<compile_context>
chip_gen: v6e
topology: v6e:2x2x1
jax: 0.10.0
libtpu: 0.0.40
codegen_flags: <defaults>
</compile_context>

<pallas_src>
import numpy as np
import jax
import jax.numpy as jnp
from jax.experimental import pallas as pl
from jax.experimental.pallas import tpu as pltpu


def _round_up(x, m):
    return ((x + m - 1) // m) * m


def _sigmoid(z):
    # sigmoid(x) == 0.5*tanh(0.5*x) + 0.5 : a single EUP op instead of exp+div.
    return 0.5 * jnp.tanh(0.5 * z) + 0.5


def _make_kernel(deeper, dK, tn, n_valid, d_pad, mxu_dtype):
    """deeper: tuple of (h_in, h_out) for LocallyConnected layers after layer 1."""

    def kernel(*refs):
        x_ref = refs[0]
        out_ref, l2_ref = refs[-2], refs[-1]
        w_refs = refs[1:-2]

        # ---- layer 1: one dense MXU matmul over all (j, k) experts ----------
        xv = x_ref[...]                       # [tn, d_pad]  (mxu_dtype)
        w1 = w_refs[0][...]                   # [d_pad, w1_cols]  (mxu_dtype)
        b1 = w_refs[1][...]                   # [1, w1_cols]  f32
        z = jnp.dot(xv, w1, preferred_element_type=jnp.float32)
        a = _sigmoid(z + b1)                  # [tn, w1_cols] f32, cols = (h, j, k)

        # ---- deeper locally-connected layers: grouped VPU compute -----------
        # Columns are element-major, so element i of every (j,k) group is the
        # contiguous lane slice [i*dK, (i+1)*dK).  No block-diag MXU waste.
        ri = 2
        for (h_in, h_out) in deeper:
            w_all = w_refs[ri][...]           # [h_in*h_out, dK] f32
            b_all = w_refs[ri + 1][...]       # [h_out, dK] f32
            ri += 2
            cols = []
            for o in range(h_out):
                acc = jnp.zeros((tn, dK), jnp.float32)
                for i in range(h_in):
                    acc = acc + (a[:, i * dK:(i + 1) * dK] *
                                 w_all[i * h_out + o:i * h_out + o + 1, :])
                cols.append(_sigmoid(acc + b_all[o:o + 1, :]))
            a = cols[0] if h_out == 1 else jnp.concatenate(cols, axis=-1)

        phi = a if deeper else a[:, :dK]      # [tn, dK] f32

        # ---- final combine on the MXU: phi @ (Wpos - Wneg).T (lane-padded) --
        wd = w_refs[-1][...]                  # [dK, d_pad]  (mxu_dtype)
        out = jnp.dot(phi.astype(mxu_dtype), wd, preferred_element_type=jnp.float32)
        out_ref[...] = out                    # lane-dense store (d_pad = k*128)

        # ---- per-tile sum of squares (row-masked against batch padding) -----
        # Padded output columns are exactly zero (wd padded with zeros), so
        # only padded batch rows need masking.  No cross-grid accumulation:
        # each grid step writes its own partial (safe with "parallel" axis).
        row = (pl.program_id(0) * tn +
               jax.lax.broadcasted_iota(jnp.int32, (tn, d_pad), 0))
        ssq = jnp.sum(jnp.where(row < n_valid, out * out, 0.0))
        l2_ref[...] = jnp.zeros((1, 8, 128), jnp.float32) + ssq

    return kernel


def _pack_weights(phi_params, w_pos, w_neg, d, d_pad, mxu_dtype):
    """One-time weight transforms (pure JAX glue, no per-step cost)."""
    K = phi_params[0][0].shape[0]
    dK = d * K
    packed = []

    # --- layer 1: zero-pad each expert's [d-1, h1] weight to d rows (zero at
    # input row j) and concatenate over (h, j, k) -> W1_big [d_pad, w1_cols].
    # Element-major (h, j, k) column order so deeper layers use contiguous
    # lane slices of width d*K.
    w1, b1 = phi_params[0]                                # [K, d-1, h1], [K, h1]
    h1 = w1.shape[-1]
    i_idx = jnp.arange(d)[None, :]                        # [1, d]  input row i
    j_idx = jnp.arange(d)[:, None]                        # [d, 1]  target j
    src = i_idx - (i_idx > j_idx).astype(jnp.int32)       # w1 row feeding input i
    src = jnp.where(i_idx == j_idx, 0, src)               # dummy idx where masked
    gathered = w1[:, src, :]                              # [K, d(j), d(i), h1]
    gathered = jnp.where((i_idx == j_idx)[None, :, :, None], 0.0, gathered)
    W1 = jnp.transpose(gathered, (2, 3, 1, 0)).reshape(d, h1 * dK)   # (i)->(h,j,k)
    b1p = jnp.broadcast_to(b1.T[:, None, :], (h1, d, K)).reshape(1, h1 * dK)
    w1_cols = _round_up(h1 * dK, 128)                     # keep intermediates lane-dense
    W1 = jnp.pad(W1, ((0, d_pad - d), (0, w1_cols - h1 * dK)))
    b1p = jnp.pad(b1p, ((0, 0), (0, w1_cols - h1 * dK)))
    packed += [W1.astype(mxu_dtype), b1p.astype(jnp.float32)]

    # --- deeper layers: small packed weight [h_in*h_out, d*K]; value at
    # (i*h_out+o, j*K+k) is w[k, i, o].  Applied on the VPU in the kernel.
    deeper = []
    for (w, b) in phi_params[1:]:
        h_in, h_out = w.shape[1], w.shape[2]
        wp = jnp.broadcast_to(jnp.transpose(w, (1, 2, 0))[:, :, None, :],
                              (h_in, h_out, d, K)).reshape(h_in * h_out, dK)
        bp = jnp.broadcast_to(b.T[:, None, :], (h_out, d, K)).reshape(h_out, dK)
        packed += [wp.astype(jnp.float32), bp.astype(jnp.float32)]
        deeper.append((h_in, h_out))

    # --- final combine weight, precomputed once and lane-padded: [dK, d_pad].
    wd = (w_pos - w_neg).T
    wd = jnp.pad(wd, ((0, 0), (0, d_pad - d)))
    packed.append(wd.astype(mxu_dtype))
    return packed, tuple(deeper)


def scalable_dag_forward(x, phi_params, w_pos, w_neg, *, block_n=1024, use_bf16=True):
    """Pallas forward of ScalableDAG_v1_3.

    Returns (out [n, d], l2_reg_store scalar), matching the PyTorch forward and
    the self.l2_reg_store side value.
    """
    n, d = x.shape
    K = phi_params[0][0].shape[0]
    dK = d * K
    mxu_dtype = jnp.bfloat16 if use_bf16 else jnp.float32
    d_pad = _round_up(d, 128)

    phi_params = [(jnp.asarray(w, jnp.float32), jnp.asarray(b, jnp.float32))
                  for (w, b) in phi_params]
    packed, deeper = _pack_weights(phi_params, jnp.asarray(w_pos, jnp.float32),
                                   jnp.asarray(w_neg, jnp.float32), d, d_pad, mxu_dtype)

    # Batch tile: large (amortize ~0.35us/step grid overhead) but keep >= 2
    # grid steps so v7x's two TensorCores split the "parallel" axis.
    n_al = _round_up(n, 16)                   # 16: bf16 sublane packing
    tn = min(block_n, n_al)
    if n_al > 16 and tn >= n_al:              # would collapse to one grid step
        tn = _round_up((n_al + 1) // 2, 16)
    n_pad = _round_up(n, tn)
    grid_n = n_pad // tn

    x = jnp.asarray(x, jnp.float32)
    x = jnp.pad(x, ((0, n_pad - n), (0, d_pad - d))).astype(mxu_dtype)

    kernel = _make_kernel(deeper, dK, tn, n, d_pad, mxu_dtype)

    x_spec = pl.BlockSpec((tn, d_pad), lambda i: (i, 0))
    # Packed weights are small: constant index_map -> DMA'd once, VMEM-resident.
    w_specs = [pl.BlockSpec(p.shape, lambda i: (0, 0)) for p in packed]
    out_specs = (pl.BlockSpec((tn, d_pad), lambda i: (i, 0)),
                 pl.BlockSpec((1, 8, 128), lambda i: (i, 0, 0)))
    out_shape = (jax.ShapeDtypeStruct((n_pad, d_pad), jnp.float32),
                 jax.ShapeDtypeStruct((grid_n, 8, 128), jnp.float32))

    out, l2_part = pl.pallas_call(
        kernel,
        out_shape=out_shape,
        grid=(grid_n,),
        in_specs=[x_spec] + w_specs,
        out_specs=out_specs,
        compiler_params=pltpu.CompilerParams(
            dimension_semantics=("parallel",),
            vmem_limit_bytes=32 * 1024 * 1024),
    )(x, *packed)

    out = out[:n, :d]
    # torch: self.l2_reg_store = sum(out**2) / x.shape[0]  (partials reduced here)
    l2 = jnp.sum(l2_part[:, 0, 0]) / n
    return out, l2


def reference_forward(x, phi_params, w_pos, w_neg):
    """Pure-JAX reference replicating the PyTorch forward exactly."""
    n, d = x.shape
    K = phi_params[0][0].shape[0]
    phis = []
    for j in range(d):
        xj = jnp.concatenate([x[:, :j], x[:, j + 1:]], axis=1)   # [n, d-1]
        a = jnp.broadcast_to(xj[:, None, :], (n, K, d - 1))      # [n, K, d-1]
        for (w, b) in phi_params:
            a = jax.nn.sigmoid(jnp.einsum('nki,kio->nko', a, w) + b[None, :, :])
        phis.append(a[:, :, 0])                                  # [n, K]
    phi = jnp.stack(phis, axis=1).reshape(n, d * K)              # [n, d*K]
    out = phi @ (w_pos - w_neg).T                                # [n, d]
    l2 = jnp.sum(out ** 2) / n
    return out, l2


if __name__ == "__main__":
    # Small shapes consistent with the module: d variables, dims = [d-1, h, 1].
    n, d, K = 512, 8, 4
    dims = [d - 1, 16, 1]
    assert len(dims) >= 2 and dims[-1] == 1 and dims[0] == d - 1

    key = jax.random.PRNGKey(0)
    keys = jax.random.split(key, 2 * (len(dims) - 1) + 3)

    # LocallyConnected(K, dims[l], dims[l+1]) params: weight [K, in, out], bias [K, out].
    phi_params = []
    for l in range(len(dims) - 1):
        w = 0.3 * jax.random.normal(keys[2 * l], (K, dims[l], dims[l + 1]), jnp.float32)
        b = 0.1 * jax.random.normal(keys[2 * l + 1], (K, dims[l + 1]), jnp.float32)
        phi_params.append((w, b))

    # fc1_pos / fc1_neg are zero-initialized in PyTorch __init__; use small
    # deterministic non-negative values (respecting the (0, None) bounds) so the
    # kernel output is non-trivial.
    w_pos = 0.05 * jax.random.uniform(keys[-3], (d, d * K), jnp.float32)
    w_neg = 0.05 * jax.random.uniform(keys[-2], (d, d * K), jnp.float32)

    x = jax.random.normal(keys[-1], (n, d), jnp.float32)

    ref_out, ref_l2 = reference_forward(x, phi_params, w_pos, w_neg)

    # Tight check with f32 MXU operands.
    out32, l2_32 = scalable_dag_forward(x, phi_params, w_pos, w_neg, use_bf16=False)
    out32 = jax.block_until_ready(out32)
    np.testing.assert_allclose(np.asarray(out32), np.asarray(ref_out), rtol=1e-3, atol=1e-3)
    np.testing.assert_allclose(float(l2_32), float(ref_l2), rtol=1e-3, atol=1e-3)

    # Default fast path: bf16 MXU operands, f32 accumulation / VPU / EUP.
    out, l2 = scalable_dag_forward(x, phi_params, w_pos, w_neg, use_bf16=True)
    out = jax.block_until_ready(out)
    l2 = jax.block_until_ready(l2)
    np.testing.assert_allclose(np.asarray(out), np.asarray(ref_out), rtol=2e-2, atol=2e-2)
    np.testing.assert_allclose(float(l2), float(ref_l2), rtol=2e-2, atol=2e-2)

    # TODO(synk): h_func()/fc1_l1_reg()/fc1_to_adj() (trace_expm adjacency
    # utilities) are training-time helpers, not part of forward(), and are not
    # implemented here.
    print("KERNEL_OK")
</pallas_src>

<mosaic_0001>
module attributes {stable_mosaic.version = 11 : i64} {
  func.func @kernel(%arg0: i32, %arg1: memref<256x128xf32, #tpu.memory_space<vmem>>, %arg2: memref<128x512xf32, #tpu.memory_space<vmem>>, %arg3: memref<1x512xf32, #tpu.memory_space<vmem>>, %arg4: memref<16x32xf32, #tpu.memory_space<vmem>>, %arg5: memref<1x32xf32, #tpu.memory_space<vmem>>, %arg6: memref<32x128xf32, #tpu.memory_space<vmem>>, %arg7: memref<256x128xf32, #tpu.memory_space<vmem>>, %arg8: memref<1x8x128xf32, #tpu.memory_space<vmem>>) attributes {dimension_semantics = [#tpu.dimension_semantics<parallel>], iteration_bounds = array<i64: 2>, scalar_prefetch = 0 : i64, scratch_operands = 0 : i64, tpu.core_type = #tpu.core_type<tc>, window_params = [{transform_indices = @transform_0, window_bounds = array<i64: 256, 128>}, {pipeline_mode = #tpu.pipeline_mode<synchronous>, transform_indices = @transform_1, window_bounds = array<i64: 128, 512>}, {pipeline_mode = #tpu.pipeline_mode<synchronous>, transform_indices = @transform_2, window_bounds = array<i64: 1, 512>}, {pipeline_mode = #tpu.pipeline_mode<synchronous>, transform_indices = @transform_3, window_bounds = array<i64: 16, 32>}, {pipeline_mode = #tpu.pipeline_mode<synchronous>, transform_indices = @transform_4, window_bounds = array<i64: 1, 32>}, {pipeline_mode = #tpu.pipeline_mode<synchronous>, transform_indices = @transform_5, window_bounds = array<i64: 32, 128>}, {transform_indices = @transform_6, window_bounds = array<i64: 256, 128>}, {transform_indices = @transform_7, window_bounds = array<i64: 1, 8, 128>}]} {
    %c0 = arith.constant 0 : index
    %c0_0 = arith.constant 0 : index
    %0 = vector.load %arg1[%c0, %c0_0] : memref<256x128xf32, #tpu.memory_space<vmem>>, vector<256x128xf32>
    %c0_1 = arith.constant 0 : index
    %c0_2 = arith.constant 0 : index
    %1 = vector.load %arg2[%c0_1, %c0_2] : memref<128x512xf32, #tpu.memory_space<vmem>>, vector<128x512xf32>
    %c0_3 = arith.constant 0 : index
    %c0_4 = arith.constant 0 : index
    %2 = vector.load %arg3[%c0_3, %c0_4] : memref<1x512xf32, #tpu.memory_space<vmem>>, vector<1x512xf32>
    %cst = arith.constant dense<0.000000e+00> : vector<256x512xf32>
    %3 = tpu.matmul %0, %1, %cst {dimension_numbers = #tpu.dot_dimension_numbers<[1], [0], [0], [1], [0, 0, 1, 1], [], []>} : vector<256x128xf32>, vector<128x512xf32>, vector<256x512xf32> -> vector<256x512xf32>
    %4 = vector.broadcast %2 : vector<1x512xf32> to vector<256x512xf32>
    %5 = arith.addf %3, %4 : vector<256x512xf32>
    %cst_5 = arith.constant 5.000000e-01 : f32
    %6 = vector.broadcast %cst_5 : f32 to vector<256x512xf32>
    %7 = arith.mulf %6, %5 : vector<256x512xf32>
    %8 = math.tanh %7 : vector<256x512xf32>
    %cst_6 = arith.constant 5.000000e-01 : f32
    %9 = vector.broadcast %cst_6 : f32 to vector<256x512xf32>
    %10 = arith.mulf %9, %8 : vector<256x512xf32>
    %cst_7 = arith.constant 5.000000e-01 : f32
    %11 = vector.broadcast %cst_7 : f32 to vector<256x512xf32>
    %12 = arith.addf %10, %11 : vector<256x512xf32>
    %c0_8 = arith.constant 0 : index
    %c0_9 = arith.constant 0 : index
    %13 = vector.load %arg4[%c0_8, %c0_9] : memref<16x32xf32, #tpu.memory_space<vmem>>, vector<16x32xf32>
    %c0_10 = arith.constant 0 : index
    %c0_11 = arith.constant 0 : index
    %14 = vector.load %arg5[%c0_10, %c0_11] : memref<1x32xf32, #tpu.memory_space<vmem>>, vector<1x32xf32>
    %cst_12 = arith.constant 0.000000e+00 : f32
    %15 = vector.broadcast %cst_12 : f32 to vector<256x32xf32>
    %16 = vector.extract_strided_slice %12 {offsets = [0, 0], sizes = [256, 32], strides = [1, 1]} : vector<256x512xf32> to vector<256x32xf32>
    %17 = vector.extract_strided_slice %13 {offsets = [0, 0], sizes = [1, 32], strides = [1, 1]} : vector<16x32xf32> to vector<1x32xf32>
    %18 = vector.broadcast %17 : vector<1x32xf32> to vector<256x32xf32>
    %19 = arith.mulf %16, %18 : vector<256x32xf32>
    %20 = arith.addf %15, %19 : vector<256x32xf32>
    %21 = vector.extract_strided_slice %12 {offsets = [0, 32], sizes = [256, 32], strides = [1, 1]} : vector<256x512xf32> to vector<256x32xf32>
    %22 = vector.extract_strided_slice %13 {offsets = [1, 0], sizes = [1, 32], strides = [1, 1]} : vector<16x32xf32> to vector<1x32xf32>
    %23 = vector.broadcast %22 : vector<1x32xf32> to vector<256x32xf32>
    %24 = arith.mulf %21, %23 : vector<256x32xf32>
    %25 = arith.addf %20, %24 : vector<256x32xf32>
    %26 = vector.extract_strided_slice %12 {offsets = [0, 64], sizes = [256, 32], strides = [1, 1]} : vector<256x512xf32> to vector<256x32xf32>
    %27 = vector.extract_strided_slice %13 {offsets = [2, 0], sizes = [1, 32], strides = [1, 1]} : vector<16x32xf32> to vector<1x32xf32>
    %28 = vector.broadcast %27 : vector<1x32xf32> to vector<256x32xf32>
    %29 = arith.mulf %26, %28 : vector<256x32xf32>
    %30 = arith.addf %25, %29 : vector<256x32xf32>
    %31 = vector.extract_strided_slice %12 {offsets = [0, 96], sizes = [256, 32], strides = [1, 1]} : vector<256x512xf32> to vector<256x32xf32>
    %32 = vector.extract_strided_slice %13 {offsets = [3, 0], sizes = [1, 32], strides = [1, 1]} : vector<16x32xf32> to vector<1x32xf32>
    %33 = vector.broadcast %32 : vector<1x32xf32> to vector<256x32xf32>
    %34 = arith.mulf %31, %33 : vector<256x32xf32>
    %35 = arith.addf %30, %34 : vector<256x32xf32>
    %36 = vector.extract_strided_slice %12 {offsets = [0, 128], sizes = [256, 32], strides = [1, 1]} : vector<256x512xf32> to vector<256x32xf32>
    %37 = vector.extract_strided_slice %13 {offsets = [4, 0], sizes = [1, 32], strides = [1, 1]} : vector<16x32xf32> to vector<1x32xf32>
    %38 = vector.broadcast %37 : vector<1x32xf32> to vector<256x32xf32>
    %39 = arith.mulf %36, %38 : vector<256x32xf32>
    %40 = arith.addf %35, %39 : vector<256x32xf32>
    %41 = vector.extract_strided_slice %12 {offsets = [0, 160], sizes = [256, 32], strides = [1, 1]} : vector<256x512xf32> to vector<256x32xf32>
    %42 = vector.extract_strided_slice %13 {offsets = [5, 0], sizes = [1, 32], strides = [1, 1]} : vector<16x32xf32> to vector<1x32xf32>
    %43 = vector.broadcast %42 : vector<1x32xf32> to vector<256x32xf32>
    %44 = arith.mulf %41, %43 : vector<256x32xf32>
    %45 = arith.addf %40, %44 : vector<256x32xf32>
    %46 = vector.extract_strided_slice %12 {offsets = [0, 192], sizes = [256, 32], strides = [1, 1]} : vector<256x512xf32> to vector<256x32xf32>
    %47 = vector.extract_strided_slice %13 {offsets = [6, 0], sizes = [1, 32], strides = [1, 1]} : vector<16x32xf32> to vector<1x32xf32>
    %48 = vector.broadcast %47 : vector<1x32xf32> to vector<256x32xf32>
    %49 = arith.mulf %46, %48 : vector<256x32xf32>
    %50 = arith.addf %45, %49 : vector<256x32xf32>
    %51 = vector.extract_strided_slice %12 {offsets = [0, 224], sizes = [256, 32], strides = [1, 1]} : vector<256x512xf32> to vector<256x32xf32>
    %52 = vector.extract_strided_slice %13 {offsets = [7, 0], sizes = [1, 32], strides = [1, 1]} : vector<16x32xf32> to vector<1x32xf32>
    %53 = vector.broadcast %52 : vector<1x32xf32> to vector<256x32xf32>
    %54 = arith.mulf %51, %53 : vector<256x32xf32>
    %55 = arith.addf %50, %54 : vector<256x32xf32>
    %56 = vector.extract_strided_slice %12 {offsets = [0, 256], sizes = [256, 32], strides = [1, 1]} : vector<256x512xf32> to vector<256x32xf32>
    %57 = vector.extract_strided_slice %13 {offsets = [8, 0], sizes = [1, 32], strides = [1, 1]} : vector<16x32xf32> to vector<1x32xf32>
    %58 = vector.broadcast %57 : vector<1x32xf32> to vector<256x32xf32>
    %59 = arith.mulf %56, %58 : vector<256x32xf32>
    %60 = arith.addf %55, %59 : vector<256x32xf32>
    %61 = vector.extract_strided_slice %12 {offsets = [0, 288], sizes = [256, 32], strides = [1, 1]} : vector<256x512xf32> to vector<256x32xf32>
    %62 = vector.extract_strided_slice %13 {offsets = [9, 0], sizes = [1, 32], strides = [1, 1]} : vector<16x32xf32> to vector<1x32xf32>
    %63 = vector.broadcast %62 : vector<1x32xf32> to vector<256x32xf32>
    %64 = arith.mulf %61, %63 : vector<256x32xf32>
    %65 = arith.addf %60, %64 : vector<256x32xf32>
    %66 = vector.extract_strided_slice %12 {offsets = [0, 320], sizes = [256, 32], strides = [1, 1]} : vector<256x512xf32> to vector<256x32xf32>
    %67 = vector.extract_strided_slice %13 {offsets = [10, 0], sizes = [1, 32], strides = [1, 1]} : vector<16x32xf32> to vector<1x32xf32>
    %68 = vector.broadcast %67 : vector<1x32xf32> to vector<256x32xf32>
    %69 = arith.mulf %66, %68 : vector<256x32xf32>
    %70 = arith.addf %65, %69 : vector<256x32xf32>
    %71 = vector.extract_strided_slice %12 {offsets = [0, 352], sizes = [256, 32], strides = [1, 1]} : vector<256x512xf32> to vector<256x32xf32>
    %72 = vector.extract_strided_slice %13 {offsets = [11, 0], sizes = [1, 32], strides = [1, 1]} : vector<16x32xf32> to vector<1x32xf32>
    %73 = vector.broadcast %72 : vector<1x32xf32> to vector<256x32xf32>
    %74 = arith.mulf %71, %73 : vector<256x32xf32>
    %75 = arith.addf %70, %74 : vector<256x32xf32>
    %76 = vector.extract_strided_slice %12 {offsets = [0, 384], sizes = [256, 32], strides = [1, 1]} : vector<256x512xf32> to vector<256x32xf32>
    %77 = vector.extract_strided_slice %13 {offsets = [12, 0], sizes = [1, 32], strides = [1, 1]} : vector<16x32xf32> to vector<1x32xf32>
    %78 = vector.broadcast %77 : vector<1x32xf32> to vector<256x32xf32>
    %79 = arith.mulf %76, %78 : vector<256x32xf32>
    %80 = arith.addf %75, %79 : vector<256x32xf32>
    %81 = vector.extract_strided_slice %12 {offsets = [0, 416], sizes = [256, 32], strides = [1, 1]} : vector<256x512xf32> to vector<256x32xf32>
    %82 = vector.extract_strided_slice %13 {offsets = [13, 0], sizes = [1, 32], strides = [1, 1]} : vector<16x32xf32> to vector<1x32xf32>
    %83 = vector.broadcast %82 : vector<1x32xf32> to vector<256x32xf32>
    %84 = arith.mulf %81, %83 : vector<256x32xf32>
    %85 = arith.addf %80, %84 : vector<256x32xf32>
    %86 = vector.extract_strided_slice %12 {offsets = [0, 448], sizes = [256, 32], strides = [1, 1]} : vector<256x512xf32> to vector<256x32xf32>
    %87 = vector.extract_strided_slice %13 {offsets = [14, 0], sizes = [1, 32], strides = [1, 1]} : vector<16x32xf32> to vector<1x32xf32>
    %88 = vector.broadcast %87 : vector<1x32xf32> to vector<256x32xf32>
    %89 = arith.mulf %86, %88 : vector<256x32xf32>
    %90 = arith.addf %85, %89 : vector<256x32xf32>
    %91 = vector.extract_strided_slice %12 {offsets = [0, 480], sizes = [256, 32], strides = [1, 1]} : vector<256x512xf32> to vector<256x32xf32>
    %92 = vector.extract_strided_slice %13 {offsets = [15, 0], sizes = [1, 32], strides = [1, 1]} : vector<16x32xf32> to vector<1x32xf32>
    %93 = vector.broadcast %92 : vector<1x32xf32> to vector<256x32xf32>
    %94 = arith.mulf %91, %93 : vector<256x32xf32>
    %95 = arith.addf %90, %94 : vector<256x32xf32>
    %96 = vector.broadcast %14 : vector<1x32xf32> to vector<256x32xf32>
    %97 = arith.addf %95, %96 : vector<256x32xf32>
    %cst_13 = arith.constant 5.000000e-01 : f32
    %98 = vector.broadcast %cst_13 : f32 to vector<256x32xf32>
    %99 = arith.mulf %98, %97 : vector<256x32xf32>
    %100 = math.tanh %99 : vector<256x32xf32>
    %cst_14 = arith.constant 5.000000e-01 : f32
    %101 = vector.broadcast %cst_14 : f32 to vector<256x32xf32>
    %102 = arith.mulf %101, %100 : vector<256x32xf32>
    %cst_15 = arith.constant 5.000000e-01 : f32
    %103 = vector.broadcast %cst_15 : f32 to vector<256x32xf32>
    %104 = arith.addf %102, %103 : vector<256x32xf32>
    %c0_16 = arith.constant 0 : index
    %c0_17 = arith.constant 0 : index
    %105 = vector.load %arg6[%c0_16, %c0_17] : memref<32x128xf32, #tpu.memory_space<vmem>>, vector<32x128xf32>
    %cst_18 = arith.constant dense<0.000000e+00> : vector<256x128xf32>
    %106 = tpu.matmul %104, %105, %cst_18 {dimension_numbers = #tpu.dot_dimension_numbers<[1], [0], [0], [1], [0, 0, 1, 1], [], []>} : vector<256x32xf32>, vector<32x128xf32>, vector<256x128xf32> -> vector<256x128xf32>
    %c0_19 = arith.constant 0 : index
    %c0_20 = arith.constant 0 : index
    %107 = vector.load %arg7[%c0_19, %c0_20] : memref<256x128xf32, #tpu.memory_space<vmem>>, vector<256x128xf32>
    tpu.vector_store %arg7[%c0_19, %c0_20], %106 {strides = array<i32>} : memref<256x128xf32, #tpu.memory_space<vmem>>, vector<256x128xf32>,
    %c256_i32 = arith.constant 256 : i32
    %108 = arith.muli %arg0, %c256_i32 : i32
    %109 = tpu.iota {dimensions = array<i32: 0>} : vector<256x128xi32>
    %110 = vector.broadcast %108 : i32 to vector<256x128xi32>
    %111 = arith.addi %110, %109 : vector<256x128xi32>
    %c512_i32 = arith.constant 512 : i32
    %112 = vector.broadcast %c512_i32 : i32 to vector<256x128xi32>
    %113 = arith.cmpi slt, %111, %112 : vector<256x128xi32>
    %114 = arith.mulf %106, %106 : vector<256x128xf32>
    %cst_21 = arith.constant 0.000000e+00 : f32
    %115 = vector.broadcast %cst_21 : f32 to vector<256x128xf32>
    %116 = arith.select %113, %114, %115 : vector<256x128xi1>, vector<256x128xf32>
    %117 = vector.shape_cast %116 : vector<256x128xf32> to vector<1x256x128xf32>
    %cst_22 = arith.constant dense<0.000000e+00> : vector<1xf32>
    %118 = vector.multi_reduction <add>, %117, %cst_22 [1, 2] : vector<1x256x128xf32> to vector<1xf32>
    %119 = vector.shape_cast %118 : vector<1xf32> to vector<1x1x1xf32>
    %120 = vector.extract %119[0, 0, 0] : f32 from vector<1x1x1xf32>
    %cst_23 = arith.constant 0.000000e+00 : f32
    %121 = vector.broadcast %cst_23 : f32 to vector<1x8x128xf32>
    %122 = vector.broadcast %120 : f32 to vector<1x8x128xf32>
    %123 = arith.addf %121, %122 : vector<1x8x128xf32>
    %c0_24 = arith.constant 0 : index
    %c0_25 = arith.constant 0 : index
    %c0_26 = arith.constant 0 : index
    %124 = vector.load %arg8[%c0_24, %c0_25, %c0_26] : memref<1x8x128xf32, #tpu.memory_space<vmem>>, vector<1x8x128xf32>
    tpu.vector_store %arg8[%c0_24, %c0_25, %c0_26], %123 {strides = array<i32>} : memref<1x8x128xf32, #tpu.memory_space<vmem>>, vector<1x8x128xf32>,
    return
  }
  func.func @transform_0(%arg0: i32) -> (i32, i32) {
    %c0_i32 = arith.constant 0 : i32
    %c0_i32_0 = arith.constant 0 : i32
    return %arg0, %c0_i32 : i32, i32
  }
  func.func @transform_1(%arg0: i32) -> (i32, i32) {
    %c0_i32 = arith.constant 0 : i32
    %c0_i32_0 = arith.constant 0 : i32
    %c0_i32_1 = arith.constant 0 : i32
    return %c0_i32, %c0_i32_0 : i32, i32
  }
  func.func @transform_2(%arg0: i32) -> (i32, i32) {
    %c0_i32 = arith.constant 0 : i32
    %c0_i32_0 = arith.constant 0 : i32
    %c0_i32_1 = arith.constant 0 : i32
    return %c0_i32, %c0_i32_0 : i32, i32
  }
  func.func @transform_3(%arg0: i32) -> (i32, i32) {
    %c0_i32 = arith.constant 0 : i32
    %c0_i32_0 = arith.constant 0 : i32
    %c0_i32_1 = arith.constant 0 : i32
    return %c0_i32, %c0_i32_0 : i32, i32
  }
  func.func @transform_4(%arg0: i32) -> (i32, i32) {
    %c0_i32 = arith.constant 0 : i32
    %c0_i32_0 = arith.constant 0 : i32
    %c0_i32_1 = arith.constant 0 : i32
    return %c0_i32, %c0_i32_0 : i32, i32
  }
  func.func @transform_5(%arg0: i32) -> (i32, i32) {
    %c0_i32 = arith.constant 0 : i32
    %c0_i32_0 = arith.constant 0 : i32
    %c0_i32_1 = arith.constant 0 : i32
    return %c0_i32, %c0_i32_0 : i32, i32
  }
  func.func @transform_6(%arg0: i32) -> (i32, i32) {
    %c0_i32 = arith.constant 0 : i32
    %c0_i32_0 = arith.constant 0 : i32
    return %arg0, %c0_i32 : i32, i32
  }
  func.func @transform_7(%arg0: i32) -> (i32, i32, i32) {
    %c0_i32 = arith.constant 0 : i32
    %c0_i32_0 = arith.constant 0 : i32
    %c0_i32_1 = arith.constant 0 : i32
    return %arg0, %c0_i32, %c0_i32_0 : i32, i32, i32
  }
}

</mosaic_0001>

<bundles_post_ra>
// kernel: tpu_custom_call.1
= control target key start
LH: loop header
LB: loop body
LE: loop exit
PB: predicated region body
PF: predicated region fallthrough
CT: control target
= control target key end

     0   :  { %s9462_s0 = inlined_call_operand.hbm [shape: f32[512,128], index: 0, kind: input, shape index: {}]   ;;  %s9463_s1 = inlined_call_operand.hbm [shape: f32[128,512], index: 1, kind: input, shape index: {}]   ;;  %s9464_s2 = inlined_call_operand.hbm [shape: f32[1,512], index: 2, kind: input, shape index: {}]   ;;  %s9465_s3 = inlined_call_operand.hbm [shape: f32[16,32], index: 3, kind: input, shape index: {}]   ;;  %s9466_s4 = inlined_call_operand.vmem [shape: f32[1,32], index: 4, kind: input, shape index: {}]   ;;  %s9467_s5 = inlined_call_operand.hbm [shape: f32[32,128], index: 5, kind: input, shape index: {}]   ;;  %s9468_s6 = inlined_call_operand.hbm [shape: f32[512,128], index: 6, kind: output, shape index: {0}]   ;;  %s9469_s7 = inlined_call_operand.hbm [shape: f32[2,8,128], index: 7, kind: output, shape index: {1}]  }
   0x1   :  { %9599 = sst [smem:[#allocation190_spill]] %s9463_s1 }
   0x2   :  { %13 = vsyncpa [#allocation3], 0 }
   0x3   :  { %15 = vsyncpa [#allocation3 + $0x1], 0 }
   0x4   :  { %16 = vsyncpa [#allocation6], 0 }
   0x5   :  { %17 = vsyncpa [#allocation9], 0 }
   0x6   :  { %18 = vsyncpa [#allocation4], 0 }
   0x7   :  { %20 = vsyncpa [#allocation4 + $0x1], 0 }
   0x8   :  { %21 = vsyncpa [#allocation13], 0 }
   0x9   :  { %23 = vsyncpa [#allocation13 + $0x1], 0  ;;  %s5997_s24 = smov 0   ;;  %s5999_s25 = smov 0  }
   0xa   :  { %s6001_s26 = smov 0   ;;  %s6003_s27 = smov 0  }
   0xb LB: > { %s6018_s28 = sadd.s32 4294967295, %s5938_s27   ;;  %s5090_s29 = sadd.s32 4294967294, %s5938_s27   ;;  %s5938_s27 = sphi %s6003_s27, %s10137_s27   ;;  %s5934_s26 = sphi %s6001_s26, %s10136_s26   ;;  %s5930_s25 = sphi %s5999_s25, %s10135_s25   ;;  %s5926_s24 = sphi %s5997_s24, %s10134_s24  }
   0xc   : > { %p49_p0 = scmp.ne.s32.totalorder %s5930_s25, %s5926_s24  ;;  %p9470_p1 = scmp.eq.s32.totalorder %s6018_s28, 0 }
   0xd   : > { %p184_p3 = scmp.eq.s32.totalorder %s5090_s29, 1  ;;  %p5091_p5 = scmp.ge.s32.totalorder %s5938_s27, 1 }
   0xe   : > { %p6027_p4 = por %p9470_p1, %p49_p0  ;;  %p217_p7 = scmp.lt.s32.totalorder %s5938_s27, 3 }
   0xf   : > { %p6032_p6 = por %p184_p3, %p49_p0  ;;  %s5940_s10 = smov [#allocation5]  }
  0x10   : > { %s9600_s30 = scalar_select %p6027_p4, 1, 0 }
  0x11   : > { %s9601_s8 = scalar_select %p6032_p6, 1, 0 }
  0x12   : > { %p6037_p8 = pnand %p5091_p5, %p217_p7  ;;  %s229_s11 = sshll.u32 %s5940_s10, 4  ;;  %s230_s11 = int_to_ptr.vmem [resolvable:$true] %s229_s11 }
  0x13   : > { %s5941_s13 = smov [#allocation8]   ;;  %s5715_s15 = scalar_lea.vmem %s230_s11, 8192 }
  0x14   : > { %s9602_s9 = scalar_select %p6037_p8, 1, 0 }
  0x15   : > { %p5299_p9 = pneg %p6037_p8  ;;  %s253_s14 = sshll.u32 %s5941_s13, 4  ;;  %s254_s14 = int_to_ptr.vmem [resolvable:$true] %s253_s14 }
  0x16   : > { %p5716_p13 = scmp.ne.s32.totalorder %s230_s11, %s5715_s15  ;;  %p5723_p5 = scmp.lt.s32.totalorder %s230_s11, %s230_s11 }
  0x17   : > { %p6046_p11 = pnand %p5299_p9, %p9470_p1  ;;  %p5724_p7 = scmp.lt.s32.totalorder %s5715_s15, %s5715_s15 }
  0x19   : > { %p5706_p12 = pneg %p6046_p11  ;;  %p5725_p10 = por %p5724_p7, %p5723_p5 }
  0x1b   : > { %p5718_p0 = pnand %p5716_p13, %p5706_p12 }
  0x1d   : > { %p5719_p3 = pneg %p5718_p0 }
  0x1f   : > { %p5726_p9 = pnand %p5725_p10, %p5719_p3 }
  0x21   : > { %5729 = shalt.err (!%p5726_p9)
}
  0x22   : > { %s5942_s16 = smov 512   ;;  %s5943_s17 = smov 32  }
  0x23   : > { %s9604_s1 = sld [smem:[#allocation190_spill]]  ;;  %s5741_s20 = scalar_lea.vmem %s254_s14, 256 }
  0x24   : > { %p5742_p1 = scmp.ne.s32.totalorder %s254_s14, %s5741_s20  ;;  %p5749_p2 = scmp.lt.s32.totalorder %s254_s14, %s254_s14 }
  0x25   : > { %p5750_p6 = scmp.lt.s32.totalorder %s5741_s20, %s5741_s20 }
  0x26   : > { %p5744_p13 = pnand %p5742_p1, %p5706_p12 }
  0x27   : > { %p5751_p5 = por %p5750_p6, %p5749_p2 }
  0x28   : > { %p5745_p0 = pneg %p5744_p13 }
  0x29   : > { %5302 = dma.hbm_to_vmem [thread:$0]  (!%p6046_p11), %s9604_s1, 8192, %s230_s11, [#allocation6], %s5942_s16, %s5942_s16, %s5943_s17  }
  0x2a   : > { %p5752_p10 = pnand %p5751_p5, %p5745_p0 }
  0x2c   : > { %5755 = shalt.err (!%p5752_p10)
}
  0x2d   : > { %s9473_s21 = smov 128   ;;  %s9474_s22 = smov 8  }
  0x2e   : > { %5308 = dma.hbm_to_vmem [thread:$0]  (!%p6046_p11), %s9465_s3, 256, %s254_s14, [#allocation9], %s9473_s21, %s9473_s21, %s9474_s22  }
  0x2f   : > { %s5946_s10 = smov [#allocation7]   ;;  %s5947_s13 = smov [#allocation10]  }
  0x30   : > { %s243_s11 = sshll.u32 %s5946_s10, 4  ;;  %s269_s15 = sshll.u32 %s5947_s13, 4  ;;  %s244_s11 = int_to_ptr.vmem [resolvable:$true] %s243_s11  ;;  %s270_s15 = int_to_ptr.vmem [resolvable:$true] %s269_s15 }
  0x31   : > { %s5767_s16 = scalar_lea.vmem %s244_s11, 64  ;;  %p5775_p3 = scmp.lt.s32.totalorder %s244_s11, %s244_s11 }
  0x32   : > { %p5768_p1 = scmp.ne.s32.totalorder %s244_s11, %s5767_s16  ;;  %p5776_p7 = scmp.lt.s32.totalorder %s5767_s16, %s5767_s16 }
  0x34   : > { %p5770_p2 = pnand %p5768_p1, %p5706_p12  ;;  %p5777_p9 = por %p5776_p7, %p5775_p3 }
  0x36   : > { %p5771_p6 = pneg %p5770_p2 }
  0x38   : > { %p5778_p13 = pnand %p5777_p9, %p5771_p6 }
  0x3a   : > { %5781 = shalt.err (!%p5778_p13)
}
  0x3b   : > { %5305 = dma.hbm_to_vmem [thread:$0]  (!%p6046_p11), %s9464_s2, 64, %s244_s11, [#allocation6]  }
  0x3c   : > { %s5793_s18 = scalar_lea.vmem %s270_s15, 512  ;;  %p5801_p1 = scmp.lt.s32.totalorder %s270_s15, %s270_s15 }
  0x3d   : > { %p5794_p0 = scmp.ne.s32.totalorder %s270_s15, %s5793_s18  ;;  %p5802_p2 = scmp.lt.s32.totalorder %s5793_s18, %s5793_s18 }
  0x3f   : > { %p5796_p5 = pnand %p5794_p0, %p5706_p12  ;;  %p5803_p4 = por %p5802_p2, %p5801_p1 }
  0x41   : > { %p5797_p10 = pneg %p5796_p5 }
  0x43   : > { %p5804_p8 = pnand %p5803_p4, %p5797_p10 }
  0x45   : > { %5807 = shalt.err (!%p5804_p8)
}
  0x46   : > { %5311 = dma.hbm_to_vmem [thread:$0]  (!%p6046_p11), %s9467_s5, 512, %s270_s15, [#allocation9], %s9473_s21, %s9473_s21, %s9474_s22  }
  0x47   : > { %s6091_s23 = sadd.s32 1, %s5938_s27   ;;  %s36_s29 = sadd.s32 1, %s5934_s26 }
  0x48   : > { %s33_s12 = ssub.s32 %s5938_s27, %s6091_s23  ;;  %p43_p8 = scmp.ne.s32.totalorder %s5934_s26, %s5930_s25 }
  0x49   : > { %p34_p4 = scmp.eq.s32.totalorder %s33_s12, 0  ;;  %p44_p12 = scmp.eq.s32.totalorder %s5938_s27, 0 }
  0x4a   : > { %p9605_p3 = scmp.eq.s32.totalorder %s6018_s28, 1  ;;  %p5327_p9 = scmp.lt.s32.totalorder %s5938_s27, 2 }
  0x4b   : > { %s6100_s10 = scalar_select %p34_p4, %s5934_s26, %s36_s29  }
  0x4c   : > { %p45_p6 = por %p44_p12, %p43_p8  ;;  %p6104_p7 = por %p9605_p3, %p43_p8 }
  0x4d   : > { %s283_s13 = sand.u32 1, %s5934_s26   ;;  %s5149_s15 = sshll.u32 %s5938_s27, 12 }
  0x4e   : > { %s9606_s11 = scalar_select %p6104_p7, 1, 0 }
  0x4f   : > { %s5097_s16 = sshll.u32 %s283_s13, 8  ;;  %s6114_s18 = scalar_lea.hbm %s9462_s0, %s5149_s15 }
  0x50   : > { %s287_s19 = scalar_lea.vmem [#allocation2], %s5097_s16  ;;  %p6118_p11 = pnand %p5327_p9, %p45_p6 }
  0x51   : > { %s294_s20 = sshll.u32 %s287_s19, 4  ;;  %s6122_s29 = scalar_lea.sflag [#allocation3], %s283_s13  ;;  %s6116_s20 = int_to_ptr.vmem [resolvable:$true] %s294_s20 }
  0x52   : > { %s5808_s21 = scalar_lea.hbm %s6114_s18, 4096  ;;  %p5810_p0 = pneg %p6118_p11 }
  0x53   : > { %p5809_p13 = scmp.ne.s32.totalorder %s6114_s18, %s5808_s21  ;;  %s5813_s16 = scalar_lea.hbm %s9462_s0, 8192 }
  0x54   : > { %p5814_p1 = scmp.lt.s32.totalorder %s6114_s18, %s9462_s0  ;;  %p5815_p2 = scmp.lt.s32.totalorder %s5813_s16, %s5808_s21 }
  0x55   : > { %p5811_p5 = pnand %p5810_p0, %p5809_p13 }
  0x56   : > { %p5816_p4 = por %p5815_p2, %p5814_p1 }
  0x57   : > { %p5812_p10 = pneg %p5811_p5 }
  0x59   : > { %p5817_p8 = pnand %p5816_p4, %p5812_p10 }
  0x5b   : > { %5820 = shalt.err (!%p5817_p8)
}
  0x5c   : > { %s5821_s13 = scalar_lea.vmem %s6116_s20, 4096  ;;  %s5948_s22 = smov [#allocation2]  }
  0x5d   : > { %p5822_p12 = scmp.ne.s32.totalorder %s6116_s20, %s5821_s13  ;;  %s5826_s1 = sshll.u32 %s5948_s22, 4  ;;  %s5827_s1 = int_to_ptr.vmem [resolvable:$false] %s5826_s1 }
  0x5e   : > { %s5828_s15 = scalar_lea.vmem %s5827_s1, 8192  ;;  %p5829_p9 = scmp.lt.s32.totalorder %s6116_s20, %s5827_s1 }
  0x5f   : > { %p5824_p6 = pnand %p5822_p12, %p5810_p0  ;;  %p5830_p13 = scmp.lt.s32.totalorder %s5828_s15, %s5821_s13 }
  0x61   : > { %p5825_p3 = pneg %p5824_p6  ;;  %p5831_p5 = por %p5830_p13, %p5829_p9 }
  0x63   : > { %p5832_p7 = pnand %p5831_p5, %p5825_p3 }
  0x65   : > { %5835 = shalt.err (!%p5832_p7)
}
  0x66   : > { %s9608_s21 = smov 8   ;;  %s9609_s14 = smov 128  }
  0x67   : > { %5315 = dma.hbm_to_vmem [thread:$0]  (!%p6118_p11), %s6114_s18, 4096, %s6116_s20, %s6122_s29, %s9609_s14, %s9609_s14, %s9608_s21  }
  0x68   : > { %p9610_p0 = scmp.ne.s32.totalorder %s9602_s9, 0 }
  0x6a   : > { %306 = sbr.rel (%p9610_p0) target bundleno = 1710 (0x6ae), region = 44 }
  0x6f   : > { %s6149_s22 = sand.u32 1, %s5930_s25   ;;  %p9611_p7 = scmp.ne.s32.totalorder %s9600_s30, 0 }
  0x70   : > { %s5101_s1 = sshll.u32 %s6149_s22, 8  ;;  %s309_s16 = scalar_lea.sflag [#allocation3], %s6149_s22 }
  0x71   : > { %s6155_s12 = scalar_lea.vmem [#allocation2], %s5101_s1 }
  0x72   : > { %5905 = dma.done.wait (%p9611_p7), %s309_s16, 4096  }
  0x73   : > { %5907 = vsyncadd (%p9611_p7), %s309_s16, 4294963200  ;;  %p9612_p11 = scmp.eq.s32.totalorder %s6018_s28, 0 }
  0x75   : > { %5909 = dma.done.wait (%p9612_p11), [#allocation6], 8256   ;;  %p9613_p10 = pmov %p9612_p11 }
  0x77   : > { %5911 = vsyncadd (%p9613_p10), [#allocation6], 4294959040  ;;  %p9614_p1 = pmov %p9613_p10 }
  0x79   : > { %5913 = dma.done.wait (%p9614_p1), [#allocation9], 768   ;;  %p9615_p2 = pmov %p9614_p1 }
  0x7a   : > { %v5949_v0 = vmov 0.0   ;;  %v459_v1 = vld [vmem:[#allocation5 + $0x1e8] sm:$0xff]  ;;  %v458_v2 = vld [vmem:[#allocation5 + $0x1e0] sm:$0xff]  ;;  %v464_v25 = vlaneseq  ;;  %v461_v38 = vld [vmem:[#allocation5 + $0x1f8] sm:$0xff]  ;;  %s5950_s30 = smov 64   ;;  %s5951_s9 = smov 32  }
  0x7b   : > { %5915 = vsyncadd (%p9615_p2), [#allocation9], 4294966528  ;;  %548 = vmatprep.mubr.f32.mxu0 %v5949_v0  ;;  %692 = vmatprep.mubr.f32.mxu1 %v5949_v0  ;;  %v455_v3 = vld [vmem:[#allocation5 + $0x1c8] sm:$0xff]  ;;  %v454_v4 = vld [vmem:[#allocation5 + $0x1c0] sm:$0xff]  ;;  %s5952_s18 = smov 96   ;;  %vm4355_vm0 = vcmask 261120  }
  0x7c   : > { %484 = vmatprep.subr.mxu0 %v459_v1  ;;  %5243 = vmatprep.subr.mxu1 %v459_v1  ;;  %v451_v5 = vld [vmem:[#allocation5 + $0x1a8] sm:$0xff]  ;;  %v450_v6 = vld [vmem:[#allocation5 + $0x1a0] sm:$0xff]  ;;  %v6171_v30 = vshrl.u32 %v464_v25, 7  ;;  %v460_v39 = vld [vmem:[#allocation5 + $0x1f0] sm:$0xff]  ;;  %s5141_s13 = sshll.u32 %s6018_s28, 8  ;;  %s8818_s15 = scalar_lea.vmem [#allocation11], %s5101_s1 }
  0x7d   : > { %485 = vmatpush1.msra.mxu0 %v458_v2  ;;  %5259 = vmatpush1.msra.mxu1 %v458_v2  ;;  %v447_v7 = vld [vmem:[#allocation5 + $0x188] sm:$0xff]  ;;  %v446_v8 = vld [vmem:[#allocation5 + $0x180] sm:$0xff]  ;;  %v457_v41 = vld [vmem:[#allocation5 + $0x1d8] sm:$0xff]  ;;  %s5150_s1 = sshll.u32 %s6018_s28, 12  ;;  %p10131_p8 = scmp.ne.s32.totalorder %s9606_s11, 0 }
  0x7e   : > { %486 = vmatprep.subr.mxu0 %v455_v3  ;;  %5244 = vmatprep.subr.mxu1 %v455_v3  ;;  %v443_v9 = vld [vmem:[#allocation5 + $0x168] sm:$0xff]  ;;  %v442_v10 = vld [vmem:[#allocation5 + $0x160] sm:$0xff]  ;;  %9616 = vst [vmem:[#allocation19_spill] sm:$0xff] %v6171_v30  ;;  %v6174_v35 = vsub.s32 2, %v6171_v30  ;;  %v456_v43 = vld [vmem:[#allocation5 + $0x1d0] sm:$0xff]  ;;  %s5953_s29 = smov [#allocation11]  }
  0x7f   : > { %487 = vmatpush1.msra.mxu0 %v454_v4  ;;  %5260 = vmatpush1.msra.mxu1 %v454_v4  ;;  %v439_v11 = vld [vmem:[#allocation5 + $0x148] sm:$0xff]  ;;  %v438_v12 = vld [vmem:[#allocation5 + $0x140] sm:$0xff]  ;;  %v453_v46 = vld [vmem:[#allocation5 + $0x1b8] sm:$0xff]  ;;  %s5840_s17 = sshll.u32 %s5953_s29, 4  ;;  %s5841_s17 = int_to_ptr.vmem [resolvable:$false] %s5840_s17 }
  0x80   : > { %488 = vmatprep.subr.mxu0 %v451_v5  ;;  %5245 = vmatprep.subr.mxu1 %v451_v5  ;;  %v435_v13 = vld [vmem:[#allocation5 + $0x128] sm:$0xff]  ;;  %v434_v14 = vld [vmem:[#allocation5 + $0x120] sm:$0xff]  ;;  %v452_v47 = vld [vmem:[#allocation5 + $0x1b0] sm:$0xff]  ;;  %s5842_s19 = scalar_lea.vmem %s5841_s17, 8192 }
  0x81   : > { %489 = vmatpush1.msra.mxu0 %v450_v6  ;;  %5261 = vmatpush1.msra.mxu1 %v450_v6  ;;  %v431_v15 = vld [vmem:[#allocation5 + $0x108] sm:$0xff]  ;;  %v430_v16 = vld [vmem:[#allocation5 + $0x100] sm:$0xff]  ;;  %v449_v48 = vld [vmem:[#allocation5 + $0x198] sm:$0xff] }
  0x82   : > { %490 = vmatprep.subr.mxu0 %v447_v7  ;;  %5246 = vmatprep.subr.mxu1 %v447_v7  ;;  %v427_v17 = vld [vmem:[#allocation5 + $0xe8] sm:$0xff]  ;;  %v426_v18 = vld [vmem:[#allocation5 + $0xe0] sm:$0xff]  ;;  %v448_v49 = vld [vmem:[#allocation5 + $0x190] sm:$0xff] }
  0x83   : > { %491 = vmatpush1.msra.mxu0 %v446_v8  ;;  %5262 = vmatpush1.msra.mxu1 %v446_v8  ;;  %v423_v19 = vld [vmem:[#allocation5 + $0xc8] sm:$0xff]  ;;  %v422_v20 = vld [vmem:[#allocation5 + $0xc0] sm:$0xff]  ;;  %v6200_v50 = vld [vmem:[%s6155_s12 + $0x10] sm:$0xff] }
  0x84   : > { %492 = vmatprep.subr.mxu0 %v443_v9  ;;  %5247 = vmatprep.subr.mxu1 %v443_v9  ;;  %v419_v21 = vld [vmem:[#allocation5 + $0xa8] sm:$0xff]  ;;  %v418_v22 = vld [vmem:[#allocation5 + $0xa0] sm:$0xff]  ;;  %v6204_v51 = vld [vmem:[%s6155_s12 + $0xd0] sm:$0xff] }
  0x85   : > { %493 = vmatpush1.msra.mxu0 %v442_v10  ;;  %5263 = vmatpush1.msra.mxu1 %v442_v10  ;;  %v415_v23 = vld [vmem:[#allocation5 + $0x88] sm:$0xff]  ;;  %v414_v24 = vld [vmem:[#allocation5 + $0x80] sm:$0xff]  ;;  %v445_v52 = vld [vmem:[#allocation5 + $0x178] sm:$0xff] }
  0x86   : > { %494 = vmatprep.subr.mxu0 %v439_v11  ;;  %5248 = vmatprep.subr.mxu1 %v439_v11  ;;  %v411_v26 = vld [vmem:[#allocation5 + $0x68] sm:$0xff]  ;;  %v410_v27 = vld [vmem:[#allocation5 + $0x60] sm:$0xff]  ;;  %v444_v53 = vld [vmem:[#allocation5 + $0x170] sm:$0xff] }
  0x87   : > { %495 = vmatpush1.msra.mxu0 %v438_v12  ;;  %5264 = vmatpush1.msra.mxu1 %v438_v12  ;;  %v407_v28 = vld [vmem:[#allocation5 + $0x48] sm:$0xff]  ;;  %v406_v29 = vld [vmem:[#allocation5 + $0x40] sm:$0xff]  ;;  %v441_v54 = vld [vmem:[#allocation5 + $0x158] sm:$0xff] }
  0x88   : > { %496 = vmatprep.subr.mxu0 %v435_v13  ;;  %5249 = vmatprep.subr.mxu1 %v435_v13  ;;  %v403_v31 = vld [vmem:[#allocation5 + $0x28] sm:$0xff]  ;;  %v402_v32 = vld [vmem:[#allocation5 + $0x20] sm:$0xff]  ;;  %v440_v55 = vld [vmem:[#allocation5 + $0x150] sm:$0xff] }
  0x89   : > { %497 = vmatpush1.msra.mxu0 %v434_v14  ;;  %5265 = vmatpush1.msra.mxu1 %v434_v14  ;;  %v399_v33 = vld [vmem:[#allocation5 + $0x8] sm:$0xff]  ;;  %v398_v34 = vld [vmem:[#allocation5] sm:$0xff]  ;;  %v6210_v56 = vld [vmem:[%s6155_s12 + $0x18] sm:$0xff] }
  0x8a   : > { %498 = vmatprep.subr.mxu0 %v431_v15  ;;  %5250 = vmatprep.subr.mxu1 %v431_v15  ;;  %v6177_v36 = vld [vmem:[%s6155_s12] sm:$0xff]  ;;  %v6190_v44 = vld [vmem:[%s6155_s12 + $0x8] sm:$0xff]  ;;  %v6214_v57 = vld [vmem:[%s6155_s12 + $0xd8] sm:$0xff] }
  0x8b   : > { %499 = vmatpush1.msra.mxu0 %v430_v16  ;;  %5266 = vmatpush1.msra.mxu1 %v430_v16  ;;  %v6180_v37 = vld [vmem:[%s6155_s12 + $0xc0] sm:$0xff]  ;;  %v6194_v45 = vld [vmem:[%s6155_s12 + $0xc8] sm:$0xff]  ;;  %v437_v58 = vld [vmem:[#allocation5 + $0x138] sm:$0xff] }
  0x8c   : > { %500 = vmatprep.subr.mxu0 %v427_v17  ;;  %5251 = vmatprep.subr.mxu1 %v427_v17  ;;  %v6182_v40 = vld [vmem:[#allocation8] sm:$0xff]  ;;  %v436_v59 = vld [vmem:[#allocation5 + $0x130] sm:$0xff]  ;;  %v433_v60 = vld [vmem:[#allocation5 + $0x118] sm:$0xff] }
  0x8d   : > { %501 = vmatpush1.msra.mxu0 %v426_v18  ;;  %5267 = vmatpush1.msra.mxu1 %v426_v18  ;;  %v1784_v42 = vrot.slane %v6182_v40, %v6174_v35  ;;  %v432_v61 = vld [vmem:[#allocation5 + $0x110] sm:$0xff]  ;;  %v6220_v62 = vld [vmem:[%s6155_s12 + $0x20] sm:$0xff]  ;;  %v429_v1 = vld [vmem:[#allocation5 + $0xf8] sm:$0xff] }
  0x8e   : > { %502 = vmatprep.subr.mxu0 %v423_v19  ;;  %5252 = vmatprep.subr.mxu1 %v423_v19  ;;  %v6224_v63 = vld [vmem:[%s6155_s12 + $0xe0] sm:$0xff]  ;;  %v428_v2 = vld [vmem:[#allocation5 + $0xf0] sm:$0xff]  ;;  %v425_v3 = vld [vmem:[#allocation5 + $0xd8] sm:$0xff] }
  0x8f   : > { %503 = vmatpush1.msra.mxu0 %v422_v20  ;;  %5268 = vmatpush1.msra.mxu1 %v422_v20  ;;  %v424_v4 = vld [vmem:[#allocation5 + $0xd0] sm:$0xff]  ;;  %v6230_v5 = vld [vmem:[%s6155_s12 + $0x28] sm:$0xff]  ;;  %v421_v7 = vld [vmem:[#allocation5 + $0xb8] sm:$0xff]  ;;  %v6257_v20 = vsub.s32 1, %v6171_v30 }
  0x90   : > { %504 = vmatprep.subr.mxu0 %v419_v21  ;;  %5253 = vmatprep.subr.mxu1 %v419_v21  ;;  %v6234_v6 = vld [vmem:[%s6155_s12 + $0xe8] sm:$0xff]  ;;  %v420_v8 = vld [vmem:[#allocation5 + $0xb0] sm:$0xff]  ;;  %v417_v9 = vld [vmem:[#allocation5 + $0x98] sm:$0xff] }
  0x91   : > { %505 = vmatpush1.msra.mxu0 %v418_v22  ;;  %5269 = vmatpush1.msra.mxu1 %v418_v22  ;;  %v416_v10 = vld [vmem:[#allocation5 + $0x90] sm:$0xff]  ;;  %v413_v13 = vld [vmem:[#allocation5 + $0x78] sm:$0xff]  ;;  %v2251_v22 = vsub.s32 5, %v6171_v30  ;;  %v374_v25 = vld [vmem:[%s6155_s12 + $0x40] sm:$0xff] }
  0x92   : > { %506 = vmatprep.subr.mxu0 %v415_v23  ;;  %5254 = vmatprep.subr.mxu1 %v415_v23  ;;  %v6240_v11 = vld [vmem:[%s6155_s12 + $0x30] sm:$0xff]  ;;  %v409_v15 = vld [vmem:[#allocation5 + $0x58] sm:$0xff] }
  0x93   : > { %507 = vmatpush1.msra.mxu0 %v414_v24  ;;  %5270 = vmatpush1.msra.mxu1 %v414_v24  ;;  %v6244_v12 = vld [vmem:[%s6155_s12 + $0xf0] sm:$0xff]  ;;  %v6250_v17 = vld [vmem:[%s6155_s12 + $0x38] sm:$0xff] }
  0x94   : > { %508 = vmatprep.subr.mxu0 %v411_v26  ;;  %5255 = vmatprep.subr.mxu1 %v411_v26  ;;  %v412_v14 = vld [vmem:[#allocation5 + $0x70] sm:$0xff]  ;;  %v6254_v18 = vld [vmem:[%s6155_s12 + $0xf8] sm:$0xff]  ;;  %v1584_v26 = vrot.slane %v6182_v40, %v6257_v20 }
  0x95   : > { %509 = vmatpush1.msra.mxu0 %v410_v27  ;;  %5271 = vmatpush1.msra.mxu1 %v410_v27  ;;  %v408_v16 = vld [vmem:[#allocation5 + $0x50] sm:$0xff]  ;;  %v405_v19 = vld [vmem:[#allocation5 + $0x38] sm:$0xff]  ;;  %v6268_v27 = vsub.s32 3, %v6171_v30 }
  0x96   : > { %510 = vmatprep.subr.mxu0 %v407_v28  ;;  %5256 = vmatprep.subr.mxu1 %v407_v28  ;;  %v404_v21 = vld [vmem:[#allocation5 + $0x30] sm:$0xff]  ;;  %v401_v23 = vld [vmem:[#allocation5 + $0x18] sm:$0xff]  ;;  %v2252_v28 = vrot.slane %v6182_v40, %v2251_v22 }
  0x97   : > { %511 = vmatpush1.msra.mxu0 %v406_v29  ;;  %5272 = vmatpush1.msra.mxu1 %v406_v29  ;;  %v400_v24 = vld [vmem:[#allocation5 + $0x10] sm:$0xff]  ;;  %v2651_v29 = vsub.s32 7, %v6171_v30 }
  0x98   : > { %512 = vmatprep.subr.mxu0 %v403_v31  ;;  %5257 = vmatprep.subr.mxu1 %v403_v31  ;;  %v375_v31 = vld [vmem:[%s6155_s12 + $0x48] sm:$0xff] }
  0x99   : > { %513 = vmatpush1.msra.mxu0 %v402_v32  ;;  %5273 = vmatpush1.msra.mxu1 %v402_v32  ;;  %v1984_v32 = vrot.slane %v6182_v40, %v6268_v27 }
  0x9a   : > { %514 = vmatprep.subr.mxu0 %v399_v33  ;;  %5258 = vmatprep.subr.mxu1 %v399_v33  ;;  %v2451_v33 = vsub.s32 6, %v6171_v30 }
  0x9b   : > { %515 = vmatpush1.msra.mxu0 %v398_v34  ;;  %5274 = vmatpush1.msra.mxu1 %v398_v34  ;;  %v2652_v34 = vrot.slane %v6182_v40, %v2651_v29 }
  0x9c   : > { %549 = vmatmul.mubr.f32.vlgmr.msra.gmra.mxu0 %v6177_v36  ;;  %693 = vmatmul.mubr.f32.vlgmr.msra.gmra.mxu1 %v6180_v37 }
  0x9d   : > { %741 = vmatprep.subr.mxu1 %v461_v38  ;;  %554 = vmatprep.mubr.f32.mxu0 %v5949_v0  ;;  %v2452_v38 = vrot.slane %v6182_v40, %v2451_v33  ;;  %v378_v40 = vld [vmem:[%s6155_s12 + $0x60] sm:$0xff] }
  0x9e   : > { %742 = vmatpush1.msra.mxu1 %v460_v39  ;;  %698 = vmatprep.mubr.f32.mxu1 %v5949_v0  ;;  %v377_v39 = vld [vmem:[%s6155_s12 + $0x58] sm:$0xff] }
  0x9f   : > { %743 = vmatprep.subr.mxu1 %v457_v41  ;;  %1786 = vrot.lane.b32.xlu1 %v1784_v42, %s5950_s30  ;;  %v379_v41 = vld [vmem:[%s6155_s12 + $0x68] sm:$0xff]  ;;  %v380_v42 = vld [vmem:[%s6155_s12 + $0x70] sm:$0xff] }
  0xa0   : > { %744 = vmatpush1.msra.mxu1 %v456_v43  ;;  %555 = vmatmul.mubr.f32.gmra.mxu0 %v6190_v44  ;;  %v381_v43 = vld [vmem:[%s6155_s12 + $0x78] sm:$0xff] }
  0xa1   : > { %699 = vmatmul.mubr.f32.gmra.mxu1 %v6194_v45  ;;  %745 = vmatprep.subr.mxu1 %v453_v46  ;;  %v383_v46 = vld [vmem:[%s6155_s12 + $0x88] sm:$0xff] }
  0xa2   : > { %746 = vmatpush1.msra.mxu1 %v452_v47  ;;  %560 = vmatprep.mubr.f32.mxu0 %v5949_v0  ;;  %v384_v47 = vld [vmem:[%s6155_s12 + $0x90] sm:$0xff] }
  0xa3   : > { %747 = vmatprep.subr.mxu1 %v449_v48  ;;  %704 = vmatprep.mubr.f32.mxu1 %v5949_v0  ;;  %v1511_v48 = vld [vmem:[#allocation8 + $0x8] sm:$0xff] }
  0xa4   : > { %748 = vmatpush1.msra.mxu1 %v448_v49  ;;  %561 = vmatmul.mubr.f32.gmra.mxu0 %v6200_v50  ;;  %v2920_v49 = vrot.slane %v1511_v48, %v6257_v20 }
  0xa5   : > { %705 = vmatmul.mubr.f32.gmra.mxu1 %v6204_v51  ;;  %749 = vmatprep.subr.mxu1 %v445_v52  ;;  %v3320_v52 = vrot.slane %v1511_v48, %v6268_v27 }
  0xa6   : > { %750 = vmatpush1.msra.mxu1 %v444_v53  ;;  %566 = vmatprep.mubr.f32.mxu0 %v5949_v0  ;;  %v386_v53 = vld [vmem:[%s6155_s12 + $0xa0] sm:$0xff] }
  0xa7   : > { %751 = vmatprep.subr.mxu1 %v441_v54  ;;  %710 = vmatprep.mubr.f32.mxu1 %v5949_v0  ;;  %v3588_v54 = vrot.slane %v1511_v48, %v2251_v22 }
  0xa8   : > { %752 = vmatpush1.msra.mxu1 %v440_v55  ;;  %567 = vmatmul.mubr.f32.gmra.mxu0 %v6210_v56  ;;  %v3120_v55 = vrot.slane %v1511_v48, %v6174_v35 }
  0xa9   : > { %711 = vmatmul.mubr.f32.gmra.mxu1 %v6214_v57  ;;  %753 = vmatprep.subr.mxu1 %v437_v58  ;;  %v388_v58 = vld [vmem:[%s6155_s12 + $0xb0] sm:$0xff] }
  0xaa   : > { %754 = vmatpush1.msra.mxu1 %v436_v59  ;;  %572 = vmatprep.mubr.f32.mxu0 %v5949_v0  ;;  %v3988_v59 = vrot.slane %v1511_v48, %v2651_v29 }
  0xab   : > { %755 = vmatprep.subr.mxu1 %v433_v60  ;;  %716 = vmatprep.mubr.f32.mxu1 %v5949_v0  ;;  %v3788_v60 = vrot.slane %v1511_v48, %v2451_v33 }
  0xac   : > { %756 = vmatpush1.msra.mxu1 %v432_v61  ;;  %573 = vmatmul.mubr.f32.gmra.mxu0 %v6220_v62  ;;  %v389_v61 = vld [vmem:[%s6155_s12 + $0xb8] sm:$0xff] }
  0xad   : > { %717 = vmatmul.mubr.f32.gmra.mxu1 %v6224_v63  ;;  %757 = vmatprep.subr.mxu1 %v429_v1 }
  0xae   : > { %758 = vmatpush1.msra.mxu1 %v428_v2  ;;  %578 = vmatprep.mubr.f32.mxu0 %v5949_v0 }
  0xaf   : > { %759 = vmatprep.subr.mxu1 %v425_v3  ;;  %722 = vmatprep.mubr.f32.mxu1 %v5949_v0 }
  0xb0   : > { %760 = vmatpush1.msra.mxu1 %v424_v4  ;;  %579 = vmatmul.mubr.f32.gmra.mxu0 %v6230_v5 }
  0xb1   : > { %723 = vmatmul.mubr.f32.gmra.mxu1 %v6234_v6  ;;  %761 = vmatprep.subr.mxu1 %v421_v7 }
  0xb2   : > { %762 = vmatpush1.msra.mxu1 %v420_v8  ;;  %584 = vmatprep.mubr.f32.mxu0 %v5949_v0 }
  0xb3   : > { %763 = vmatprep.subr.mxu1 %v417_v9  ;;  %728 = vmatprep.mubr.f32.mxu1 %v5949_v0 }
  0xb4   : > { %764 = vmatpush1.msra.mxu1 %v416_v10  ;;  %585 = vmatmul.mubr.f32.gmra.mxu0 %v6240_v11 }
  0xb5   : > { %729 = vmatmul.mubr.f32.gmra.mxu1 %v6244_v12  ;;  %765 = vmatprep.subr.mxu1 %v413_v13 }
  0xb6   : > { %766 = vmatpush1.msra.mxu1 %v412_v14  ;;  %590 = vmatprep.mubr.f32.mxu0 %v5949_v0 }
  0xb7   : > { %767 = vmatprep.subr.mxu1 %v409_v15  ;;  %734 = vmatprep.mubr.f32.mxu1 %v5949_v0 }
  0xb8   : > { %768 = vmatpush1.msra.mxu1 %v408_v16  ;;  %591 = vmatmul.mubr.f32.gmra.mxu0 %v6250_v17 }
  0xb9   : > { %735 = vmatmul.mubr.f32.gmra.mxu1 %v6254_v18  ;;  %769 = vmatprep.subr.mxu1 %v405_v19 }
  0xba   : > { %770 = vmatpush1.msra.mxu1 %v404_v21  ;;  %596 = vmatprep.mubr.f32.mxu0 %v5949_v0 }
  0xbb   : > { %771 = vmatprep.subr.mxu1 %v401_v23  ;;  %805 = vmatprep.mubr.f32.mxu1 %v5949_v0 }
  0xbc   : > { %772 = vmatpush1.msra.mxu1 %v400_v24  ;;  %597 = vmatmul.mubr.f32.gmra.mxu0 %v374_v25 }
  0xbd   : > { %806 = vmatmul.mubr.f32.vlgmr.msra.gmra.mxu1 %v6177_v36  ;;  %602 = vmatprep.mubr.f32.mxu0 %v5949_v0  ;;  %v376_v36 = vld [vmem:[%s6155_s12 + $0x50] sm:$0xff] }
  0xbe   : > { %811 = vmatprep.mubr.f32.mxu1 %v5949_v0  ;;  %1586 = vrot.lane.b32.xlu0 %v1584_v26, %s5951_s9 }
  0xbf   : > { %2254 = vrot.lane.b32.xlu1 %v2252_v28, %s5951_s9 }
  0xc0   : > { %603 = vmatmul.mubr.f32.gmra.mxu0 %v375_v31 }
  0xc1   : > { %812 = vmatmul.mubr.f32.gmra.mxu1 %v6190_v44  ;;  %608 = vmatprep.mubr.f32.mxu0 %v5949_v0  ;;  %v382_v44 = vld [vmem:[%s6155_s12 + $0x80] sm:$0xff] }
  0xc2   : > { %817 = vmatprep.mubr.f32.mxu1 %v5949_v0  ;;  %1986 = vrot.lane.b32.xlu0 %v1984_v32, %s5952_s18 }
  0xc3   : > { %2654 = vrot.lane.b32.xlu1 %v2652_v34, %s5952_s18 }
  0xc4   : > { %609 = vmatmul.mubr.f32.gmra.mxu0 %v376_v36 }
  0xc5   : > { %818 = vmatmul.mubr.f32.gmra.mxu1 %v6200_v50  ;;  %614 = vmatprep.mubr.f32.mxu0 %v5949_v0  ;;  %v385_v50 = vld [vmem:[%s6155_s12 + $0x98] sm:$0xff] }
  0xc6   : > { %823 = vmatprep.mubr.f32.mxu1 %v5949_v0  ;;  %2454 = vrot.lane.b32.xlu0 %v2452_v38, %s5950_s30 }
  0xc7   : > { %2922 = vrot.lane.b32.xlu1 %v2920_v49, %s5951_s9 }
  0xc8   : > { %615 = vmatmul.mubr.f32.gmra.mxu0 %v377_v39 }
  0xc9   : > { %824 = vmatmul.mubr.f32.gmra.mxu1 %v6210_v56  ;;  %620 = vmatprep.mubr.f32.mxu0 %v5949_v0  ;;  %v387_v56 = vld [vmem:[%s6155_s12 + $0xa8] sm:$0xff] }
  0xca   : > { %829 = vmatprep.mubr.f32.mxu1 %v5949_v0  ;;  %3122 = vrot.lane.b32.xlu0 %v3120_v55, %s5950_s30 }
  0xcb   : > { %3322 = vrot.lane.b32.xlu1 %v3320_v52, %s5952_s18 }
  0xcc   : > { %621 = vmatmul.mubr.f32.gmra.mxu0 %v378_v40 }
  0xcd   : > { %830 = vmatmul.mubr.f32.gmra.mxu1 %v6220_v62  ;;  %626 = vmatprep.mubr.f32.mxu0 %v5949_v0 }
  0xce   : > { %835 = vmatprep.mubr.f32.mxu1 %v5949_v0  ;;  %3790 = vrot.lane.b32.xlu0 %v3788_v60, %s5950_s30 }
  0xcf   : > { %3590 = vrot.lane.b32.xlu1 %v3588_v54, %s5951_s9 }
  0xd0   : > { %627 = vmatmul.mubr.f32.gmra.mxu0 %v379_v41 }
  0xd1   : > { %836 = vmatmul.mubr.f32.gmra.mxu1 %v6230_v5  ;;  %632 = vmatprep.mubr.f32.mxu0 %v5949_v0 }
  0xd2   : > { %841 = vmatprep.mubr.f32.mxu1 %v5949_v0 }
  0xd3   : > { %3990 = vrot.lane.b32.xlu1 %v3988_v59, %s5952_s18 }
  0xd4   : > { %633 = vmatmul.mubr.f32.gmra.mxu0 %v380_v42 }
  0xd5   : > { %842 = vmatmul.mubr.f32.gmra.mxu1 %v6240_v11  ;;  %638 = vmatprep.mubr.f32.mxu0 %v5949_v0 }
  0xd6   : > { %847 = vmatprep.mubr.f32.mxu1 %v5949_v0 }
  0xd8   : > { %639 = vmatmul.mubr.f32.gmra.mxu0 %v381_v43 }
  0xd9   : > { %848 = vmatmul.mubr.f32.gmra.mxu1 %v6250_v17  ;;  %644 = vmatprep.mubr.f32.mxu0 %v5949_v0 }
  0xda   : > { %853 = vmatprep.mubr.f32.mxu1 %v5949_v0 }
  0xdc   : > { %645 = vmatmul.mubr.f32.gmra.mxu0 %v382_v44 }
  0xdd   : > { %854 = vmatmul.mubr.f32.gmra.mxu1 %v374_v25  ;;  %650 = vmatprep.mubr.f32.mxu0 %v5949_v0 }
  0xde   : > { %859 = vmatprep.mubr.f32.mxu1 %v5949_v0 }
  0xe0   : > { %651 = vmatmul.mubr.f32.gmra.mxu0 %v383_v46 }
  0xe1   : > { %860 = vmatmul.mubr.f32.gmra.mxu1 %v375_v31  ;;  %656 = vmatprep.mubr.f32.mxu0 %v5949_v0 }
  0xe2   : > { %865 = vmatprep.mubr.f32.mxu1 %v5949_v0 }
  0xe4   : > { %657 = vmatmul.mubr.f32.gmra.mxu0 %v384_v47 }
  0xe5   : > { %866 = vmatmul.mubr.f32.gmra.mxu1 %v376_v36  ;;  %662 = vmatprep.mubr.f32.mxu0 %v5949_v0 }
  0xe6   : > { %871 = vmatprep.mubr.f32.mxu1 %v5949_v0 }
  0xe8   : > { %663 = vmatmul.mubr.f32.gmra.mxu0 %v385_v50 }
  0xe9   : > { %872 = vmatmul.mubr.f32.gmra.mxu1 %v377_v39  ;;  %668 = vmatprep.mubr.f32.mxu0 %v5949_v0 }
  0xea   : > { %877 = vmatprep.mubr.f32.mxu1 %v5949_v0 }
  0xec   : > { %669 = vmatmul.mubr.f32.gmra.mxu0 %v386_v53 }
  0xed   : > { %878 = vmatmul.mubr.f32.gmra.mxu1 %v378_v40  ;;  %674 = vmatprep.mubr.f32.mxu0 %v5949_v0 }
  0xee   : > { %883 = vmatprep.mubr.f32.mxu1 %v5949_v0 }
  0xf0   : > { %675 = vmatmul.mubr.f32.gmra.mxu0 %v387_v56 }
  0xf1   : > { %884 = vmatmul.mubr.f32.gmra.mxu1 %v379_v41  ;;  %680 = vmatprep.mubr.f32.mxu0 %v5949_v0 }
  0xf2   : > { %889 = vmatprep.mubr.f32.mxu1 %v5949_v0 }
  0xf4   : > { %681 = vmatmul.mubr.f32.gmra.mxu0 %v388_v58 }
  0xf5   : > { %890 = vmatmul.mubr.f32.gmra.mxu1 %v380_v42  ;;  %686 = vmatprep.mubr.f32.mxu0 %v5949_v0 }
  0xf6   : > { %895 = vmatprep.mubr.f32.mxu1 %v5949_v0 }
  0xf8   : > { %687 = vmatmul.mubr.f32.gmra.mxu0 %v389_v61 }
  0xf9   : > { %896 = vmatmul.mubr.f32.gmra.mxu1 %v381_v43 }
  0xfa   : > { %901 = vmatprep.mubr.f32.mxu1 %v5949_v0 }
  0xfd   : > { %902 = vmatmul.mubr.f32.gmra.mxu1 %v382_v44 }
  0xfe   : > { %907 = vmatprep.mubr.f32.mxu1 %v5949_v0 }
 0x101   : > { %908 = vmatmul.mubr.f32.gmra.mxu1 %v383_v46 }
 0x102   : > { %913 = vmatprep.mubr.f32.mxu1 %v5949_v0 }
 0x105   : > { %914 = vmatmul.mubr.f32.gmra.mxu1 %v384_v47 }
 0x106   : > { %919 = vmatprep.mubr.f32.mxu1 %v5949_v0 }
 0x109   : > { %920 = vmatmul.mubr.f32.gmra.mxu1 %v385_v50 }
 0x10a   : > { %925 = vmatprep.mubr.f32.mxu1 %v5949_v0 }
 0x10d   : > { %926 = vmatmul.mubr.f32.gmra.mxu1 %v386_v53 }
 0x10e   : > { %931 = vmatprep.mubr.f32.mxu1 %v5949_v0 }
 0x111   : > { %932 = vmatmul.mubr.f32.gmra.mxu1 %v387_v56  ;;  %v6410_v24 = vpop.permute.xlu1 %1786 }
 0x112   : > { %937 = vmatprep.mubr.f32.mxu1 %v5949_v0 }
 0x115   : > { %938 = vmatmul.mubr.f32.gmra.mxu1 %v388_v58 }
 0x116   : > { %943 = vmatprep.mubr.f32.mxu1 %v5949_v0 }
 0x119   : > { %944 = vmatmul.mubr.f32.gmra.mxu1 %v389_v61 }
 0x11a   : > { %949 = vmatprep.mubr.f32.mxu1 %v5949_v0 }
 0x11d   : > { %950 = vmatmul.mubr.f32.gmra.mxu1 %v6180_v37  ;;  %v6382_v37 = vsub.s32 0, %v6171_v30 }
 0x11e   : > { %955 = vmatprep.mubr.f32.mxu1 %v5949_v0 }
 0x121   : > { %956 = vmatmul.mubr.f32.gmra.mxu1 %v6194_v45  ;;  %v6384_v45 = vld [vmem:[#allocation7] sm:$0xf] }
 0x122   : > { %961 = vmatprep.mubr.f32.mxu1 %v5949_v0 }
 0x125   : > { %962 = vmatmul.mubr.f32.gmra.mxu1 %v6204_v51  ;;  %v6388_v51 = vrot.slane %v6384_v45, %v6382_v37 }
 0x126   : > { %967 = vmatprep.mubr.f32.mxu1 %v5949_v0 }
 0x129   : > { %968 = vmatmul.mubr.f32.gmra.mxu1 %v6214_v57 }
 0x12a   : > { %973 = vmatprep.mubr.f32.mxu1 %v5949_v0 }
 0x12d   : > { %974 = vmatmul.mubr.f32.gmra.mxu1 %v6224_v63 }
 0x12e   : > { %979 = vmatprep.mubr.f32.mxu1 %v5949_v0 }
 0x131   : > { %980 = vmatmul.mubr.f32.gmra.mxu1 %v6234_v6  ;;  %v6417_v32 = vpop.permute.xlu1 %2254 }
 0x132   : > { %985 = vmatprep.mubr.f32.mxu1 %v5949_v0 }
 0x135   : > { %986 = vmatmul.mubr.f32.gmra.mxu1 %v6244_v12  ;;  %v6432_v48 = vpop.permute.xlu1 %2654 }
 0x136   : > { %991 = vmatprep.mubr.f32.mxu1 %v5949_v0  ;;  %v6394_v0 = vrot.slane %v6384_v45, %v6257_v20  ;;  %v6403_v20 = vpop.permute.xlu0 %1586  ;;  %9618 = vst [vmem:[#allocation21_spill] sm:$0xff] %v6432_v48 }
 0x139   : > { %992 = vmatmul.mubr.f32.gmra.mxu1 %v6254_v18 }
 0x13a   : > { %v6415_v31 = vpop.permute.xlu0 %1986 }
 0x15c   : > { %v550_v57 = vpop.f32.mrf.mxu0  ;;  %v694_v62 = vpop.f32.mrf.mxu1 }
 0x15d   : > { %v551_v63 = vadd.f32 %v550_v57, %v6388_v51  ;;  %v695_v1 = vadd.f32 %v694_v62, %v6388_v51  ;;  %v6452_v57 = vpop.permute.xlu0 %2454 }
 0x15e   : > { %v552_v4 = vpop.f32.mrf.mxu0  ;;  %v696_v11 = vpop.f32.mrf.mxu1 }
 0x15f   : > { %v1094_v2 = vmul.f32 0.5, %v695_v1  ;;  %v998_v3 = vmul.f32 0.5, %v551_v63  ;;  %v553_v5 = vadd.f32 %v552_v4, %v6394_v0  ;;  %v697_v12 = vadd.f32 %v696_v11, %v6394_v0 }
 0x160   : > { %v556_v6 = vpop.f32.mrf.mxu0 }
 0x161   : > { %5379 = vtanh.f32 %v1094_v2  ;;  %v999_v8 = vmul.f32 0.5, %v553_v5  ;;  %v557_v9 = vadd.f32 %v556_v6, %v6388_v51  ;;  %v1095_v16 = vmul.f32 0.5, %v697_v12  ;;  %v700_v19 = vpop.f32.mrf.mxu1 }
 0x162   : > { %5381 = vtanh.f32 %v998_v3  ;;  %v701_v22 = vadd.f32 %v700_v19, %v6388_v51  ;;  %v558_v26 = vpop.f32.mrf.mxu0 }
 0x163   : > { %5383 = vtanh.f32 %v999_v8  ;;  %v1002_v15 = vmul.f32 0.5, %v557_v9  ;;  %v559_v29 = vadd.f32 %v558_v26, %v6394_v0  ;;  %v702_v40 = vpop.f32.mrf.mxu1 }
 0x164   : > { %v1098_v25 = vmul.f32 0.5, %v701_v22  ;;  %v703_v42 = vadd.f32 %v702_v40, %v6394_v0  ;;  %v562_v56 = vpop.f32.mrf.mxu0 }
 0x165   : > { %5385 = vtanh.f32 %v1002_v15  ;;  %v1003_v39 = vmul.f32 0.5, %v559_v29  ;;  %v563_v60 = vadd.f32 %v562_v56, %v6388_v51  ;;  %v706_v63 = vpop.f32.mrf.mxu1 }
 0x166   : > { %5387 = vtanh.f32 %v1095_v16  ;;  %v1099_v50 = vmul.f32 0.5, %v703_v42  ;;  %v707_v5 = vadd.f32 %v706_v63, %v6388_v51  ;;  %v564_v12 = vpop.f32.mrf.mxu0 }
 0x167   : > { %5389 = vtanh.f32 %v1098_v25  ;;  %v1006_v1 = vmul.f32 0.5, %v563_v60  ;;  %v708_v22 = vpop.f32.mrf.mxu1 }
 0x168   : > { %5391 = vtanh.f32 %v1003_v39  ;;  %v1102_v9 = vmul.f32 0.5, %v707_v5  ;;  %v709_v25 = vadd.f32 %v708_v22, %v6394_v0 }
 0x169   : > { %5393 = vtanh.f32 %v1099_v50 }
 0x16a   : > { %5395 = vtanh.f32 %v1006_v1  ;;  %v1103_v29 = vmul.f32 0.5, %v709_v25 }
 0x16b   : > { %5397 = vtanh.f32 %v1102_v9 }
 0x16e   : > { %v5380_v7 = vpop.eup %5379 }
 0x16f   : > { %v5382_v10 = vpop.eup %5381  ;;  %v1350_v13 = vmul.f32 0.5, %v5380_v7 }
 0x170   : > { %v1254_v14 = vmul.f32 0.5, %v5382_v10  ;;  %v5384_v28 = vpop.eup %5383 }
 0x171   : > { %v6399_v17 = vadd.f32 0.5, %v1350_v13  ;;  %v1255_v36 = vmul.f32 0.5, %v5384_v28 }
 0x172   : > { %v6401_v18 = vadd.f32 0.5, %v1254_v14  ;;  %v5386_v38 = vpop.eup %5385  ;;  %v565_v14 = vadd.f32 %v564_v12, %v6394_v0 }
 0x173   : > { %9617 = vst [vmem:[#allocation20_spill] sm:$0xff] %v6399_v17  ;;  %v1613_v21 = vmul.f32 %v6403_v20, %v6399_v17  ;;  %v2013_v41 = vmul.f32 %v6415_v31, %v6399_v17  ;;  %v5388_v43 = vpop.eup %5387  ;;  %v1813_v44 = vmul.f32 %v6410_v24, %v6399_v17  ;;  %v6430_v46 = vadd.f32 0.5, %v1255_v36  ;;  %v568_v36 = vpop.f32.mrf.mxu0 }
 0x174   : > { %v1589_v23 = vmul.f32 %v6403_v20, %v6401_v18  ;;  %v1989_v33 = vmul.f32 %v6415_v31, %v6401_v18  ;;  %v1789_v34 = vmul.f32 %v6410_v24, %v6401_v18  ;;  %v1258_v47 = vmul.f32 0.5, %v5386_v38  ;;  %v5390_v59 = vpop.eup %5389 }
 0x175   : > { %1701 = vrot.lane.b32.xlu1 %v1613_v21, %s5952_s18  ;;  %v1351_v49 = vmul.f32 0.5, %v5388_v43  ;;  %v2657_v53 = vmul.f32 %v6432_v48, %v6430_v46  ;;  %v2257_v54 = vmul.f32 %v6417_v32, %v6430_v46  ;;  %v1354_v62 = vmul.f32 0.5, %v5390_v59  ;;  %v5392_v3 = vpop.eup %5391 }
 0x176   : > { %1653 = vrot.lane.b32.xlu0 %v1589_v23, %s5952_s18  ;;  %v6436_v52 = vadd.f32 0.5, %v1258_v47  ;;  %v2457_v4 = vmul.f32 %v6452_v57, %v6430_v46  ;;  %v1259_v7 = vmul.f32 0.5, %v5392_v3  ;;  %v5394_v8 = vpop.eup %5393  ;;  %v1007_v21 = vmul.f32 0.5, %v565_v14 }
 0x177   : > { %v6442_v55 = vadd.f32 0.5, %v1351_v49  ;;  %v6461_v6 = vadd.f32 0.5, %v1354_v62  ;;  %v1355_v13 = vmul.f32 0.5, %v5394_v8  ;;  %v5396_v26 = vpop.eup %5395 }
 0x178   : > { %v1590_v58 = vmul.f32 %v6403_v20, %v6436_v52  ;;  %v1790_v2 = vmul.f32 %v6410_v24, %v6436_v52  ;;  %v6466_v11 = vadd.f32 0.5, %v1259_v7  ;;  %v1990_v23 = vmul.f32 %v6415_v31, %v6436_v52  ;;  %v5398_v38 = vpop.eup %5397 }
 0x179   : > { %2053 = vrot.lane.b32.xlu1 %v1989_v33, %s5951_s9  ;;  %9619 = vst [vmem:[#allocation22_spill] sm:$0xff] %v6442_v55  ;;  %v2281_v61 = vmul.f32 %v6417_v32, %v6442_v55  ;;  %9620 = vst [vmem:[#allocation23_spill] sm:$0xff] %v6461_v6  ;;  %v1814_v10 = vmul.f32 %v6410_v24, %v6461_v6  ;;  %v1614_v15 = vmul.f32 %v6403_v20, %v6461_v6 }
 0x17a   : > { %1853 = vrot.lane.b32.xlu0 %v1789_v34, %s5950_s30  ;;  %v2258_v16 = vmul.f32 %v6417_v32, %v6466_v11  ;;  %v6475_v19 = vadd.f32 0.5, %v1355_v13  ;;  %5399 = vtanh.f32 %v1007_v21  ;;  %v2014_v33 = vmul.f32 %v6415_v31, %v6461_v6 }
 0x17b   : > { %v1262_v34 = vmul.f32 0.5, %v5396_v26  ;;  %5401 = vtanh.f32 %v1103_v29  ;;  %v2458_v39 = vmul.f32 %v6452_v57, %v6466_v11  ;;  %v2658_v42 = vmul.f32 %v6432_v48, %v6466_v11 }
 0x17c   : > { %9621 = vst [vmem:[#allocation24_spill] sm:$0xff] %v6475_v19  ;;  %v2282_v28 = vmul.f32 %v6417_v32, %v6475_v19  ;;  %v1358_v43 = vmul.f32 0.5, %v5398_v38 }
 0x17d   : > { %2101 = vrot.lane.b32.xlu1 %v2013_v41, %s5951_s9  ;;  %v6490_v40 = vadd.f32 0.5, %v1262_v34  ;;  %v569_v41 = vadd.f32 %v568_v36, %v6388_v51 }
 0x17e   : > { %1901 = vrot.lane.b32.xlu0 %v1813_v44, %s5950_s30  ;;  %v712_v44 = vpop.f32.mrf.mxu1 }
 0x17f   : > { %v1010_v47 = vmul.f32 0.5, %v569_v41  ;;  %v1591_v49 = vmul.f32 %v6403_v20, %v6490_v40  ;;  %v713_v50 = vadd.f32 %v712_v44, %v6388_v51  ;;  %v1791_v56 = vmul.f32 %v6410_v24, %v6490_v40 }
 0x180   : > { %v1991_v5 = vmul.f32 %v6415_v31, %v6490_v40  ;;  %v714_v8 = vpop.f32.mrf.mxu1 }
 0x181   : > { %2721 = vrot.lane.b32.xlu1 %v2657_v53, %s5951_s9  ;;  %5403 = vtanh.f32 %v1010_v47  ;;  %v1106_v60 = vmul.f32 0.5, %v713_v50  ;;  %v715_v13 = vadd.f32 %v714_v8, %v6394_v0 }
 0x182   : > { %2321 = vrot.lane.b32.xlu0 %v2257_v54, %s5952_s18  ;;  %v6500_v54 = vadd.f32 0.5, %v1358_v43  ;;  %v718_v22 = vpop.f32.mrf.mxu1 }
 0x183   : > { %5405 = vtanh.f32 %v1106_v60  ;;  %v719_v29 = vadd.f32 %v718_v22, %v6388_v51 }
 0x184   : > { %9622 = vst [vmem:[#allocation25_spill] sm:$0xff] %v6500_v54  ;;  %v1815_v1 = vmul.f32 %v6410_v24, %v6500_v54  ;;  %v2015_v14 = vmul.f32 %v6415_v31, %v6500_v54  ;;  %v720_v47 = vpop.f32.mrf.mxu1 }
 0x185   : > { %1655 = vrot.lane.b32.xlu1 %v1590_v58, %s5952_s18  ;;  %v570_v58 = vpop.f32.mrf.mxu0 }
 0x186   : > { %2369 = vrot.lane.b32.xlu0 %v2281_v61, %s5952_s18  ;;  %v1615_v61 = vmul.f32 %v6403_v20, %v6500_v54  ;;  %v571_v62 = vadd.f32 %v570_v58, %v6394_v0 }
 0x187   : > { %v5400_v53 = vpop.eup %5399 }
 0x188   : > { %v1263_v59 = vmul.f32 0.5, %v5400_v53  ;;  %v5402_v63 = vpop.eup %5401 }
 0x189   : > { %1855 = vrot.lane.b32.xlu1 %v1790_v2, %s5950_s30  ;;  %v1359_v3 = vmul.f32 0.5, %v5402_v63 }
 0x18a   : > { %2521 = vrot.lane.b32.xlu0 %v2457_v4, %s5950_s30  ;;  %v6512_v2 = vadd.f32 0.5, %v1263_v59  ;;  %v1011_v4 = vmul.f32 0.5, %v571_v62 }
 0x18b   : > { %v6520_v9 = vadd.f32 0.5, %v1359_v3  ;;  %v724_v3 = vpop.f32.mrf.mxu1 }
 0x18c   : > { %9623 = vst [vmem:[#allocation26_spill] sm:$0xff] %v6512_v2  ;;  %v2259_v7 = vmul.f32 %v6417_v32, %v6512_v2  ;;  %5407 = vtanh.f32 %v1011_v4  ;;  %v2659_v26 = vmul.f32 %v6432_v48, %v6512_v2  ;;  %v2459_v34 = vmul.f32 %v6452_v57, %v6512_v2 }
 0x18d   : > { %1903 = vrot.lane.b32.xlu1 %v1814_v10, %s5950_s30  ;;  %9624 = vst [vmem:[#allocation27_spill] sm:$0xff] %v6520_v9  ;;  %v574_v10 = vpop.f32.mrf.mxu0 }
 0x18e   : > { %1703 = vrot.lane.b32.xlu0 %v1614_v15, %s5952_s18  ;;  %v5404_v12 = vpop.eup %5403  ;;  %v575_v15 = vadd.f32 %v574_v10, %v6388_v51 }
 0x18f   : > { %v1266_v21 = vmul.f32 0.5, %v5404_v12  ;;  %v576_v38 = vpop.f32.mrf.mxu0  ;;  %v725_v12 = vadd.f32 %v724_v3, %v6388_v51 }
 0x190   : > { %v5406_v25 = vpop.eup %5405  ;;  %v577_v44 = vadd.f32 %v576_v38, %v6394_v0 }
 0x191   : > { %2323 = vrot.lane.b32.xlu1 %v2258_v16, %s5952_s18  ;;  %v2283_v16 = vmul.f32 %v6417_v32, %v6520_v9  ;;  %v1362_v36 = vmul.f32 0.5, %v5406_v25  ;;  %v1114_v25 = vmul.f32 0.5, %v725_v12 }
 0x192   : > { %2055 = vrot.lane.b32.xlu0 %v1990_v23, %s5951_s9  ;;  %v1107_v23 = vmul.f32 0.5, %v715_v13  ;;  %v1015_v53 = vmul.f32 0.5, %v577_v44 }
 0x193   : > { %v6542_v43 = vadd.f32 0.5, %v1362_v36  ;;  %v726_v36 = vpop.f32.mrf.mxu1 }
 0x194   : > { %5409 = vtanh.f32 %v1107_v23 }
 0x195   : > { %2371 = vrot.lane.b32.xlu1 %v2282_v28, %s5952_s18  ;;  %v1014_v28 = vmul.f32 0.5, %v575_v15  ;;  %9626 = vst [vmem:[#allocation29_spill] sm:$0xff] %v6542_v43  ;;  %v1816_v58 = vmul.f32 %v6410_v24, %v6542_v43  ;;  %v1616_v60 = vmul.f32 %v6403_v20, %v6542_v43  ;;  %v2016_v23 = vmul.f32 %v6415_v31, %v6542_v43  ;;  %v730_v12 = vpop.f32.mrf.mxu1 }
 0x196   : > { %2103 = vrot.lane.b32.xlu0 %v2014_v33, %s5951_s9  ;;  %v6534_v33 = vadd.f32 0.5, %v1266_v21 }
 0x197   : > { %5411 = vtanh.f32 %v1014_v28 }
 0x198   : > { %9625 = vst [vmem:[#allocation28_spill] sm:$0xff] %v6534_v33  ;;  %v1992_v10 = vmul.f32 %v6415_v31, %v6534_v33 }
 0x199   : > { %2523 = vrot.lane.b32.xlu1 %v2458_v39, %s5950_s30  ;;  %v1110_v39 = vmul.f32 0.5, %v719_v29  ;;  %v5408_v41 = vpop.eup %5407 }
 0x19a   : > { %2723 = vrot.lane.b32.xlu0 %v2658_v42, %s5951_s9  ;;  %v1792_v42 = vmul.f32 %v6410_v24, %v6534_v33  ;;  %v1267_v50 = vmul.f32 0.5, %v5408_v41 }
 0x19b   : > { %5413 = vtanh.f32 %v1110_v39 }
 0x19c   : > { %v6552_v59 = vadd.f32 0.5, %v1267_v50  ;;  %5415 = vtanh.f32 %v1015_v53  ;;  %v6594_v53 = vpop.permute.xlu0 %3122 }
 0x19d   : > { %1657 = vrot.lane.b32.xlu1 %v1591_v49, %s5952_s18  ;;  %v1592_v49 = vmul.f32 %v6403_v20, %v6534_v33  ;;  %9632 = vst [vmem:[#allocation35_spill] sm:$0xff] %v6594_v53 }
 0x19e   : > { %1857 = vrot.lane.b32.xlu0 %v1791_v56, %s5950_s30  ;;  %v721_v56 = vadd.f32 %v720_v47, %v6394_v0  ;;  %9627 = vst [vmem:[#allocation30_spill] sm:$0xff] %v6552_v59  ;;  %v2260_v4 = vmul.f32 %v6417_v32, %v6552_v59  ;;  %v2660_v38 = vmul.f32 %v6432_v48, %v6552_v59 }
 0x1a0   : > { %v1111_v62 = vmul.f32 0.5, %v721_v56 }
 0x1a1   : > { %1705 = vrot.lane.b32.xlu1 %v1615_v61, %s5952_s18  ;;  %v580_v61 = vpop.f32.mrf.mxu0  ;;  %v5410_v63 = vpop.eup %5409 }
 0x1a2   : > { %1905 = vrot.lane.b32.xlu0 %v1815_v1, %s5950_s30  ;;  %v581_v1 = vadd.f32 %v580_v61, %v6388_v51  ;;  %v1363_v8 = vmul.f32 0.5, %v5410_v63  ;;  %5417 = vtanh.f32 %v1111_v62 }
 0x1a3   : > { %v582_v15 = vpop.f32.mrf.mxu0 }
 0x1a4   : > { %v6570_v22 = vadd.f32 0.5, %v1363_v8  ;;  %v6609_v8 = vpop.permute.xlu0 %3790 }
 0x1a5   : > { %2057 = vrot.lane.b32.xlu1 %v1991_v5, %s5951_s9  ;;  %v5412_v5 = vpop.eup %5411  ;;  %v586_v63 = vpop.f32.mrf.mxu0  ;;  %9634 = vst [vmem:[#allocation37_spill] sm:$0xff] %v6609_v8 }
 0x1a6   : > { %2325 = vrot.lane.b32.xlu0 %v2259_v7, %s5952_s18  ;;  %v6561_v7 = vpop.permute.xlu1 %2922  ;;  %v1270_v13 = vmul.f32 0.5, %v5412_v5  ;;  %9628 = vst [vmem:[#allocation31_spill] sm:$0xff] %v6570_v22  ;;  %v2284_v39 = vmul.f32 %v6417_v32, %v6570_v22 }
 0x1a8   : > { %v5414_v21 = vpop.eup %5413  ;;  %v6578_v29 = vadd.f32 0.5, %v1270_v13 }
 0x1a9   : > { %2105 = vrot.lane.b32.xlu1 %v2015_v14, %s5951_s9  ;;  %v1018_v14 = vmul.f32 0.5, %v581_v1  ;;  %v5416_v41 = vpop.eup %5415 }
 0x1aa   : > { %2373 = vrot.lane.b32.xlu0 %v2283_v16, %s5952_s18  ;;  %v2460_v16 = vmul.f32 %v6452_v57, %v6552_v59  ;;  %v6576_v28 = vpop.permute.xlu1 %3322  ;;  %v1271_v56 = vmul.f32 0.5, %v5416_v41  ;;  %v1993_v13 = vmul.f32 %v6415_v31, %v6578_v29 }
 0x1ab   : > { %9629 = vst [vmem:[#allocation32_spill] sm:$0xff] %v6576_v28  ;;  %5419 = vtanh.f32 %v1018_v14 }
 0x1ac   : > { %5421 = vtanh.f32 %v1114_v25  ;;  %v6602_v1 = vadd.f32 0.5, %v1271_v56 }
 0x1ad   : > { %2725 = vrot.lane.b32.xlu1 %v2659_v26, %s5951_s9  ;;  %v583_v26 = vadd.f32 %v582_v15, %v6394_v0 }
 0x1ae   : > { %2525 = vrot.lane.b32.xlu0 %v2459_v34, %s5950_s30  ;;  %v1366_v34 = vmul.f32 0.5, %v5414_v21  ;;  %v6592_v50 = vpop.permute.xlu1 %3590  ;;  %v731_v21 = vadd.f32 %v730_v12, %v6388_v51  ;;  %v2661_v56 = vmul.f32 %v6432_v48, %v6602_v1 }
 0x1af   : > { %v1019_v47 = vmul.f32 0.5, %v583_v26  ;;  %9631 = vst [vmem:[#allocation34_spill] sm:$0xff] %v6592_v50 }
 0x1b0   : > { %v6587_v44 = vadd.f32 0.5, %v1366_v34  ;;  %v1118_v41 = vmul.f32 0.5, %v731_v21 }
 0x1b1   : > { %1859 = vrot.lane.b32.xlu1 %v1792_v42, %s5950_s30  ;;  %v727_v42 = vadd.f32 %v726_v36, %v6394_v0  ;;  %5423 = vtanh.f32 %v1019_v47 }
 0x1b2   : > { %1659 = vrot.lane.b32.xlu0 %v1592_v49, %s5952_s18  ;;  %9630 = vst [vmem:[#allocation33_spill] sm:$0xff] %v6587_v44  ;;  %v1593_v49 = vmul.f32 %v6403_v20, %v6578_v29  ;;  %v1617_v62 = vmul.f32 %v6403_v20, %v6587_v44  ;;  %v6607_v5 = vpop.permute.xlu1 %3990  ;;  %v2017_v26 = vmul.f32 %v6415_v31, %v6587_v44 }
 0x1b3   : > { %v1115_v61 = vmul.f32 0.5, %v727_v42  ;;  %9633 = vst [vmem:[#allocation36_spill] sm:$0xff] %v6607_v5  ;;  %v588_v42 = vpop.f32.mrf.mxu0 }
 0x1b5   : > { %1907 = vrot.lane.b32.xlu1 %v1816_v58, %s5950_s30  ;;  %v1793_v58 = vmul.f32 %v6410_v24, %v6578_v29  ;;  %5425 = vtanh.f32 %v1115_v61  ;;  %v732_v61 = vpop.f32.mrf.mxu1 }
 0x1b6   : > { %1707 = vrot.lane.b32.xlu0 %v1616_v60, %s5952_s18  ;;  %v5418_v60 = vpop.eup %5417 }
 0x1b7   : > { %v1367_v3 = vmul.f32 0.5, %v5418_v60  ;;  %v589_v60 = vadd.f32 %v588_v42, %v6394_v0 }
 0x1b8   : > { %v5420_v14 = vpop.eup %5419 }
 0x1b9   : > { %2327 = vrot.lane.b32.xlu1 %v2260_v4, %s5952_s18  ;;  %v1817_v4 = vmul.f32 %v6410_v24, %v6587_v44  ;;  %v6615_v15 = vadd.f32 0.5, %v1367_v3  ;;  %v5422_v34 = vpop.eup %5421 }
 0x1ba   : > { %2059 = vrot.lane.b32.xlu0 %v1992_v10, %s5951_s9  ;;  %v587_v10 = vadd.f32 %v586_v63, %v6388_v51 }
 0x1bb   : > { %9635 = vst [vmem:[#allocation38_spill] sm:$0xff] %v6615_v15 }
 0x1bc   : > { %v1022_v25 = vmul.f32 0.5, %v587_v10 }
 0x1bd   : > { %2527 = vrot.lane.b32.xlu1 %v2460_v16, %s5950_s30  ;;  %v2261_v16 = vmul.f32 %v6417_v32, %v6602_v1 }
 0x1be   : > { %2107 = vrot.lane.b32.xlu0 %v2016_v23, %s5951_s9  ;;  %v1274_v23 = vmul.f32 0.5, %v5420_v14  ;;  %5427 = vtanh.f32 %v1022_v25  ;;  %v1023_v14 = vmul.f32 0.5, %v589_v60  ;;  %v736_v60 = vpop.f32.mrf.mxu1 }
 0x1bf   : > { %5429 = vtanh.f32 %v1118_v41 }
 0x1c0   : > { %v6631_v47 = vadd.f32 0.5, %v1274_v23  ;;  %5431 = vtanh.f32 %v1023_v14  ;;  %v738_v43 = vpop.f32.mrf.mxu1 }
 0x1c1   : > { %2727 = vrot.lane.b32.xlu1 %v2660_v38, %s5951_s9 }
 0x1c2   : > { %2375 = vrot.lane.b32.xlu0 %v2284_v39, %s5952_s18  ;;  %v2285_v39 = vmul.f32 %v6417_v32, %v6615_v15  ;;  %v1794_v12 = vmul.f32 %v6410_v24, %v6631_v47  ;;  %v1594_v21 = vmul.f32 %v6403_v20, %v6631_v47 }
 0x1c5   : > { %1661 = vrot.lane.b32.xlu1 %v1593_v49, %s5952_s18  ;;  %v1370_v49 = vmul.f32 0.5, %v5422_v34 }
 0x1c6   : > { %1861 = vrot.lane.b32.xlu0 %v1793_v58, %s5950_s30  ;;  %v5424_v58 = vpop.eup %5423 }
 0x1c7   : > { %v1275_v10 = vmul.f32 0.5, %v5424_v58 }
 0x1c9   : > { %1709 = vrot.lane.b32.xlu1 %v1617_v62, %s5952_s18  ;;  %v2461_v62 = vmul.f32 %v6452_v57, %v6602_v1 }
 0x1ca   : > { %1909 = vrot.lane.b32.xlu0 %v1817_v4, %s5950_s30  ;;  %v6644_v4 = vadd.f32 0.5, %v1370_v49 }
 0x1cc   : > { %9637 = vst [vmem:[#allocation40_spill] sm:$0xff] %v6644_v4  ;;  %v1818_v41 = vmul.f32 %v6410_v24, %v6644_v4  ;;  %v1618_v49 = vmul.f32 %v6403_v20, %v6644_v4 }
 0x1cd   : > { %2061 = vrot.lane.b32.xlu1 %v1993_v13, %s5951_s9  ;;  %v5426_v13 = vpop.eup %5425 }
 0x1ce   : > { %2329 = vrot.lane.b32.xlu0 %v2261_v16, %s5952_s18  ;;  %v733_v16 = vadd.f32 %v732_v61, %v6394_v0  ;;  %v1371_v34 = vmul.f32 0.5, %v5426_v13  ;;  %v1994_v13 = vmul.f32 %v6415_v31, %v6631_v47 }
 0x1d0   : > { %v1119_v42 = vmul.f32 0.5, %v733_v16  ;;  %v6666_v58 = vadd.f32 0.5, %v1371_v34  ;;  %v737_v16 = vadd.f32 %v736_v60, %v6388_v51 }
 0x1d1   : > { %2109 = vrot.lane.b32.xlu1 %v2017_v26, %s5951_s9  ;;  %v6657_v26 = vadd.f32 0.5, %v1275_v10  ;;  %v5428_v10 = vpop.eup %5427 }
 0x1d2   : > { %2377 = vrot.lane.b32.xlu0 %v2285_v39, %s5952_s18  ;;  %v592_v39 = vpop.f32.mrf.mxu0  ;;  %9640 = vst [vmem:[#allocation43_spill] sm:$0xff] %v6666_v58  ;;  %5433 = vtanh.f32 %v1119_v42  ;;  %v2286_v34 = vmul.f32 %v6417_v32, %v6666_v58  ;;  %v2018_v42 = vmul.f32 %v6415_v31, %v6644_v4 }
 0x1d3   : > { %v2262_v61 = vmul.f32 %v6417_v32, %v6657_v26  ;;  %v2462_v44 = vmul.f32 %v6452_v57, %v6657_v26 }
 0x1d5   : > { %2729 = vrot.lane.b32.xlu1 %v2661_v56, %s5951_s9  ;;  %v593_v56 = vadd.f32 %v592_v39, %v6388_v51 }
 0x1d6   : > { %2529 = vrot.lane.b32.xlu0 %v2461_v62, %s5950_s30 }
 0x1d7   : > { %v1026_v14 = vmul.f32 0.5, %v593_v56  ;;  %v1122_v56 = vmul.f32 0.5, %v737_v16 }
 0x1d9   : > { %1863 = vrot.lane.b32.xlu1 %v1794_v12, %s5950_s30  ;;  %5435 = vtanh.f32 %v1026_v14 }
 0x1da   : > { %1663 = vrot.lane.b32.xlu0 %v1594_v21, %s5952_s18  ;;  %v1278_v21 = vmul.f32 0.5, %v5428_v10  ;;  %5437 = vtanh.f32 %v1122_v56 }
 0x1dc   : > { %v6689_v60 = vadd.f32 0.5, %v1278_v21 }
 0x1dd   : > { %1911 = vrot.lane.b32.xlu1 %v1818_v41, %s5950_s30  ;;  %v5430_v41 = vpop.eup %5429 }
 0x1de   : > { %1711 = vrot.lane.b32.xlu0 %v1618_v49, %s5952_s18  ;;  %v594_v49 = vpop.f32.mrf.mxu0  ;;  %v1374_v10 = vmul.f32 0.5, %v5430_v41  ;;  %v5432_v14 = vpop.eup %5431  ;;  %v739_v41 = vadd.f32 %v738_v43, %v6394_v0  ;;  %v1795_v54 = vmul.f32 %v6410_v24, %v6689_v60 }
 0x1e0   : > { %v6700_v16 = vadd.f32 0.5, %v1374_v10  ;;  %v598_v56 = vpop.f32.mrf.mxu0  ;;  %v1123_v10 = vmul.f32 0.5, %v739_v41 }
 0x1e1   : > { %2331 = vrot.lane.b32.xlu1 %v2262_v61, %s5952_s18 }
 0x1e2   : > { %2063 = vrot.lane.b32.xlu0 %v1994_v13, %s5951_s9  ;;  %v595_v13 = vadd.f32 %v594_v49, %v6394_v0  ;;  %9642 = vst [vmem:[#allocation45_spill] sm:$0xff] %v6700_v16  ;;  %v1595_v49 = vmul.f32 %v6403_v20, %v6689_v60  ;;  %v1619_v43 = vmul.f32 %v6403_v20, %v6700_v16 }
 0x1e4   : > { %v1027_v21 = vmul.f32 0.5, %v595_v13 }
 0x1e5   : > { %2379 = vrot.lane.b32.xlu1 %v2286_v34, %s5952_s18  ;;  %v2662_v34 = vmul.f32 %v6432_v48, %v6657_v26 }
 0x1e6   : > { %2111 = vrot.lane.b32.xlu0 %v2018_v42, %s5951_s9  ;;  %5439 = vtanh.f32 %v1027_v21  ;;  %v1819_v21 = vmul.f32 %v6410_v24, %v6700_v16 }
 0x1e7   : > { %v6624_v36 = vpop.permute.xlu1 %1701  ;;  %5441 = vtanh.f32 %v1123_v10 }
 0x1e8   : > { %9636 = vst [vmem:[#allocation39_spill] sm:$0xff] %v6624_v36  ;;  %v6626_v38 = vpop.permute.xlu0 %1653 }
 0x1e9   : > { %2531 = vrot.lane.b32.xlu1 %v2462_v44, %s5950_s30  ;;  %v1279_v44 = vmul.f32 0.5, %v5432_v14 }
 0x1ea   : > { %2731 = vrot.lane.b32.xlu0 %v2662_v34, %s5951_s9  ;;  %v6718_v34 = vrot.slane %v6384_v45, %v6174_v35  ;;  %v1995_v35 = vmul.f32 %v6415_v31, %v6689_v60  ;;  %v807_v45 = vpop.f32.mrf.mxu1 }
 0x1eb   : > { %v6640_v63 = vpop.permute.xlu1 %2053  ;;  %v6720_v14 = vadd.f32 0.5, %v1279_v44 }
 0x1ec   : > { %v6642_v3 = vpop.permute.xlu0 %1853  ;;  %9644 = vst [vmem:[#allocation47_spill] sm:$0xff] %v6718_v34 }
 0x1ed   : > { %1665 = vrot.lane.b32.xlu1 %v1595_v49, %s5952_s18 }
 0x1ee   : > { %1865 = vrot.lane.b32.xlu0 %v1795_v54, %s5950_s30 }
 0x1ef   : > { %v6653_v23 = vpop.permute.xlu1 %2101 }
 0x1f0   : > { %9638 = vst [vmem:[#allocation41_spill] sm:$0xff] %v6653_v23  ;;  %v6655_v25 = vpop.permute.xlu0 %1901  ;;  %v599_v23 = vadd.f32 %v598_v56, %v6388_v51 }
 0x1f1   : > { %9639 = vst [vmem:[#allocation42_spill] sm:$0xff] %v6655_v25  ;;  %1713 = vrot.lane.b32.xlu1 %v1619_v43, %s5952_s18  ;;  %v808_v43 = vadd.f32 %v807_v45, %v6718_v34  ;;  %v2019_v25 = vmul.f32 %v6415_v31, %v6700_v16 }
 0x1f2   : > { %1913 = vrot.lane.b32.xlu0 %v1819_v21, %s5950_s30  ;;  %v1030_v56 = vmul.f32 0.5, %v599_v23 }
 0x1f3   : > { %v6671_v62 = vpop.permute.xlu1 %2721 }
 0x1f4   : > { %v6673_v12 = vpop.permute.xlu0 %2321  ;;  %5443 = vtanh.f32 %v1030_v56 }
 0x1f5   : > { %2065 = vrot.lane.b32.xlu1 %v1995_v35, %s5951_s9 }
 0x1f7   : > { %v6682_v39 = vpop.permute.xlu1 %1655 }
 0x1f8   : > { %v6687_v61 = vpop.permute.xlu0 %2369 }
 0x1f9   : > { %9641 = vst [vmem:[#allocation44_spill] sm:$0xff] %v6687_v61  ;;  %v5434_v61 = vpop.eup %5433  ;;  %2113 = vrot.lane.b32.xlu1 %v2019_v25, %s5951_s9  ;;  %v2463_v25 = vmul.f32 %v6452_v57, %v6720_v14 }
 0x1fa   : > { %v1375_v49 = vmul.f32 0.5, %v5434_v61  ;;  %v5436_v41 = vpop.eup %5435 }
 0x1fb   : > { %v6698_v4 = vpop.permute.xlu1 %1855  ;;  %v5438_v21 = vpop.eup %5437  ;;  %v1282_v6 = vmul.f32 0.5, %v5436_v41 }
 0x1fc   : > { %v6706_v42 = vpop.permute.xlu0 %2521  ;;  %v6733_v61 = vadd.f32 0.5, %v1375_v49  ;;  %v1000_v49 = vmul.f32 0.5, %v808_v43  ;;  %v1378_v17 = vmul.f32 0.5, %v5438_v21  ;;  %v5440_v56 = vpop.eup %5439 }
 0x1fd   : > { %v6750_v36 = vadd.f32 0.5, %v1282_v6  ;;  %v1283_v6 = vmul.f32 0.5, %v5440_v56 }
 0x1fe   : > { %9647 = vst [vmem:[#allocation50_spill] sm:$0xff] %v6733_v61  ;;  %v2287_v35 = vmul.f32 %v6417_v32, %v6733_v61  ;;  %5445 = vtanh.f32 %v1000_v49  ;;  %v6760_v16 = vadd.f32 0.5, %v1378_v17 }
 0x1ff   : > { %v6714_v13 = vpop.permute.xlu1 %1903  ;;  %v1796_v21 = vmul.f32 %v6410_v24, %v6750_v36  ;;  %v6773_v17 = vadd.f32 0.5, %v1283_v6 }
 0x200   : > { %9643 = vst [vmem:[#allocation46_spill] sm:$0xff] %v6714_v13  ;;  %v6726_v54 = vpop.permute.xlu0 %1703  ;;  %v2263_v13 = vmul.f32 %v6417_v32, %v6720_v14  ;;  %9650 = vst [vmem:[#allocation53_spill] sm:$0xff] %v6760_v16 }
 0x201   : > { %9645 = vst [vmem:[#allocation48_spill] sm:$0xff] %v6726_v54  ;;  %v600_v54 = vpop.f32.mrf.mxu0 }
 0x202   : > { %2333 = vrot.lane.b32.xlu0 %v2263_v13, %s5952_s18  ;;  %v601_v23 = vadd.f32 %v600_v54, %v6394_v0  ;;  %v2663_v13 = vmul.f32 %v6432_v48, %v6720_v14 }
 0x203   : > { %v6731_v44 = vpop.permute.xlu1 %2323  ;;  %v604_v43 = vpop.f32.mrf.mxu0 }
 0x204   : > { %9646 = vst [vmem:[#allocation49_spill] sm:$0xff] %v6731_v44  ;;  %v6739_v10 = vpop.permute.xlu0 %2055  ;;  %v1031_v54 = vmul.f32 0.5, %v601_v23  ;;  %2733 = vrot.lane.b32.xlu1 %v2663_v13, %s5951_s9  ;;  %v605_v49 = vadd.f32 %v604_v43, %v6388_v51  ;;  %v1596_v23 = vmul.f32 %v6403_v20, %v6750_v36 }
 0x206   : > { %2381 = vrot.lane.b32.xlu0 %v2287_v35, %s5952_s18  ;;  %5447 = vtanh.f32 %v1031_v54  ;;  %v606_v54 = vpop.f32.mrf.mxu0  ;;  %v1034_v43 = vmul.f32 0.5, %v605_v49  ;;  %v1996_v49 = vmul.f32 %v6415_v31, %v6750_v36 }
 0x207   : > { %v6748_v45 = vpop.permute.xlu1 %2371  ;;  %v607_v58 = vadd.f32 %v606_v54, %v6394_v0 }
 0x208   : > { %9648 = vst [vmem:[#allocation51_spill] sm:$0xff] %v6748_v45  ;;  %v6755_v41 = vpop.permute.xlu0 %2103  ;;  %v5442_v45 = vpop.eup %5441  ;;  %1867 = vrot.lane.b32.xlu1 %v1796_v21, %s5950_s30  ;;  %v1620_v21 = vmul.f32 %v6403_v20, %v6760_v16  ;;  %5449 = vtanh.f32 %v1034_v43 }
 0x209   : > { %9649 = vst [vmem:[#allocation52_spill] sm:$0xff] %v6755_v41  ;;  %v1379_v56 = vmul.f32 0.5, %v5442_v45  ;;  %v1820_v41 = vmul.f32 %v6410_v24, %v6760_v16  ;;  %v5444_v15 = vpop.eup %5443  ;;  %v1035_v19 = vmul.f32 0.5, %v607_v58 }
 0x20a   : > { %2533 = vrot.lane.b32.xlu0 %v2463_v25, %s5950_s30  ;;  %v6775_v25 = vpop.f32.mrf.mxu1  ;;  %v1286_v22 = vmul.f32 0.5, %v5444_v15 }
 0x20b   : > { %v6765_v35 = vpop.permute.xlu1 %2523  ;;  %v6787_v45 = vadd.f32 0.5, %v1379_v56  ;;  %v5446_v55 = vpop.eup %5445  ;;  %5451 = vtanh.f32 %v1035_v19 }
 0x20c   : > { %9651 = vst [vmem:[#allocation54_spill] sm:$0xff] %v6765_v35  ;;  %v6771_v13 = vpop.permute.xlu0 %2723  ;;  %1915 = vrot.lane.b32.xlu1 %v1820_v41, %s5950_s30  ;;  %v813_v9 = vpop.f32.mrf.mxu1  ;;  %v6804_v15 = vadd.f32 0.5, %v1286_v22 }
 0x20d   : > { %9652 = vst [vmem:[#allocation55_spill] sm:$0xff] %v6771_v13  ;;  %9655 = vst [vmem:[#allocation58_spill] sm:$0xff] %v6787_v45  ;;  %v814_v41 = vadd.f32 %v813_v9, %v6718_v34  ;;  %v2288_v54 = vmul.f32 %v6417_v32, %v6787_v45  ;;  %v1256_v9 = vmul.f32 0.5, %v5446_v55 }
 0x20e   : > { %1667 = vrot.lane.b32.xlu0 %v1596_v23, %s5952_s18  ;;  %v2264_v23 = vmul.f32 %v6417_v32, %v6773_v17  ;;  %v6822_v19 = vpop.f32.mrf.mxu1 }
 0x20f   : > { %v6780_v61 = vpop.permute.xlu1 %1657  ;;  %v1004_v43 = vmul.f32 0.5, %v814_v41  ;;  %v6815_v22 = vadd.f32 0.5, %v1256_v9  ;;  %v1797_v41 = vmul.f32 %v6410_v24, %v6804_v15 }
 0x210   : > { %9653 = vst [vmem:[#allocation56_spill] sm:$0xff] %v6780_v61  ;;  %v6785_v6 = vpop.permute.xlu0 %1857  ;;  %2335 = vrot.lane.b32.xlu1 %v2264_v23, %s5952_s18  ;;  %v2020_v23 = vmul.f32 %v6415_v31, %v6760_v16 }
 0x211   : > { %9654 = vst [vmem:[#allocation57_spill] sm:$0xff] %v6785_v6  ;;  %5453 = vtanh.f32 %v1004_v43 }
 0x212   : > { %1715 = vrot.lane.b32.xlu0 %v1620_v21, %s5952_s18  ;;  %v610_v21 = vpop.f32.mrf.mxu0 }
 0x213   : > { %v6797_v56 = vpop.permute.xlu1 %1705  ;;  %v5448_v33 = vpop.eup %5447  ;;  %v611_v58 = vadd.f32 %v610_v21, %v6388_v51 }
 0x214   : > { %9656 = vst [vmem:[#allocation59_spill] sm:$0xff] %v6797_v56  ;;  %v6802_v59 = vpop.permute.xlu0 %1905  ;;  %2383 = vrot.lane.b32.xlu1 %v2288_v54, %s5952_s18  ;;  %v1287_v55 = vmul.f32 0.5, %v5448_v33  ;;  %v2925_v33 = vmul.f32 %v6561_v7, %v6815_v22 }
 0x215   : > { %9657 = vst [vmem:[#allocation60_spill] sm:$0xff] %v6802_v59  ;;  %v1038_v21 = vmul.f32 0.5, %v611_v58  ;;  %v5450_v43 = vpop.eup %5449  ;;  %v1997_v58 = vmul.f32 %v6415_v31, %v6804_v15 }
 0x216   : > { %2067 = vrot.lane.b32.xlu0 %v1996_v49, %s5951_s9  ;;  %v2464_v49 = vmul.f32 %v6452_v57, %v6773_v17  ;;  %v6827_v16 = vadd.f32 0.5, %v1287_v55  ;;  %v612_v55 = vpop.f32.mrf.mxu0  ;;  %v1290_v45 = vmul.f32 0.5, %v5450_v43 }
 0x217   : > { %v6813_v56 = vpop.permute.xlu1 %2057  ;;  %5455 = vtanh.f32 %v1038_v21  ;;  %v3125_v21 = vmul.f32 %v6594_v53, %v6815_v22  ;;  %v613_v43 = vadd.f32 %v612_v55, %v6394_v0 }
 0x218   : > { %9658 = vst [vmem:[#allocation61_spill] sm:$0xff] %v6813_v56  ;;  %2535 = vrot.lane.b32.xlu1 %v2464_v49, %s5950_s30  ;;  %v6820_v54 = vpop.permute.xlu0 %2325  ;;  %v819_v49 = vpop.f32.mrf.mxu1 }
 0x219   : > { %9659 = vst [vmem:[#allocation62_spill] sm:$0xff] %v6820_v54  ;;  %v820_v59 = vadd.f32 %v819_v49, %v6718_v34  ;;  %v616_v49 = vpop.f32.mrf.mxu0 }
 0x21a   : > { %2115 = vrot.lane.b32.xlu0 %v2020_v23, %s5951_s9  ;;  %v1597_v23 = vmul.f32 %v6403_v20, %v6804_v15  ;;  %v617_v48 = vadd.f32 %v616_v49, %v6388_v51 }
 0x21b   : > { %v6832_v9 = vpop.permute.xlu1 %2105  ;;  %v1008_v5 = vmul.f32 0.5, %v820_v59  ;;  %v2465_v59 = vmul.f32 %v6452_v57, %v6827_v16 }
 0x21c   : > { %1669 = vrot.lane.b32.xlu1 %v1597_v23, %s5952_s18  ;;  %9660 = vst [vmem:[#allocation63_spill] sm:$0xff] %v6832_v9  ;;  %v2265_v23 = vmul.f32 %v6417_v32, %v6827_v16 }
 0x21d   : > { %5457 = vtanh.f32 %v1008_v5 }
 0x21e   : > { %1869 = vrot.lane.b32.xlu0 %v1797_v41, %s5950_s30  ;;  %v6838_v41 = vpop.permute.xlu0 %2373 }
 0x21f   : > { %9661 = vst [vmem:[#allocation64_spill] sm:$0xff] %v6838_v41  ;;  %v6843_v9 = vpop.permute.xlu1 %2725  ;;  %v6850_v41 = vadd.f32 0.5, %v1290_v45  ;;  %v3325_v45 = vmul.f32 %v6576_v28, %v6815_v22 }
 0x220   : > { %2069 = vrot.lane.b32.xlu1 %v1997_v58, %s5951_s9  ;;  %9662 = vst [vmem:[#allocation65_spill] sm:$0xff] %v6843_v9  ;;  %v6853_v58 = vpop.f32.mrf.mxu1 }
 0x221   : > { %9664 = vst [vmem:[#allocation67_spill] sm:$0xff] %v6853_v58 }
 0x222   : > { %2989 = vrot.lane.b32.xlu0 %v2925_v33, %s5952_s18  ;;  %v5452_v33 = vpop.eup %5451  ;;  %v6848_v8 = vpop.permute.xlu0 %2525 }
 0x223   : > { %9663 = vst [vmem:[#allocation66_spill] sm:$0xff] %v6848_v8  ;;  %v5454_v50 = vpop.eup %5453  ;;  %v6862_v9 = vpop.permute.xlu1 %1859  ;;  %v1039_v8 = vmul.f32 0.5, %v613_v43 }
 0x224   : > { %3189 = vrot.lane.b32.xlu1 %v3125_v21, %s5950_s30  ;;  %9665 = vst [vmem:[#allocation68_spill] sm:$0xff] %v6862_v9  ;;  %v1260_v55 = vmul.f32 0.5, %v5454_v50  ;;  %v825_v54 = vpop.f32.mrf.mxu1  ;;  %v1598_v21 = vmul.f32 %v6403_v20, %v6850_v41  ;;  %v1798_v9 = vmul.f32 %v6410_v24, %v6850_v41  ;;  %v5456_v50 = vpop.eup %5455 }
 0x225   : > { %v618_v43 = vpop.f32.mrf.mxu0  ;;  %5459 = vtanh.f32 %v1039_v8 }
 0x226   : > { %2337 = vrot.lane.b32.xlu0 %v2265_v23, %s5952_s18  ;;  %v1291_v23 = vmul.f32 0.5, %v5452_v33  ;;  %v826_v33 = vadd.f32 %v825_v54, %v6718_v34  ;;  %v6868_v5 = vpop.permute.xlu0 %1659  ;;  %v6875_v13 = vadd.f32 0.5, %v1260_v55  ;;  %v1998_v54 = vmul.f32 %v6415_v31, %v6850_v41 }
 0x227   : > { %9666 = vst [vmem:[#allocation69_spill] sm:$0xff] %v6868_v5  ;;  %v1294_v5 = vmul.f32 0.5, %v5456_v50  ;;  %v622_v55 = vpop.f32.mrf.mxu0 }
 0x228   : > { %3389 = vrot.lane.b32.xlu1 %v3325_v45, %s5951_s9  ;;  %v6870_v49 = vadd.f32 0.5, %v1291_v23  ;;  %9668 = vst [vmem:[#allocation71_spill] sm:$0xff] %v6875_v13  ;;  %v6880_v45 = vpop.permute.xlu1 %1907  ;;  %v1012_v23 = vmul.f32 0.5, %v826_v33 }
 0x229   : > { %9669 = vst [vmem:[#allocation72_spill] sm:$0xff] %v6880_v45  ;;  %v6893_v33 = vadd.f32 0.5, %v1294_v5  ;;  %v3126_v5 = vmul.f32 %v6594_v53, %v6875_v13 }
 0x22a   : > { %2537 = vrot.lane.b32.xlu0 %v2465_v59, %s5950_s30  ;;  %9667 = vst [vmem:[#allocation70_spill] sm:$0xff] %v6870_v49  ;;  %v1042_v59 = vmul.f32 0.5, %v617_v48  ;;  %v619_v48 = vadd.f32 %v618_v43, %v6394_v0  ;;  %v6886_v2 = vpop.permute.xlu0 %1707  ;;  %v2266_v8 = vmul.f32 %v6417_v32, %v6870_v49  ;;  %v5458_v45 = vpop.eup %5457 }
 0x22b   : > { %9671 = vst [vmem:[#allocation74_spill] sm:$0xff] %v6886_v2  ;;  %9672 = vst [vmem:[#allocation75_spill] sm:$0xff] %v6893_v33 }
 0x22c   : > { %1871 = vrot.lane.b32.xlu1 %v1798_v9, %s5950_s30  ;;  %5461 = vtanh.f32 %v1042_v59  ;;  %v2926_v9 = vmul.f32 %v6561_v7, %v6875_v13  ;;  %v1043_v59 = vmul.f32 0.5, %v619_v48  ;;  %v6896_v43 = vpop.permute.xlu1 %2327  ;;  %v623_v48 = vadd.f32 %v622_v55, %v6388_v51 }
 0x22d   : > { %5463 = vtanh.f32 %v1012_v23  ;;  %9673 = vst [vmem:[#allocation76_spill] sm:$0xff] %v6896_v43  ;;  %v1264_v23 = vmul.f32 0.5, %v5458_v45 }
 0x22e   : > { %1671 = vrot.lane.b32.xlu0 %v1598_v21, %s5952_s18  ;;  %v6883_v21 = vpop.f32.mrf.mxu1  ;;  %5465 = vtanh.f32 %v1043_v59  ;;  %v1046_v55 = vmul.f32 0.5, %v623_v48 }
 0x22f   : > { %9670 = vst [vmem:[#allocation73_spill] sm:$0xff] %v6883_v21  ;;  %v1599_v21 = vmul.f32 %v6403_v20, %v6893_v33  ;;  %v6917_v59 = vadd.f32 0.5, %v1264_v23  ;;  %v5699_v23 = vld [vmem:[#allocation8] sm:$0xff] }
 0x230   : > { %2339 = vrot.lane.b32.xlu1 %v2266_v8, %s5952_s18  ;;  %v831_v50 = vpop.f32.mrf.mxu1  ;;  %v6901_v8 = vpop.permute.xlu0 %2059  ;;  %v6930_v48 = vrot.slane %v5699_v23, %v6382_v37 }
 0x231   : > { %v832_v2 = vadd.f32 %v831_v50, %v6718_v34  ;;  %9674 = vst [vmem:[#allocation77_spill] sm:$0xff] %v6901_v8  ;;  %v6908_v43 = vpop.permute.xlu1 %2527 }
 0x232   : > { %2071 = vrot.lane.b32.xlu0 %v1998_v54, %s5951_s9  ;;  %v2466_v54 = vmul.f32 %v6452_v57, %v6870_v49  ;;  %9675 = vst [vmem:[#allocation78_spill] sm:$0xff] %v6908_v43  ;;  %v5460_v45 = vpop.eup %5459  ;;  %v1999_v43 = vmul.f32 %v6415_v31, %v6893_v33  ;;  %9679 = vst [vmem:[#allocation82_spill] sm:$0xff] %v6930_v48 }
 0x233   : > { %v1016_v50 = vmul.f32 0.5, %v832_v2 }
 0x234   : > { %2539 = vrot.lane.b32.xlu1 %v2466_v54, %s5950_s30  ;;  %v6912_v34 = vpop.permute.xlu0 %2107  ;;  %v3326_v54 = vmul.f32 %v6576_v28, %v6875_v13 }
 0x235   : > { %9676 = vst [vmem:[#allocation79_spill] sm:$0xff] %v6912_v34  ;;  %5467 = vtanh.f32 %v1016_v50  ;;  %v1295_v34 = vmul.f32 0.5, %v5460_v45  ;;  %v3127_v50 = vmul.f32 %v6594_v53, %v6917_v59 }
 0x236   : > { %2991 = vrot.lane.b32.xlu0 %v2926_v9, %s5952_s18  ;;  %v624_v9 = vpop.f32.mrf.mxu0  ;;  %5469 = vtanh.f32 %v1046_v55 }
 0x237   : > { %v625_v56 = vadd.f32 %v624_v9, %v6394_v0 }
 0x238   : > { %1673 = vrot.lane.b32.xlu1 %v1599_v21, %s5952_s18  ;;  %v628_v8 = vpop.f32.mrf.mxu0  ;;  %v6924_v35 = vpop.permute.xlu0 %2375  ;;  %v1799_v21 = vmul.f32 %v6410_v24, %v6893_v33  ;;  %v6938_v33 = vadd.f32 0.5, %v1295_v34  ;;  %v3327_v34 = vmul.f32 %v6576_v28, %v6917_v59 }
 0x239   : > { %v5462_v2 = vpop.eup %5461  ;;  %9678 = vst [vmem:[#allocation81_spill] sm:$0xff] %v6924_v35  ;;  %v1047_v49 = vmul.f32 0.5, %v625_v56 }
 0x23a   : > { %3191 = vrot.lane.b32.xlu0 %v3126_v5, %s5950_s30  ;;  %v6920_v5 = vpop.permute.xlu1 %2727  ;;  %v5464_v45 = vpop.eup %5463  ;;  %9680 = vst [vmem:[#allocation83_spill] sm:$0xff] %v6938_v33 }
 0x23b   : > { %9677 = vst [vmem:[#allocation80_spill] sm:$0xff] %v6920_v5  ;;  %v1298_v5 = vmul.f32 0.5, %v5462_v2  ;;  %v630_v35 = vpop.f32.mrf.mxu0  ;;  %v1268_v58 = vmul.f32 0.5, %v5464_v45  ;;  %v5466_v9 = vpop.eup %5465 }
 0x23c   : > { %2073 = vrot.lane.b32.xlu1 %v1999_v43, %s5951_s9  ;;  %v1521_v43 = vmul.f32 %v6930_v48, %v6578_v29  ;;  %v1862_v44 = vpop.permute.xlu0 %1861  ;;  %v631_v6 = vadd.f32 %v630_v35, %v6394_v0 }
 0x23e   : > { %3391 = vrot.lane.b32.xlu0 %v3326_v54, %s5951_s9  ;;  %v629_v54 = vadd.f32 %v628_v8, %v6388_v51  ;;  %v1662_v13 = vpop.permute.xlu1 %1661  ;;  %v2927_v8 = vmul.f32 %v6561_v7, %v6917_v59  ;;  %v1051_v45 = vmul.f32 0.5, %v631_v6 }
 0x23f   : > { %v1753_v2 = vadd.f32 %v1662_v13, %v1521_v43  ;;  %v2267_v13 = vmul.f32 %v6417_v32, %v6938_v33  ;;  %v634_v43 = vpop.f32.mrf.mxu0 }
 0x240   : > { %3193 = vrot.lane.b32.xlu1 %v3127_v50, %s5950_s30  ;;  %v1050_v55 = vmul.f32 0.5, %v629_v54  ;;  %v9514_v50 = vsub.s32 4, %v6171_v30  ;;  %v6953_v61 = vpop.permute.xlu0 %1909  ;;  %v1299_v54 = vmul.f32 0.5, %v5466_v9 }
 0x241   : > { %9683 = vst [vmem:[#allocation86_spill] sm:$0xff] %v6953_v61  ;;  %v1953_v35 = vadd.f32 %v1862_v44, %v1753_v2  ;;  %v2467_v44 = vmul.f32 %v6452_v57, %v6938_v33  ;;  %v635_v2 = vadd.f32 %v634_v43, %v6388_v51  ;;  %v636_v9 = vpop.f32.mrf.mxu0 }
 0x242   : > { %1873 = vrot.lane.b32.xlu0 %v1799_v21, %s5950_s30  ;;  %v6944_v21 = vadd.f32 0.5, %v1298_v5  ;;  %v6948_v29 = vpop.permute.xlu1 %1709  ;;  %5471 = vtanh.f32 %v1050_v55  ;;  %v6958_v5 = vadd.f32 0.5, %v1268_v58  ;;  %v6965_v61 = vrot.slane %v5699_v23, %v9514_v50 }
 0x243   : > { %9682 = vst [vmem:[#allocation85_spill] sm:$0xff] %v6948_v29  ;;  %v5468_v29 = vpop.eup %5467  ;;  %5473 = vtanh.f32 %v1047_v49  ;;  %v6972_v58 = vadd.f32 0.5, %v1299_v54  ;;  %v640_v43 = vpop.f32.mrf.mxu0 }
 0x244   : > { %9681 = vst [vmem:[#allocation84_spill] sm:$0xff] %v6944_v21  ;;  %3393 = vrot.lane.b32.xlu1 %v3327_v34, %s5951_s9  ;;  %9684 = vst [vmem:[#allocation87_spill] sm:$0xff] %v6958_v5  ;;  %v1800_v56 = vmul.f32 %v6410_v24, %v6944_v21  ;;  %v2330_v55 = vpop.permute.xlu0 %2329  ;;  %v2189_v6 = vmul.f32 %v6965_v61, %v6602_v1  ;;  %5475 = vtanh.f32 %v1051_v45  ;;  %v1054_v45 = vmul.f32 0.5, %v635_v2 }
 0x245   : > { %9685 = vst [vmem:[#allocation88_spill] sm:$0xff] %v6965_v61  ;;  %9686 = vst [vmem:[#allocation89_spill] sm:$0xff] %v6972_v58  ;;  %v2928_v49 = vmul.f32 %v6561_v7, %v6958_v5  ;;  %v1600_v1 = vmul.f32 %v6403_v20, %v6944_v21  ;;  %v2268_v50 = vmul.f32 %v6417_v32, %v6972_v58 }
 0x246   : > { %2993 = vrot.lane.b32.xlu0 %v2927_v8, %s5952_s18  ;;  %v2062_v8 = vpop.permute.xlu1 %2061  ;;  %v2000_v2 = vmul.f32 %v6415_v31, %v6944_v21  ;;  %5477 = vtanh.f32 %v1054_v45  ;;  %v1522_v45 = vmul.f32 %v6930_v48, %v6631_v47 }
 0x247   : > { %v2153_v34 = vadd.f32 %v2062_v8, %v1953_v35  ;;  %v1272_v35 = vmul.f32 0.5, %v5468_v29 }
 0x248   : > { %1875 = vrot.lane.b32.xlu1 %v1800_v56, %s5950_s30  ;;  %v6980_v56 = vpop.permute.xlu0 %2377 }
 0x249   : > { %v2221_v8 = vadd.f32 %v2189_v6, %v2153_v34  ;;  %9688 = vst [vmem:[#allocation91_spill] sm:$0xff] %v6980_v56  ;;  %v6994_v34 = vadd.f32 0.5, %v1272_v35 }
 0x24a   : > { %2341 = vrot.lane.b32.xlu0 %v2267_v13, %s5952_s18  ;;  %v6976_v23 = vpop.permute.xlu1 %2109  ;;  %v5470_v13 = vpop.eup %5469 }
 0x24b   : > { %9687 = vst [vmem:[#allocation90_spill] sm:$0xff] %v6976_v23  ;;  %v1302_v54 = vmul.f32 0.5, %v5470_v13  ;;  %v6988_v23 = vld [vmem:[#allocation8 + $0x8] sm:$0xff]  ;;  %v2421_v6 = vadd.f32 %v2330_v55, %v2221_v8  ;;  %v641_v13 = vadd.f32 %v640_v43, %v6388_v51  ;;  %v2468_v55 = vmul.f32 %v6452_v57, %v6972_v58 }
 0x24c   : > { %2995 = vrot.lane.b32.xlu1 %v2928_v49, %s5952_s18  ;;  %v6992_v29 = vrot.slane %v6988_v23, %v6382_v37  ;;  %v2530_v49 = vpop.permute.xlu0 %2529  ;;  %v637_v8 = vadd.f32 %v636_v9, %v6394_v0  ;;  %v3128_v43 = vmul.f32 %v6594_v53, %v6958_v5 }
 0x24d   : > { %v7002_v33 = vadd.f32 0.5, %v1302_v54  ;;  %v1058_v54 = vmul.f32 0.5, %v641_v13 }
 0x24e   : > { %2541 = vrot.lane.b32.xlu0 %v2467_v44, %s5950_s30  ;;  %v2730_v44 = vpop.permute.xlu1 %2729  ;;  %v2857_v56 = vmul.f32 %v6992_v29, %v6994_v34  ;;  %v1055_v5 = vmul.f32 0.5, %v637_v8 }
 0x24f   : > { %v5472_v28 = vpop.eup %5471  ;;  %v1601_v9 = vmul.f32 %v6403_v20, %v7002_v33  ;;  %5479 = vtanh.f32 %v1058_v54  ;;  %v2929_v54 = vmul.f32 %v6561_v7, %v6994_v34 }
 0x250   : > { %2343 = vrot.lane.b32.xlu1 %v2268_v50, %s5952_s18  ;;  %v642_v50 = vpop.f32.mrf.mxu0  ;;  %v1664_v21 = vpop.permute.xlu0 %1663  ;;  %5481 = vtanh.f32 %v1055_v5 }
 0x251   : > { %v643_v58 = vadd.f32 %v642_v50, %v6394_v0 }
 0x252   : > { %1675 = vrot.lane.b32.xlu0 %v1600_v1, %s5952_s18  ;;  %v2621_v1 = vadd.f32 %v2530_v49, %v2421_v6  ;;  %v1864_v37 = vpop.permute.xlu1 %1863  ;;  %v5474_v6 = vpop.eup %5473 }
 0x253   : > { %v1303_v53 = vmul.f32 0.5, %v5474_v6  ;;  %v1059_v50 = vmul.f32 0.5, %v643_v58  ;;  %v2190_v58 = vmul.f32 %v6965_v61, %v6657_v26 }
 0x254   : > { %v2821_v35 = vadd.f32 %v2730_v44, %v2621_v1  ;;  %2543 = vrot.lane.b32.xlu1 %v2468_v55, %s5950_s30  ;;  %v5476_v1 = vpop.eup %5475  ;;  %v1754_v55 = vadd.f32 %v1664_v21, %v1522_v45  ;;  %v7021_v13 = vpop.permute.xlu0 %1711  ;;  %v2001_v21 = vmul.f32 %v6415_v31, %v7002_v33 }
 0x255   : > { %9691 = vst [vmem:[#allocation94_spill] sm:$0xff] %v7021_v13  ;;  %v7033_v6 = vadd.f32 0.5, %v1303_v53  ;;  %5483 = vtanh.f32 %v1059_v50 }
 0x256   : > { %2075 = vrot.lane.b32.xlu0 %v2000_v2, %s5951_s9  ;;  %v7013_v49 = vadd.f32 %v2857_v56, %v2821_v35  ;;  %v1306_v2 = vmul.f32 0.5, %v5472_v28  ;;  %v7017_v44 = vpop.permute.xlu1 %1911  ;;  %v1801_v28 = vmul.f32 %v6410_v24, %v7002_v33  ;;  %v1307_v56 = vmul.f32 0.5, %v5476_v1  ;;  %v646_v35 = vpop.f32.mrf.mxu0 }
 0x257   : > { %9690 = vst [vmem:[#allocation93_spill] sm:$0xff] %v7017_v44  ;;  %v1954_v8 = vadd.f32 %v1864_v37, %v1754_v55  ;;  %v647_v1 = vadd.f32 %v646_v35, %v6388_v51  ;;  %v5478_v37 = vpop.eup %5477  ;;  %v2269_v26 = vmul.f32 %v6417_v32, %v7033_v6 }
 0x258   : > { %9689 = vst [vmem:[#allocation92_spill] sm:$0xff] %v7013_v49  ;;  %1677 = vrot.lane.b32.xlu1 %v1601_v9, %s5952_s18  ;;  %v7026_v47 = vadd.f32 0.5, %v1306_v2  ;;  %v2064_v45 = vpop.permute.xlu0 %2063  ;;  %v7040_v9 = vadd.f32 0.5, %v1307_v56  ;;  %v1310_v56 = vmul.f32 0.5, %v5478_v37 }
 0x259   : > { %v2154_v2 = vadd.f32 %v2064_v45, %v1954_v8  ;;  %v1062_v50 = vmul.f32 0.5, %v647_v1 }
 0x25a   : > { %3195 = vrot.lane.b32.xlu0 %v3128_v43, %s5950_s30  ;;  %9692 = vst [vmem:[#allocation95_spill] sm:$0xff] %v7026_v47  ;;  %v7029_v43 = vpop.permute.xlu1 %2331  ;;  %9694 = vst [vmem:[#allocation97_spill] sm:$0xff] %v7040_v9  ;;  %v1802_v5 = vmul.f32 %v6410_v24, %v7026_v47  ;;  %v2270_v45 = vmul.f32 %v6417_v32, %v7040_v9  ;;  %v7066_v37 = vadd.f32 0.5, %v1310_v56 }
 0x25b   : > { %9693 = vst [vmem:[#allocation96_spill] sm:$0xff] %v7029_v43  ;;  %v7048_v55 = vadd.f32 %v2190_v58, %v2154_v2  ;;  %v2469_v58 = vmul.f32 %v6452_v57, %v7033_v6  ;;  %5485 = vtanh.f32 %v1062_v50  ;;  %v1602_v56 = vmul.f32 %v6403_v20, %v7026_v47 }
 0x25c   : > { %2077 = vrot.lane.b32.xlu1 %v2001_v21, %s5951_s9  ;;  %v7050_v21 = vpop.permute.xlu0 %2111  ;;  %9700 = vst [vmem:[#allocation103_spill] sm:$0xff] %v7066_v37 }
 0x25d   : > { %9696 = vst [vmem:[#allocation99_spill] sm:$0xff] %v7048_v55  ;;  %9697 = vst [vmem:[#allocation100_spill] sm:$0xff] %v7050_v21  ;;  %v1523_v21 = vmul.f32 %v6930_v48, %v6689_v60  ;;  %v1603_v60 = vmul.f32 %v6403_v20, %v7066_v37 }
 0x25e   : > { %1877 = vrot.lane.b32.xlu0 %v1801_v28, %s5950_s30  ;;  %v648_v28 = vpop.f32.mrf.mxu0  ;;  %v7044_v53 = vpop.permute.xlu1 %2379 }
 0x25f   : > { %9695 = vst [vmem:[#allocation98_spill] sm:$0xff] %v7044_v53  ;;  %v2470_v53 = vmul.f32 %v6452_v57, %v7040_v9 }
 0x260   : > { %1879 = vrot.lane.b32.xlu1 %v1802_v5, %s5950_s30  ;;  %v652_v35 = vpop.f32.mrf.mxu0  ;;  %v5480_v5 = vpop.eup %5479 }
 0x261   : > { %v653_v2 = vadd.f32 %v652_v35, %v6388_v51  ;;  %v5482_v35 = vpop.eup %5481 }
 0x262   : > { %2997 = vrot.lane.b32.xlu0 %v2929_v54, %s5952_s18  ;;  %v7056_v8 = vpop.permute.xlu1 %2531  ;;  %v7060_v54 = vpop.permute.xlu0 %2731  ;;  %v1311_v55 = vmul.f32 0.5, %v5482_v35 }
 0x263   : > { %9698 = vst [vmem:[#allocation101_spill] sm:$0xff] %v7056_v8  ;;  %9699 = vst [vmem:[#allocation102_spill] sm:$0xff] %v7060_v54  ;;  %v654_v1 = vpop.f32.mrf.mxu0  ;;  %v1066_v50 = vmul.f32 0.5, %v653_v2  ;;  %v1314_v54 = vmul.f32 0.5, %v5480_v5 }
 0x264   : > { %2347 = vrot.lane.b32.xlu1 %v2270_v45, %s5952_s18  ;;  %v649_v45 = vadd.f32 %v648_v28, %v6394_v0  ;;  %v5484_v28 = vpop.eup %5483 }
 0x265   : > { %v658_v8 = vpop.f32.mrf.mxu0  ;;  %5487 = vtanh.f32 %v1066_v50 }
 0x266   : > { %2345 = vrot.lane.b32.xlu0 %v2269_v26, %s5952_s18  ;;  %v1666_v26 = vpop.permute.xlu1 %1665  ;;  %v1866_v44 = vpop.permute.xlu0 %1865  ;;  %v659_v2 = vadd.f32 %v658_v8, %v6388_v51 }
 0x267   : > { %v1755_v13 = vadd.f32 %v1666_v26, %v1523_v21  ;;  %v2002_v21 = vmul.f32 %v6415_v31, %v7026_v47  ;;  %v1315_v26 = vmul.f32 0.5, %v5484_v28  ;;  %v7096_v47 = vadd.f32 0.5, %v1311_v55 }
 0x268   : > { %2547 = vrot.lane.b32.xlu1 %v2470_v53, %s5950_s30  ;;  %v1063_v53 = vmul.f32 0.5, %v649_v45  ;;  %v2003_v45 = vmul.f32 %v6415_v31, %v7066_v37  ;;  %v1070_v50 = vmul.f32 0.5, %v659_v2  ;;  %v5486_v28 = vpop.eup %5485 }
 0x269   : > { %v1955_v5 = vadd.f32 %v1866_v44, %v1755_v13  ;;  %9704 = vst [vmem:[#allocation107_spill] sm:$0xff] %v7096_v47  ;;  %v1803_v44 = vmul.f32 %v6410_v24, %v7066_v37 }
 0x26a   : > { %2545 = vrot.lane.b32.xlu0 %v2469_v58, %s5950_s30  ;;  %v655_v58 = vadd.f32 %v654_v1, %v6394_v0  ;;  %v7079_v43 = vpop.permute.xlu1 %1713  ;;  %v7083_v49 = vpop.permute.xlu0 %1913  ;;  %v7089_v1 = vadd.f32 0.5, %v1314_v54  ;;  %5489 = vtanh.f32 %v1063_v53  ;;  %v7105_v54 = vadd.f32 0.5, %v1315_v26 }
 0x26b   : > { %9701 = vst [vmem:[#allocation104_spill] sm:$0xff] %v7079_v43  ;;  %9702 = vst [vmem:[#allocation105_spill] sm:$0xff] %v7083_v49  ;;  %v660_v43 = vpop.f32.mrf.mxu0 }
 0x26c   : > { %1681 = vrot.lane.b32.xlu1 %v1603_v60, %s5952_s18  ;;  %9703 = vst [vmem:[#allocation106_spill] sm:$0xff] %v7089_v1  ;;  %v2191_v60 = vmul.f32 %v6965_v61, %v6720_v14  ;;  %9707 = vst [vmem:[#allocation110_spill] sm:$0xff] %v7105_v54  ;;  %v1804_v55 = vmul.f32 %v6410_v24, %v7089_v1 }
 0x26e   : > { %1679 = vrot.lane.b32.xlu0 %v1602_v56, %s5952_s18  ;;  %v1067_v56 = vmul.f32 0.5, %v655_v58  ;;  %v2066_v35 = vpop.permute.xlu1 %2065  ;;  %v664_v58 = vpop.f32.mrf.mxu0 }
 0x26f   : > { %v2155_v49 = vadd.f32 %v2066_v35, %v1955_v5  ;;  %v665_v2 = vadd.f32 %v664_v58, %v6388_v51 }
 0x270   : > { %2081 = vrot.lane.b32.xlu1 %v2003_v45, %s5951_s9  ;;  %5491 = vtanh.f32 %v1067_v56  ;;  %v666_v5 = vpop.f32.mrf.mxu0  ;;  %v2272_v56 = vmul.f32 %v6417_v32, %v7105_v54  ;;  %v2471_v45 = vmul.f32 %v6452_v57, %v7096_v47 }
 0x271   : > { %v7103_v13 = vadd.f32 %v2191_v60, %v2155_v49  ;;  %v2271_v49 = vmul.f32 %v6417_v32, %v7096_v47  ;;  %5493 = vtanh.f32 %v1070_v50  ;;  %v1074_v50 = vmul.f32 0.5, %v665_v2 }
 0x272   : > { %2079 = vrot.lane.b32.xlu0 %v2002_v21, %s5951_s9  ;;  %v7108_v14 = vpop.permute.xlu1 %2113  ;;  %v1318_v21 = vmul.f32 0.5, %v5486_v28  ;;  %v5488_v60 = vpop.eup %5487  ;;  %v667_v58 = vadd.f32 %v666_v5, %v6394_v0  ;;  %v1524_v5 = vmul.f32 %v6930_v48, %v6750_v36  ;;  %v2004_v36 = vmul.f32 %v6415_v31, %v7089_v1 }
 0x273   : > { %9706 = vst [vmem:[#allocation109_spill] sm:$0xff] %v7103_v13  ;;  %9708 = vst [vmem:[#allocation111_spill] sm:$0xff] %v7108_v14  ;;  %v1322_v37 = vmul.f32 0.5, %v5488_v60  ;;  %5495 = vtanh.f32 %v1074_v50 }
 0x274   : > { %v7098_v8 = vpop.permute.xlu0 %2333  ;;  %1883 = vrot.lane.b32.xlu1 %v1804_v55, %s5950_s30  ;;  %v670_v55 = vpop.f32.mrf.mxu0 }
 0x275   : > { %9705 = vst [vmem:[#allocation108_spill] sm:$0xff] %v7098_v8  ;;  %v671_v2 = vadd.f32 %v670_v55, %v6388_v51  ;;  %v7151_v50 = vadd.f32 0.5, %v1322_v37 }
 0x276   : > { %1881 = vrot.lane.b32.xlu0 %v1803_v44, %s5950_s30  ;;  %v7119_v26 = vpop.permute.xlu1 %2733  ;;  %v7128_v44 = vadd.f32 0.5, %v1318_v21 }
 0x277   : > { %9710 = vst [vmem:[#allocation113_spill] sm:$0xff] %v7119_v26  ;;  %v5490_v21 = vpop.eup %5489  ;;  %v672_v26 = vpop.f32.mrf.mxu0  ;;  %v1078_v60 = vmul.f32 0.5, %v671_v2  ;;  %9715 = vst [vmem:[#allocation118_spill] sm:$0xff] %v7151_v50 }
 0x278   : > { %v7112_v53 = vpop.permute.xlu0 %2381  ;;  %2351 = vrot.lane.b32.xlu1 %v2272_v56, %s5952_s18  ;;  %9712 = vst [vmem:[#allocation115_spill] sm:$0xff] %v7128_v44  ;;  %v1604_v56 = vmul.f32 %v6403_v20, %v7089_v1  ;;  %v1319_v13 = vmul.f32 0.5, %v5490_v21  ;;  %v1805_v2 = vmul.f32 %v6410_v24, %v7128_v44 }
 0x279   : > { %9709 = vst [vmem:[#allocation112_spill] sm:$0xff] %v7112_v53  ;;  %v661_v53 = vadd.f32 %v660_v43, %v6394_v0  ;;  %v1605_v43 = vmul.f32 %v6403_v20, %v7128_v44  ;;  %v676_v55 = vpop.f32.mrf.mxu0 }
 0x27a   : > { %2349 = vrot.lane.b32.xlu0 %v2271_v49, %s5952_s18  ;;  %v1868_v28 = vpop.permute.xlu1 %1867  ;;  %v2472_v49 = vmul.f32 %v6452_v57, %v7105_v54 }
 0x27b   : > { %v1071_v54 = vmul.f32 0.5, %v661_v53 }
 0x27c   : > { %v7123_v35 = vpop.permute.xlu0 %2533  ;;  %2551 = vrot.lane.b32.xlu1 %v2472_v49, %s5950_s30 }
 0x27d   : > { %9711 = vst [vmem:[#allocation114_spill] sm:$0xff] %v7123_v35  ;;  %v5492_v49 = vpop.eup %5491 }
 0x27e   : > { %2549 = vrot.lane.b32.xlu0 %v2471_v45, %s5950_s30  ;;  %v1075_v45 = vmul.f32 0.5, %v667_v58  ;;  %v7142_v35 = vpop.permute.xlu1 %1915  ;;  %v1323_v58 = vmul.f32 0.5, %v5492_v49  ;;  %v5494_v53 = vpop.eup %5493 }
 0x27f   : > { %9713 = vst [vmem:[#allocation116_spill] sm:$0xff] %v7142_v35  ;;  %v7161_v35 = vadd.f32 0.5, %v1319_v13 }
 0x280   : > { %v1668_v14 = vpop.permute.xlu0 %1667  ;;  %1685 = vrot.lane.b32.xlu1 %v1605_v43, %s5952_s18  ;;  %5497 = vtanh.f32 %v1075_v45  ;;  %v2192_v45 = vmul.f32 %v6965_v61, %v6773_v17 }
 0x281   : > { %v1756_v8 = vadd.f32 %v1668_v14, %v1524_v5  ;;  %v2005_v14 = vmul.f32 %v6415_v31, %v7128_v44  ;;  %v5701_v5 = vld [vmem:[#allocation7] sm:$0xf]  ;;  %9716 = vst [vmem:[#allocation119_spill] sm:$0xff] %v7161_v35  ;;  %5499 = vtanh.f32 %v1071_v54  ;;  %v1806_v54 = vmul.f32 %v6410_v24, %v7151_v50 }
 0x282   : > { %1683 = vrot.lane.b32.xlu0 %v1604_v56, %s5952_s18  ;;  %v7154_v56 = vpop.permute.xlu1 %2335  ;;  %v7159_v43 = vrot.slane %v5701_v5, %v6268_v27  ;;  %5501 = vtanh.f32 %v1078_v60  ;;  %v677_v27 = vadd.f32 %v676_v55, %v6388_v51  ;;  %v1517_v60 = vmul.f32 %v6930_v48, %v6401_v18 }
 0x283   : > { %v1956_v21 = vadd.f32 %v1868_v28, %v1756_v8  ;;  %v1326_v8 = vmul.f32 0.5, %v5494_v53  ;;  %v678_v28 = vpop.f32.mrf.mxu0  ;;  %v2273_v55 = vmul.f32 %v6417_v32, %v7161_v35 }
 0x284   : > { %v7146_v47 = vpop.permute.xlu0 %1715  ;;  %2085 = vrot.lane.b32.xlu1 %v2005_v14, %s5951_s9  ;;  %v1749_v53 = vadd.f32 %v6626_v38, %v1517_v60 }
 0x285   : > { %9714 = vst [vmem:[#allocation117_spill] sm:$0xff] %v7146_v47  ;;  %v7188_v5 = vadd.f32 0.5, %v1326_v8  ;;  %v682_v18 = vpop.f32.mrf.mxu0  ;;  %v2473_v8 = vmul.f32 %v6452_v57, %v7161_v35 }
 0x286   : > { %2083 = vrot.lane.b32.xlu0 %v2004_v36, %s5951_s9  ;;  %v7168_v36 = vadd.f32 0.5, %v1323_v58  ;;  %v7172_v13 = vpop.permute.xlu1 %2383  ;;  %v810_v58 = vadd.f32 %v6775_v25, %v7159_v43 }
 0x287   : > { %9718 = vst [vmem:[#allocation121_spill] sm:$0xff] %v7172_v13  ;;  %9720 = vst [vmem:[#allocation123_spill] sm:$0xff] %v7188_v5 }
 0x288   : > { %v2068_v37 = vpop.permute.xlu0 %2067  ;;  %9717 = vst [vmem:[#allocation120_spill] sm:$0xff] %v7168_v36  ;;  %1887 = vrot.lane.b32.xlu1 %v1806_v54, %s5950_s30  ;;  %v2274_v25 = vmul.f32 %v6417_v32, %v7168_v36  ;;  %v1949_v54 = vadd.f32 %v6642_v3, %v1749_v53  ;;  %v1001_v13 = vmul.f32 0.5, %v810_v58  ;;  %v684_v53 = vpop.f32.mrf.mxu0 }
 0x289   : > { %v2156_v49 = vadd.f32 %v2068_v37, %v1956_v21  ;;  %v1082_v37 = vmul.f32 0.5, %v677_v27  ;;  %v683_v27 = vadd.f32 %v682_v18, %v6388_v51 }
 0x28a   : > { %1885 = vrot.lane.b32.xlu0 %v1805_v2, %s5950_s30  ;;  %v679_v2 = vadd.f32 %v678_v28, %v6394_v0  ;;  %v1525_v28 = vmul.f32 %v6930_v48, %v6804_v15  ;;  %v1606_v15 = vmul.f32 %v6403_v20, %v7151_v50 }
 0x28b   : > { %v7178_v14 = vadd.f32 %v2192_v45, %v2156_v49  ;;  %v7192_v45 = vpop.permute.xlu1 %2535  ;;  %v5496_v49 = vpop.eup %5495  ;;  %5503 = vtanh.f32 %v1082_v37 }
 0x28c   : > { %v7182_v21 = vpop.permute.xlu0 %2115  ;;  %9721 = vst [vmem:[#allocation124_spill] sm:$0xff] %v7192_v45  ;;  %2355 = vrot.lane.b32.xlu1 %v2274_v25, %s5952_s18  ;;  %v1330_v60 = vmul.f32 0.5, %v5496_v49  ;;  %v2149_v25 = vadd.f32 %v6640_v63, %v1949_v54  ;;  %5505 = vtanh.f32 %v1001_v13  ;;  %v2185_v49 = vmul.f32 %v6965_v61, %v6430_v46  ;;  %v688_v54 = vpop.f32.mrf.mxu0 }
 0x28d   : > { %9719 = vst [vmem:[#allocation122_spill] sm:$0xff] %v7182_v21  ;;  %v673_v21 = vadd.f32 %v672_v26, %v6394_v0  ;;  %v1607_v26 = vmul.f32 %v6403_v20, %v7188_v5  ;;  %v5498_v58 = vpop.eup %5497 }
 0x28e   : > { %2353 = vrot.lane.b32.xlu0 %v2273_v55, %s5952_s18  ;;  %v1083_v55 = vmul.f32 0.5, %v679_v2  ;;  %v5500_v37 = vpop.eup %5499  ;;  %v1086_v2 = vmul.f32 0.5, %v683_v27  ;;  %v7215_v45 = vadd.f32 0.5, %v1330_v60  ;;  %v1331_v63 = vmul.f32 0.5, %v5498_v58 }
 0x28f   : > { %v1670_v3 = vpop.permute.xlu1 %1669  ;;  %v1079_v44 = vmul.f32 0.5, %v673_v21  ;;  %v5502_v1 = vpop.eup %5501  ;;  %v2007_v21 = vmul.f32 %v6415_v31, %v7188_v5  ;;  %v2193_v27 = vmul.f32 %v6965_v61, %v6827_v16 }
 0x290   : > { %v1870_v38 = vpop.permute.xlu0 %1869  ;;  %v1757_v47 = vadd.f32 %v1670_v3, %v1525_v28  ;;  %1689 = vrot.lane.b32.xlu1 %v1607_v26, %s5952_s18  ;;  %9722 = vst [vmem:[#allocation125_spill] sm:$0xff] %v7215_v45  ;;  %5507 = vtanh.f32 %v1083_v55  ;;  %v2217_v28 = vadd.f32 %v2185_v49, %v2149_v25  ;;  %v1327_v26 = vmul.f32 0.5, %v5500_v37  ;;  %v690_v37 = vpop.f32.mrf.mxu0 }
 0x291   : > { %5509 = vtanh.f32 %v1079_v44  ;;  %v7230_v55 = vadd.f32 0.5, %v1331_v63  ;;  %v1334_v58 = vmul.f32 0.5, %v5502_v1  ;;  %v689_v25 = vadd.f32 %v688_v54, %v6388_v51 }
 0x292   : > { %2553 = vrot.lane.b32.xlu0 %v2473_v8, %s5950_s30  ;;  %v1957_v8 = vadd.f32 %v1870_v38, %v1757_v47  ;;  %v2006_v47 = vmul.f32 %v6415_v31, %v7151_v50  ;;  %5511 = vtanh.f32 %v1086_v2  ;;  %v2417_v38 = vadd.f32 %v6673_v12, %v2217_v28 }
 0x293   : > { %v2070_v13 = vpop.permute.xlu1 %2069  ;;  %9725 = vst [vmem:[#allocation128_spill] sm:$0xff] %v7230_v55  ;;  %v1518_v49 = vmul.f32 %v6930_v48, %v6436_v52  ;;  %v816_v12 = vadd.f32 %v6822_v19, %v7159_v43  ;;  %v1807_v51 = vmul.f32 %v6410_v24, %v7188_v5  ;;  %v691_v52 = vadd.f32 %v690_v37, %v6394_v0 }
 0x294   : > { %v7208_v18 = vpop.permute.xlu0 %2989  ;;  %v2157_v3 = vadd.f32 %v2070_v13, %v1957_v8  ;;  %2089 = vrot.lane.b32.xlu1 %v2007_v21, %s5951_s9  ;;  %v2617_v2 = vadd.f32 %v6706_v42, %v2417_v38  ;;  %v7241_v8 = vadd.f32 0.5, %v1327_v26  ;;  %v7249_v13 = vadd.f32 0.5, %v1334_v58 }
 0x295   : > { %v1750_v63 = vadd.f32 %v6682_v39, %v1518_v49  ;;  %v1090_v21 = vmul.f32 0.5, %v689_v25  ;;  %v2276_v19 = vmul.f32 %v6417_v32, %v7230_v55  ;;  %v1526_v39 = vmul.f32 %v6930_v48, %v6850_v41 }
 0x296   : > { %1687 = vrot.lane.b32.xlu0 %v1606_v15, %s5952_s18  ;;  %v7228_v60 = vadd.f32 %v2193_v27, %v2157_v3  ;;  %v1808_v15 = vmul.f32 %v6410_v24, %v7215_v45  ;;  %9726 = vst [vmem:[#allocation129_spill] sm:$0xff] %v7241_v8  ;;  %9728 = vst [vmem:[#allocation131_spill] sm:$0xff] %v7249_v13  ;;  %v2817_v3 = vadd.f32 %v6671_v62, %v2617_v2  ;;  %v9729_v2 = vld [vmem:[#allocation56_spill] sm:$0xff] }
 0x297   : > { %v3190_v44 = vpop.permute.xlu1 %3189  ;;  %v1950_v28 = vadd.f32 %v6698_v4, %v1750_v63  ;;  %v2853_v27 = vmul.f32 %v6992_v29, %v6815_v22  ;;  %v1005_v26 = vmul.f32 0.5, %v816_v12  ;;  %v2275_v58 = vmul.f32 %v6417_v32, %v7241_v8 }
 0x298   : > { %v7222_v46 = vpop.permute.xlu0 %2337  ;;  %9724 = vst [vmem:[#allocation127_spill] sm:$0xff] %v7228_v60  ;;  %1891 = vrot.lane.b32.xlu1 %v1808_v15, %s5950_s30  ;;  %v5504_v54 = vpop.eup %5503  ;;  %v1519_v62 = vmul.f32 %v6930_v48, %v6490_v40  ;;  %5513 = vtanh.f32 %v1090_v21  ;;  %v1091_v37 = vmul.f32 0.5, %v691_v52  ;;  %v2186_v49 = vmul.f32 %v6965_v61, %v6466_v11 }
 0x299   : > { %9723 = vst [vmem:[#allocation126_spill] sm:$0xff] %v7222_v46  ;;  %v5506_v25 = vpop.eup %5505  ;;  %v2150_v4 = vadd.f32 %v6739_v10, %v1950_v28  ;;  %v1338_v22 = vmul.f32 0.5, %v5504_v54  ;;  %v2885_v10 = vadd.f32 %v2853_v27, %v2817_v3  ;;  %5515 = vtanh.f32 %v1005_v26 }
 0x29a   : > { %2087 = vrot.lane.b32.xlu0 %v2006_v47, %s5951_s9  ;;  %v685_v47 = vadd.f32 %v684_v53, %v6394_v0  ;;  %v1609_v0 = vmul.f32 %v6403_v20, %v7249_v13  ;;  %v1751_v12 = vadd.f32 %v9729_v2, %v1519_v62  ;;  %v1257_v63 = vmul.f32 0.5, %v5506_v25 }
 0x29b   : > { %v3390_v42 = vpop.permute.xlu1 %3389  ;;  %v1608_v21 = vmul.f32 %v6403_v20, %v7215_v45  ;;  %v2218_v54 = vadd.f32 %v2186_v49, %v2150_v4  ;;  %v3085_v28 = vadd.f32 %v7208_v18, %v2885_v10  ;;  %v7280_v3 = vadd.f32 0.5, %v1338_v22  ;;  %v9734_v4 = vld [vmem:[#allocation57_spill] sm:$0xff]  ;;  %v9736_v22 = vld [vmem:[#allocation67_spill] sm:$0xff] }
 0x29c   : > { %v7243_v1 = vpop.permute.xlu0 %2537  ;;  %2359 = vrot.lane.b32.xlu1 %v2276_v19, %s5952_s18  ;;  %v1087_v40 = vmul.f32 0.5, %v685_v47  ;;  %5517 = vtanh.f32 %v1091_v37  ;;  %v2009_v47 = vmul.f32 %v6415_v31, %v7249_v13  ;;  %v9733_v25 = vsub.s32 4, %v6171_v30  ;;  %v9737_v10 = vld [vmem:[#allocation49_spill] sm:$0xff] }
 0x29d   : > { %9727 = vst [vmem:[#allocation130_spill] sm:$0xff] %v7243_v1  ;;  %v5508_v53 = vpop.eup %5507  ;;  %9731 = vst [vmem:[#allocation56_spill] sm:$0xff] %v7280_v3  ;;  %v1951_v62 = vadd.f32 %v9734_v4, %v1751_v12  ;;  %v822_v37 = vadd.f32 %v9736_v22, %v7159_v43  ;;  %v2008_v2 = vmul.f32 %v6415_v31, %v7215_v45  ;;  %v9750_v45 = vld [vmem:[#allocation66_spill] sm:$0xff] }
 0x29e   : > { %1889 = vrot.lane.b32.xlu0 %v1807_v51, %s5950_s30  ;;  %v5510_v52 = vpop.eup %5509  ;;  %v1339_v27 = vmul.f32 0.5, %v5508_v53  ;;  %v7290_v18 = vrot.slane %v6988_v23, %v9733_v25  ;;  %5519 = vtanh.f32 %v1087_v40  ;;  %v7302_v23 = vadd.f32 0.5, %v1257_v63 }
 0x29f   : > { %v1872_v41 = vpop.permute.xlu1 %1871  ;;  %v1335_v53 = vmul.f32 0.5, %v5510_v52  ;;  %v2418_v12 = vadd.f32 %v9737_v10, %v2218_v54  ;;  %v1810_v40 = vmul.f32 %v6410_v24, %v7280_v3  ;;  %v1009_v4 = vmul.f32 0.5, %v822_v37 }
 0x2a0   : > { %v1672_v38 = vpop.permute.xlu0 %1671  ;;  %1693 = vrot.lane.b32.xlu1 %v1609_v0, %s5952_s18  ;;  %v7297_v0 = vpop.f32.mrf.mxu1  ;;  %v3521_v54 = vmul.f32 %v7290_v18, %v7302_v23 }
 0x2a1   : > { %v1758_v15 = vadd.f32 %v1672_v38, %v1526_v39  ;;  %v9730_v38 = vld [vmem:[#allocation70_spill] sm:$0xff]  ;;  %5521 = vtanh.f32 %v1009_v4 }
 0x2a2   : > { %2357 = vrot.lane.b32.xlu0 %v2275_v58, %s5952_s18  ;;  %v2194_v11 = vmul.f32 %v6965_v61, %v9730_v38  ;;  %v5512_v58 = vpop.eup %5511  ;;  %v837_v25 = vpop.f32.mrf.mxu1 }
 0x2a3   : > { %v1958_v51 = vadd.f32 %v1872_v41, %v1758_v15  ;;  %v7283_v26 = vpop.permute.xlu1 %2339  ;;  %v3285_v15 = vadd.f32 %v3190_v44, %v3085_v28  ;;  %v9738_v44 = vld [vmem:[#allocation61_spill] sm:$0xff]  ;;  %v1342_v28 = vmul.f32 0.5, %v5512_v58  ;;  %v1809_v58 = vmul.f32 %v6410_v24, %v7249_v13 }
 0x2a4   : > { %v2072_v19 = vpop.permute.xlu0 %2071  ;;  %9732 = vst [vmem:[#allocation70_spill] sm:$0xff] %v7283_v26  ;;  %2093 = vrot.lane.b32.xlu1 %v2009_v47, %s5951_s9  ;;  %v9742_v47 = vld [vmem:[#allocation26_spill] sm:$0xff] }
 0x2a5   : > { %v2158_v39 = vadd.f32 %v2072_v19, %v1958_v51  ;;  %v2151_v51 = vadd.f32 %v9738_v44, %v1951_v62  ;;  %v3485_v19 = vadd.f32 %v3390_v42, %v3285_v15  ;;  %v2187_v63 = vmul.f32 %v6965_v61, %v9742_v47  ;;  %v9744_v62 = vld [vmem:[#allocation47_spill] sm:$0xff]  ;;  %v5514_v44 = vpop.eup %5513 }
 0x2a6   : > { %1691 = vrot.lane.b32.xlu0 %v1608_v21, %s5952_s18  ;;  %v7306_v21 = vadd.f32 0.5, %v1339_v27  ;;  %v7318_v42 = vadd.f32 0.5, %v1335_v53  ;;  %v838_v15 = vadd.f32 %v837_v25, %v9744_v62  ;;  %v7326_v10 = vadd.f32 0.5, %v1342_v28  ;;  %v9747_v47 = vld [vmem:[#allocation71_spill] sm:$0xff] }
 0x2a7   : > { %v7293_v41 = vadd.f32 %v2194_v11, %v2158_v39  ;;  %v7309_v52 = vpop.permute.xlu1 %2539  ;;  %v9741_v39 = vld [vmem:[#allocation54_spill] sm:$0xff]  ;;  %v2219_v22 = vadd.f32 %v2187_v63, %v2151_v51  ;;  %v2854_v13 = vmul.f32 %v6992_v29, %v9747_v47  ;;  %v7337_v63 = vpop.f32.mrf.mxu1 }
 0x2a8   : > { %v2992_v49 = vpop.permute.xlu0 %2991  ;;  %9739 = vst [vmem:[#allocation67_spill] sm:$0xff] %v7306_v21  ;;  %9740 = vst [vmem:[#allocation49_spill] sm:$0xff] %v7309_v52  ;;  %v2618_v11 = vadd.f32 %v9741_v39, %v2418_v12  ;;  %1895 = vrot.lane.b32.xlu1 %v1810_v40, %s5950_s30  ;;  %v2278_v53 = vmul.f32 %v6417_v32, %v7306_v21  ;;  %v9746_v39 = vld [vmem:[#allocation55_spill] sm:$0xff]  ;;  %v2277_v51 = vmul.f32 %v6417_v32, %v7318_v42 }
 0x2a9   : > { %9735 = vst [vmem:[#allocation57_spill] sm:$0xff] %v7293_v41  ;;  %9743 = vst [vmem:[#allocation61_spill] sm:$0xff] %v7318_v42  ;;  %v1020_v28 = vmul.f32 0.5, %v838_v15 }
 0x2aa   : > { %2091 = vrot.lane.b32.xlu0 %v2008_v2, %s5951_s9  ;;  %v7324_v2 = vadd.f32 %v3521_v54, %v3485_v19  ;;  %9745 = vst [vmem:[#allocation54_spill] sm:$0xff] %v7326_v10  ;;  %v2818_v40 = vadd.f32 %v9746_v39, %v2618_v11  ;;  %v5516_v19 = vpop.eup %5515  ;;  %v9748_v54 = vld [vmem:[#allocation62_spill] sm:$0xff]  ;;  %v1346_v11 = vmul.f32 0.5, %v5514_v44  ;;  %v843_v44 = vpop.f32.mrf.mxu1 }
 0x2ab   : > { %v1674_v12 = vpop.permute.xlu1 %1673  ;;  %v2419_v25 = vadd.f32 %v9748_v54, %v2219_v22  ;;  %v5518_v47 = vpop.eup %5517  ;;  %v1610_v22 = vmul.f32 %v6403_v20, %v7280_v3  ;;  %5523 = vtanh.f32 %v1020_v28  ;;  %v9753_v28 = vld [vmem:[#allocation83_spill] sm:$0xff] }
 0x2ac   : > { %v3192_v27 = vpop.permute.xlu0 %3191  ;;  %2363 = vrot.lane.b32.xlu1 %v2278_v53, %s5952_s18  ;;  %v1611_v53 = vmul.f32 %v6403_v20, %v7326_v10  ;;  %v2886_v50 = vadd.f32 %v2854_v13, %v2818_v40  ;;  %v5520_v54 = vpop.eup %5519  ;;  %v7349_v52 = vadd.f32 0.5, %v1346_v11  ;;  %v1347_v46 = vmul.f32 0.5, %v5518_v47 }
 0x2ad   : > { %v2619_v30 = vadd.f32 %v9750_v45, %v2419_v25  ;;  %v2011_v13 = vmul.f32 %v6415_v31, %v7326_v10 }
 0x2ae   : > { %1893 = vrot.lane.b32.xlu0 %v1809_v58, %s5950_s30  ;;  %v9749_v58 = vld [vmem:[#allocation75_spill] sm:$0xff]  ;;  %9751 = vst [vmem:[#allocation26_spill] sm:$0xff] %v7349_v52 }
 0x2af   : > { %v1527_v5 = vmul.f32 %v6930_v48, %v9749_v58  ;;  %v2074_v39 = vpop.permute.xlu1 %2073  ;;  %v1261_v58 = vmul.f32 0.5, %v5516_v19 }
 0x2b0   : > { %v3392_v37 = vpop.permute.xlu0 %3391  ;;  %1697 = vrot.lane.b32.xlu1 %v1611_v53, %s5952_s18  ;;  %v2010_v53 = vmul.f32 %v6415_v31, %v7280_v3 }
 0x2b1   : > { %v1759_v4 = vadd.f32 %v1674_v12, %v1527_v5  ;;  %v2855_v5 = vmul.f32 %v6992_v29, %v6917_v59  ;;  %v9752_v12 = vld [vmem:[#allocation65_spill] sm:$0xff]  ;;  %v7362_v47 = vadd.f32 0.5, %v1261_v58  ;;  %v7364_v59 = vpop.f32.mrf.mxu1 }
 0x2b2   : > { %2361 = vrot.lane.b32.xlu0 %v2277_v51, %s5952_s18  ;;  %v3086_v51 = vadd.f32 %v2992_v49, %v2886_v50  ;;  %v2819_v40 = vadd.f32 %v9752_v12, %v2619_v30  ;;  %v2195_v50 = vmul.f32 %v6965_v61, %v9753_v28  ;;  %v1343_v49 = vmul.f32 0.5, %v5520_v54  ;;  %v5522_v12 = vpop.eup %5521 }
 0x2b3   : > { %v3194_v45 = vpop.permute.xlu1 %3193  ;;  %v7368_v30 = vadd.f32 0.5, %v1347_v46  ;;  %v1811_v46 = vmul.f32 %v6410_v24, %v7326_v10 }
 0x2b4   : > { %v1874_v15 = vpop.permute.xlu0 %1873  ;;  %v3286_v25 = vadd.f32 %v3192_v27, %v3086_v51  ;;  %2097 = vrot.lane.b32.xlu1 %v2011_v13, %s5951_s9  ;;  %v1812_v27 = vmul.f32 %v6410_v24, %v7349_v52  ;;  %v7375_v54 = vadd.f32 0.5, %v1343_v49  ;;  %v1265_v49 = vmul.f32 0.5, %v5522_v12 }
 0x2b5   : > { %v1959_v1 = vadd.f32 %v1874_v15, %v1759_v4  ;;  %9755 = vst [vmem:[#allocation55_spill] sm:$0xff] %v7368_v30 }
 0x2b6   : > { %1695 = vrot.lane.b32.xlu0 %v1610_v22, %s5952_s18  ;;  %v3486_v4 = vadd.f32 %v3392_v37, %v3286_v25  ;;  %v3522_v22 = vmul.f32 %v7290_v18, %v7362_v47  ;;  %9756 = vst [vmem:[#allocation71_spill] sm:$0xff] %v7375_v54  ;;  %v849_v37 = vpop.f32.mrf.mxu1  ;;  %v2279_v24 = vmul.f32 %v6417_v32, %v7375_v54 }
 0x2b7   : > { %v2159_v19 = vadd.f32 %v2074_v39, %v1959_v1  ;;  %v3394_v1 = vpop.permute.xlu1 %3393  ;;  %v2887_v39 = vadd.f32 %v2855_v5, %v2819_v40  ;;  %v850_v25 = vadd.f32 %v849_v37, %v9744_v62  ;;  %v2280_v40 = vmul.f32 %v6417_v32, %v7368_v30  ;;  %v9761_v37 = vld [vmem:[#allocation73_spill] sm:$0xff] }
 0x2b8   : > { %v2994_v11 = vpop.permute.xlu0 %2993  ;;  %1899 = vrot.lane.b32.xlu1 %v1812_v27, %s5950_s30  ;;  %v7382_v13 = vadd.f32 %v3522_v22, %v3486_v4  ;;  %v1612_v32 = vmul.f32 %v6403_v20, %v7349_v52 }
 0x2b9   : > { %v7366_v15 = vadd.f32 %v2195_v50, %v2159_v19  ;;  %v3087_v51 = vadd.f32 %v2994_v11, %v2887_v39  ;;  %v844_v19 = vadd.f32 %v843_v44, %v9744_v62  ;;  %v1028_v4 = vmul.f32 0.5, %v850_v25  ;;  %v9759_v39 = vld [vmem:[#allocation21_spill] sm:$0xff] }
 0x2ba   : > { %2095 = vrot.lane.b32.xlu0 %v2010_v53, %s5951_s9  ;;  %v5524_v53 = vpop.eup %5523  ;;  %v2664_v22 = vmul.f32 %v9759_v39, %v6773_v17 }
 0x2bb   : > { %9754 = vst [vmem:[#allocation47_spill] sm:$0xff] %v7366_v15  ;;  %v1876_v5 = vpop.permute.xlu1 %1875  ;;  %v3287_v11 = vadd.f32 %v3194_v45, %v3087_v51  ;;  %v1024_v3 = vmul.f32 0.5, %v844_v19  ;;  %v7406_v45 = vadd.f32 0.5, %v1265_v49  ;;  %v1276_v25 = vmul.f32 0.5, %v5524_v53 }
 0x2bc   : > { %v7377_v58 = vpop.permute.xlu0 %2341  ;;  %2367 = vrot.lane.b32.xlu1 %v2280_v40, %s5952_s18  ;;  %v828_v40 = vadd.f32 %v9761_v37, %v7159_v43  ;;  %5525 = vtanh.f32 %v1028_v4 }
 0x2bd   : > { %9757 = vst [vmem:[#allocation62_spill] sm:$0xff] %v7377_v58  ;;  %v3487_v51 = vadd.f32 %v3394_v1, %v3287_v11  ;;  %5527 = vtanh.f32 %v1024_v3  ;;  %v9765_v1 = vld [vmem:[#allocation89_spill] sm:$0xff]  ;;  %v7422_v4 = vadd.f32 0.5, %v1276_v25  ;;  %v9767_v3 = vld [vmem:[#allocation35_spill] sm:$0xff]  ;;  %v1529_v25 = vmul.f32 %v6930_v48, %v7002_v33 }
 0x2be   : > { %1897 = vrot.lane.b32.xlu0 %v1811_v46, %s5950_s30  ;;  %v9760_v46 = vld [vmem:[#allocation84_spill] sm:$0xff]  ;;  %v2196_v49 = vmul.f32 %v6965_v61, %v9765_v1  ;;  %v2665_v33 = vmul.f32 %v9759_v39, %v6827_v16 }
 0x2bf   : > { %v7395_v27 = vpop.permute.xlu1 %2995  ;;  %v1528_v44 = vmul.f32 %v6930_v48, %v9760_v46  ;;  %v9764_v46 = vld [vmem:[#allocation32_spill] sm:$0xff] }
 0x2c0   : > { %v7389_v50 = vpop.permute.xlu0 %2541  ;;  %2735 = vrot.lane.b32.xlu1 %v2664_v22, %s5951_s9  ;;  %v3523_v22 = vmul.f32 %v7290_v18, %v7406_v45 }
 0x2c1   : > { %9758 = vst [vmem:[#allocation75_spill] sm:$0xff] %v7389_v50  ;;  %v1013_v50 = vmul.f32 0.5, %v828_v40 }
 0x2c2   : > { %2365 = vrot.lane.b32.xlu0 %v2279_v24, %s5952_s18  ;;  %v9763_v24 = vld [vmem:[#allocation87_spill] sm:$0xff]  ;;  %v7420_v53 = vadd.f32 %v3523_v22, %v3487_v51 }
 0x2c3   : > { %v7409_v17 = vpop.permute.xlu1 %2343  ;;  %v3328_v37 = vmul.f32 %v9764_v46, %v9763_v24  ;;  %5529 = vtanh.f32 %v1013_v50 }
 0x2c4   : > { %v1676_v10 = vpop.permute.xlu0 %1675  ;;  %9762 = vst [vmem:[#allocation66_spill] sm:$0xff] %v7409_v17 }
 0x2c5   : > { %v1760_v12 = vadd.f32 %v1676_v10, %v1528_v44  ;;  %3395 = vrot.lane.b32.xlu1 %v3328_v37, %s5951_s9  ;;  %v2012_v10 = vmul.f32 %v6415_v31, %v7349_v52  ;;  %v3129_v44 = vmul.f32 %v9767_v3, %v6994_v34  ;;  %v9769_v31 = vld [vmem:[#allocation34_spill] sm:$0xff]  ;;  %v2197_v52 = vmul.f32 %v6965_v61, %v7033_v6 }
 0x2c6   : > { %1699 = vrot.lane.b32.xlu0 %v1612_v32, %s5952_s18  ;;  %v3593_v51 = vmul.f32 %v9769_v31, %v7302_v23 }
 0x2c7   : > { %v1960_v19 = vadd.f32 %v1876_v5, %v1760_v12  ;;  %v7425_v5 = vpop.permute.xlu1 %2543  ;;  %v7436_v12 = vpop.f32.mrf.mxu1 }
 0x2c8   : > { %v2076_v20 = vpop.permute.xlu0 %2075  ;;  %9766 = vst [vmem:[#allocation65_spill] sm:$0xff] %v7425_v5 }
 0x2c9   : > { %v2160_v11 = vadd.f32 %v2076_v20, %v1960_v19  ;;  %3197 = vrot.lane.b32.xlu1 %v3129_v44, %s5950_s30  ;;  %v3130_v19 = vmul.f32 %v9767_v3, %v7422_v4  ;;  %v2930_v20 = vmul.f32 %v6561_v7, %v7422_v4  ;;  %v5526_v44 = vpop.eup %5525 }
 0x2ca   : > { %2099 = vrot.lane.b32.xlu0 %v2012_v10, %s5951_s9  ;;  %v855_v10 = vpop.f32.mrf.mxu1 }
 0x2cb   : > { %v7429_v40 = vadd.f32 %v2196_v49, %v2160_v11  ;;  %v1678_v37 = vpop.permute.xlu1 %1677 }
 0x2cc   : > { %v7431_v32 = vpop.permute.xlu0 %3195  ;;  %v1761_v22 = vadd.f32 %v1678_v37, %v1529_v25  ;;  %v3594_v37 = vmul.f32 %v9769_v31, %v7362_v47 }
 0x2cd   : > { %9768 = vst [vmem:[#allocation83_spill] sm:$0xff] %v7429_v40  ;;  %3199 = vrot.lane.b32.xlu1 %v3130_v19, %s5950_s30  ;;  %v5528_v19 = vpop.eup %5527 }
 0x2ce   : > { %3657 = vrot.lane.b32.xlu0 %v3593_v51, %s5952_s18 }
 0x2cf   : > { %v2078_v11 = vpop.permute.xlu1 %2077 }
 0x2d0   : > { %v1878_v50 = vpop.permute.xlu0 %1877  ;;  %v5530_v15 = vpop.eup %5529 }
 0x2d1   : > { %v1961_v49 = vadd.f32 %v1878_v50, %v1761_v22  ;;  %2737 = vrot.lane.b32.xlu1 %v2665_v33, %s5951_s9  ;;  %v7456_v22 = vpop.f32.mrf.mxu1  ;;  %v9773_v33 = vld [vmem:[#allocation37_spill] sm:$0xff] }
 0x2d2   : > { %2999 = vrot.lane.b32.xlu0 %v2930_v20, %s5952_s18  ;;  %v1284_v20 = vmul.f32 0.5, %v5526_v44  ;;  %v3793_v58 = vmul.f32 %v9773_v33, %v7302_v23 }
 0x2d3   : > { %v2161_v51 = vadd.f32 %v2078_v11, %v1961_v49  ;;  %v7461_v16 = vpop.permute.xlu1 %1879  ;;  %v3329_v49 = vmul.f32 %v9764_v46, %v6994_v34  ;;  %v1280_v11 = vmul.f32 0.5, %v5528_v19  ;;  %v861_v17 = vpop.f32.mrf.mxu1  ;;  %v9775_v34 = vld [vmem:[#allocation36_spill] sm:$0xff]  ;;  %v1269_v19 = vmul.f32 0.5, %v5530_v15 }
 0x2d4   : > { %v7451_v25 = vpop.permute.xlu0 %2997  ;;  %9771 = vst [vmem:[#allocation84_spill] sm:$0xff] %v7461_v16  ;;  %v862_v44 = vadd.f32 %v861_v17, %v9744_v62 }
 0x2d5   : > { %v7458_v50 = vadd.f32 %v2197_v52, %v2161_v51  ;;  %3397 = vrot.lane.b32.xlu1 %v3329_v49, %s5951_s9  ;;  %v7470_v52 = vadd.f32 0.5, %v1284_v20  ;;  %v856_v49 = vadd.f32 %v855_v10, %v9744_v62  ;;  %v3794_v20 = vmul.f32 %v9773_v33, %v7362_v47 }
 0x2d6   : > { %3659 = vrot.lane.b32.xlu0 %v3594_v37, %s5952_s18  ;;  %v3993_v37 = vmul.f32 %v9775_v34, %v7302_v23  ;;  %v1036_v17 = vmul.f32 0.5, %v862_v44  ;;  %v7491_v15 = vadd.f32 0.5, %v1269_v19  ;;  %v840_v10 = vadd.f32 %v7337_v63, %v7159_v43 }
 0x2d7   : > { %9770 = vst [vmem:[#allocation21_spill] sm:$0xff] %v7458_v50  ;;  %v7474_v51 = vpop.permute.xlu1 %2347  ;;  %v2932_v23 = vmul.f32 %v6561_v7, %v7470_v52 }
 0x2d8   : > { %v7465_v5 = vpop.permute.xlu0 %2345  ;;  %9774 = vst [vmem:[#allocation87_spill] sm:$0xff] %v7474_v51  ;;  %5531 = vtanh.f32 %v1036_v17  ;;  %v3596_v19 = vmul.f32 %v9769_v31, %v7491_v15  ;;  %v1021_v63 = vmul.f32 0.5, %v840_v10  ;;  %v2666_v10 = vmul.f32 %v9759_v39, %v9730_v38 }
 0x2d9   : > { %9772 = vst [vmem:[#allocation73_spill] sm:$0xff] %v7465_v5  ;;  %v7478_v5 = vadd.f32 0.5, %v1280_v11  ;;  %4057 = vrot.lane.b32.xlu1 %v3993_v37, %s5951_s9  ;;  %v1032_v11 = vmul.f32 0.5, %v856_v49  ;;  %v834_v37 = vadd.f32 %v7297_v0, %v7159_v43 }
 0x2da   : > { %3857 = vrot.lane.b32.xlu0 %v3793_v58, %s5950_s30 }
 0x2db   : > { %v7487_v58 = vpop.permute.xlu1 %2547  ;;  %v2931_v44 = vmul.f32 %v6561_v7, %v7478_v5  ;;  %5533 = vtanh.f32 %v1032_v11  ;;  %v3131_v17 = vmul.f32 %v9767_v3, %v7478_v5  ;;  %v7522_v11 = vpop.f32.mrf.mxu1 }
 0x2dc   : > { %v7481_v50 = vpop.permute.xlu0 %2545  ;;  %9777 = vst [vmem:[#allocation89_spill] sm:$0xff] %v7487_v58  ;;  %v1017_v58 = vmul.f32 0.5, %v834_v37  ;;  %5535 = vtanh.f32 %v1021_v63  ;;  %v3330_v63 = vmul.f32 %v9764_v46, %v7422_v4 }
 0x2dd   : > { %9776 = vst [vmem:[#allocation32_spill] sm:$0xff] %v7481_v50  ;;  %3003 = vrot.lane.b32.xlu1 %v2932_v23, %s5952_s18  ;;  %v3595_v23 = vmul.f32 %v9769_v31, %v7406_v45 }
 0x2de   : > { %3859 = vrot.lane.b32.xlu0 %v3794_v20, %s5950_s30  ;;  %5537 = vtanh.f32 %v1017_v58  ;;  %v2667_v58 = vmul.f32 %v9759_v39, %v9753_v28 }
 0x2df   : > { %v7503_v20 = vpop.permute.xlu1 %1681 }
 0x2e0   : > { %v7495_v50 = vpop.permute.xlu0 %1679  ;;  %9779 = vst [vmem:[#allocation34_spill] sm:$0xff] %v7503_v20 }
 0x2e1   : > { %9778 = vst [vmem:[#allocation35_spill] sm:$0xff] %v7495_v50  ;;  %3663 = vrot.lane.b32.xlu1 %v3596_v19, %s5952_s18  ;;  %v3132_v19 = vmul.f32 %v9767_v3, %v7470_v52 }
 0x2e2   : > { %3001 = vrot.lane.b32.xlu0 %v2931_v44, %s5952_s18 }
 0x2e3   : > { %v7513_v0 = vpop.permute.xlu1 %2081 }
 0x2e4   : > { %v7507_v49 = vpop.permute.xlu0 %2079  ;;  %9781 = vst [vmem:[#allocation36_spill] sm:$0xff] %v7513_v0 }
 0x2e5   : > { %9780 = vst [vmem:[#allocation37_spill] sm:$0xff] %v7507_v49  ;;  %3201 = vrot.lane.b32.xlu1 %v3131_v17, %s5950_s30  ;;  %v867_v17 = vpop.f32.mrf.mxu1 }
 0x2e6   : > { %3661 = vrot.lane.b32.xlu0 %v3595_v23, %s5952_s18 }
 0x2e7   : > { %v7525_v37 = vpop.permute.xlu1 %1883 }
 0x2e8   : > { %v7517_v44 = vpop.permute.xlu0 %1881  ;;  %9783 = vst [vmem:[#allocation133_spill] sm:$0xff] %v7525_v37 }
 0x2e9   : > { %9782 = vst [vmem:[#allocation132_spill] sm:$0xff] %v7517_v44  ;;  %3203 = vrot.lane.b32.xlu1 %v3132_v19, %s5950_s30  ;;  %v7544_v44 = vpop.f32.mrf.mxu1 }
 0x2ea   : > { %2739 = vrot.lane.b32.xlu0 %v2666_v10, %s5951_s9  ;;  %v5532_v10 = vpop.eup %5531 }
 0x2eb   : > { %v7535_v38 = vpop.permute.xlu1 %2351  ;;  %v5534_v19 = vpop.eup %5533  ;;  %v1292_v37 = vmul.f32 0.5, %v5532_v10 }
 0x2ec   : > { %v7529_v23 = vpop.permute.xlu0 %2349  ;;  %9785 = vst [vmem:[#allocation135_spill] sm:$0xff] %v7535_v38  ;;  %v3331_v38 = vmul.f32 %v9764_v46, %v7478_v5  ;;  %v1288_v28 = vmul.f32 0.5, %v5534_v19  ;;  %v3995_v19 = vmul.f32 %v9775_v34, %v7406_v45 }
 0x2ed   : > { %9784 = vst [vmem:[#allocation134_spill] sm:$0xff] %v7529_v23  ;;  %2741 = vrot.lane.b32.xlu1 %v2667_v58, %s5951_s9  ;;  %v3994_v23 = vmul.f32 %v9775_v34, %v7362_v47  ;;  %v3795_v58 = vmul.f32 %v9773_v33, %v7406_v45  ;;  %v5536_v47 = vpop.eup %5535  ;;  %v7556_v51 = vadd.f32 0.5, %v1292_v37 }
 0x2ee   : > { %3399 = vrot.lane.b32.xlu0 %v3330_v63, %s5951_s9  ;;  %v7564_v49 = vadd.f32 0.5, %v1288_v28  ;;  %v4354_v28 = vld [vmem:[#allocation10 + $0x18] sm:$0xff] }
 0x2ef   : > { %v7547_v63 = vpop.permute.xlu1 %2551  ;;  %9789 = vst [vmem:[#allocation139_spill] sm:$0xff] %v7556_v51  ;;  %v2934_v45 = vmul.f32 %v6561_v7, %v7556_v51  ;;  %5187 = vmatprep.subr.mxu0 %v4354_v28 }
 0x2f0   : > { %v7539_v0 = vpop.permute.xlu0 %2549  ;;  %9787 = vst [vmem:[#allocation137_spill] sm:$0xff] %v7547_v63  ;;  %v5538_v63 = vpop.eup %5537  ;;  %9791 = vst [vmem:[#allocation141_spill] sm:$0xff] %v7564_v49  ;;  %5188 = vmatpush3.msra.mxu0 %v4354_v28 }
 0x2f1   : > { %9786 = vst [vmem:[#allocation136_spill] sm:$0xff] %v7539_v0  ;;  %3401 = vrot.lane.b32.xlu1 %v3331_v38, %s5951_s9  ;;  %v873_v0 = vpop.f32.mrf.mxu1  ;;  %v868_v38 = vadd.f32 %v867_v17, %v9744_v62  ;;  %v1273_v37 = vmul.f32 0.5, %v5538_v63  ;;  %v852_v17 = vadd.f32 %v7436_v12, %v7159_v43  ;;  %v2933_v63 = vmul.f32 %v6561_v7, %v7564_v49 }
 0x2f2   : > { %4059 = vrot.lane.b32.xlu0 %v3994_v23, %s5951_s9  ;;  %v874_v10 = vadd.f32 %v873_v0, %v9744_v62  ;;  %v3796_v0 = vmul.f32 %v9773_v33, %v7491_v15 }
 0x2f3   : > { %v7560_v23 = vpop.permute.xlu1 %1685 }
 0x2f4   : > { %v7551_v20 = vpop.permute.xlu0 %1683  ;;  %9790 = vst [vmem:[#allocation140_spill] sm:$0xff] %v7560_v23 }
 0x2f5   : > { %9788 = vst [vmem:[#allocation138_spill] sm:$0xff] %v7551_v20  ;;  %v1277_v20 = vmul.f32 0.5, %v5536_v47  ;;  %4061 = vrot.lane.b32.xlu1 %v3995_v19, %s5951_s9  ;;  %v4353_v47 = vld [vmem:[#allocation10 + $0x10] sm:$0xff]  ;;  %v1040_v19 = vmul.f32 0.5, %v868_v38 }
 0x2f6   : > { %3861 = vrot.lane.b32.xlu0 %v3795_v58, %s5950_s30  ;;  %v1044_v58 = vmul.f32 0.5, %v874_v10  ;;  %v4352_v10 = vld [vmem:[#allocation10 + $0x8] sm:$0xff]  ;;  %5189 = vmatprep.subr.mxu0 %v4353_v47 }
 0x2f7   : > { %v7573_v23 = vpop.permute.xlu1 %2085  ;;  %v7577_v50 = vadd.f32 0.5, %v1277_v20  ;;  %v846_v20 = vadd.f32 %v7364_v59, %v7159_v43  ;;  %5190 = vmatpush3.msra.mxu0 %v4353_v47  ;;  %v3133_v47 = vmul.f32 %v9767_v3, %v7564_v49 }
 0x2f8   : > { %v7567_v16 = vpop.permute.xlu0 %2083  ;;  %9793 = vst [vmem:[#allocation143_spill] sm:$0xff] %v7573_v23  ;;  %5539 = vtanh.f32 %v1044_v58  ;;  %v1029_v23 = vmul.f32 0.5, %v852_v17  ;;  %5191 = vmatprep.subr.mxu0 %v4352_v10 }
 0x2f9   : > { %9792 = vst [vmem:[#allocation142_spill] sm:$0xff] %v7567_v16  ;;  %3007 = vrot.lane.b32.xlu1 %v2934_v45, %s5952_s18  ;;  %v3598_v38 = vmul.f32 %v9769_v31, %v7577_v50  ;;  %v4351_v45 = vld [vmem:[#allocation10] sm:$0xff]  ;;  %5541 = vtanh.f32 %v1040_v19  ;;  %5192 = vmatpush3.msra.mxu0 %v4352_v10  ;;  %v2668_v19 = vmul.f32 %v9759_v39, %v9765_v1 }
 0x2fa   : > { %3863 = vrot.lane.b32.xlu0 %v3796_v0, %s5950_s30  ;;  %v7586_v0 = vadd.f32 0.5, %v1273_v37  ;;  %v1025_v37 = vmul.f32 0.5, %v846_v20  ;;  %5193 = vmatprep.subr.mxu0 %v4351_v45  ;;  %5543 = vtanh.f32 %v1029_v23  ;;  %v3134_v20 = vmul.f32 %v9767_v3, %v7556_v51 }
 0x2fb   : > { %v7591_v12 = vpop.permute.xlu1 %1887  ;;  %5194 = vmatpush3.msra.mxu0 %v4351_v45  ;;  %v3332_v23 = vmul.f32 %v9764_v46, %v7470_v52 }
 0x2fc   : > { %v7581_v16 = vpop.permute.xlu0 %1885  ;;  %9795 = vst [vmem:[#allocation145_spill] sm:$0xff] %v7591_v12  ;;  %v3597_v59 = vmul.f32 %v9769_v31, %v7586_v0  ;;  %5545 = vtanh.f32 %v1025_v37 }
 0x2fd   : > { %9794 = vst [vmem:[#allocation144_spill] sm:$0xff] %v7581_v16  ;;  %3667 = vrot.lane.b32.xlu1 %v3598_v38, %s5952_s18 }
 0x2fe   : > { %3005 = vrot.lane.b32.xlu0 %v2933_v63, %s5952_s18  ;;  %v7610_v63 = vpop.f32.mrf.mxu1 }
 0x2ff   : > { %v7601_v58 = vpop.permute.xlu1 %2355 }
 0x300   : > { %v7595_v28 = vpop.permute.xlu0 %2353  ;;  %9797 = vst [vmem:[#allocation147_spill] sm:$0xff] %v7601_v58  ;;  %v879_v45 = vpop.f32.mrf.mxu1 }
 0x301   : > { %9796 = vst [vmem:[#allocation146_spill] sm:$0xff] %v7595_v28  ;;  %3205 = vrot.lane.b32.xlu1 %v3133_v47, %s5950_s30 }
 0x302   : > { %3665 = vrot.lane.b32.xlu0 %v3597_v59, %s5952_s18  ;;  %v2669_v59 = vmul.f32 %v9759_v39, %v7033_v6 }
 0x303   : > { %v7613_v10 = vpop.permute.xlu1 %1689 }
 0x304   : > { %v7605_v17 = vpop.permute.xlu0 %2553  ;;  %9799 = vst [vmem:[#allocation149_spill] sm:$0xff] %v7613_v10  ;;  %v7632_v10 = vpop.f32.mrf.mxu1 }
 0x305   : > { %9798 = vst [vmem:[#allocation148_spill] sm:$0xff] %v7605_v17  ;;  %3207 = vrot.lane.b32.xlu1 %v3134_v20, %s5950_s30  ;;  %v5540_v37 = vpop.eup %5539 }
 0x306   : > { %2743 = vrot.lane.b32.xlu0 %v2668_v19, %s5951_s9  ;;  %v3996_v19 = vmul.f32 %v9775_v34, %v7491_v15  ;;  %v5542_v20 = vpop.eup %5541  ;;  %v1300_v17 = vmul.f32 0.5, %v5540_v37 }
 0x307   : > { %v7623_v1 = vpop.permute.xlu1 %2089  ;;  %v1296_v6 = vmul.f32 0.5, %v5542_v20  ;;  %v5544_v28 = vpop.eup %5543  ;;  %v3997_v20 = vmul.f32 %v9775_v34, %v7586_v0 }
 0x308   : > { %v7617_v38 = vpop.permute.xlu0 %1687  ;;  %9801 = vst [vmem:[#allocation151_spill] sm:$0xff] %v7623_v1  ;;  %v3333_v1 = vmul.f32 %v9764_v46, %v7564_v49  ;;  %v7644_v12 = vadd.f32 0.5, %v1300_v17  ;;  %v3798_v17 = vmul.f32 %v9773_v33, %v7577_v50 }
 0x309   : > { %9800 = vst [vmem:[#allocation150_spill] sm:$0xff] %v7617_v38  ;;  %2745 = vrot.lane.b32.xlu1 %v2669_v59, %s5951_s9  ;;  %v3797_v59 = vmul.f32 %v9773_v33, %v7586_v0  ;;  %v7652_v16 = vadd.f32 0.5, %v1296_v6 }
 0x30a   : > { %3403 = vrot.lane.b32.xlu0 %v3332_v23, %s5951_s9  ;;  %9805 = vst [vmem:[#allocation155_spill] sm:$0xff] %v7644_v12 }
 0x30b   : > { %v7635_v23 = vpop.permute.xlu1 %1891  ;;  %9807 = vst [vmem:[#allocation157_spill] sm:$0xff] %v7652_v16 }
 0x30c   : > { %v7627_v47 = vpop.permute.xlu0 %2087  ;;  %9803 = vst [vmem:[#allocation153_spill] sm:$0xff] %v7635_v23  ;;  %v5546_v23 = vpop.eup %5545 }
 0x30d   : > { %9802 = vst [vmem:[#allocation152_spill] sm:$0xff] %v7627_v47  ;;  %3405 = vrot.lane.b32.xlu1 %v3333_v1, %s5951_s9  ;;  %v885_v47 = vpop.f32.mrf.mxu1  ;;  %v880_v1 = vadd.f32 %v879_v45, %v9744_v62  ;;  %v864_v45 = vadd.f32 %v7522_v11, %v7159_v43 }
 0x30e   : > { %4063 = vrot.lane.b32.xlu0 %v3996_v19, %s5951_s9  ;;  %v886_v37 = vadd.f32 %v885_v47, %v9744_v62  ;;  %v1281_v47 = vmul.f32 0.5, %v5546_v23  ;;  %v2935_v23 = vmul.f32 %v6561_v7, %v7652_v16 }
 0x30f   : > { %v7648_v19 = vpop.permute.xlu1 %2359 }
 0x310   : > { %v7639_v58 = vpop.permute.xlu0 %1889  ;;  %9806 = vst [vmem:[#allocation156_spill] sm:$0xff] %v7648_v19 }
 0x311   : > { %9804 = vst [vmem:[#allocation154_spill] sm:$0xff] %v7639_v58  ;;  %v1285_v58 = vmul.f32 0.5, %v5544_v28  ;;  %4065 = vrot.lane.b32.xlu1 %v3997_v20, %s5951_s9  ;;  %v2936_v28 = vmul.f32 %v6561_v7, %v7644_v12 }
 0x312   : > { %3865 = vrot.lane.b32.xlu0 %v3797_v59, %s5950_s30  ;;  %v1052_v59 = vmul.f32 0.5, %v886_v37  ;;  %v9812_v37 = vld [vmem:[#allocation28_spill] sm:$0xff] }
 0x313   : > { %v7661_v19 = vpop.permute.xlu1 %1693  ;;  %v7665_v6 = vadd.f32 0.5, %v1285_v58  ;;  %v1520_v20 = vmul.f32 %v6930_v48, %v9812_v37  ;;  %v858_v58 = vadd.f32 %v7456_v22, %v7159_v43  ;;  %v9817_v37 = vld [vmem:[#allocation68_spill] sm:$0xff] }
 0x314   : > { %v7655_v38 = vpop.permute.xlu0 %2357  ;;  %9809 = vst [vmem:[#allocation159_spill] sm:$0xff] %v7661_v19  ;;  %5547 = vtanh.f32 %v1052_v59 }
 0x315   : > { %9808 = vst [vmem:[#allocation158_spill] sm:$0xff] %v7655_v38  ;;  %9810 = vst [vmem:[#allocation160_spill] sm:$0xff] %v7665_v6  ;;  %v1048_v38 = vmul.f32 0.5, %v880_v1  ;;  %3011 = vrot.lane.b32.xlu1 %v2936_v28, %s5952_s18  ;;  %v3600_v1 = vmul.f32 %v9769_v31, %v7665_v6  ;;  %v9814_v28 = vld [vmem:[#allocation69_spill] sm:$0xff]  ;;  %v1033_v22 = vmul.f32 0.5, %v858_v58 }
 0x316   : > { %3867 = vrot.lane.b32.xlu0 %v3798_v17, %s5950_s30  ;;  %v7676_v17 = vadd.f32 0.5, %v1281_v47  ;;  %v1752_v19 = vadd.f32 %v9814_v28, %v1520_v20  ;;  %v7702_v20 = vpop.f32.mrf.mxu1  ;;  %v9819_v58 = vld [vmem:[#allocation77_spill] sm:$0xff] }
 0x317   : > { %v7681_v11 = vpop.permute.xlu1 %2093  ;;  %5549 = vtanh.f32 %v1048_v38  ;;  %v2670_v38 = vmul.f32 %v9759_v39, %v7040_v9 }
 0x318   : > { %v7669_v40 = vpop.permute.xlu0 %1691  ;;  %9813 = vst [vmem:[#allocation28_spill] sm:$0xff] %v7681_v11  ;;  %v3599_v47 = vmul.f32 %v9769_v31, %v7676_v17  ;;  %v1952_v11 = vadd.f32 %v9817_v37, %v1752_v19  ;;  %v3136_v19 = vmul.f32 %v9767_v3, %v7644_v12 }
 0x319   : > { %9811 = vst [vmem:[#allocation161_spill] sm:$0xff] %v7669_v40  ;;  %v1037_v40 = vmul.f32 0.5, %v864_v45  ;;  %3671 = vrot.lane.b32.xlu1 %v3600_v1, %s5952_s18 }
 0x31a   : > { %3009 = vrot.lane.b32.xlu0 %v2935_v23, %s5952_s18  ;;  %v3135_v23 = vmul.f32 %v9767_v3, %v7652_v16  ;;  %v2152_v1 = vadd.f32 %v9819_v58, %v1952_v11  ;;  %v9824_v58 = vld [vmem:[#allocation107_spill] sm:$0xff] }
 0x31b   : > { %v7692_v59 = vpop.permute.xlu1 %1895  ;;  %5551 = vtanh.f32 %v1037_v40  ;;  %v9821_v40 = vld [vmem:[#allocation30_spill] sm:$0xff] }
 0x31c   : > { %v7686_v49 = vpop.permute.xlu0 %2091  ;;  %9816 = vst [vmem:[#allocation162_spill] sm:$0xff] %v7692_v59  ;;  %5553 = vtanh.f32 %v1033_v22 }
 0x31d   : > { %9815 = vst [vmem:[#allocation69_spill] sm:$0xff] %v7686_v49  ;;  %3209 = vrot.lane.b32.xlu1 %v3135_v23, %s5950_s30  ;;  %v3334_v23 = vmul.f32 %v9764_v46, %v7556_v51  ;;  %v9826_v49 = vld [vmem:[#allocation76_spill] sm:$0xff] }
 0x31e   : > { %3669 = vrot.lane.b32.xlu0 %v3599_v47, %s5952_s18  ;;  %v2188_v47 = vmul.f32 %v6965_v61, %v9821_v40 }
 0x31f   : > { %v7706_v28 = vpop.permute.xlu1 %2363 }
 0x320   : > { %v7697_v45 = vpop.permute.xlu0 %1893  ;;  %9820 = vst [vmem:[#allocation77_spill] sm:$0xff] %v7706_v28  ;;  %v2220_v11 = vadd.f32 %v2188_v47, %v2152_v1  ;;  %v2671_v28 = vmul.f32 %v9759_v39, %v9824_v58 }
 0x321   : > { %9818 = vst [vmem:[#allocation68_spill] sm:$0xff] %v7697_v45  ;;  %3211 = vrot.lane.b32.xlu1 %v3136_v19, %s5950_s30  ;;  %v891_v45 = vpop.f32.mrf.mxu1  ;;  %v5548_v59 = vpop.eup %5547  ;;  %v3998_v19 = vmul.f32 %v9775_v34, %v7577_v50 }
 0x322   : > { %2747 = vrot.lane.b32.xlu0 %v2670_v38, %s5951_s9  ;;  %v892_v22 = vadd.f32 %v891_v45, %v9744_v62  ;;  %v2420_v1 = vadd.f32 %v9826_v49, %v2220_v11  ;;  %v1308_v47 = vmul.f32 0.5, %v5548_v59  ;;  %v3799_v49 = vmul.f32 %v9773_v33, %v7676_v17  ;;  %v9829_v11 = vld [vmem:[#allocation78_spill] sm:$0xff] }
 0x323   : > { %v7719_v38 = vpop.permute.xlu1 %1697 }
 0x324   : > { %v7712_v37 = vpop.permute.xlu0 %2361  ;;  %9823 = vst [vmem:[#allocation163_spill] sm:$0xff] %v7719_v38  ;;  %v1056_v45 = vmul.f32 0.5, %v892_v22  ;;  %v3335_v38 = vmul.f32 %v9764_v46, %v7652_v16  ;;  %v2620_v22 = vadd.f32 %v9829_v11, %v2420_v1  ;;  %v3800_v1 = vmul.f32 %v9773_v33, %v7665_v6 }
 0x325   : > { %9822 = vst [vmem:[#allocation30_spill] sm:$0xff] %v7712_v37  ;;  %2749 = vrot.lane.b32.xlu1 %v2671_v28, %s5951_s9  ;;  %v5550_v37 = vpop.eup %5549 }
 0x326   : > { %3407 = vrot.lane.b32.xlu0 %v3334_v23, %s5951_s9  ;;  %v1304_v58 = vmul.f32 0.5, %v5550_v37  ;;  %5555 = vtanh.f32 %v1056_v45 }
 0x327   : > { %v7730_v23 = vpop.permute.xlu1 %2097 }
 0x328   : > { %v7723_v40 = vpop.permute.xlu0 %1695  ;;  %9827 = vst [vmem:[#allocation76_spill] sm:$0xff] %v7730_v23  ;;  %v5552_v59 = vpop.eup %5551 }
 0x329   : > { %9825 = vst [vmem:[#allocation164_spill] sm:$0xff] %v7723_v40  ;;  %v870_v40 = vadd.f32 %v7544_v44, %v7159_v43  ;;  %3409 = vrot.lane.b32.xlu1 %v3335_v38, %s5951_s9  ;;  %v3999_v44 = vmul.f32 %v9775_v34, %v7676_v17  ;;  %v5554_v37 = vpop.eup %5553  ;;  %v7749_v38 = vadd.f32 0.5, %v1304_v58 }
 0x32a   : > { %4067 = vrot.lane.b32.xlu0 %v3998_v19, %s5951_s9  ;;  %v7742_v19 = vadd.f32 0.5, %v1308_v47  ;;  %v9834_v47 = vld [vmem:[#allocation80_spill] sm:$0xff]  ;;  %v1289_v11 = vmul.f32 0.5, %v5554_v37 }
 0x32b   : > { %v7745_v23 = vpop.permute.xlu1 %1899  ;;  %v1041_v61 = vmul.f32 0.5, %v870_v40  ;;  %9832 = vst [vmem:[#allocation167_spill] sm:$0xff] %v7749_v38  ;;  %v2820_v45 = vadd.f32 %v9834_v47, %v2620_v22  ;;  %v2937_v22 = vmul.f32 %v6561_v7, %v7749_v38 }
 0x32c   : > { %v7736_v28 = vpop.permute.xlu0 %2095  ;;  %9830 = vst [vmem:[#allocation78_spill] sm:$0xff] %v7742_v19  ;;  %9831 = vst [vmem:[#allocation166_spill] sm:$0xff] %v7745_v23  ;;  %v2938_v58 = vmul.f32 %v6561_v7, %v7742_v19 }
 0x32d   : > { %9828 = vst [vmem:[#allocation165_spill] sm:$0xff] %v7736_v28  ;;  %v1293_v28 = vmul.f32 0.5, %v5552_v59  ;;  %4069 = vrot.lane.b32.xlu1 %v3999_v44, %s5951_s9  ;;  %5557 = vtanh.f32 %v1041_v61 }
 0x32e   : > { %3869 = vrot.lane.b32.xlu0 %v3799_v49, %s5950_s30  ;;  %v2856_v49 = vmul.f32 %v6992_v29, %v9763_v24  ;;  %v7771_v24 = vadd.f32 0.5, %v1289_v11 }
 0x32f   : > { %v7760_v23 = vpop.permute.xlu1 %2367  ;;  %v7764_v40 = vadd.f32 0.5, %v1293_v28  ;;  %v7778_v28 = vpop.f32.mrf.mxu1 }
 0x330   : > { %v7751_v9 = vpop.permute.xlu0 %1897  ;;  %9835 = vst [vmem:[#allocation80_spill] sm:$0xff] %v7760_v23  ;;  %v2888_v44 = vadd.f32 %v2856_v49, %v2820_v45  ;;  %9838 = vst [vmem:[#allocation171_spill] sm:$0xff] %v7771_v24  ;;  %v3601_v45 = vmul.f32 %v9769_v31, %v7771_v24 }
 0x331   : > { %9833 = vst [vmem:[#allocation168_spill] sm:$0xff] %v7751_v9  ;;  %9836 = vst [vmem:[#allocation169_spill] sm:$0xff] %v7764_v40  ;;  %3015 = vrot.lane.b32.xlu1 %v2938_v58, %s5952_s18  ;;  %v3137_v58 = vmul.f32 %v9767_v3, %v7749_v38  ;;  %v897_v23 = vpop.f32.mrf.mxu1 }
 0x332   : > { %3871 = vrot.lane.b32.xlu0 %v3800_v1, %s5950_s30  ;;  %v3602_v1 = vmul.f32 %v9769_v31, %v7764_v40  ;;  %v3088_v61 = vadd.f32 %v7395_v27, %v2888_v44  ;;  %v3524_v27 = vmul.f32 %v7290_v18, %v7491_v15  ;;  %v898_v44 = vadd.f32 %v897_v23, %v9744_v62 }
 0x333   : > { %v7774_v37 = vpop.permute.xlu1 %2735  ;;  %v3336_v23 = vmul.f32 %v9764_v46, %v7644_v12 }
 0x334   : > { %v7766_v59 = vpop.permute.xlu0 %2365  ;;  %v3288_v49 = vadd.f32 %v7431_v32, %v3088_v61 }
 0x335   : > { %9837 = vst [vmem:[#allocation170_spill] sm:$0xff] %v7766_v59  ;;  %3675 = vrot.lane.b32.xlu1 %v3602_v1, %s5952_s18 }
 0x336   : > { %3013 = vrot.lane.b32.xlu0 %v2937_v22, %s5952_s18  ;;  %v5556_v22 = vpop.eup %5555 }
 0x337   : > { %v3396_v11 = vpop.permute.xlu1 %3395 }
 0x338   : > { %v7781_v47 = vpop.permute.xlu0 %1699  ;;  %v3488_v59 = vadd.f32 %v3396_v11, %v3288_v49  ;;  %v2474_v49 = vmul.f32 %v6452_v57, %v7168_v36  ;;  %v1060_v11 = vmul.f32 0.5, %v898_v44  ;;  %v3802_v44 = vmul.f32 %v9773_v33, %v7764_v40 }
 0x339   : > { %9839 = vst [vmem:[#allocation172_spill] sm:$0xff] %v7781_v47  ;;  %3213 = vrot.lane.b32.xlu1 %v3137_v58, %s5950_s30  ;;  %v9841_v47 = vld [vmem:[#allocation110_spill] sm:$0xff] }
 0x33a   : > { %3673 = vrot.lane.b32.xlu0 %v3601_v45, %s5952_s18  ;;  %v2672_v32 = vmul.f32 %v9759_v39, %v9841_v47  ;;  %v7798_v61 = vadd.f32 %v3524_v27, %v3488_v59  ;;  %v1312_v45 = vmul.f32 0.5, %v5556_v22  ;;  %v5558_v58 = vpop.eup %5557  ;;  %v876_v59 = vadd.f32 %v7610_v63, %v7159_v43 }
 0x33b   : > { %v3198_v9 = vpop.permute.xlu1 %3197  ;;  %5559 = vtanh.f32 %v1060_v11  ;;  %v4000_v47 = vmul.f32 %v9775_v34, %v7665_v6 }
 0x33c   : > { %v7793_v1 = vpop.permute.xlu0 %2099  ;;  %v7810_v22 = vadd.f32 0.5, %v1312_v45  ;;  %v1045_v63 = vmul.f32 0.5, %v876_v59  ;;  %v3801_v59 = vmul.f32 %v9773_v33, %v7771_v24 }
 0x33d   : > { %9840 = vst [vmem:[#allocation173_spill] sm:$0xff] %v7793_v1  ;;  %2555 = vrot.lane.b32.xlu1 %v2474_v49, %s5950_s30  ;;  %v7806_v1 = vpop.f32.mrf.mxu1 }
 0x33e   : > { %2751 = vrot.lane.b32.xlu0 %v2672_v32, %s5951_s9  ;;  %9842 = vst [vmem:[#allocation174_spill] sm:$0xff] %v7810_v22  ;;  %v1297_v32 = vmul.f32 0.5, %v5558_v58  ;;  %v2939_v16 = vmul.f32 %v6561_v7, %v7810_v22  ;;  %v9844_v58 = vld [vmem:[#allocation92_spill] sm:$0xff]  ;;  %5561 = vtanh.f32 %v1045_v63 }
 0x33f   : > { %v7813_v27 = vpop.permute.xlu1 %3199  ;;  %v903_v48 = vpop.f32.mrf.mxu1  ;;  %v3089_v11 = vadd.f32 %v7451_v25, %v9844_v58  ;;  %v3525_v58 = vmul.f32 %v7290_v18, %v7586_v0  ;;  %v2674_v0 = vmul.f32 %v9759_v39, %v7168_v36 }
 0x340   : > { %v3658_v15 = vpop.permute.xlu0 %3657  ;;  %v904_v45 = vadd.f32 %v903_v48, %v9744_v62  ;;  %v7830_v12 = vadd.f32 0.5, %v1297_v32 }
 0x341   : > { %3875 = vrot.lane.b32.xlu1 %v3802_v44, %s5950_s30  ;;  %v3289_v48 = vadd.f32 %v3198_v9, %v3089_v11  ;;  %v3753_v25 = vadd.f32 %v3658_v15, %v7324_v2  ;;  %v3138_v9 = vmul.f32 %v9767_v3, %v7742_v19  ;;  %v7854_v2 = vld [vmem:[%s9466_s4] ss:$0 sm:$0xff] }
 0x342   : > { %3411 = vrot.lane.b32.xlu0 %v3336_v23, %s5951_s9  ;;  %9845 = vst [vmem:[#allocation92_spill] sm:$0xff] %v7830_v12 }
 0x343   : > { %v7824_v23 = vpop.permute.xlu1 %2737 }
 0x344   : > { %v7817_v49 = vpop.permute.xlu0 %2999  ;;  %9843 = vst [vmem:[#allocation175_spill] sm:$0xff] %v7824_v23  ;;  %v3603_v23 = vmul.f32 %v9769_v31, %v7830_v12 }
 0x345   : > { %3017 = vrot.lane.b32.xlu1 %v2939_v16, %s5952_s18  ;;  %v882_v16 = vadd.f32 %v7632_v10, %v7159_v43 }
 0x346   : > { %4071 = vrot.lane.b32.xlu0 %v4000_v47, %s5951_s9  ;;  %v1064_v47 = vmul.f32 0.5, %v904_v45 }
 0x347   : > { %v3398_v51 = vpop.permute.xlu1 %3397  ;;  %v1049_v15 = vmul.f32 0.5, %v882_v16  ;;  %v3337_v16 = vmul.f32 %v9764_v46, %v7749_v38  ;;  %v2476_v38 = vmul.f32 %v6452_v57, %v7230_v55 }
 0x348   : > { %v7832_v44 = vpop.permute.xlu0 %3659  ;;  %v3489_v32 = vadd.f32 %v3398_v51, %v3289_v48  ;;  %5563 = vtanh.f32 %v1064_v47  ;;  %v5560_v11 = vpop.eup %5559  ;;  %v3338_v47 = vmul.f32 %v9764_v46, %v7742_v19 }
 0x349   : > { %3677 = vrot.lane.b32.xlu1 %v3603_v23, %s5952_s18  ;;  %5565 = vtanh.f32 %v1049_v15 }
 0x34a   : > { %3873 = vrot.lane.b32.xlu0 %v3801_v59, %s5950_s30  ;;  %v7848_v45 = vadd.f32 %v3525_v58, %v3489_v32  ;;  %v1316_v32 = vmul.f32 0.5, %v5560_v11 }
 0x34b   : > { %v4058_v51 = vpop.permute.xlu1 %4057 }
 0x34c   : > { %v3858_v60 = vpop.permute.xlu0 %3857 }
 0x34d   : > { %v3953_v63 = vadd.f32 %v3858_v60, %v3753_v25  ;;  %2755 = vrot.lane.b32.xlu1 %v2674_v0, %s5951_s9  ;;  %v2673_v60 = vmul.f32 %v9759_v39, %v7161_v35  ;;  %v7877_v0 = vpop.f32.mrf.mxu1 }
 0x34e   : > { %3215 = vrot.lane.b32.xlu0 %v3138_v9, %s5950_s30 }
 0x34f   : > { %v4153_v10 = vadd.f32 %v4058_v51, %v3953_v63  ;;  %v7863_v48 = vpop.permute.xlu1 %3003  ;;  %v4002_v63 = vmul.f32 %v9775_v34, %v7764_v40  ;;  %v5562_v51 = vpop.eup %5561 }
 0x350   : > { %v3860_v23 = vpop.permute.xlu0 %3859  ;;  %9846 = vst [vmem:[#allocation176_spill] sm:$0xff] %v7863_v48  ;;  %v1301_v11 = vmul.f32 0.5, %v5562_v51 }
 0x351   : > { %v4191_v59 = vadd.f32 %v7854_v2, %v4153_v10  ;;  %3415 = vrot.lane.b32.xlu1 %v3338_v47, %s5951_s9  ;;  %v7879_v10 = vadd.f32 0.5, %v1316_v32  ;;  %v3139_v47 = vmul.f32 %v9767_v3, %v7810_v22 }
 0x352   : > { %2753 = vrot.lane.b32.xlu0 %v2673_v60, %s5951_s9  ;;  %v4001_v60 = vmul.f32 %v9775_v34, %v7771_v24  ;;  %v7895_v35 = vadd.f32 0.5, %v1301_v11  ;;  %v3754_v11 = vadd.f32 %v7832_v44, %v7382_v13  ;;  %v2475_v13 = vmul.f32 %v6452_v57, %v7241_v8 }
 0x353   : > { %v4223_v25 = vmul.f32 0.5, %v4191_v59  ;;  %v7873_v9 = vpop.permute.xlu1 %3663  ;;  %9847 = vst [vmem:[#allocation177_spill] sm:$0xff] %v7879_v10 }
 0x354   : > { %v7867_v58 = vpop.permute.xlu0 %3001  ;;  %9849 = vst [vmem:[#allocation179_spill] sm:$0xff] %v7895_v35  ;;  %v3954_v6 = vadd.f32 %v3860_v23, %v3754_v11 }
 0x355   : > { %5567 = vtanh.f32 %v4223_v25  ;;  %4075 = vrot.lane.b32.xlu1 %v4002_v63, %s5951_s9  ;;  %v5564_v25 = vpop.eup %5563  ;;  %v2940_v63 = vmul.f32 %v6561_v7, %v7879_v10 }
 0x356   : > { %3413 = vrot.lane.b32.xlu0 %v3337_v16, %s5951_s9  ;;  %v909_v16 = vpop.f32.mrf.mxu1  ;;  %v1320_v51 = vmul.f32 0.5, %v5564_v25 }
 0x357   : > { %v7885_v59 = vpop.permute.xlu1 %3201  ;;  %v910_v36 = vadd.f32 %v909_v16, %v9744_v62  ;;  %v5566_v16 = vpop.eup %5565 }
 0x358   : > { %v3662_v15 = vpop.permute.xlu0 %3661  ;;  %v7907_v40 = vpop.f32.mrf.mxu1  ;;  %v1305_v41 = vmul.f32 0.5, %v5566_v16 }
 0x359   : > { %3217 = vrot.lane.b32.xlu1 %v3139_v47, %s5950_s30  ;;  %v1068_v19 = vmul.f32 0.5, %v910_v36  ;;  %v3604_v47 = vmul.f32 %v9769_v31, %v7895_v35  ;;  %v3755_v23 = vadd.f32 %v3662_v15, %v7420_v53 }
 0x35a   : > { %4073 = vrot.lane.b32.xlu0 %v4001_v60, %s5951_s9  ;;  %v7932_v11 = vadd.f32 0.5, %v1305_v41  ;;  %v894_v41 = vadd.f32 %v7778_v28, %v7159_v43  ;;  %v2675_v28 = vmul.f32 %v9759_v39, %v7241_v8 }
 0x35b   : > { %v7898_v60 = vpop.permute.xlu1 %3203  ;;  %5569 = vtanh.f32 %v1068_v19 }
 0x35c   : > { %v7890_v32 = vpop.permute.xlu0 %2739  ;;  %9850 = vst [vmem:[#allocation180_spill] sm:$0xff] %v7898_v60  ;;  %v3605_v53 = vmul.f32 %v9769_v31, %v7932_v11 }
 0x35d   : > { %9848 = vst [vmem:[#allocation178_spill] sm:$0xff] %v7890_v32  ;;  %2559 = vrot.lane.b32.xlu1 %v2476_v38, %s5950_s30  ;;  %v7913_v32 = vadd.f32 0.5, %v1320_v51  ;;  %v3804_v38 = vmul.f32 %v9773_v33, %v7895_v35 }
 0x35e   : > { %3019 = vrot.lane.b32.xlu0 %v2940_v63, %s5952_s18  ;;  %v888_v63 = vadd.f32 %v7702_v20, %v7159_v43  ;;  %v915_v20 = vpop.f32.mrf.mxu1 }
 0x35f   : > { %9851 = vst [vmem:[#allocation181_spill] sm:$0xff] %v7913_v32  ;;  %v7916_v36 = vpop.permute.xlu1 %2741  ;;  %v2941_v19 = vmul.f32 %v6561_v7, %v7913_v32 }
 0x360   : > { %v7902_v24 = vpop.permute.xlu0 %3399  ;;  %9852 = vst [vmem:[#allocation182_spill] sm:$0xff] %v7916_v36  ;;  %v916_v36 = vadd.f32 %v915_v20, %v9744_v62  ;;  %v3140_v20 = vmul.f32 %v9767_v3, %v7879_v10 }
 0x361   : > { %3879 = vrot.lane.b32.xlu1 %v3804_v38, %s5950_s30 }
 0x362   : > { %v5568_v25 = vpop.eup %5567  ;;  %3679 = vrot.lane.b32.xlu0 %v3604_v47, %s5952_s18  ;;  %v1053_v47 = vmul.f32 0.5, %v888_v63  ;;  %v1072_v63 = vmul.f32 0.5, %v916_v36 }
 0x363   : > { %v4287_v26 = vmul.f32 0.5, %v5568_v25  ;;  %v7925_v48 = vpop.permute.xlu1 %3401 }
 0x364   : > { %v4060_v60 = vpop.permute.xlu0 %4059  ;;  %5571 = vtanh.f32 %v1053_v47 }
 0x365   : > { %v4154_v44 = vadd.f32 %v4060_v60, %v3954_v6  ;;  %v4319_v51 = vadd.f32 0.5, %v4287_v26  ;;  %3021 = vrot.lane.b32.xlu1 %v2941_v19, %s5952_s18  ;;  %v3803_v26 = vmul.f32 %v9773_v33, %v7830_v12  ;;  %v1057_v19 = vmul.f32 0.5, %v894_v41 }
 0x366   : > { %2557 = vrot.lane.b32.xlu0 %v2475_v13, %s5950_s30 }
 0x367   : > { %v4192_v16 = vadd.f32 %v7854_v2, %v4154_v44  ;;  %5195 = vmatprep.mubr.msk.f32.mxu0 %vm4355_vm0, %v4319_v51  ;;  %v4062_v38 = vpop.permute.xlu1 %4061  ;;  %v2676_v51 = vmul.f32 %v9759_v39, %v7230_v55 }
 0x368   : > { %v3862_v6 = vpop.permute.xlu0 %3861 }
 0x369   : > { %v4224_v60 = vmul.f32 0.5, %v4192_v16  ;;  %v3955_v25 = vadd.f32 %v3862_v6, %v3755_v23  ;;  %3681 = vrot.lane.b32.xlu1 %v3605_v53, %s5952_s18  ;;  %v5570_v16 = vpop.eup %5569 }
 0x36a   : > { %3877 = vrot.lane.b32.xlu0 %v3803_v26, %s5950_s30  ;;  %v3340_v26 = vmul.f32 %v9764_v46, %v7879_v10 }
 0x36b   : > { %5573 = vtanh.f32 %v4224_v60  ;;  %v4155_v15 = vadd.f32 %v4062_v38, %v3955_v25  ;;  %v7947_v36 = vpop.permute.xlu1 %3007  ;;  %v1324_v60 = vmul.f32 0.5, %v5570_v16  ;;  %v7964_v38 = vpop.f32.mrf.mxu1 }
 0x36c   : > { %v3864_v13 = vpop.permute.xlu0 %3863  ;;  %5575 = vtanh.f32 %v1072_v63  ;;  %v3339_v63 = vmul.f32 %v9764_v46, %v7810_v22 }
 0x36d   : > { %v4193_v44 = vadd.f32 %v7854_v2, %v4155_v15  ;;  %2759 = vrot.lane.b32.xlu1 %v2676_v51, %s5951_s9  ;;  %v4004_v15 = vmul.f32 %v9775_v34, %v7895_v35 }
 0x36e   : > { %3219 = vrot.lane.b32.xlu0 %v3140_v20, %s5950_s30 }
 0x36f   : > { %v4225_v47 = vmul.f32 0.5, %v4193_v44  ;;  %v7957_v6 = vpop.permute.xlu1 %3667  ;;  %v7971_v44 = vadd.f32 0.5, %v1324_v60 }
 0x370   : > { %v7951_v23 = vpop.permute.xlu0 %3005 }
 0x371   : > { %9853 = vst [vmem:[#allocation183_spill] sm:$0xff] %v7951_v23  ;;  %5577 = vtanh.f32 %v4225_v47  ;;  %3419 = vrot.lane.b32.xlu1 %v3340_v26, %s5951_s9  ;;  %v5572_v41 = vpop.eup %5571  ;;  %9855 = vst [vmem:[#allocation185_spill] sm:$0xff] %v7971_v44  ;;  %v4003_v47 = vmul.f32 %v9775_v34, %v7830_v12 }
 0x372   : > { %2757 = vrot.lane.b32.xlu0 %v2675_v28, %s5951_s9  ;;  %5579 = vtanh.f32 %v1057_v19  ;;  %v921_v19 = vpop.f32.mrf.mxu1  ;;  %v1309_v16 = vmul.f32 0.5, %v5572_v41  ;;  %v3756_v41 = vadd.f32 %v7873_v9, %v7798_v61 }
 0x373   : > { %v7967_v53 = vpop.permute.xlu1 %3205  ;;  %v922_v55 = vadd.f32 %v921_v19, %v9744_v62  ;;  %v2478_v19 = vmul.f32 %v6452_v57, %v7306_v21 }
 0x374   : > { %v3666_v25 = vpop.permute.xlu0 %3665  ;;  %9854 = vst [vmem:[#allocation184_spill] sm:$0xff] %v7967_v53  ;;  %v3956_v12 = vadd.f32 %v3864_v13, %v3756_v41 }
 0x375   : > { %4079 = vrot.lane.b32.xlu1 %v4004_v15, %s5951_s9  ;;  %v2942_v15 = vmul.f32 %v6561_v7, %v7971_v44 }
 0x376   : > { %3417 = vrot.lane.b32.xlu0 %v3339_v63, %s5951_s9  ;;  %v3141_v63 = vmul.f32 %v9767_v3, %v7913_v32 }
 0x377   : > { %v7979_v26 = vpop.permute.xlu1 %3207 }
 0x378   : > { %v5574_v20 = vpop.eup %5573  ;;  %v7973_v51 = vpop.permute.xlu0 %2743  ;;  %9857 = vst [vmem:[#allocation187_spill] sm:$0xff] %v7979_v26  ;;  %v900_v26 = vadd.f32 %v7806_v1, %v7159_v43 }
 0x379   : > { %9856 = vst [vmem:[#allocation186_spill] sm:$0xff] %v7973_v51  ;;  %v4288_v28 = vmul.f32 0.5, %v5574_v20  ;;  %v5576_v8 = vpop.eup %5575  ;;  %3221 = vrot.lane.b32.xlu1 %v3141_v63, %s5950_s30  ;;  %v7999_v63 = vpop.f32.mrf.mxu1  ;;  %v1076_v51 = vmul.f32 0.5, %v922_v55 }
 0x37a   : > { %4077 = vrot.lane.b32.xlu0 %v4003_v47, %s5951_s9  ;;  %v7992_v47 = vadd.f32 0.5, %v1309_v16  ;;  %v1328_v10 = vmul.f32 0.5, %v5576_v8  ;;  %9859 = vst [vmem:[#allocation189_spill] sm:$0xff] %v7999_v63  ;;  %v9860_v8 = vld [vmem:[#allocation99_spill] sm:$0xff]  ;;  %v9861_v16 = vld [vmem:[#allocation96_spill] sm:$0xff]  ;;  %v3757_v63 = vadd.f32 %v3666_v25, %v7848_v45 }
 0x37b   : > { %v4320_v60 = vadd.f32 0.5, %v4288_v28  ;;  %v7995_v28 = vpop.permute.xlu1 %2745  ;;  %v927_v41 = vpop.f32.mrf.mxu1  ;;  %5581 = vtanh.f32 %v1076_v51  ;;  %v2858_v51 = vmul.f32 %v6992_v29, %v7422_v4 }
 0x37c   : > { %v7984_v22 = vpop.permute.xlu0 %3403  ;;  %9858 = vst [vmem:[#allocation188_spill] sm:$0xff] %v7995_v28  ;;  %v3606_v61 = vmul.f32 %v9769_v31, %v7992_v47  ;;  %v8008_v23 = vadd.f32 0.5, %v1328_v10  ;;  %v3806_v13 = vmul.f32 %v9773_v33, %v7992_v47  ;;  %v2477_v10 = vmul.f32 %v6452_v57, %v7318_v42 }
 0x37d   : > { %5196 = vmatmul.mubr.msk.f32.vlgmr.msra.gmra.mxu0 %vm4355_vm0, %v4320_v60  ;;  %2563 = vrot.lane.b32.xlu1 %v2478_v19, %s5950_s30  ;;  %v2422_v60 = vadd.f32 %v9861_v16, %v9860_v8  ;;  %v1061_v8 = vmul.f32 0.5, %v900_v26  ;;  %v928_v16 = vadd.f32 %v927_v41, %v9744_v62  ;;  %v3805_v26 = vmul.f32 %v9773_v33, %v7932_v11  ;;  %v9867_v41 = vld [vmem:[#allocation108_spill] sm:$0xff] }
 0x37e   : > { %v5578_v20 = vpop.eup %5577  ;;  %3023 = vrot.lane.b32.xlu0 %v2942_v15, %s5952_s18  ;;  %9862 = vst [vmem:[#allocation99_spill] sm:$0xff] %v8008_v23  ;;  %v2943_v25 = vmul.f32 %v6561_v7, %v8008_v23 }
 0x37f   : > { %v4289_v35 = vmul.f32 0.5, %v5578_v20  ;;  %v5580_v9 = vpop.eup %5579  ;;  %v8011_v55 = vpop.permute.xlu1 %3405  ;;  %v9863_v20 = vld [vmem:[#allocation101_spill] sm:$0xff] }
 0x380   : > { %v4064_v53 = vpop.permute.xlu0 %4063  ;;  %v2622_v19 = vadd.f32 %v9863_v20, %v2422_v60 }
 0x381   : > { %v4156_v15 = vadd.f32 %v4064_v53, %v3956_v12  ;;  %v4321_v28 = vadd.f32 0.5, %v4289_v35  ;;  %v1313_v35 = vmul.f32 0.5, %v5580_v9  ;;  %3883 = vrot.lane.b32.xlu1 %v3806_v13, %s5950_s30 }
 0x382   : > { %3683 = vrot.lane.b32.xlu0 %v3606_v61, %s5952_s18 }
 0x383   : > { %v4194_v12 = vadd.f32 %v7854_v2, %v4156_v15  ;;  %5198 = vmatprep.mubr.msk.f32.mxu0 %vm4355_vm0, %v4321_v28  ;;  %v4066_v45 = vpop.permute.xlu1 %4065  ;;  %v9864_v28 = vld [vmem:[#allocation102_spill] sm:$0xff]  ;;  %v8029_v15 = vadd.f32 0.5, %v1313_v35 }
 0x384   : > { %v3866_v1 = vpop.permute.xlu0 %3865  ;;  %v2822_v9 = vadd.f32 %v9864_v28, %v2622_v19  ;;  %v1080_v19 = vmul.f32 0.5, %v928_v16 }
 0x385   : > { %v4226_v53 = vmul.f32 0.5, %v4194_v12  ;;  %v3957_v61 = vadd.f32 %v3866_v1, %v3757_v63  ;;  %9865 = vst [vmem:[#allocation96_spill] sm:$0xff] %v8029_v15  ;;  %3025 = vrot.lane.b32.xlu1 %v2943_v25, %s5952_s18  ;;  %v9866_v63 = vld [vmem:[#allocation109_spill] sm:$0xff]  ;;  %v3607_v35 = vmul.f32 %v9769_v31, %v8029_v15  ;;  %v9868_v1 = vld [vmem:[#allocation114_spill] sm:$0xff] }
 0x386   : > { %2561 = vrot.lane.b32.xlu0 %v2477_v10, %s5950_s30  ;;  %v2423_v20 = vadd.f32 %v9867_v41, %v9866_v63 }
 0x387   : > { %5583 = vtanh.f32 %v4226_v53  ;;  %v4157_v60 = vadd.f32 %v4066_v45, %v3957_v61  ;;  %v8040_v4 = vpop.permute.xlu1 %3011  ;;  %v2890_v53 = vadd.f32 %v2858_v51, %v2822_v9  ;;  %v906_v45 = vadd.f32 %v7877_v0, %v7159_v43  ;;  %v9869_v51 = vld [vmem:[#allocation113_spill] sm:$0xff] }
 0x388   : > { %v8031_v13 = vpop.permute.xlu0 %3867  ;;  %5585 = vtanh.f32 %v1061_v8  ;;  %v2623_v10 = vadd.f32 %v9868_v1, %v2423_v20  ;;  %v3142_v8 = vmul.f32 %v9767_v3, %v7971_v44  ;;  %v2678_v9 = vmul.f32 %v9759_v39, %v7306_v21  ;;  %v5582_v41 = vpop.eup %5581 }
 0x389   : > { %v4195_v12 = vadd.f32 %v7854_v2, %v4157_v60  ;;  %3685 = vrot.lane.b32.xlu1 %v3607_v35, %s5952_s18  ;;  %v3090_v16 = vadd.f32 %v7817_v49, %v2890_v53  ;;  %v2859_v60 = vmul.f32 %v6992_v29, %v7478_v5  ;;  %v2677_v49 = vmul.f32 %v9759_v39, %v7318_v42 }
 0x38a   : > { %3881 = vrot.lane.b32.xlu0 %v3805_v26, %s5950_s30  ;;  %v2823_v0 = vadd.f32 %v9869_v51, %v2623_v10  ;;  %v1065_v26 = vmul.f32 0.5, %v906_v45  ;;  %v1332_v10 = vmul.f32 0.5, %v5582_v41 }
 0x38b   : > { %v4227_v61 = vmul.f32 0.5, %v4195_v12  ;;  %v8054_v28 = vpop.permute.xlu1 %3671  ;;  %v3290_v20 = vadd.f32 %v7813_v27, %v3090_v16  ;;  %v3341_v27 = vmul.f32 %v9764_v46, %v7913_v32  ;;  %v9888_v32 = vld [vmem:[#allocation139_spill] sm:$0xff] }
 0x38c   : > { %v8047_v25 = vpop.permute.xlu0 %3009  ;;  %v2891_v35 = vadd.f32 %v2859_v60, %v2823_v0 }
 0x38d   : > { %5587 = vtanh.f32 %v4227_v61  ;;  %2763 = vrot.lane.b32.xlu1 %v2678_v9, %s5951_s9  ;;  %v3490_v5 = vadd.f32 %v7902_v24, %v3290_v20  ;;  %v8076_v61 = vpop.f32.mrf.mxu1  ;;  %v4006_v9 = vmul.f32 %v9775_v34, %v7992_v47 }
 0x38e   : > { %5589 = vtanh.f32 %v1080_v19  ;;  %3223 = vrot.lane.b32.xlu0 %v3142_v8, %s5950_s30  ;;  %v3342_v19 = vmul.f32 %v9764_v46, %v7971_v44  ;;  %v3091_v45 = vadd.f32 %v7867_v58, %v2891_v35  ;;  %v3526_v8 = vmul.f32 %v7290_v18, %v7577_v50  ;;  %v9894_v44 = vld [vmem:[#allocation187_spill] sm:$0xff] }
 0x38f   : > { %v8066_v12 = vpop.permute.xlu1 %3209  ;;  %5591 = vtanh.f32 %v1065_v26  ;;  %v4005_v50 = vmul.f32 %v9775_v34, %v7932_v11  ;;  %v933_v58 = vpop.f32.mrf.mxu1 }
 0x390   : > { %v3670_v63 = vpop.permute.xlu0 %3669  ;;  %v3291_v0 = vadd.f32 %v7885_v59, %v3091_v45  ;;  %v3558_v60 = vadd.f32 %v3526_v8, %v3490_v5  ;;  %v3527_v45 = vmul.f32 %v7290_v18, %v7676_v17  ;;  %v2480_v17 = vmul.f32 %v6452_v57, %v7368_v30 }
 0x391   : > { %3423 = vrot.lane.b32.xlu1 %v3342_v19, %s5951_s9 }
 0x392   : > { %2761 = vrot.lane.b32.xlu0 %v2677_v49, %s5951_s9  ;;  %v8087_v49 = vadd.f32 0.5, %v1332_v10  ;;  %v3491_v20 = vadd.f32 %v7925_v48, %v3291_v0  ;;  %v3758_v19 = vadd.f32 %v7957_v6, %v3558_v60  ;;  %v934_v6 = vadd.f32 %v933_v58, %v9744_v62 }
 0x393   : > { %v8082_v24 = vpop.permute.xlu1 %3211 }
 0x394   : > { %v5584_v1 = vpop.eup %5583  ;;  %v8071_v53 = vpop.permute.xlu0 %2747  ;;  %9870 = vst [vmem:[#allocation101_spill] sm:$0xff] %v8087_v49 }
 0x395   : > { %v4290_v16 = vmul.f32 0.5, %v5584_v1  ;;  %v5586_v51 = vpop.eup %5585  ;;  %4083 = vrot.lane.b32.xlu1 %v4006_v9, %s5951_s9  ;;  %v3143_v1 = vmul.f32 %v9767_v3, %v8008_v23  ;;  %v3559_v9 = vadd.f32 %v3527_v45, %v3491_v20  ;;  %v1084_v20 = vmul.f32 0.5, %v934_v6 }
 0x396   : > { %3421 = vrot.lane.b32.xlu0 %v3341_v27, %s5951_s9  ;;  %v1317_v59 = vmul.f32 0.5, %v5586_v51  ;;  %v3958_v27 = vadd.f32 %v8031_v13, %v3758_v19 }
 0x397   : > { %v4322_v26 = vadd.f32 0.5, %v4290_v16  ;;  %v8098_v5 = vpop.permute.xlu1 %2749  ;;  %v2944_v16 = vmul.f32 %v6561_v7, %v8087_v49  ;;  %v3759_v58 = vadd.f32 %v3670_v63, %v3559_v9  ;;  %v912_v63 = vadd.f32 %v7907_v40, %v7159_v43  ;;  %v9873_v9 = vld [vmem:[#allocation124_spill] sm:$0xff] }
 0x398   : > { %v8089_v41 = vpop.permute.xlu0 %3407  ;;  %v8109_v60 = vadd.f32 0.5, %v1317_v59 }
 0x399   : > { %5199 = vmatmul.mubr.msk.f32.gmra.mxu0 %vm4355_vm0, %v4322_v26  ;;  %3225 = vrot.lane.b32.xlu1 %v3143_v1, %s5950_s30 }
 0x39a   : > { %v5588_v35 = vpop.eup %5587  ;;  %4081 = vrot.lane.b32.xlu0 %v4005_v50, %s5951_s9  ;;  %9871 = vst [vmem:[#allocation102_spill] sm:$0xff] %v8109_v60  ;;  %v8116_v50 = vpop.f32.mrf.mxu1  ;;  %v3608_v59 = vmul.f32 %v9769_v31, %v8109_v60 }
 0x39b   : > { %v5590_v10 = vpop.eup %5589  ;;  %v4291_v48 = vmul.f32 0.5, %v5588_v35  ;;  %v8112_v13 = vpop.permute.xlu1 %3409 }
 0x39c   : > { %v4068_v8 = vpop.permute.xlu0 %4067  ;;  %v1336_v26 = vmul.f32 0.5, %v5590_v10  ;;  %v5592_v1 = vpop.eup %5591  ;;  %v2424_v10 = vadd.f32 %v7154_v56, %v7178_v14  ;;  %v2479_v14 = vmul.f32 %v6452_v57, %v7375_v54 }
 0x39d   : > { %v4158_v51 = vadd.f32 %v4068_v8, %v3958_v27  ;;  %v4323_v0 = vadd.f32 0.5, %v4291_v48  ;;  %2567 = vrot.lane.b32.xlu1 %v2480_v17, %s5950_s30  ;;  %v3808_v8 = vmul.f32 %v9773_v33, %v8109_v60  ;;  %v1321_v17 = vmul.f32 0.5, %v5592_v1 }
 0x39e   : > { %3027 = vrot.lane.b32.xlu0 %v2944_v16, %s5952_s18  ;;  %v8127_v48 = vadd.f32 0.5, %v1336_v26  ;;  %v939_v16 = vpop.f32.mrf.mxu1 }
 0x39f   : > { %v4196_v19 = vadd.f32 %v7854_v2, %v4158_v51  ;;  %5201 = vmatprep.mubr.msk.f32.mxu0 %vm4355_vm0, %v4323_v0  ;;  %v4070_v6 = vpop.permute.xlu1 %4069  ;;  %v2624_v51 = vadd.f32 %v9873_v9, %v2424_v10  ;;  %v8148_v10 = vadd.f32 0.5, %v1321_v17  ;;  %v918_v9 = vadd.f32 %v7964_v38, %v7159_v43  ;;  %v9876_v17 = vld [vmem:[#allocation180_spill] sm:$0xff] }
 0x3a0   : > { %v3870_v35 = vpop.permute.xlu0 %3869  ;;  %9872 = vst [vmem:[#allocation109_spill] sm:$0xff] %v8127_v48 }
 0x3a1   : > { %v4228_v27 = vmul.f32 0.5, %v4196_v19  ;;  %v3959_v45 = vadd.f32 %v3870_v35, %v3759_v58  ;;  %3887 = vrot.lane.b32.xlu1 %v3808_v8, %s5950_s30  ;;  %v2824_v40 = vadd.f32 %v7774_v37, %v2624_v51  ;;  %v1069_v58 = vmul.f32 0.5, %v912_v63  ;;  %9874 = vst [vmem:[#allocation108_spill] sm:$0xff] %v8148_v10  ;;  %v9875_v8 = vld [vmem:[#allocation176_spill] sm:$0xff] }
 0x3a2   : > { %3687 = vrot.lane.b32.xlu0 %v3608_v59, %s5952_s18  ;;  %v940_v19 = vadd.f32 %v939_v16, %v9744_v62  ;;  %v2860_v59 = vmul.f32 %v6992_v29, %v7470_v52  ;;  %v3807_v37 = vmul.f32 %v9773_v33, %v8029_v15  ;;  %v3609_v52 = vmul.f32 %v9769_v31, %v8148_v10 }
 0x3a3   : > { %5593 = vtanh.f32 %v4228_v27  ;;  %v4159_v0 = vadd.f32 %v4070_v6, %v3959_v45  ;;  %v8142_v35 = vpop.permute.xlu1 %3015 }
 0x3a4   : > { %5595 = vtanh.f32 %v1084_v20  ;;  %v8133_v56 = vpop.permute.xlu0 %3871  ;;  %v2945_v20 = vmul.f32 %v6561_v7, %v8127_v48  ;;  %v2892_v45 = vadd.f32 %v2860_v59, %v2824_v40  ;;  %v1088_v63 = vmul.f32 0.5, %v940_v19 }
 0x3a5   : > { %v4197_v26 = vadd.f32 %v7854_v2, %v4159_v0  ;;  %v3144_v0 = vmul.f32 %v9767_v3, %v8087_v49  ;;  %v1073_v19 = vmul.f32 0.5, %v918_v9  ;;  %v2679_v59 = vmul.f32 %v9759_v39, %v7375_v54 }
 0x3a6   : > { %2565 = vrot.lane.b32.xlu0 %v2479_v14, %s5950_s30  ;;  %3029 = vrot.lane.b32.xlu1 %v2945_v20, %s5952_s18  ;;  %v3092_v16 = vadd.f32 %v9875_v8, %v2892_v45  ;;  %v9878_v45 = vld [vmem:[#allocation70_spill] sm:$0xff]  ;;  %v3344_v9 = vmul.f32 %v9764_v46, %v8087_v49  ;;  %v2862_v54 = vmul.f32 %v6992_v29, %v9888_v32 }
 0x3a7   : > { %v4229_v1 = vmul.f32 0.5, %v4197_v26  ;;  %v8156_v6 = vpop.permute.xlu1 %3675  ;;  %v2680_v26 = vmul.f32 %v9759_v39, %v7368_v30 }
 0x3a8   : > { %v8150_v27 = vpop.permute.xlu0 %3013  ;;  %v3292_v14 = vadd.f32 %v9876_v17, %v3092_v16  ;;  %v9882_v17 = vld [vmem:[#allocation126_spill] sm:$0xff] }
 0x3a9   : > { %5597 = vtanh.f32 %v4229_v1 }
 0x3aa   : > { %5599 = vtanh.f32 %v1069_v58  ;;  %3885 = vrot.lane.b32.xlu0 %v3807_v37, %s5950_s30  ;;  %3689 = vrot.lane.b32.xlu1 %v3609_v52, %s5952_s18  ;;  %v3492_v58 = vadd.f32 %v7984_v22, %v3292_v14  ;;  %v9877_v37 = vld [vmem:[#allocation57_spill] sm:$0xff]  ;;  %v9879_v52 = vld [vmem:[#allocation160_spill] sm:$0xff] }
 0x3ab   : > { %5601 = vtanh.f32 %v1088_v63  ;;  %v8170_v40 = vpop.permute.xlu1 %3213  ;;  %v2426_v63 = vadd.f32 %v9878_v45, %v9877_v37  ;;  %v3528_v8 = vmul.f32 %v7290_v18, %v9879_v52  ;;  %v9883_v37 = vld [vmem:[#allocation49_spill] sm:$0xff] }
 0x3ac   : > { %v8163_v51 = vpop.permute.xlu0 %3673  ;;  %5603 = vtanh.f32 %v1073_v19  ;;  %v4008_v19 = vmul.f32 %v9775_v34, %v8109_v60 }
 0x3ad   : > { %v2626_v45 = vadd.f32 %v9883_v37, %v2426_v63 }
 0x3ae   : > { %3227 = vrot.lane.b32.xlu0 %v3144_v0, %s5950_s30  ;;  %2767 = vrot.lane.b32.xlu1 %v2680_v26, %s5951_s9  ;;  %v9881_v0 = vld [vmem:[#allocation127_spill] sm:$0xff]  ;;  %v3560_v26 = vadd.f32 %v3528_v8, %v3492_v58  ;;  %v9884_v8 = vld [vmem:[#allocation130_spill] sm:$0xff] }
 0x3af   : > { %v8185_v22 = vpop.permute.xlu1 %2555  ;;  %v2425_v14 = vadd.f32 %v9882_v17, %v9881_v0 }
 0x3b0   : > { %v5594_v38 = vpop.eup %5593  ;;  %v8175_v20 = vpop.permute.xlu0 %2751  ;;  %9880 = vst [vmem:[#allocation114_spill] sm:$0xff] %v8185_v22  ;;  %v3760_v52 = vadd.f32 %v8054_v28, %v3560_v26 }
 0x3b1   : > { %v5596_v1 = vpop.eup %5595  ;;  %v4292_v16 = vmul.f32 0.5, %v5594_v38  ;;  %v3343_v38 = vmul.f32 %v9764_v46, %v8008_v23 }
 0x3b2   : > { %2765 = vrot.lane.b32.xlu0 %v2679_v59, %s5951_s9  ;;  %v1340_v21 = vmul.f32 0.5, %v5596_v1  ;;  %3427 = vrot.lane.b32.xlu1 %v3344_v9, %s5951_s9  ;;  %v8196_v59 = vpop.f32.mrf.mxu1  ;;  %v9885_v9 = vld [vmem:[#allocation178_spill] sm:$0xff]  ;;  %v3960_v23 = vadd.f32 %v8133_v56, %v3760_v52 }
 0x3b3   : > { %v4324_v42 = vadd.f32 0.5, %v4292_v16  ;;  %v8202_v58 = vpop.permute.xlu1 %3875  ;;  %v2625_v16 = vadd.f32 %v9884_v8, %v2425_v14  ;;  %v2826_v17 = vadd.f32 %v9885_v9, %v2626_v45 }
 0x3b4   : > { %v8191_v30 = vpop.permute.xlu0 %3411  ;;  %v8209_v37 = vadd.f32 0.5, %v1340_v21  ;;  %v945_v26 = vpop.f32.mrf.mxu1  ;;  %v3145_v21 = vmul.f32 %v9767_v3, %v8127_v48 }
 0x3b5   : > { %5202 = vmatmul.mubr.msk.f32.gmra.mxu0 %vm4355_vm0, %v4324_v42  ;;  %v4007_v42 = vmul.f32 %v9775_v34, %v8029_v15  ;;  %v946_v32 = vadd.f32 %v945_v26, %v9744_v62 }
 0x3b6   : > { %v5598_v0 = vpop.eup %5597  ;;  %3425 = vrot.lane.b32.xlu0 %v3343_v38, %s5951_s9  ;;  %9886 = vst [vmem:[#allocation113_spill] sm:$0xff] %v8209_v37  ;;  %4087 = vrot.lane.b32.xlu1 %v4008_v19, %s5951_s9  ;;  %v9887_v38 = vld [vmem:[#allocation175_spill] sm:$0xff]  ;;  %v9890_v19 = vld [vmem:[#allocation141_spill] sm:$0xff] }
 0x3b7   : > { %v5600_v1 = vpop.eup %5599  ;;  %v4293_v63 = vmul.f32 0.5, %v5598_v0  ;;  %v2825_v49 = vadd.f32 %v9887_v38, %v2625_v16  ;;  %v8218_v56 = vpop.permute.xlu1 %3017  ;;  %v2894_v0 = vadd.f32 %v2862_v54, %v2826_v17  ;;  %v2861_v9 = vmul.f32 %v6992_v29, %v9890_v19 }
 0x3b8   : > { %v4072_v28 = vpop.permute.xlu0 %4071  ;;  %v1325_v45 = vmul.f32 0.5, %v5600_v1  ;;  %9889 = vst [vmem:[#allocation124_spill] sm:$0xff] %v8218_v56  ;;  %v5602_v52 = vpop.eup %5601  ;;  %v2946_v1 = vmul.f32 %v6561_v7, %v8209_v37  ;;  %v9927_v56 = vld [vmem:[#allocation179_spill] sm:$0xff] }
 0x3b9   : > { %v4160_v14 = vadd.f32 %v4072_v28, %v3960_v23  ;;  %v4325_v8 = vadd.f32 0.5, %v4293_v63  ;;  %v3094_v63 = vadd.f32 %v7947_v36, %v2894_v0  ;;  %v2893_v28 = vadd.f32 %v2861_v9, %v2825_v49  ;;  %v9895_v0 = vld [vmem:[#allocation184_spill] sm:$0xff] }
 0x3ba   : > { %4085 = vrot.lane.b32.xlu0 %v4007_v42, %s5951_s9  ;;  %3229 = vrot.lane.b32.xlu1 %v3145_v21, %s5950_s30  ;;  %v8231_v54 = vadd.f32 0.5, %v1325_v45  ;;  %v1344_v17 = vmul.f32 0.5, %v5602_v52  ;;  %v9893_v21 = vld [vmem:[#allocation183_spill] sm:$0xff]  ;;  %v1092_v36 = vmul.f32 0.5, %v946_v32  ;;  %v5604_v52 = vpop.eup %5603 }
 0x3bb   : > { %v4198_v16 = vadd.f32 %v7854_v2, %v4160_v14  ;;  %5204 = vmatprep.mubr.msk.f32.mxu0 %vm4355_vm0, %v4325_v8  ;;  %v8234_v38 = vpop.permute.xlu1 %3677  ;;  %v9892_v14 = vld [vmem:[#allocation24_spill] sm:$0xff]  ;;  %v8238_v8 = vpop.f32.mrf.mxu1  ;;  %v3093_v19 = vadd.f32 %v9893_v21, %v2893_v28  ;;  %v3294_v22 = vadd.f32 %v9894_v44, %v3094_v63 }
 0x3bc   : > { %v3874_v23 = vpop.permute.xlu0 %3873  ;;  %9891 = vst [vmem:[#allocation176_spill] sm:$0xff] %v8231_v54  ;;  %v2482_v26 = vmul.f32 %v6452_v57, %v9892_v14  ;;  %v3610_v45 = vmul.f32 %v9769_v31, %v8231_v54  ;;  %v8251_v28 = vadd.f32 0.5, %v1344_v17  ;;  %v3810_v32 = vmul.f32 %v9773_v33, %v8231_v54 }
 0x3bd   : > { %v4230_v42 = vmul.f32 0.5, %v4198_v16  ;;  %v3293_v9 = vadd.f32 %v9895_v0, %v3093_v19  ;;  %v3494_v16 = vadd.f32 %v8089_v41, %v3294_v22  ;;  %v951_v63 = vpop.f32.mrf.mxu1  ;;  %v1329_v19 = vmul.f32 0.5, %v5604_v52  ;;  %v9901_v22 = vld [vmem:[#allocation22_spill] sm:$0xff]  ;;  %v9902_v0 = vld [vmem:[#allocation171_spill] sm:$0xff] }
 0x3be   : > { %3031 = vrot.lane.b32.xlu0 %v2946_v1, %s5952_s18  ;;  %2571 = vrot.lane.b32.xlu1 %v2482_v26, %s5950_s30  ;;  %v9896_v1 = vld [vmem:[#allocation189_spill] sm:$0xff]  ;;  %9897 = vst [vmem:[#allocation180_spill] sm:$0xff] %v8251_v28  ;;  %v2481_v17 = vmul.f32 %v6452_v57, %v9901_v22  ;;  %v952_v60 = vadd.f32 %v951_v63, %v9744_v62 }
 0x3bf   : > { %5605 = vtanh.f32 %v4230_v42  ;;  %v924_v15 = vadd.f32 %v9896_v1, %v7159_v43  ;;  %v8254_v44 = vpop.permute.xlu1 %2755  ;;  %v3493_v42 = vadd.f32 %v8011_v55, %v3293_v9  ;;  %v9899_v26 = vld [vmem:[#allocation169_spill] sm:$0xff]  ;;  %v3529_v1 = vmul.f32 %v7290_v18, %v9902_v0 }
 0x3c0   : > { %v8242_v49 = vpop.permute.xlu0 %3215  ;;  %9898 = vst [vmem:[#allocation57_spill] sm:$0xff] %v8254_v44  ;;  %v3530_v21 = vmul.f32 %v7290_v18, %v9899_v26  ;;  %5607 = vtanh.f32 %v1092_v36  ;;  %v2947_v36 = vmul.f32 %v6561_v7, %v8251_v28  ;;  %v930_v0 = vadd.f32 %v8076_v61, %v7159_v43 }
 0x3c1   : > { %v1077_v44 = vmul.f32 0.5, %v924_v15  ;;  %v3561_v9 = vadd.f32 %v3529_v1, %v3493_v42  ;;  %v3809_v15 = vmul.f32 %v9773_v33, %v8148_v10 }
 0x3c2   : > { %3691 = vrot.lane.b32.xlu0 %v3610_v45, %s5952_s18  ;;  %3891 = vrot.lane.b32.xlu1 %v3810_v32, %s5950_s30  ;;  %v3562_v45 = vadd.f32 %v3530_v21, %v3494_v16  ;;  %v8275_v32 = vadd.f32 0.5, %v1329_v19  ;;  %v1096_v21 = vmul.f32 0.5, %v952_v60 }
 0x3c3   : > { %v8270_v55 = vpop.permute.xlu1 %3415  ;;  %v3761_v16 = vadd.f32 %v8163_v51, %v3561_v9  ;;  %5609 = vtanh.f32 %v1077_v44  ;;  %v3146_v51 = vmul.f32 %v9767_v3, %v8209_v37 }
 0x3c4   : > { %v8261_v41 = vpop.permute.xlu0 %2753  ;;  %v3762_v52 = vadd.f32 %v8156_v6, %v3562_v45  ;;  %9903 = vst [vmem:[#allocation160_spill] sm:$0xff] %v8275_v32  ;;  %v3611_v6 = vmul.f32 %v9769_v31, %v8275_v32  ;;  %5611 = vtanh.f32 %v1096_v21 }
 0x3c5   : > { %9900 = vst [vmem:[#allocation70_spill] sm:$0xff] %v8261_v41  ;;  %v3961_v42 = vadd.f32 %v3874_v23, %v3761_v16  ;;  %v2682_v23 = vmul.f32 %v9759_v39, %v9892_v14 }
 0x3c6   : > { %2569 = vrot.lane.b32.xlu0 %v2481_v17, %s5950_s30  ;;  %3033 = vrot.lane.b32.xlu1 %v2947_v36, %s5952_s18  ;;  %v3962_v63 = vadd.f32 %v8202_v58, %v3762_v52 }
 0x3c7   : > { %v4076_v17 = vpop.permute.xlu1 %4075 }
 0x3c8   : > { %v8277_v26 = vpop.permute.xlu0 %3413  ;;  %v4162_v19 = vadd.f32 %v4076_v17, %v3962_v63  ;;  %v2681_v63 = vmul.f32 %v9759_v39, %v9901_v22  ;;  %v9905_v17 = vld [vmem:[#allocation83_spill] sm:$0xff] }
 0x3ca   : > { %3889 = vrot.lane.b32.xlu0 %v3809_v15, %s5950_s30  ;;  %3693 = vrot.lane.b32.xlu1 %v3611_v6, %s5952_s18  ;;  %v4200_v60 = vadd.f32 %v7854_v2, %v4162_v19  ;;  %v1081_v15 = vmul.f32 0.5, %v930_v0  ;;  %v9906_v6 = vld [vmem:[#allocation66_spill] sm:$0xff] }
 0x3cb   : > { %v8294_v36 = vpop.permute.xlu1 %3217 }
 0x3cc   : > { %v5606_v45 = vpop.eup %5605  ;;  %v4074_v1 = vpop.permute.xlu0 %4073  ;;  %9904 = vst [vmem:[#allocation127_spill] sm:$0xff] %v8294_v36  ;;  %v4232_v52 = vmul.f32 0.5, %v4200_v60  ;;  %v9924_v36 = vld [vmem:[#allocation35_spill] sm:$0xff] }
 0x3cd   : > { %v4161_v58 = vadd.f32 %v4074_v1, %v3961_v42  ;;  %v4294_v44 = vmul.f32 0.5, %v5606_v45  ;;  %v5608_v21 = vpop.eup %5607  ;;  %v2428_v42 = vadd.f32 %v9906_v6, %v9905_v17  ;;  %v3346_v45 = vmul.f32 %v9764_v46, %v8209_v37  ;;  %v8317_v60 = vpop.f32.mrf.mxu1  ;;  %v9912_v6 = vld [vmem:[#allocation186_spill] sm:$0xff] }
 0x3ce   : > { %3231 = vrot.lane.b32.xlu0 %v3146_v51, %s5950_s30  ;;  %2771 = vrot.lane.b32.xlu1 %v2682_v23, %s5951_s9  ;;  %5613 = vtanh.f32 %v4232_v52  ;;  %v1348_v0 = vmul.f32 0.5, %v5608_v21  ;;  %v3345_v51 = vmul.f32 %v9764_v46, %v8127_v48  ;;  %v9910_v52 = vld [vmem:[#allocation65_spill] sm:$0xff]  ;;  %v9911_v21 = vld [vmem:[#allocation75_spill] sm:$0xff] }
 0x3cf   : > { %v4199_v61 = vadd.f32 %v7854_v2, %v4161_v58  ;;  %v4326_v9 = vadd.f32 0.5, %v4294_v44  ;;  %v8308_v2 = vpop.permute.xlu1 %2559  ;;  %v9908_v58 = vld [vmem:[#allocation47_spill] sm:$0xff]  ;;  %v9909_v44 = vld [vmem:[#allocation62_spill] sm:$0xff] }
 0x3d0   : > { %v8299_v16 = vpop.permute.xlu0 %3019  ;;  %9907 = vst [vmem:[#allocation126_spill] sm:$0xff] %v8308_v2  ;;  %v2427_v23 = vadd.f32 %v9909_v44, %v9908_v58  ;;  %v9915_v58 = vld [vmem:[#allocation182_spill] sm:$0xff] }
 0x3d1   : > { %v4231_v19 = vmul.f32 0.5, %v4199_v61  ;;  %5205 = vmatmul.mubr.msk.f32.gmra.mxu0 %vm4355_vm0, %v4326_v9  ;;  %v2628_v61 = vadd.f32 %v9910_v52, %v2428_v42  ;;  %v4009_v42 = vmul.f32 %v9775_v34, %v8148_v10  ;;  %v9916_v52 = vld [vmem:[#allocation155_spill] sm:$0xff] }
 0x3d2   : > { %2769 = vrot.lane.b32.xlu0 %v2681_v63, %s5951_s9  ;;  %3431 = vrot.lane.b32.xlu1 %v3346_v45, %s5951_s9  ;;  %v5610_v63 = vpop.eup %5609  ;;  %v2627_v17 = vadd.f32 %v9911_v21, %v2427_v23  ;;  %v8329_v45 = vadd.f32 0.5, %v1348_v0  ;;  %v2864_v37 = vmul.f32 %v6992_v29, %v9916_v52  ;;  %v3147_v0 = vmul.f32 %v9767_v3, %v8251_v28 }
 0x3d3   : > { %5615 = vtanh.f32 %v4231_v19  ;;  %v8323_v9 = vpop.permute.xlu1 %3879  ;;  %v2828_v19 = vadd.f32 %v9912_v6, %v2628_v61  ;;  %v1333_v2 = vmul.f32 0.5, %v5610_v63  ;;  %v5612_v61 = vpop.eup %5611 }
 0x3d4   : > { %5617 = vtanh.f32 %v1081_v15  ;;  %v8312_v1 = vpop.permute.xlu0 %3679  ;;  %v4010_v15 = vmul.f32 %v9775_v34, %v8231_v54  ;;  %9913 = vst [vmem:[#allocation49_spill] sm:$0xff] %v8329_v45  ;;  %v2827_v44 = vadd.f32 %v9915_v58, %v2627_v17  ;;  %v2948_v63 = vmul.f32 %v6561_v7, %v8329_v45 }
 0x3d5   : > { %v2896_v21 = vadd.f32 %v2864_v37, %v2828_v19  ;;  %v8353_v52 = vadd.f32 0.5, %v1333_v2  ;;  %v1352_v54 = vmul.f32 0.5, %v5612_v61  ;;  %v9920_v19 = vld [vmem:[#allocation31_spill] sm:$0xff]  ;;  %v936_v61 = vadd.f32 %v8116_v50, %v7159_v43 }
 0x3d6   : > { %3429 = vrot.lane.b32.xlu0 %v3345_v51, %s5951_s9  ;;  %4091 = vrot.lane.b32.xlu1 %v4010_v15, %s5951_s9  ;;  %v957_v51 = vpop.f32.mrf.mxu1  ;;  %v9918_v15 = vld [vmem:[#allocation157_spill] sm:$0xff] }
 0x3d7   : > { %v8340_v23 = vpop.permute.xlu1 %3021  ;;  %v2863_v6 = vmul.f32 %v6992_v29, %v9918_v15  ;;  %v3096_v17 = vadd.f32 %v8040_v4, %v2896_v21  ;;  %9919 = vst [vmem:[#allocation175_spill] sm:$0xff] %v8353_v52 }
 0x3d8   : > { %v8331_v48 = vpop.permute.xlu0 %2557  ;;  %9917 = vst [vmem:[#allocation178_spill] sm:$0xff] %v8340_v23  ;;  %v8360_v15 = vpop.f32.mrf.mxu1  ;;  %v9922_v23 = vld [vmem:[#allocation82_spill] sm:$0xff] }
 0x3d9   : > { %9914 = vst [vmem:[#allocation130_spill] sm:$0xff] %v8331_v48  ;;  %v958_v48 = vadd.f32 %v957_v51, %v9744_v62  ;;  %v2484_v51 = vmul.f32 %v6452_v57, %v9920_v19  ;;  %v3296_v4 = vadd.f32 %v8082_v24, %v3096_v17 }
 0x3da   : > { %4089 = vrot.lane.b32.xlu0 %v4009_v42, %s5951_s9  ;;  %3233 = vrot.lane.b32.xlu1 %v3147_v0, %s5950_s30  ;;  %v2895_v42 = vadd.f32 %v2863_v6, %v2827_v44  ;;  %v9921_v0 = vld [vmem:[#allocation95_spill] sm:$0xff] }
 0x3db   : > { %v5614_v58 = vpop.eup %5613  ;;  %v8356_v37 = vpop.permute.xlu1 %3681  ;;  %v1530_v41 = vmul.f32 %v9922_v23, %v9921_v0  ;;  %v1100_v21 = vmul.f32 0.5, %v958_v48  ;;  %v3496_v24 = vadd.f32 %v8191_v30, %v3296_v4  ;;  %v3812_v48 = vmul.f32 %v9773_v33, %v8353_v52 }
 0x3dc   : > { %v8347_v10 = vpop.permute.xlu0 %3877  ;;  %v3095_v14 = vadd.f32 %v8047_v25, %v2895_v42  ;;  %v4296_v44 = vmul.f32 0.5, %v5614_v58  ;;  %v8376_v42 = vadd.f32 0.5, %v1352_v54  ;;  %v1085_v30 = vmul.f32 0.5, %v936_v61 }
 0x3dd   : > { %v1762_v0 = vadd.f32 %v9924_v36, %v1530_v41  ;;  %v3532_v41 = vmul.f32 %v7290_v18, %v9927_v56  ;;  %5619 = vtanh.f32 %v1100_v21  ;;  %v9929_v36 = vld [vmem:[#allocation27_spill] sm:$0xff] }
 0x3de   : > { %3035 = vrot.lane.b32.xlu0 %v2948_v63, %s5952_s18  ;;  %2575 = vrot.lane.b32.xlu1 %v2484_v51, %s5950_s30  ;;  %v3612_v63 = vmul.f32 %v9769_v31, %v8353_v52  ;;  %v3295_v25 = vadd.f32 %v8066_v12, %v3095_v14  ;;  %9925 = vst [vmem:[#allocation141_spill] sm:$0xff] %v8376_v42  ;;  %v4328_v58 = vadd.f32 0.5, %v4296_v44  ;;  %v963_v51 = vpop.f32.mrf.mxu1  ;;  %v9931_v44 = vld [vmem:[#allocation92_spill] sm:$0xff]  ;;  %5621 = vtanh.f32 %v1085_v30 }
 0x3df   : > { %v8379_v50 = vpop.permute.xlu1 %2759  ;;  %v2483_v4 = vmul.f32 %v6452_v57, %v9929_v36  ;;  %v964_v56 = vadd.f32 %v963_v51, %v9744_v62  ;;  %v2949_v61 = vmul.f32 %v6561_v7, %v8376_v42  ;;  %v9935_v30 = vld [vmem:[#allocation88_spill] sm:$0xff] }
 0x3e0   : > { %v5616_v2 = vpop.eup %5615  ;;  %v8368_v6 = vpop.permute.xlu0 %3219  ;;  %9926 = vst [vmem:[#allocation183_spill] sm:$0xff] %v8379_v50  ;;  %v3531_v50 = vmul.f32 %v7290_v18, %v9931_v44 }
 0x3e1   : > { %9923 = vst [vmem:[#allocation139_spill] sm:$0xff] %v8368_v6  ;;  %v5618_v22 = vpop.eup %5617  ;;  %v4295_v17 = vmul.f32 0.5, %v5616_v2  ;;  %v3495_v6 = vadd.f32 %v8112_v13, %v3295_v25  ;;  %v9930_v2 = vld [vmem:[#allocation84_spill] sm:$0xff]  ;;  %v3564_v13 = vadd.f32 %v3532_v41, %v3496_v24 }
 0x3e2   : > { %3695 = vrot.lane.b32.xlu0 %v3612_v63, %s5952_s18  ;;  %v1337_v14 = vmul.f32 0.5, %v5618_v22  ;;  %3895 = vrot.lane.b32.xlu1 %v3812_v48, %s5950_s30  ;;  %v1962_v63 = vadd.f32 %v9930_v2, %v1762_v0  ;;  %v9933_v48 = vld [vmem:[#allocation37_spill] sm:$0xff] }
 0x3e3   : > { %v4327_v12 = vadd.f32 0.5, %v4295_v17  ;;  %v8398_v22 = vpop.permute.xlu1 %3419  ;;  %v3563_v21 = vadd.f32 %v3531_v50, %v3495_v6  ;;  %v3764_v0 = vadd.f32 %v8312_v1, %v3564_v13  ;;  %v3811_v17 = vmul.f32 %v9773_v33, %v8275_v32 }
 0x3e4   : > { %v8386_v54 = vpop.permute.xlu0 %2757  ;;  %v8403_v25 = vadd.f32 0.5, %v1337_v14  ;;  %v942_v6 = vadd.f32 %v8196_v59, %v7159_v43  ;;  %v1104_v1 = vmul.f32 0.5, %v964_v56  ;;  %v9934_v14 = vld [vmem:[#allocation97_spill] sm:$0xff] }
 0x3e5   : > { %9928 = vst [vmem:[#allocation187_spill] sm:$0xff] %v8386_v54  ;;  %5207 = vmatprep.mubr.msk.f32.mxu0 %vm4355_vm0, %v4327_v12  ;;  %v3763_v51 = vadd.f32 %v8234_v38, %v3563_v21  ;;  %v3964_v41 = vadd.f32 %v8323_v9, %v3764_v0  ;;  %v3148_v38 = vmul.f32 %v9767_v3, %v8329_v45  ;;  %v8427_v9 = vld [vmem:[%s9466_s4] ss:$0 sm:$0xff] }
 0x3e6   : > { %2573 = vrot.lane.b32.xlu0 %v2483_v4, %s5950_s30  ;;  %5208 = vmatmul.mubr.msk.f32.gmra.mxu0 %vm4355_vm0, %v4328_v58  ;;  %9932 = vst [vmem:[#allocation184_spill] sm:$0xff] %v8403_v25  ;;  %v2162_v58 = vadd.f32 %v9933_v48, %v1962_v63  ;;  %v3613_v12 = vmul.f32 %v9769_v31, %v8403_v25  ;;  %5623 = vtanh.f32 %v1104_v1 }
 0x3e7   : > { %3037 = vrot.lane.b32.xlu1 %v2949_v61, %s5952_s18  ;;  %v4080_v50 = vpop.permute.xlu1 %4079  ;;  %v2198_v4 = vmul.f32 %v9935_v30, %v9934_v14  ;;  %v3963_v2 = vadd.f32 %v8347_v10, %v3763_v51  ;;  %v1089_v61 = vmul.f32 0.5, %v942_v6  ;;  %v2684_v21 = vmul.f32 %v9759_v39, %v9920_v19  ;;  %v9951_v19 = vld [vmem:[#allocation138_spill] sm:$0xff] }
 0x3e8   : > { %v8405_v24 = vpop.permute.xlu0 %3417  ;;  %v4164_v63 = vadd.f32 %v4080_v50, %v3964_v41  ;;  %v9936_v41 = vld [vmem:[#allocation87_spill] sm:$0xff] }
 0x3e9   : > { %v2230_v59 = vadd.f32 %v2198_v4, %v2162_v58  ;;  %v2683_v58 = vmul.f32 %v9759_v39, %v9929_v36 }
 0x3ea   : > { %3893 = vrot.lane.b32.xlu0 %v3811_v17, %s5950_s30  ;;  %v4202_v13 = vadd.f32 %v8427_v9, %v4164_v63  ;;  %v5620_v51 = vpop.eup %5619 }
 0x3eb   : > { %3697 = vrot.lane.b32.xlu1 %v3613_v12, %s5952_s18  ;;  %v8431_v10 = vpop.permute.xlu1 %3221  ;;  %v2430_v6 = vadd.f32 %v9936_v41, %v2230_v59  ;;  %v3348_v12 = vmul.f32 %v9764_v46, %v8329_v45  ;;  %v1356_v14 = vmul.f32 0.5, %v5620_v51  ;;  %v5622_v63 = vpop.eup %5621  ;;  %v9939_v59 = vld [vmem:[#allocation73_spill] sm:$0xff] }
 0x3ec   : > { %v4078_v44 = vpop.permute.xlu0 %4077  ;;  %v4234_v0 = vmul.f32 0.5, %v4202_v13  ;;  %v1341_v41 = vmul.f32 0.5, %v5622_v63 }
 0x3ed   : > { %v4163_v56 = vadd.f32 %v4078_v44, %v3963_v2  ;;  %v3347_v2 = vmul.f32 %v9764_v46, %v8251_v28  ;;  %v8452_v44 = vpop.f32.mrf.mxu1  ;;  %v9954_v28 = vld [vmem:[#allocation103_spill] sm:$0xff] }
 0x3ee   : > { %3235 = vrot.lane.b32.xlu0 %v3148_v38, %s5950_s30  ;;  %5625 = vtanh.f32 %v4234_v0  ;;  %v9938_v38 = vld [vmem:[#allocation21_spill] sm:$0xff]  ;;  %v4012_v0 = vmul.f32 %v9775_v34, %v8353_v52 }
 0x3ef   : > { %v4201_v17 = vadd.f32 %v8427_v9, %v4163_v56  ;;  %2775 = vrot.lane.b32.xlu1 %v2684_v21, %s5951_s9  ;;  %5627 = vtanh.f32 %v1089_v61  ;;  %v8443_v50 = vpop.permute.xlu1 %2563  ;;  %v2429_v13 = vadd.f32 %v9939_v59, %v9938_v38  ;;  %v9940_v56 = vld [vmem:[#allocation89_spill] sm:$0xff]  ;;  %v9944_v38 = vld [vmem:[#allocation188_spill] sm:$0xff] }
 0x3f0   : > { %v8436_v48 = vpop.permute.xlu0 %3023  ;;  %9937 = vst [vmem:[#allocation189_spill] sm:$0xff] %v8443_v50  ;;  %v2630_v61 = vadd.f32 %v9940_v56, %v2430_v6  ;;  %v4011_v6 = vmul.f32 %v9775_v34, %v8275_v32  ;;  %v9945_v56 = vld [vmem:[#allocation78_spill] sm:$0xff] }
 0x3f1   : > { %v4233_v1 = vmul.f32 0.5, %v4201_v17  ;;  %v9941_v17 = vld [vmem:[#allocation32_spill] sm:$0xff]  ;;  %v2866_v50 = vmul.f32 %v6992_v29, %v9945_v56 }
 0x3f2   : > { %2773 = vrot.lane.b32.xlu0 %v2683_v58, %s5951_s9  ;;  %v2629_v58 = vadd.f32 %v9941_v17, %v2429_v13  ;;  %v2830_v51 = vadd.f32 %v8071_v53, %v2630_v61  ;;  %v3149_v53 = vmul.f32 %v9767_v3, %v8376_v42  ;;  %v9947_v61 = vld [vmem:[#allocation167_spill] sm:$0xff]  ;;  %v8481_v17 = vadd.f32 0.5, %v1341_v41 }
 0x3f3   : > { %5629 = vtanh.f32 %v4233_v1  ;;  %3435 = vrot.lane.b32.xlu1 %v3348_v12, %s5951_s9  ;;  %v8458_v21 = vpop.permute.xlu1 %3883  ;;  %v8464_v1 = vadd.f32 0.5, %v1356_v14  ;;  %v5624_v14 = vpop.eup %5623 }
 0x3f4   : > { %v8447_v4 = vpop.permute.xlu0 %3683  ;;  %v2829_v59 = vadd.f32 %v9944_v38, %v2629_v58  ;;  %v2898_v63 = vadd.f32 %v2866_v50, %v2830_v51  ;;  %9948 = vst [vmem:[#allocation66_spill] sm:$0xff] %v8481_v17  ;;  %v1360_v52 = vmul.f32 0.5, %v5624_v14  ;;  %v9949_v51 = vld [vmem:[#allocation43_spill] sm:$0xff]  ;;  %v948_v14 = vadd.f32 %v8238_v8, %v7159_v43 }
 0x3f5   : > { %9942 = vst [vmem:[#allocation169_spill] sm:$0xff] %v8464_v1  ;;  %v2486_v41 = vmul.f32 %v6452_v57, %v9949_v51  ;;  %v3614_v54 = vmul.f32 %v9769_v31, %v8481_v17 }
 0x3f6   : > { %3433 = vrot.lane.b32.xlu0 %v3347_v2, %s5951_s9  ;;  %v969_v2 = vpop.f32.mrf.mxu1  ;;  %v3098_v38 = vadd.f32 %v8142_v35, %v2898_v63 }
 0x3f7   : > { %4095 = vrot.lane.b32.xlu1 %v4012_v0, %s5951_s9  ;;  %v8475_v13 = vpop.permute.xlu1 %3025  ;;  %v2865_v0 = vmul.f32 %v6992_v29, %v9947_v61 }
 0x3f8   : > { %v8466_v12 = vpop.permute.xlu0 %2561  ;;  %9946 = vst [vmem:[#allocation83_spill] sm:$0xff] %v8475_v13  ;;  %v8495_v61 = vpop.f32.mrf.mxu1  ;;  %v9950_v13 = vld [vmem:[#allocation106_spill] sm:$0xff]  ;;  %v3298_v35 = vadd.f32 %v8242_v49, %v3098_v38  ;;  %v8511_v38 = vadd.f32 0.5, %v1360_v52  ;;  %v1093_v52 = vmul.f32 0.5, %v948_v14 }
 0x3f9   : > { %9943 = vst [vmem:[#allocation171_spill] sm:$0xff] %v8466_v12  ;;  %v970_v12 = vadd.f32 %v969_v2, %v9744_v62  ;;  %v2897_v56 = vadd.f32 %v2865_v0, %v2829_v59 }
 0x3fa   : > { %4093 = vrot.lane.b32.xlu0 %v4011_v6, %s5951_s9  ;;  %v2950_v6 = vmul.f32 %v6561_v7, %v8464_v1  ;;  %9952 = vst [vmem:[#allocation47_spill] sm:$0xff] %v8511_v38 }
 0x3fb   : > { %3237 = vrot.lane.b32.xlu1 %v3149_v53, %s5950_s30  ;;  %v5626_v32 = vpop.eup %5625  ;;  %v8491_v50 = vpop.permute.xlu1 %3685  ;;  %v1532_v53 = vmul.f32 %v9922_v23, %v9950_v13  ;;  %v3097_v45 = vadd.f32 %v8150_v27, %v2897_v56  ;;  %v1108_v0 = vmul.f32 0.5, %v970_v12  ;;  %v3498_v27 = vadd.f32 %v8270_v55, %v3298_v35  ;;  %v9957_v35 = vld [vmem:[#allocation34_spill] sm:$0xff] }
 0x3fc   : > { %v8484_v58 = vpop.permute.xlu0 %3881  ;;  %v5628_v2 = vpop.eup %5627  ;;  %v4298_v59 = vmul.f32 0.5, %v5626_v32  ;;  %v3814_v12 = vmul.f32 %v9773_v33, %v8481_v17  ;;  %v3534_v55 = vmul.f32 %v7290_v18, %v7992_v47 }
 0x3fd   : > { %v1764_v36 = vadd.f32 %v9951_v19, %v1532_v53  ;;  %v3297_v13 = vadd.f32 %v8170_v40, %v3097_v45  ;;  %v1345_v32 = vmul.f32 0.5, %v5628_v2  ;;  %v1531_v19 = vmul.f32 %v9922_v23, %v9954_v28 }
 0x3fe   : > { %3039 = vrot.lane.b32.xlu0 %v2950_v6, %s5952_s18  ;;  %v4330_v56 = vadd.f32 0.5, %v4298_v59  ;;  %5631 = vtanh.f32 %v1108_v0  ;;  %v3533_v28 = vmul.f32 %v7290_v18, %v7932_v11 }
 0x3ff   : > { %2579 = vrot.lane.b32.xlu1 %v2486_v41, %s5950_s30  ;;  %v8514_v8 = vpop.permute.xlu1 %2763  ;;  %v975_v41 = vpop.f32.mrf.mxu1  ;;  %v3497_v40 = vadd.f32 %v8277_v26, %v3297_v13  ;;  %v1763_v59 = vadd.f32 %v9957_v35, %v1531_v19  ;;  %v3566_v26 = vadd.f32 %v3534_v55, %v3498_v27  ;;  %v8533_v47 = vadd.f32 0.5, %v1345_v32  ;;  %v9963_v35 = vld [vmem:[#allocation110_spill] sm:$0xff] }
 0x400   : > { %v5630_v63 = vpop.eup %5629  ;;  %v8503_v6 = vpop.permute.xlu0 %3223  ;;  %9953 = vst [vmem:[#allocation62_spill] sm:$0xff] %v8514_v8  ;;  %v976_v14 = vadd.f32 %v975_v41, %v9744_v62  ;;  %v2951_v13 = vmul.f32 %v6561_v7, %v8511_v38  ;;  %5633 = vtanh.f32 %v1093_v52  ;;  %v954_v27 = vadd.f32 %v8317_v60, %v7159_v43  ;;  %v9961_v41 = vld [vmem:[#allocation142_spill] sm:$0xff]  ;;  %v9962_v52 = vld [vmem:[#allocation36_spill] sm:$0xff] }
 0x401   : > { %v4297_v49 = vmul.f32 0.5, %v5630_v63  ;;  %v9958_v63 = vld [vmem:[#allocation133_spill] sm:$0xff]  ;;  %9959 = vst [vmem:[#allocation75_spill] sm:$0xff] %v8533_v47  ;;  %v3766_v11 = vadd.f32 %v8447_v4, %v3566_v26  ;;  %v3615_v60 = vmul.f32 %v9769_v31, %v8533_v47 }
 0x402   : > { %3699 = vrot.lane.b32.xlu0 %v3614_v54, %s5952_s18  ;;  %v9956_v54 = vld [vmem:[#allocation38_spill] sm:$0xff]  ;;  %v1964_v8 = vadd.f32 %v9958_v63, %v1764_v36  ;;  %v9960_v36 = vld [vmem:[#allocation132_spill] sm:$0xff] }
 0x403   : > { %v4329_v45 = vadd.f32 0.5, %v4297_v49  ;;  %3899 = vrot.lane.b32.xlu1 %v3814_v12, %s5950_s30  ;;  %v2485_v53 = vmul.f32 %v6452_v57, %v9956_v54  ;;  %v8538_v0 = vpop.permute.xlu1 %3423  ;;  %v1963_v49 = vadd.f32 %v9960_v36, %v1763_v59  ;;  %v3565_v12 = vadd.f32 %v3533_v28, %v3497_v40 }
 0x404   : > { %v8523_v2 = vpop.permute.xlu0 %2761  ;;  %v2164_v19 = vadd.f32 %v9961_v41, %v1964_v8  ;;  %v1112_v40 = vmul.f32 0.5, %v976_v14  ;;  %v2200_v59 = vmul.f32 %v9935_v30, %v9963_v35  ;;  %v1097_v8 = vmul.f32 0.5, %v954_v27 }
 0x405   : > { %9955 = vst [vmem:[#allocation65_spill] sm:$0xff] %v8523_v2  ;;  %5210 = vmatprep.mubr.msk.f32.mxu0 %vm4355_vm0, %v4329_v45  ;;  %v3765_v55 = vadd.f32 %v8356_v37, %v3565_v12  ;;  %v3966_v45 = vadd.f32 %v8458_v21, %v3766_v11  ;;  %v3150_v37 = vmul.f32 %v9767_v3, %v8464_v1  ;;  %v9964_v21 = vld [vmem:[#allocation107_spill] sm:$0xff] }
 0x406   : > { %2577 = vrot.lane.b32.xlu0 %v2485_v53, %s5950_s30  ;;  %5211 = vmatmul.mubr.msk.f32.gmra.mxu0 %vm4355_vm0, %v4330_v56  ;;  %v3813_v56 = vmul.f32 %v9773_v33, %v8403_v25  ;;  %v2163_v53 = vadd.f32 %v9962_v52, %v1963_v49  ;;  %v2199_v14 = vmul.f32 %v9935_v30, %v9964_v21  ;;  %5635 = vtanh.f32 %v1112_v40  ;;  %v9967_v40 = vld [vmem:[#allocation135_spill] sm:$0xff] }
 0x407   : > { %3041 = vrot.lane.b32.xlu1 %v2951_v13, %s5952_s18  ;;  %v4084_v4 = vpop.permute.xlu1 %4083  ;;  %v3965_v63 = vadd.f32 %v8484_v58, %v3765_v55  ;;  %v2232_v13 = vadd.f32 %v2200_v59, %v2164_v19  ;;  %v2686_v58 = vmul.f32 %v9759_v39, %v9949_v51  ;;  %5637 = vtanh.f32 %v1097_v8  ;;  %v9968_v59 = vld [vmem:[#allocation134_spill] sm:$0xff] }
 0x408   : > { %v8546_v32 = vpop.permute.xlu0 %3421  ;;  %v4166_v28 = vadd.f32 %v4084_v4, %v3966_v45  ;;  %v2231_v11 = vadd.f32 %v2199_v14, %v2163_v53  ;;  %v2685_v19 = vmul.f32 %v9759_v39, %v9956_v54  ;;  %v8578_v45 = vpop.f32.mrf.mxu1  ;;  %v3350_v53 = vmul.f32 %v9764_v46, %v8464_v1  ;;  %v9969_v14 = vld [vmem:[#allocation137_spill] sm:$0xff] }
 0x409   : > { %v2432_v4 = vadd.f32 %v9967_v40, %v2232_v13  ;;  %v960_v35 = vadd.f32 %v8360_v15, %v7159_v43  ;;  %v4014_v15 = vmul.f32 %v9775_v34, %v8481_v17  ;;  %v9979_v17 = vld [vmem:[#allocation139_spill] sm:$0xff] }
 0x40a   : > { %3897 = vrot.lane.b32.xlu0 %v3813_v56, %s5950_s30  ;;  %v4204_v36 = vadd.f32 %v8427_v9, %v4166_v28  ;;  %v981_v21 = vpop.f32.mrf.mxu1 }
 0x40b   : > { %3701 = vrot.lane.b32.xlu1 %v3615_v60, %s5952_s18  ;;  %v8568_v12 = vpop.permute.xlu1 %3225  ;;  %v5632_v55 = vpop.eup %5631  ;;  %v2632_v13 = vadd.f32 %v9969_v14, %v2432_v4  ;;  %v4013_v4 = vmul.f32 %v9775_v34, %v8403_v25 }
 0x40c   : > { %v4082_v26 = vpop.permute.xlu0 %4081  ;;  %9965 = vst [vmem:[#allocation186_spill] sm:$0xff] %v8568_v12  ;;  %v4236_v27 = vmul.f32 0.5, %v4204_v36  ;;  %v1364_v28 = vmul.f32 0.5, %v5632_v55  ;;  %v982_v55 = vadd.f32 %v981_v21, %v9744_v62  ;;  %v983_v54 = vpop.f32.mrf.mxu1  ;;  %v9989_v12 = vld [vmem:[#allocation50_spill] sm:$0xff] }
 0x40d   : > { %v4165_v49 = vadd.f32 %v4082_v26, %v3965_v63  ;;  %v2431_v63 = vadd.f32 %v9968_v59, %v2231_v11  ;;  %v3349_v26 = vmul.f32 %v9764_v46, %v8376_v42  ;;  %v3151_v59 = vmul.f32 %v9767_v3, %v8511_v38 }
 0x40e   : > { %3239 = vrot.lane.b32.xlu0 %v3150_v37, %s5950_s30  ;;  %5639 = vtanh.f32 %v4236_v27  ;;  %v5634_v37 = vpop.eup %5633  ;;  %v2832_v27 = vadd.f32 %v8175_v20, %v2632_v13 }
 0x40f   : > { %v4203_v56 = vadd.f32 %v8427_v9, %v4165_v49  ;;  %2779 = vrot.lane.b32.xlu1 %v2686_v58, %s5951_s9  ;;  %v8582_v52 = vpop.permute.xlu1 %2567  ;;  %v1101_v49 = vmul.f32 0.5, %v960_v35  ;;  %v9970_v58 = vld [vmem:[#allocation136_spill] sm:$0xff] }
 0x410   : > { %v8573_v41 = vpop.permute.xlu0 %3027  ;;  %v2631_v11 = vadd.f32 %v9970_v58, %v2431_v63 }
 0x411   : > { %9966 = vst [vmem:[#allocation182_spill] sm:$0xff] %v8573_v41  ;;  %v4235_v60 = vmul.f32 0.5, %v4203_v56  ;;  %v1349_v56 = vmul.f32 0.5, %v5634_v37 }
 0x412   : > { %2777 = vrot.lane.b32.xlu0 %v2685_v19, %s5951_s9  ;;  %v8602_v19 = vadd.f32 0.5, %v1364_v28  ;;  %v966_v28 = vadd.f32 %v8452_v44, %v7159_v43 }
 0x413   : > { %5641 = vtanh.f32 %v4235_v60  ;;  %3439 = vrot.lane.b32.xlu1 %v3350_v53, %s5951_s9  ;;  %v8596_v36 = vpop.permute.xlu1 %3887  ;;  %v2831_v60 = vadd.f32 %v8098_v5, %v2631_v11  ;;  %v9972_v53 = vld [vmem:[#allocation177_spill] sm:$0xff]  ;;  %v5636_v63 = vpop.eup %5635  ;;  %v8622_v14 = vadd.f32 0.5, %v1349_v56  ;;  %v1116_v5 = vmul.f32 0.5, %v982_v55  ;;  %v9977_v56 = vld [vmem:[#allocation58_spill] sm:$0xff] }
 0x414   : > { %v8589_v8 = vpop.permute.xlu0 %3687  ;;  %9971 = vst [vmem:[#allocation155_spill] sm:$0xff] %v8602_v19  ;;  %v2868_v35 = vmul.f32 %v6992_v29, %v9972_v53  ;;  %5643 = vtanh.f32 %v1101_v49  ;;  %v5638_v58 = vpop.eup %5637  ;;  %v9976_v53 = vld [vmem:[#allocation20_spill] sm:$0xff]  ;;  %v2488_v55 = vmul.f32 %v6452_v57, %v9977_v56 }
 0x415   : > { %9975 = vst [vmem:[#allocation95_spill] sm:$0xff] %v8622_v14  ;;  %5645 = vtanh.f32 %v1116_v5 }
 0x416   : > { %3437 = vrot.lane.b32.xlu0 %v3349_v26, %s5951_s9  ;;  %v9974_v26 = vld [vmem:[#allocation174_spill] sm:$0xff]  ;;  %v2900_v21 = vadd.f32 %v2868_v35, %v2832_v27  ;;  %v1368_v27 = vmul.f32 0.5, %v5636_v63  ;;  %v1105_v35 = vmul.f32 0.5, %v966_v28 }
 0x417   : > { %4099 = vrot.lane.b32.xlu1 %v4014_v15, %s5951_s9  ;;  %v2867_v37 = vmul.f32 %v6992_v29, %v9974_v26  ;;  %v2952_v15 = vmul.f32 %v6561_v7, %v8602_v19  ;;  %v1541_v26 = vmul.f32 %v9922_v23, %v9976_v53  ;;  %v9981_v53 = vld [vmem:[#allocation118_spill] sm:$0xff] }
 0x418   : > { %v8605_v40 = vpop.permute.xlu0 %2565  ;;  %v8614_v20 = vpop.permute.xlu1 %3029  ;;  %v1534_v28 = vmul.f32 %v9922_v23, %v9981_v53  ;;  %v9985_v53 = vld [vmem:[#allocation150_spill] sm:$0xff]  ;;  %5647 = vtanh.f32 %v1105_v35  ;;  %v984_v35 = vadd.f32 %v983_v54, %v7159_v43 }
 0x419   : > { %9973 = vst [vmem:[#allocation157_spill] sm:$0xff] %v8614_v20  ;;  %v2899_v11 = vadd.f32 %v2867_v37, %v2831_v60 }
 0x41a   : > { %4097 = vrot.lane.b32.xlu0 %v4013_v4, %s5951_s9  ;;  %v3100_v4 = vadd.f32 %v8299_v16, %v2900_v21  ;;  %v1353_v16 = vmul.f32 0.5, %v5638_v58  ;;  %v972_v21 = vadd.f32 %v8495_v61, %v7159_v43  ;;  %v8650_v58 = vadd.f32 0.5, %v1368_v27 }
 0x41b   : > { %3241 = vrot.lane.b32.xlu1 %v3151_v59, %s5950_s30  ;;  %v5640_v44 = vpop.eup %5639  ;;  %v9978_v59 = vld [vmem:[#allocation124_spill] sm:$0xff]  ;;  %v1766_v1 = vadd.f32 %v9985_v53, %v1534_v28 }
 0x41c   : > { %v8624_v13 = vpop.permute.xlu0 %3885  ;;  %v8633_v49 = vpop.permute.xlu1 %3689  ;;  %v3099_v25 = vadd.f32 %v9978_v59, %v2899_v11  ;;  %v3300_v20 = vadd.f32 %v9979_v17, %v3100_v4  ;;  %v4300_v60 = vmul.f32 0.5, %v5640_v44  ;;  %v9982_v11 = vld [vmem:[#allocation127_spill] sm:$0xff]  ;;  %v9990_v28 = vld [vmem:[#allocation96_spill] sm:$0xff] }
 0x41d   : > { %v9983_v44 = vld [vmem:[#allocation115_spill] sm:$0xff] }
 0x41e   : > { %3043 = vrot.lane.b32.xlu0 %v2952_v15, %s5952_s18  ;;  %v3616_v15 = vmul.f32 %v9769_v31, %v8622_v14  ;;  %v3299_v59 = vadd.f32 %v9982_v11, %v3099_v25  ;;  %v3500_v17 = vadd.f32 %v8398_v22, %v3300_v20  ;;  %v1533_v61 = vmul.f32 %v9922_v23, %v9983_v44  ;;  %v9986_v22 = vld [vmem:[#allocation102_spill] sm:$0xff]  ;;  %v9988_v44 = vld [vmem:[#allocation140_spill] sm:$0xff] }
 0x41f   : > { %2583 = vrot.lane.b32.xlu1 %v2488_v55, %s5950_s30  ;;  %v3816_v55 = vmul.f32 %v9773_v33, %v8622_v14  ;;  %v4332_v2 = vadd.f32 0.5, %v4300_v60  ;;  %v3536_v20 = vmul.f32 %v7290_v18, %v9986_v22  ;;  %v2487_v60 = vmul.f32 %v6452_v57, %v9989_v12 }
 0x420   : > { %v5642_v37 = vpop.eup %5641  ;;  %v8641_v63 = vpop.permute.xlu0 %3227  ;;  %v3499_v25 = vadd.f32 %v8405_v24, %v3299_v59  ;;  %v978_v24 = vadd.f32 %v8578_v45, %v7159_v43  ;;  %v3535_v59 = vmul.f32 %v7290_v18, %v9990_v28  ;;  %v2953_v45 = vmul.f32 %v6561_v7, %v8650_v58 }
 0x421   : > { %9980 = vst [vmem:[#allocation82_spill] sm:$0xff] %v8641_v63  ;;  %v4299_v4 = vmul.f32 0.5, %v5642_v37  ;;  %v8655_v5 = vpop.permute.xlu1 %2767  ;;  %v9987_v37 = vld [vmem:[#allocation39_spill] sm:$0xff]  ;;  %v1109_v63 = vmul.f32 0.5, %v972_v21  ;;  %v987_v21 = vpop.f32.mrf.mxu1 }
 0x422   : > { %3703 = vrot.lane.b32.xlu0 %v3616_v15, %s5952_s18  ;;  %9984 = vst [vmem:[#allocation35_spill] sm:$0xff] %v8655_v5  ;;  %v1773_v11 = vadd.f32 %v9987_v37, %v1541_v26  ;;  %v1765_v15 = vadd.f32 %v9988_v44, %v1533_v61  ;;  %v8675_v26 = vadd.f32 0.5, %v1353_v16  ;;  %v9991_v61 = vld [vmem:[#allocation144_spill] sm:$0xff]  ;;  %v3567_v22 = vadd.f32 %v3535_v59, %v3499_v25  ;;  %v5644_v37 = vpop.eup %5643 }
 0x423   : > { %v4331_v27 = vadd.f32 0.5, %v4299_v4  ;;  %3903 = vrot.lane.b32.xlu1 %v3816_v55, %s5950_s30  ;;  %v3568_v4 = vadd.f32 %v3536_v20, %v3500_v17  ;;  %v9993_v55 = vld [vmem:[#allocation145_spill] sm:$0xff]  ;;  %v9994_v20 = vld [vmem:[#allocation42_spill] sm:$0xff]  ;;  %5649 = vtanh.f32 %v1109_v63  ;;  %v1113_v44 = vmul.f32 0.5, %v978_v24  ;;  %v9998_v24 = vld [vmem:[#allocation152_spill] sm:$0xff] }
 0x424   : > { %v8665_v51 = vpop.permute.xlu0 %2765  ;;  %v1965_v53 = vadd.f32 %v9991_v61, %v1765_v15  ;;  %v1966_v17 = vadd.f32 %v9993_v55, %v1766_v1  ;;  %v3767_v15 = vadd.f32 %v8491_v50, %v3567_v22  ;;  %v1117_v1 = vmul.f32 0.5, %v984_v35  ;;  %v9997_v61 = vld [vmem:[#allocation23_spill] sm:$0xff]  ;;  %v9999_v55 = vld [vmem:[#allocation41_spill] sm:$0xff] }
 0x425   : > { %5213 = vmatprep.mubr.msk.f32.mxu0 %vm4355_vm0, %v4331_v27  ;;  %v8681_v57 = vpop.permute.xlu1 %3427  ;;  %v3768_v16 = vadd.f32 %v8589_v8, %v3568_v4  ;;  %v1973_v27 = vadd.f32 %v9994_v20, %v1773_v11  ;;  %v988_v25 = vadd.f32 %v987_v21, %v9744_v62  ;;  %v9996_v8 = vld [vmem:[#allocation143_spill] sm:$0xff]  ;;  %v3617_v59 = vmul.f32 %v9769_v31, %v8675_v26  ;;  %v989_v4 = vpop.f32.mrf.mxu1 }
 0x426   : > { %2581 = vrot.lane.b32.xlu0 %v2487_v60, %s5950_s30  ;;  %5214 = vmatmul.mubr.msk.f32.gmra.mxu0 %vm4355_vm0, %v4332_v2  ;;  %9992 = vst [vmem:[#allocation179_spill] sm:$0xff] %v8681_v57  ;;  %v3815_v2 = vmul.f32 %v9773_v33, %v8533_v47  ;;  %v2165_v28 = vadd.f32 %v9996_v8, %v1965_v53  ;;  %v1357_v35 = vmul.f32 0.5, %v5644_v37  ;;  %v10000_v22 = vld [vmem:[#allocation119_spill] sm:$0xff]  ;;  %v10001_v8 = vld [vmem:[#allocation48_spill] sm:$0xff]  ;;  %5651 = vtanh.f32 %v1113_v44  ;;  %v10004_v44 = vld [vmem:[#allocation54_spill] sm:$0xff] }
 0x427   : > { %3045 = vrot.lane.b32.xlu1 %v2953_v45, %s5952_s18  ;;  %v3968_v60 = vadd.f32 %v8596_v36, %v3768_v16  ;;  %v1542_v63 = vmul.f32 %v9922_v23, %v9997_v61  ;;  %v2166_v45 = vadd.f32 %v9998_v24, %v1966_v17  ;;  %v3967_v50 = vadd.f32 %v8624_v13, %v3767_v15 }
 0x428   : > { %v8688_v54 = vpop.permute.xlu0 %3425  ;;  %v2173_v21 = vadd.f32 %v9999_v55, %v1973_v27  ;;  %v2201_v53 = vmul.f32 %v9935_v30, %v10000_v22  ;;  %v3152_v20 = vmul.f32 %v9767_v3, %v8602_v19  ;;  %v1120_v27 = vmul.f32 0.5, %v988_v25  ;;  %v10006_v22 = vld [vmem:[#allocation22_spill] sm:$0xff] }
 0x429   : > { %9995 = vst [vmem:[#allocation84_spill] sm:$0xff] %v8688_v54  ;;  %v4088_v11 = vpop.permute.xlu1 %4087  ;;  %v1774_v61 = vadd.f32 %v10001_v8, %v1542_v63  ;;  %v10002_v54 = vld [vmem:[#allocation120_spill] sm:$0xff]  ;;  %5653 = vtanh.f32 %v1117_v1  ;;  %v1539_v25 = vmul.f32 %v9922_v23, %v10004_v44 }
 0x42a   : > { %3901 = vrot.lane.b32.xlu0 %v3815_v2, %s5950_s30  ;;  %v4168_v36 = vadd.f32 %v4088_v11, %v3968_v60  ;;  %v5646_v2 = vpop.eup %5645  ;;  %v2202_v17 = vmul.f32 %v9935_v30, %v10002_v54  ;;  %v2233_v15 = vadd.f32 %v2201_v53, %v2165_v28  ;;  %v2688_v11 = vmul.f32 %v9759_v39, %v9977_v56  ;;  %v10007_v53 = vld [vmem:[#allocation46_spill] sm:$0xff] }
 0x42b   : > { %3705 = vrot.lane.b32.xlu1 %v3617_v59, %s5952_s18  ;;  %v993_v59 = vpop.f32.mrf.mxu1  ;;  %v8720_v54 = vadd.f32 0.5, %v1357_v35  ;;  %v5648_v1 = vpop.eup %5647 }
 0x42c   : > { %v4086_v16 = vpop.permute.xlu0 %4085  ;;  %v4206_v13 = vadd.f32 %v8427_v9, %v4168_v36  ;;  %v2234_v24 = vadd.f32 %v2202_v17, %v2166_v45  ;;  %v2687_v36 = vmul.f32 %v9759_v39, %v9989_v12  ;;  %v2209_v45 = vmul.f32 %v9935_v30, %v10006_v22  ;;  %v10009_v17 = vld [vmem:[#allocation163_spill] sm:$0xff]  ;;  %v10010_v22 = vld [vmem:[#allocation52_spill] sm:$0xff]  ;;  %v10019_v12 = vld [vmem:[#allocation70_spill] sm:$0xff] }
 0x42d   : > { %v4167_v37 = vadd.f32 %v4086_v16, %v3967_v50  ;;  %v8715_v60 = vpop.permute.xlu1 %3229  ;;  %v990_v50 = vadd.f32 %v989_v4, %v7159_v43  ;;  %v1974_v16 = vadd.f32 %v10007_v53, %v1774_v61  ;;  %v994_v4 = vadd.f32 %v993_v59, %v9744_v62  ;;  %v995_v44 = vpop.f32.mrf.mxu1 }
 0x42e   : > { %3243 = vrot.lane.b32.xlu0 %v3152_v20, %s5950_s30  ;;  %10003 = vst [vmem:[#allocation92_spill] sm:$0xff] %v8715_v60  ;;  %v4238_v63 = vmul.f32 0.5, %v4206_v13  ;;  %v10008_v20 = vld [vmem:[#allocation146_spill] sm:$0xff]  ;;  %v1771_v13 = vadd.f32 %v10009_v17, %v1539_v25  ;;  %v3352_v39 = vmul.f32 %v9764_v46, %v8602_v19  ;;  %v1361_v62 = vmul.f32 0.5, %v5648_v1 }
 0x42f   : > { %v4205_v55 = vadd.f32 %v8427_v9, %v4167_v37  ;;  %2783 = vrot.lane.b32.xlu1 %v2688_v11, %s5951_s9  ;;  %v2433_v8 = vadd.f32 %v10008_v20, %v2233_v15  ;;  %v1372_v11 = vmul.f32 0.5, %v5646_v2  ;;  %v2174_v61 = vadd.f32 %v10010_v22, %v1974_v16  ;;  %v10012_v15 = vld [vmem:[#allocation168_spill] sm:$0xff]  ;;  %v10014_v16 = vld [vmem:[#allocation114_spill] sm:$0xff] }
 0x430   : > { %v8725_v28 = vpop.permute.xlu0 %3031  ;;  %5655 = vtanh.f32 %v4238_v63  ;;  %v10011_v63 = vld [vmem:[#allocation147_spill] sm:$0xff]  ;;  %v1971_v59 = vadd.f32 %v10012_v15, %v1771_v13  ;;  %v1121_v53 = vmul.f32 0.5, %v990_v50  ;;  %v2241_v20 = vadd.f32 %v2209_v45, %v2173_v21  ;;  %v10013_v2 = vld [vmem:[#allocation24_spill] sm:$0xff] }
 0x431   : > { %10005 = vst [vmem:[#allocation37_spill] sm:$0xff] %v8725_v28  ;;  %v4237_v35 = vmul.f32 0.5, %v4205_v55  ;;  %v8737_v37 = vpop.permute.xlu1 %2571  ;;  %v2434_v55 = vadd.f32 %v10011_v63, %v2234_v24  ;;  %v2210_v17 = vmul.f32 %v9935_v30, %v10013_v2  ;;  %v8753_v24 = vpop.eup %5649  ;;  %v996_v1 = vadd.f32 %v995_v44, %v7159_v43  ;;  %v10016_v63 = vld [vmem:[#allocation57_spill] sm:$0xff]  ;;  %v10017_v15 = vld [vmem:[#allocation19_spill] sm:$0xff] }
 0x432   : > { %2781 = vrot.lane.b32.xlu0 %v2687_v36, %s5951_s9  ;;  %v3351_v36 = vmul.f32 %v9764_v46, %v8511_v38  ;;  %v4016_v21 = vmul.f32 %v9775_v34, %v8622_v14  ;;  %v8762_v50 = vadd.f32 0.5, %v1372_v11  ;;  %v4712_v2 = vadd.s32 8, %v10017_v15  ;;  %v10029_v38 = vld [vmem:[#allocation161_spill] sm:$0xff] }
 0x433   : > { %5657 = vtanh.f32 %v4237_v35  ;;  %3443 = vrot.lane.b32.xlu1 %v3352_v39, %s5951_s9  ;;  %v2634_v22 = vadd.f32 %v10014_v16, %v2434_v55  ;;  %v10015_v35 = vld [vmem:[#allocation148_spill] sm:$0xff]  ;;  %v2242_v45 = vadd.f32 %v2210_v17, %v2174_v61  ;;  %v8775_v11 = vadd.f32 0.5, %v1361_v62 }
 0x434   : > { %5659 = vtanh.f32 %v1120_v27  ;;  %v8744_v25 = vpop.permute.xlu0 %3691  ;;  %v1124_v27 = vmul.f32 0.5, %v994_v4  ;;  %v2633_v13 = vadd.f32 %v10015_v35, %v2433_v8  ;;  %v10018_v16 = vld [vmem:[#allocation76_spill] sm:$0xff]  ;;  %v4015_v8 = vmul.f32 %v9775_v34, %v8533_v47 }
 0x435   : > { %v8758_v39 = vpop.permute.xlu1 %3891  ;;  %v2834_v55 = vadd.f32 %v10016_v63, %v2634_v22  ;;  %v2171_v4 = vadd.f32 %v10018_v16, %v1971_v59  ;;  %5661 = vtanh.f32 %v1121_v53  ;;  %v10020_v61 = vld [vmem:[#allocation44_spill] sm:$0xff]  ;;  %v10021_v22 = vld [vmem:[#allocation185_spill] sm:$0xff]  ;;  %v8780_v59 = vmul.f32 0.5, %v996_v1  ;;  %v8791_v53 = vpop.eup %5651 }
 0x436   : > { %3441 = vrot.lane.b32.xlu0 %v3351_v36, %s5951_s9  ;;  %v2833_v43 = vadd.f32 %v10019_v12, %v2633_v13  ;;  %v8773_v36 = vstv %s5141_s13  ;;  %v2441_v17 = vadd.f32 %v10020_v61, %v2241_v20  ;;  %v2870_v35 = vmul.f32 %v6992_v29, %v10021_v22  ;;  %v10022_v12 = vld [vmem:[#allocation71_spill] sm:$0xff]  ;;  %v10023_v63 = vld [vmem:[#allocation181_spill] sm:$0xff]  ;;  %v8796_v22 = vpop.eup %5653 }
 0x437   : > { %4103 = vrot.lane.b32.xlu1 %v4016_v21, %s5951_s9  ;;  %v2207_v13 = vmul.f32 %v9935_v30, %v10022_v12  ;;  %v2869_v21 = vmul.f32 %v6992_v29, %v10023_v63  ;;  %v3817_v62 = vmul.f32 %v9773_v33, %v8675_v26  ;;  %5663 = vtanh.f32 %v1124_v27 }
 0x438   : > { %v8768_v44 = vpop.permute.xlu0 %2569  ;;  %v2902_v20 = vadd.f32 %v2870_v35, %v2834_v55  ;;  %v4745_v1 = vadd.s32 %v8773_v36, %v4712_v2  ;;  %v4744_v61 = vadd.s32 %v8773_v36, %v10017_v15  ;;  %v2954_v27 = vmul.f32 %v6561_v7, %v8762_v50 }
 0x439   : > { %v8787_v16 = vpop.permute.xlu1 %3033  ;;  %v2239_v12 = vadd.f32 %v2207_v13, %v2171_v4  ;;  %v2901_v63 = vadd.f32 %v2869_v21, %v2833_v43  ;;  %v3818_v35 = vmul.f32 %v9773_v33, %v8720_v54  ;;  %v3618_v19 = vmul.f32 %v9769_v31, %v8720_v54  ;;  %v10025_v43 = vld [vmem:[#allocation125_spill] sm:$0xff]  ;;  %v10026_v21 = vld [vmem:[#allocation26_spill] sm:$0xff] }
 0x43a   : > { %4101 = vrot.lane.b32.xlu0 %v4015_v8, %s5951_s9  ;;  %v10024_v8 = vld [vmem:[#allocation51_spill] sm:$0xff]  ;;  %v3102_v55 = vadd.f32 %v8436_v48, %v2902_v20  ;;  %v3353_v4 = vmul.f32 %v9764_v46, %v8650_v58  ;;  %v1536_v13 = vmul.f32 %v9922_v23, %v10025_v43  ;;  %vm4777_vm1 = vcmp.lt.s32.totalorder %v4745_v1, 512 }
 0x43b   : > { %v2442_v47 = vadd.f32 %v10024_v8, %v2242_v45  ;;  %3905 = vrot.lane.b32.xlu1 %v3817_v62, %s5950_s30  ;;  %v1540_v62 = vmul.f32 %v9922_v23, %v10026_v21  ;;  %v10027_v8 = vld [vmem:[#allocation178_spill] sm:$0xff]  ;;  %vm4776_vm2 = vcmp.lt.s32.totalorder %v4744_v61, 512  ;;  %5665 = vtanh.f32 %v8780_v59 }
 0x43c   : > { %v8799_v14 = vpop.permute.xlu0 %3889  ;;  %v3101_v56 = vadd.f32 %v10027_v8, %v2901_v63  ;;  %v3302_v60 = vadd.f32 %v8503_v6, %v3102_v55  ;;  %v1768_v63 = vadd.f32 %v10029_v38, %v1536_v13  ;;  %v10030_v8 = vld [vmem:[#allocation170_spill] sm:$0xff] }
 0x43d   : > { %v5197_v2 = vpop.f32.mrf.mxu0  ;;  %v5656_v45 = vpop.eup %5655  ;;  %v2439_v57 = vadd.f32 %v10030_v8, %v2239_v12  ;;  %v2642_v55 = vadd.f32 %v8737_v37, %v2442_v47  ;;  %v10032_v37 = vld [vmem:[#allocation123_spill] sm:$0xff]  ;;  %v10038_v59 = vld [vmem:[#allocation166_spill] sm:$0xff] }
 0x43e   : > { %4678 = vst [vmem:[%s8818_s15 + $0x8] sm:$0xff] %v5197_v2  ;;  %v4809_v48 = vmul.f32 %v5197_v2, %v5197_v2  ;;  %3047 = vrot.lane.b32.xlu0 %v2954_v27, %s5952_s18  ;;  %v8822_v20 = vpop.permute.xlu1 %3693  ;;  %v4302_v28 = vmul.f32 0.5, %v5656_v45  ;;  %v3301_v41 = vadd.f32 %v8431_v10, %v3101_v56  ;;  %v3502_v6 = vadd.f32 %v8538_v0, %v3302_v60  ;;  %v10031_v45 = vld [vmem:[#allocation176_spill] sm:$0xff] }
 0x43f   : > { %10028 = vst [vmem:[#allocation97_spill] sm:$0xff] %v8822_v20  ;;  %v4518_v43 = vpop.f32.mrf.mxu0  ;;  %3907 = vrot.lane.b32.xlu1 %v3818_v35, %s5950_s30  ;;  %v3538_v20 = vmul.f32 %v7290_v18, %v10031_v45  ;;  %v2641_v35 = vadd.f32 %v8768_v44, %v2441_v17  ;;  %v1369_v45 = vmul.f32 0.5, %v8791_v53 }
 0x440   : > { %v5658_v21 = vpop.eup %5657  ;;  %4677 = vst [vmem:[%s8818_s15] sm:$0xff] %v4518_v43  ;;  %v4808_v5 = vmul.f32 %v4518_v43, %v4518_v43  ;;  %v8829_v2 = vpop.permute.xlu0 %3231  ;;  %v3501_v38 = vadd.f32 %v8546_v32, %v3301_v41  ;;  %v4841_v12 = vsel %vm4777_vm1, %v4809_v48, 0.0  ;;  %v4334_v13 = vadd.f32 0.5, %v4302_v28  ;;  %v10033_v32 = vld [vmem:[#allocation172_spill] sm:$0xff]  ;;  %v10035_v48 = vld [vmem:[#allocation149_spill] sm:$0xff] }
 0x441   : > { %v5660_v27 = vpop.eup %5659  ;;  %v4301_v42 = vmul.f32 0.5, %v5658_v21  ;;  %v1535_v21 = vmul.f32 %v9922_v23, %v10032_v37  ;;  %v1772_v41 = vadd.f32 %v10033_v32, %v1540_v62  ;;  %v10034_v28 = vld [vmem:[#allocation108_spill] sm:$0xff]  ;;  %v3570_v17 = vadd.f32 %v3538_v20, %v3502_v6  ;;  %v10041_v37 = vld [vmem:[#allocation29_spill] sm:$0xff] }
 0x442   : > { %v4840_v10 = vsel %vm4776_vm2, %v4808_v5, 0.0  ;;  %3707 = vrot.lane.b32.xlu0 %v3618_v19, %s5952_s18  ;;  %v2772_v56 = vpop.permute.xlu1 %2771  ;;  %v1376_v60 = vmul.f32 0.5, %v5660_v27  ;;  %v3153_v19 = vmul.f32 %v9767_v3, %v8650_v58  ;;  %v2639_v5 = vadd.f32 %v8605_v40, %v2439_v57  ;;  %v10042_v32 = vld [vmem:[#allocation69_spill] sm:$0xff] }
 0x443   : > { %v8841_v43 = vadd.f32 %v4841_v12, %v4840_v10  ;;  %v8843_v0 = vadd.f32 %v2772_v56, %v2642_v55  ;;  %v4333_v47 = vadd.f32 0.5, %v4301_v42  ;;  %3445 = vrot.lane.b32.xlu1 %v3353_v4, %s5951_s9  ;;  %v3537_v44 = vmul.f32 %v7290_v18, %v10034_v28  ;;  %v8857_v42 = vpop.eup %5661  ;;  %v10036_v4 = vld [vmem:[#allocation153_spill] sm:$0xff]  ;;  %v10037_v12 = vld [vmem:[#allocation154_spill] sm:$0xff] }
 0x444   : > { %v2770_v1 = vpop.permute.xlu0 %2769  ;;  %v1365_v62 = vmul.f32 0.5, %v8753_v24  ;;  %v1767_v8 = vadd.f32 %v10035_v48, %v1535_v21  ;;  %v1968_v27 = vadd.f32 %v10036_v4, %v1768_v63  ;;  %v4017_v57 = vmul.f32 %v9775_v34, %v8675_v26  ;;  %v5664_v55 = vpop.eup %5663  ;;  %v10044_v48 = vld [vmem:[#allocation151_spill] sm:$0xff]  ;;  %v10045_v4 = vld [vmem:[#allocation128_spill] sm:$0xff] }
 0x445   : > { %v8854_v61 = vadd.f32 %v2770_v1, %v2641_v35  ;;  %5216 = vmatprep.mubr.msk.f32.mxu0 %vm4355_vm0, %v4333_v47  ;;  %v3569_v20 = vadd.f32 %v3537_v44, %v3501_v38  ;;  %v2839_v6 = vadd.f32 %v8665_v51, %v2639_v5  ;;  %v3770_v24 = vadd.f32 %v8744_v25, %v3570_v17  ;;  %v10039_v35 = vld [vmem:[#allocation180_spill] sm:$0xff]  ;;  %v10040_v47 = vld [vmem:[#allocation25_spill] sm:$0xff]  ;;  %v10043_v44 = vld [vmem:[#allocation59_spill] sm:$0xff] }
 0x446   : > { %3245 = vrot.lane.b32.xlu0 %v3153_v19, %s5950_s30  ;;  %5217 = vmatmul.mubr.msk.f32.gmra.mxu0 %vm4355_vm0, %v4334_v13  ;;  %v8864_v40 = vpop.permute.xlu1 %3431  ;;  %v8872_v63 = vadd.f32 0.5, %v1376_v60  ;;  %v1967_v10 = vadd.f32 %v10037_v12, %v1767_v8  ;;  %v3154_v13 = vmul.f32 %v9767_v3, %v8762_v50  ;;  %v1972_v38 = vadd.f32 %v10038_v59, %v1772_v41 }
 0x447   : > { %4105 = vrot.lane.b32.xlu1 %v4017_v57, %s5951_s9  ;;  %v3769_v51 = vadd.f32 %v8633_v49, %v3569_v20  ;;  %v3970_v25 = vadd.f32 %v8758_v39, %v3770_v24  ;;  %v2875_v53 = vmul.f32 %v6992_v29, %v10039_v35  ;;  %v1543_v60 = vmul.f32 %v9922_v23, %v10040_v47  ;;  %v10046_v24 = vld [vmem:[#allocation173_spill] sm:$0xff]  ;;  %v10049_v47 = vld [vmem:[#allocation55_spill] sm:$0xff] }
 0x448   : > { %v8875_v56 = vpop.permute.xlu0 %3429  ;;  %v1544_v21 = vmul.f32 %v9922_v23, %v10041_v37  ;;  %v2168_v1 = vadd.f32 %v10042_v32, %v1968_v27  ;;  %v3354_v41 = vmul.f32 %v9764_v46, %v8762_v50  ;;  %v1380_v49 = vmul.f32 0.5, %v5664_v55 }
 0x449   : > { %v2907_v5 = vadd.f32 %v2875_v53, %v2839_v6  ;;  %v3969_v39 = vadd.f32 %v8799_v14, %v3769_v51  ;;  %v1775_v17 = vadd.f32 %v10043_v44, %v1543_v60  ;;  %v2167_v8 = vadd.f32 %v10044_v48, %v1967_v10  ;;  %v10048_v51 = vld [vmem:[#allocation129_spill] sm:$0xff]  ;;  %v10051_v48 = vld [vmem:[#allocation63_spill] sm:$0xff] }
 0x44a   : > { %3247 = vrot.lane.b32.xlu0 %v3154_v13, %s5950_s30  ;;  %v4092_v19 = vpop.permute.xlu1 %4091  ;;  %v2204_v57 = vmul.f32 %v9935_v30, %v10045_v4  ;;  %v2955_v27 = vmul.f32 %v6561_v7, %v8872_v63  ;;  %v2172_v12 = vadd.f32 %v10046_v24, %v1972_v38  ;;  %v10047_v13 = vld [vmem:[#allocation74_spill] sm:$0xff]  ;;  %v2203_v10 = vmul.f32 %v9935_v30, %v10048_v51  ;;  %v10052_v4 = vld [vmem:[#allocation156_spill] sm:$0xff] }
 0x44b   : > { %v4170_v28 = vadd.f32 %v4092_v19, %v3970_v25  ;;  %3447 = vrot.lane.b32.xlu1 %v3354_v41, %s5951_s9  ;;  %v3107_v6 = vadd.f32 %v8787_v16, %v2907_v5  ;;  %v1776_v59 = vadd.f32 %v10047_v13, %v1544_v21  ;;  %v4018_v53 = vmul.f32 %v9775_v34, %v8720_v54  ;;  %v10050_v21 = vld [vmem:[#allocation60_spill] sm:$0xff]  ;;  %v10056_v13 = vld [vmem:[#allocation126_spill] sm:$0xff] }
 0x44c   : > { %v4090_v20 = vpop.permute.xlu0 %4089  ;;  %v2236_v25 = vadd.f32 %v2204_v57, %v2168_v1  ;;  %v2208_v38 = vmul.f32 %v9935_v30, %v10049_v47  ;;  %v8915_v32 = vadd.f32 0.5, %v1380_v49  ;;  %v1975_v19 = vadd.f32 %v10050_v21, %v1775_v17 }
 0x44d   : > { %v4208_v14 = vadd.f32 %v8427_v9, %v4170_v28  ;;  %v4169_v55 = vadd.f32 %v4090_v20, %v3969_v39  ;;  %v2235_v41 = vadd.f32 %v2203_v10, %v2167_v8  ;;  %v3619_v5 = vmul.f32 %v9769_v31, %v8775_v11 }
 0x44e   : > { %3049 = vrot.lane.b32.xlu0 %v2955_v27, %s5952_s18  ;;  %v3234_v35 = vpop.permute.xlu1 %3233  ;;  %v1373_v39 = vmul.f32 0.5, %v8796_v22  ;;  %v2240_v28 = vadd.f32 %v2208_v38, %v2172_v12  ;;  %v2175_v49 = vadd.f32 %v10051_v48, %v1975_v19  ;;  %v2436_v57 = vadd.f32 %v10052_v4, %v2236_v25  ;;  %v10053_v27 = vld [vmem:[#allocation72_spill] sm:$0xff]  ;;  %v10054_v12 = vld [vmem:[#allocation27_spill] sm:$0xff]  ;;  %v10062_v4 = vld [vmem:[#allocation141_spill] sm:$0xff] }
 0x44f   : > { %v4240_v60 = vmul.f32 0.5, %v4208_v14  ;;  %v4207_v16 = vadd.f32 %v8427_v9, %v4169_v55  ;;  %v8913_v37 = vadd.f32 %v3234_v35, %v3107_v6  ;;  %4107 = vrot.lane.b32.xlu1 %v4018_v53, %s5951_s9  ;;  %v8924_v9 = vadd.f32 0.5, %v1365_v62  ;;  %v8937_v62 = vpop.eup %5665  ;;  %v10055_v14 = vld [vmem:[#allocation158_spill] sm:$0xff]  ;;  %v10057_v25 = vld [vmem:[#allocation79_spill] sm:$0xff]  ;;  %v10058_v53 = vld [vmem:[#allocation80_spill] sm:$0xff] }
 0x450   : > { %v8918_v1 = vpop.permute.xlu0 %3035  ;;  %v3819_v8 = vmul.f32 %v9773_v33, %v8775_v11  ;;  %v8933_v20 = vadd.f32 0.5, %v1369_v45  ;;  %v1976_v22 = vadd.f32 %v10053_v27, %v1776_v59  ;;  %v4713_v24 = vadd.s32 16, %v10017_v15  ;;  %v10060_v19 = vld [vmem:[#allocation183_spill] sm:$0xff] }
 0x451   : > { %5667 = vtanh.f32 %v4240_v60  ;;  %v4239_v44 = vmul.f32 0.5, %v4207_v16  ;;  %v2211_v6 = vmul.f32 %v9935_v30, %v10054_v12  ;;  %v2435_v55 = vadd.f32 %v10055_v14, %v2235_v41  ;;  %v10059_v16 = vld [vmem:[#allocation130_spill] sm:$0xff]  ;;  %v10064_v27 = vld [vmem:[#allocation187_spill] sm:$0xff]  ;;  %v10065_v12 = vld [vmem:[#allocation101_spill] sm:$0xff] }
 0x452   : > { %3709 = vrot.lane.b32.xlu0 %v3619_v5, %s5952_s18  ;;  %v8929_v17 = vpop.permute.xlu1 %2575  ;;  %v2636_v51 = vadd.f32 %v10056_v13, %v2436_v57  ;;  %v2956_v45 = vmul.f32 %v6561_v7, %v8915_v32  ;;  %v8948_v59 = vadd.f32 0.5, %v1373_v39  ;;  %v2176_v35 = vadd.f32 %v10057_v25, %v1976_v22  ;;  %v10061_v39 = vld [vmem:[#allocation31_spill] sm:$0xff]  ;;  %v10063_v57 = vld [vmem:[#allocation40_spill] sm:$0xff] }
 0x453   : > { %5669 = vtanh.f32 %v4239_v44  ;;  %3909 = vrot.lane.b32.xlu1 %v3819_v8, %s5950_s30  ;;  %v2440_v47 = vadd.f32 %v10058_v53, %v2240_v28  ;;  %v4714_v38 = vadd.s32 24, %v10017_v15  ;;  %v2243_v60 = vadd.f32 %v2211_v6, %v2175_v49  ;;  %v10067_v53 = vld [vmem:[#allocation64_spill] sm:$0xff] }
 0x454   : > { %v8943_v10 = vpop.permute.xlu0 %3695  ;;  %v2635_v21 = vadd.f32 %v10059_v16, %v2435_v55  ;;  %v2836_v41 = vadd.f32 %v10060_v19, %v2636_v51  ;;  %v3820_v7 = vmul.f32 %v9773_v33, %v8924_v9  ;;  %v2212_v44 = vmul.f32 %v9935_v30, %v10061_v39  ;;  %v10068_v16 = vld [vmem:[#allocation99_spill] sm:$0xff]  ;;  %v10069_v39 = vld [vmem:[#allocation49_spill] sm:$0xff] }
 0x455   : > { %v2640_v48 = vadd.f32 %v8582_v52, %v2440_v47  ;;  %v4746_v28 = vadd.s32 %v8773_v36, %v4713_v24  ;;  %v2877_v49 = vmul.f32 %v6992_v29, %v10062_v4  ;;  %v1546_v8 = vmul.f32 %v9922_v23, %v10063_v57  ;;  %v10066_v24 = vld [vmem:[#allocation35_spill] sm:$0xff]  ;;  %v10070_v4 = vld [vmem:[#allocation182_spill] sm:$0xff] }
 0x456   : > { %3051 = vrot.lane.b32.xlu0 %v2956_v45, %s5952_s18  ;;  %v8956_v5 = vpop.permute.xlu1 %3895  ;;  %v2835_v22 = vadd.f32 %v10064_v27, %v2635_v21  ;;  %v2872_v6 = vmul.f32 %v6992_v29, %v10065_v12  ;;  %v3620_v52 = vmul.f32 %v9769_v31, %v8924_v9  ;;  %v2244_v55 = vadd.f32 %v2212_v44, %v2176_v35  ;;  %v10071_v12 = vld [vmem:[#allocation81_spill] sm:$0xff] }
 0x457   : > { %3911 = vrot.lane.b32.xlu1 %v3820_v7, %s5950_s30  ;;  %v2840_v13 = vadd.f32 %v10066_v24, %v2640_v48  ;;  %v4747_v45 = vadd.s32 %v8773_v36, %v4714_v38  ;;  %v2909_v25 = vadd.f32 %v2877_v49, %v8854_v61  ;;  %v2443_v47 = vadd.f32 %v10067_v53, %v2243_v60 }
 0x458   : > { %v2574_v14 = vpop.permute.xlu0 %2573  ;;  %v2871_v21 = vmul.f32 %v6992_v29, %v10068_v16  ;;  %v2904_v19 = vadd.f32 %v2872_v6, %v2836_v41  ;;  %v3621_v35 = vmul.f32 %v9769_v31, %v8933_v20  ;;  %v2876_v44 = vmul.f32 %v6992_v29, %v10069_v39  ;;  %v10073_v16 = vld [vmem:[#allocation83_spill] sm:$0xff]  ;;  %v10074_v39 = vld [vmem:[#allocation82_spill] sm:$0xff] }
 0x459   : > { %v5200_v51 = vpop.f32.mrf.mxu0  ;;  %vm4778_vm3 = vcmp.lt.s32.totalorder %v4746_v28, 512  ;;  %v3155_v60 = vmul.f32 %v9767_v3, %v8872_v63  ;;  %v2444_v6 = vadd.f32 %v10071_v12, %v2244_v55  ;;  %vm4779_vm4 = vcmp.lt.s32.totalorder %v4747_v45, 512 }
 0x45a   : > { %4680 = vst [vmem:[%s8818_s15 + $0x18] sm:$0xff] %v5200_v51  ;;  %3711 = vrot.lane.b32.xlu0 %v3620_v52, %s5952_s18  ;;  %v3038_v7 = vpop.permute.xlu1 %3037  ;;  %v2903_v48 = vadd.f32 %v2871_v21, %v2835_v22  ;;  %v3104_v41 = vadd.f32 %v10070_v4, %v2904_v19  ;;  %v4811_v49 = vmul.f32 %v5200_v51, %v5200_v51  ;;  %v10072_v52 = vld [vmem:[#allocation94_spill] sm:$0xff] }
 0x45b   : > { %v4528_v38 = vpop.f32.mrf.mxu0  ;;  %v8986_v61 = vadd.f32 %v3038_v7, %v2909_v25  ;;  %3713 = vrot.lane.b32.xlu1 %v3621_v35, %s5952_s18  ;;  %v1778_v24 = vadd.f32 %v10072_v52, %v1546_v8  ;;  %v2908_v53 = vadd.f32 %v2876_v44, %v2840_v13  ;;  %v3356_v19 = vmul.f32 %v9764_v46, %v8915_v32 }
 0x45c   : > { %4679 = vst [vmem:[%s8818_s15 + $0x10] sm:$0xff] %v4528_v38  ;;  %v4810_v57 = vmul.f32 %v4528_v38, %v4528_v38  ;;  %v8992_v27 = vpop.permute.xlu0 %3893  ;;  %v3103_v7 = vadd.f32 %v10073_v16, %v2903_v48  ;;  %v3304_v22 = vadd.f32 %v10074_v39, %v3104_v41  ;;  %v3156_v13 = vmul.f32 %v9767_v3, %v8915_v32  ;;  %v10075_v38 = vld [vmem:[#allocation56_spill] sm:$0xff]  ;;  %v10076_v48 = vld [vmem:[#allocation186_spill] sm:$0xff]  ;;  %v10079_v16 = vld [vmem:[#allocation175_spill] sm:$0xff] }
 0x45d   : > { %v3108_v55 = vadd.f32 %v8918_v1, %v2908_v53  ;;  %v1538_v28 = vmul.f32 %v9922_v23, %v10075_v38  ;;  %v2644_v1 = vadd.f32 %v8929_v17, %v2444_v6  ;;  %v10078_v3 = vld [vmem:[#allocation164_spill] sm:$0xff]  ;;  %v3540_v39 = vmul.f32 %v7290_v18, %v10079_v16  ;;  %v10087_v16 = vld [vmem:[#allocation85_spill] sm:$0xff] }
 0x45e   : > { %v5668_v25 = vpop.eup %5667  ;;  %v4842_v21 = vsel %vm4778_vm3, %v4810_v57, 0.0  ;;  %3249 = vrot.lane.b32.xlu0 %v3155_v60, %s5950_s30  ;;  %v9001_v51 = vpop.permute.xlu1 %3697  ;;  %v3303_v4 = vadd.f32 %v10076_v48, %v3103_v7  ;;  %v10077_v60 = vld [vmem:[#allocation179_spill] sm:$0xff]  ;;  %v4843_v57 = vsel %vm4779_vm4, %v4811_v49, 0.0  ;;  %v4020_v45 = vmul.f32 %v9775_v34, %v8924_v9  ;;  %v10083_v48 = vld [vmem:[#allocation93_spill] sm:$0xff] }
 0x45f   : > { %v4304_v35 = vmul.f32 0.5, %v5668_v25  ;;  %v4873_v8 = vadd.f32 %v8841_v43, %v4842_v21  ;;  %v3504_v41 = vadd.f32 %v10077_v60, %v3304_v22  ;;  %3451 = vrot.lane.b32.xlu1 %v3356_v19, %s5951_s9  ;;  %v1770_v25 = vadd.f32 %v10078_v3, %v1538_v28  ;;  %v10080_v22 = vld [vmem:[#allocation84_spill] sm:$0xff] }
 0x460   : > { %v5670_v44 = vpop.eup %5669  ;;  %v3236_v12 = vpop.permute.xlu0 %3235  ;;  %v3503_v21 = vadd.f32 %v10080_v22, %v3303_v4  ;;  %v2643_v19 = vadd.f32 %v2574_v14, %v2443_v47  ;;  %v10084_v60 = vld [vmem:[#allocation160_spill] sm:$0xff] }
 0x461   : > { %v4303_v52 = vmul.f32 0.5, %v5670_v44  ;;  %v9016_v43 = vadd.f32 %v3236_v12, %v3108_v55  ;;  %v9018_v53 = vadd.f32 %v4873_v8, %v4843_v57  ;;  %v4336_v49 = vadd.f32 0.5, %v4304_v35  ;;  %v10081_v55 = vld [vmem:[#allocation33_spill] sm:$0xff]  ;;  %v10082_v44 = vld [vmem:[#allocation131_spill] sm:$0xff] }
 0x462   : > { %3251 = vrot.lane.b32.xlu0 %v3156_v13, %s5950_s30  ;;  %v2776_v7 = vpop.permute.xlu1 %2775  ;;  %v1545_v8 = vmul.f32 %v9922_v23, %v10081_v55  ;;  %v1537_v38 = vmul.f32 %v9922_v23, %v10082_v44  ;;  %v3355_v13 = vmul.f32 %v9764_v46, %v8872_v63  ;;  %v1978_v35 = vadd.f32 %v10083_v48, %v1778_v24  ;;  %v10085_v12 = vld [vmem:[#allocation159_spill] sm:$0xff]  ;;  %v10090_v55 = vld [vmem:[#allocation97_spill] sm:$0xff] }
 0x463   : > { %v9027_v17 = vadd.f32 %v2776_v7, %v2644_v1  ;;  %v4335_v6 = vadd.f32 0.5, %v4303_v52  ;;  %4111 = vrot.lane.b32.xlu1 %v4020_v45, %s5951_s9  ;;  %v3539_v14 = vmul.f32 %v7290_v18, %v10084_v60  ;;  %v3572_v47 = vadd.f32 %v3540_v39, %v3504_v41  ;;  %v10086_v1 = vld [vmem:[#allocation162_spill] sm:$0xff]  ;;  %v10088_v45 = vld [vmem:[#allocation100_spill] sm:$0xff] }
 0x464   : > { %v2774_v28 = vpop.permute.xlu0 %2773  ;;  %v1377_v57 = vmul.f32 0.5, %v8857_v42  ;;  %v1769_v52 = vadd.f32 %v10085_v12, %v1537_v38  ;;  %v1970_v3 = vadd.f32 %v10086_v1, %v1770_v25  ;;  %v3822_v24 = vmul.f32 %v9773_v33, %v8948_v59  ;;  %v10093_v60 = vld [vmem:[#allocation86_spill] sm:$0xff]  ;;  %v10094_v12 = vld [vmem:[#allocation28_spill] sm:$0xff]  ;;  %v10095_v1 = vld [vmem:[#allocation67_spill] sm:$0xff] }
 0x465   : > { %v9039_v4 = vadd.f32 %v2774_v28, %v2643_v19  ;;  %5219 = vmatprep.mubr.msk.f32.mxu0 %vm4355_vm0, %v4335_v6  ;;  %v1381_v41 = vmul.f32 0.5, %v8937_v62  ;;  %v1777_v39 = vadd.f32 %v10087_v16, %v1545_v8  ;;  %v3571_v7 = vadd.f32 %v3539_v14, %v3503_v21  ;;  %v10089_v19 = vld [vmem:[#allocation68_spill] sm:$0xff]  ;;  %v10091_v21 = vld [vmem:[#allocation43_spill] sm:$0xff]  ;;  %v10092_v8 = vld [vmem:[#allocation165_spill] sm:$0xff] }
 0x466   : > { %3449 = vrot.lane.b32.xlu0 %v3355_v13, %s5951_s9  ;;  %5220 = vmatmul.mubr.msk.f32.gmra.mxu0 %vm4355_vm0, %v4336_v49  ;;  %v9047_v46 = vpop.permute.xlu1 %3435  ;;  %v3772_v42 = vadd.f32 %v8943_v10, %v3572_v47  ;;  %v2178_v22 = vadd.f32 %v10088_v45, %v1978_v35  ;;  %v1969_v25 = vadd.f32 %v10089_v19, %v1769_v52  ;;  %v9063_v38 = vadd.f32 0.5, %v1377_v57  ;;  %v10097_v45 = vld [vmem:[#allocation169_spill] sm:$0xff] }
 0x467   : > { %3915 = vrot.lane.b32.xlu1 %v3822_v24, %s5950_s30  ;;  %v4019_v49 = vmul.f32 %v9775_v34, %v8775_v11  ;;  %v3771_v44 = vadd.f32 %v10090_v55, %v3571_v7  ;;  %v2214_v10 = vmul.f32 %v9935_v30, %v10091_v21  ;;  %v2170_v28 = vadd.f32 %v10092_v8, %v1970_v3  ;;  %v10096_v7 = vld [vmem:[#allocation90_spill] sm:$0xff]  ;;  %v10098_v19 = vld [vmem:[#allocation61_spill] sm:$0xff] }
 0x468   : > { %v9056_v6 = vpop.permute.xlu0 %3433  ;;  %v3972_v62 = vadd.f32 %v8956_v5, %v3772_v42  ;;  %v4021_v48 = vmul.f32 %v9775_v34, %v8933_v20  ;;  %v9071_v35 = vadd.f32 0.5, %v1381_v41  ;;  %v1977_v14 = vadd.f32 %v10093_v60, %v1777_v39  ;;  %v9085_v39 = vld [vmem:[%s9466_s4] ss:$0 sm:$0xff] }
 0x469   : > { %v3971_v47 = vadd.f32 %v8992_v27, %v3771_v44  ;;  %v2246_v57 = vadd.f32 %v2214_v10, %v2178_v22  ;;  %v2169_v52 = vadd.f32 %v10094_v12, %v1969_v25  ;;  %v2206_v24 = vmul.f32 %v9935_v30, %v10095_v1 }
 0x46a   : > { %4109 = vrot.lane.b32.xlu0 %v4019_v49, %s5951_s9  ;;  %v4096_v13 = vpop.permute.xlu1 %4095  ;;  %v3622_v16 = vmul.f32 %v9769_v31, %v8948_v59  ;;  %v2177_v41 = vadd.f32 %v10096_v7, %v1977_v14  ;;  %v2878_v22 = vmul.f32 %v6992_v29, %v10097_v45  ;;  %v2205_v25 = vmul.f32 %v9935_v30, %v10098_v19  ;;  %v10102_v45 = vld [vmem:[#allocation30_spill] sm:$0xff]  ;;  %v10103_v19 = vld [vmem:[#allocation189_spill] sm:$0xff] }
 0x46b   : > { %v4172_v5 = vadd.f32 %v4096_v13, %v3972_v62  ;;  %4113 = vrot.lane.b32.xlu1 %v4021_v48, %s5951_s9  ;;  %v2238_v49 = vadd.f32 %v2206_v24, %v2170_v28  ;;  %v4022_v44 = vmul.f32 %v9775_v34, %v8948_v59  ;;  %v4715_v62 = vadd.s32 32, %v10017_v15  ;;  %v10099_v48 = vld [vmem:[#allocation38_spill] sm:$0xff] }
 0x46c   : > { %v4094_v3 = vpop.permute.xlu0 %4093  ;;  %v2910_v13 = vadd.f32 %v2878_v22, %v8843_v0  ;;  %v2213_v60 = vmul.f32 %v9935_v30, %v10099_v48  ;;  %v2237_v28 = vadd.f32 %v2205_v25, %v2169_v52  ;;  %v3824_v52 = vmul.f32 %v9773_v33, %v9071_v35 }
 0x46d   : > { %v4210_v27 = vadd.f32 %v9085_v39, %v4172_v5  ;;  %v4171_v42 = vadd.f32 %v4094_v3, %v3971_v47  ;;  %v3821_v47 = vmul.f32 %v9773_v33, %v8933_v20  ;;  %v10100_v5 = vld [vmem:[#allocation98_spill] sm:$0xff] }
 0x46e   : > { %3715 = vrot.lane.b32.xlu0 %v3622_v16, %s5952_s18  ;;  %v3238_v55 = vpop.permute.xlu1 %3237  ;;  %v2446_v12 = vadd.f32 %v10100_v5, %v2246_v57  ;;  %v2245_v3 = vadd.f32 %v2213_v60, %v2177_v41  ;;  %v10101_v16 = vld [vmem:[#allocation77_spill] sm:$0xff]  ;;  %v4748_v57 = vadd.s32 %v8773_v36, %v4715_v62  ;;  %v3623_v41 = vmul.f32 %v9769_v31, %v9063_v38  ;;  %v10106_v60 = vld [vmem:[#allocation62_spill] sm:$0xff] }
 0x46f   : > { %v4242_v21 = vmul.f32 0.5, %v4210_v27  ;;  %v4209_v10 = vadd.f32 %v9085_v39, %v4171_v42  ;;  %v9098_v8 = vadd.f32 %v3238_v55, %v8986_v61  ;;  %4115 = vrot.lane.b32.xlu1 %v4022_v44, %s5951_s9  ;;  %v4716_v61 = vadd.s32 40, %v10017_v15 }
 0x470   : > { %v3040_v14 = vpop.permute.xlu0 %3039  ;;  %v2438_v7 = vadd.f32 %v10101_v16, %v2238_v49  ;;  %v2437_v22 = vadd.f32 %v10102_v45, %v2237_v28  ;;  %v10104_v49 = vld [vmem:[#allocation91_spill] sm:$0xff]  ;;  %vm4780_vm5 = vcmp.lt.s32.totalorder %v4748_v57, 512  ;;  %v10109_v16 = vld [vmem:[#allocation65_spill] sm:$0xff] }
 0x471   : > { %5671 = vtanh.f32 %v4242_v21  ;;  %v4241_v1 = vmul.f32 0.5, %v4209_v10  ;;  %v9107_v24 = vadd.f32 %v3040_v14, %v2910_v13  ;;  %v4749_v44 = vadd.s32 %v8773_v36, %v4716_v61  ;;  %v10105_v13 = vld [vmem:[#allocation171_spill] sm:$0xff] }
 0x472   : > { %3913 = vrot.lane.b32.xlu0 %v3821_v47, %s5950_s30  ;;  %v2580_v0 = vpop.permute.xlu1 %2579  ;;  %v2638_v25 = vadd.f32 %v10103_v19, %v2438_v7  ;;  %v2445_v21 = vadd.f32 %v10104_v49, %v2245_v3  ;;  %v4024_v10 = vmul.f32 %v9775_v34, %v9071_v35  ;;  %v2637_v48 = vadd.f32 %v10105_v13, %v2437_v22  ;;  %v10107_v47 = vld [vmem:[#allocation47_spill] sm:$0xff]  ;;  %v10110_v19 = vld [vmem:[#allocation109_spill] sm:$0xff] }
 0x473   : > { %5673 = vtanh.f32 %v4241_v1  ;;  %v2646_v27 = vadd.f32 %v2580_v0, %v2446_v12  ;;  %3919 = vrot.lane.b32.xlu1 %v3824_v52, %s5950_s30  ;;  %v2879_v5 = vmul.f32 %v6992_v29, %v10107_v47  ;;  %v10108_v12 = vld [vmem:[#allocation113_spill] sm:$0xff]  ;;  %v3624_v52 = vmul.f32 %v9769_v31, %v9071_v35 }
 0x474   : > { %v9115_v42 = vpop.permute.xlu0 %3699  ;;  %v2838_v28 = vadd.f32 %v10106_v60, %v2638_v25  ;;  %v2874_v1 = vmul.f32 %v6992_v29, %v10108_v12  ;;  %v2837_v7 = vadd.f32 %v10109_v16, %v2637_v48  ;;  %vm4781_vm6 = vcmp.lt.s32.totalorder %v4749_v44, 512 }
 0x475   : > { %v5203_v55 = vpop.f32.mrf.mxu0  ;;  %v2911_v57 = vadd.f32 %v2879_v5, %v9039_v4  ;;  %v2873_v25 = vmul.f32 %v6992_v29, %v10110_v19  ;;  %v3823_v31 = vmul.f32 %v9773_v33, %v9063_v38  ;;  %v10112_v5 = vld [vmem:[#allocation157_spill] sm:$0xff] }
 0x476   : > { %4682 = vst [vmem:[%s8818_s15 + $0x28] sm:$0xff] %v5203_v55  ;;  %3717 = vrot.lane.b32.xlu0 %v3623_v41, %s5952_s18  ;;  %v9126_v62 = vpop.permute.xlu1 %3899  ;;  %v4813_v61 = vmul.f32 %v5203_v55, %v5203_v55  ;;  %v2906_v55 = vadd.f32 %v2874_v1, %v2838_v28 }
 0x477   : > { %v4538_v14 = vpop.f32.mrf.mxu0  ;;  %4119 = vrot.lane.b32.xlu1 %v4024_v10, %s5951_s9  ;;  %v2905_v44 = vadd.f32 %v2873_v25, %v2837_v7 }
 0x478   : > { %4681 = vst [vmem:[%s8818_s15 + $0x20] sm:$0xff] %v4538_v14  ;;  %v4812_v3 = vmul.f32 %v4538_v14, %v4538_v14  ;;  %v2578_v0 = vpop.permute.xlu0 %2577  ;;  %v4845_v13 = vsel %vm4781_vm6, %v4813_v61, 0.0  ;;  %v10113_v61 = vld [vmem:[#allocation53_spill] sm:$0xff] }
 0x479   : > { %v2645_v41 = vadd.f32 %v2578_v0, %v2445_v21  ;;  %v10111_v21 = vld [vmem:[#allocation37_spill] sm:$0xff]  ;;  %v3105_v28 = vadd.f32 %v10112_v5, %v2905_v44  ;;  %v4023_v0 = vmul.f32 %v9775_v34, %v9063_v38  ;;  %v10117_v44 = vld [vmem:[#allocation184_spill] sm:$0xff] }
 0x47a   : > { %v4844_v45 = vsel %vm4780_vm5, %v4812_v3, 0.0  ;;  %3719 = vrot.lane.b32.xlu0 %v3624_v52, %s5952_s18  ;;  %v3042_v22 = vpop.permute.xlu1 %3041  ;;  %v3106_v48 = vadd.f32 %v10111_v21, %v2906_v55  ;;  %v1548_v3 = vmul.f32 %v9922_v23, %v10113_v61  ;;  %v10114_v52 = vld [vmem:[#allocation92_spill] sm:$0xff]  ;;  %v10116_v55 = vld [vmem:[#allocation66_spill] sm:$0xff]  ;;  %v3541_v21 = vmul.f32 %v7290_v18, %v10117_v44  ;;  %v10125_v44 = vld [vmem:[#allocation111_spill] sm:$0xff]  ;;  %s4916_s18 = scalar_lea.sflag [#allocation4], %s6149_s22 }
 0x47b   : > { %v4875_v49 = vadd.f32 %v9018_v53, %v4844_v45  ;;  %v3111_v10 = vadd.f32 %v3042_v22, %v2911_v57  ;;  %v3305_v16 = vadd.f32 %v10114_v52, %v3105_v28  ;;  %v10115_v45 = vld [vmem:[#allocation117_spill] sm:$0xff]  ;;  %v10119_v28 = vld [vmem:[#allocation116_spill] sm:$0xff] }
 0x47c   : > { %v3898_v60 = vpop.permute.xlu0 %3897  ;;  %v3306_v53 = vadd.f32 %v8829_v2, %v3106_v48  ;;  %v1780_v22 = vadd.f32 %v10115_v45, %v1548_v3  ;;  %v10121_v3 = vld [vmem:[#allocation122_spill] sm:$0xff]  ;;  %v4717_v45 = vadd.s32 48, %v10017_v15 }
 0x47d   : > { %v9149_v4 = vadd.f32 %v4875_v49, %v4845_v13  ;;  %v3505_v25 = vadd.f32 %v8875_v56, %v3305_v16  ;;  %v3542_v49 = vmul.f32 %v7290_v18, %v10116_v55 }
 0x47e   : > { %v5672_v14 = vpop.eup %5671  ;;  %3917 = vrot.lane.b32.xlu0 %v3823_v31, %s5950_s30  ;;  %v9152_v47 = vpop.permute.xlu1 %3701  ;;  %v3506_v7 = vadd.f32 %v8864_v40, %v3306_v53  ;;  %v1980_v53 = vadd.f32 %v10119_v28, %v1780_v22  ;;  %s9392_s30 = scalar_lea.hbm %s9468_s6, %s5150_s1 }
 0x47f   : > { %v4306_v12 = vmul.f32 0.5, %v5672_v14  ;;  %v10118_v14 = vld [vmem:[#allocation45_spill] sm:$0xff] }
 0x480   : > { %v5674_v1 = vpop.eup %5673  ;;  %v9158_v33 = vpop.permute.xlu0 %3239  ;;  %v3574_v40 = vadd.f32 %v3542_v49, %v3506_v7  ;;  %v1547_v5 = vmul.f32 %v9922_v23, %v10118_v14  ;;  %v10122_v23 = vld [vmem:[#allocation58_spill] sm:$0xff]  ;;  %v4750_v14 = vadd.s32 %v8773_v36, %v4717_v45 }
 0x481   : > { %v4305_v57 = vmul.f32 0.5, %v5674_v1  ;;  %v4338_v19 = vadd.f32 0.5, %v4306_v12  ;;  %v10120_v1 = vld [vmem:[#allocation104_spill] sm:$0xff]  ;;  %v2216_v7 = vmul.f32 %v9935_v30, %v10122_v23 }
 0x482   : > { %4117 = vrot.lane.b32.xlu0 %v4023_v0, %s5951_s9  ;;  %v2780_v2 = vpop.permute.xlu1 %2779  ;;  %v3774_v12 = vadd.f32 %v9115_v42, %v3574_v40  ;;  %v1779_v61 = vadd.f32 %v10120_v1, %v1547_v5  ;;  %v2180_v0 = vadd.f32 %v10121_v3, %v1980_v53  ;;  %vm4782_vm7 = vcmp.lt.s32.totalorder %v4750_v14, 512  ;;  %s4934_s9 = sshll.u32 %s8818_s15, 4  ;;  %s9395_s9 = int_to_ptr.vmem [resolvable:$true] %s4934_s9 }
 0x483   : > { %v9169_v13 = vadd.f32 %v2780_v2, %v2646_v27  ;;  %v4337_v31 = vadd.f32 0.5, %v4305_v57  ;;  %v3573_v27 = vadd.f32 %v3541_v21, %v3505_v25  ;;  %s5836_s20 = scalar_lea.vmem %s9395_s9, 4096  ;;  %p5843_p3 = scmp.lt.s32.totalorder %s9395_s9, %s5841_s17 }
 0x484   : > { %v2778_v34 = vpop.permute.xlu0 %2777  ;;  %v3974_v16 = vadd.f32 %v9126_v62, %v3774_v12  ;;  %v2248_v25 = vadd.f32 %v2216_v7, %v2180_v0  ;;  %v4718_v62 = vadd.s32 56, %v10017_v15  ;;  %p5837_p4 = scmp.ne.s32.totalorder %s9395_s9, %s5836_s20  ;;  %p5844_p9 = scmp.lt.s32.totalorder %s5842_s19, %s5836_s20 }
 0x485   : > { %v2845_v48 = vadd.f32 %v2778_v34, %v2645_v41  ;;  %5222 = vmatprep.mubr.msk.f32.mxu0 %vm4355_vm0, %v4337_v31  ;;  %v3773_v41 = vadd.f32 %v9001_v51, %v3573_v27  ;;  %v10124_v34 = vld [vmem:[#allocation155_spill] sm:$0xff]  ;;  %v10126_v27 = vld [vmem:[#allocation50_spill] sm:$0xff] }
 0x486   : > { %5223 = vmatmul.mubr.msk.f32.gmra.mxu0 %vm4355_vm0, %v4338_v19  ;;  %v9178_v56 = vpop.permute.xlu1 %3439  ;;  %v10123_v19 = vld [vmem:[#allocation105_spill] sm:$0xff]  ;;  %v2880_v51 = vmul.f32 %v6992_v29, %v10124_v34  ;;  %v2215_v12 = vmul.f32 %v9935_v30, %v10126_v27  ;;  %v4751_v23 = vadd.s32 %v8773_v36, %v4718_v62  ;;  %p5838_p12 = pnand %p5837_p4, %p10131_p8  ;;  %p5845_p13 = por %p5844_p9, %p5843_p3 }
 0x487   : > { %v3973_v22 = vadd.f32 %v3898_v60, %v3773_v41  ;;  %v1979_v42 = vadd.f32 %v10123_v19, %v1779_v61  ;;  %v10127_v61 = vld [vmem:[#allocation121_spill] sm:$0xff] }
 0x488   : > { %v9183_v52 = vpop.permute.xlu0 %3437  ;;  %v2912_v53 = vadd.f32 %v2880_v51, %v9027_v17  ;;  %v2448_v3 = vadd.f32 %v10127_v61, %v2248_v25  ;;  %vm4783_vm8 = vcmp.lt.s32.totalorder %v4751_v23, 512  ;;  %p5839_p6 = pneg %p5838_p12 }
 0x489   : > { %v2179_v21 = vadd.f32 %v10125_v44, %v1979_v42  ;;  %v10128_v42 = vld [vmem:[#allocation112_spill] sm:$0xff] }
 0x48a   : > { %v4100_v57 = vpop.permute.xlu1 %4099  ;;  %p5846_p5 = pnand %p5845_p13, %p5839_p6 }
 0x48b   : > { %v4174_v2 = vadd.f32 %v4100_v57, %v3974_v16 }
 0x48c   : > { %v4098_v55 = vpop.permute.xlu0 %4097 }
 0x48d   : > { %v4212_v49 = vadd.f32 %v9085_v39, %v4174_v2  ;;  %v4173_v31 = vadd.f32 %v4098_v55, %v3973_v22 }
 0x48e   : > { %v3242_v40 = vpop.permute.xlu1 %3241 }
 0x48f   : > { %v4244_v60 = vmul.f32 0.5, %v4212_v49  ;;  %v4211_v5 = vadd.f32 %v9085_v39, %v4173_v31  ;;  %v9198_v28 = vadd.f32 %v3242_v40, %v3111_v10  ;;  %v2247_v10 = vadd.f32 %v2215_v12, %v2179_v21 }
 0x490   : > { %v3044_v1 = vpop.permute.xlu0 %3043  ;;  %v2881_v49 = vmul.f32 %v6992_v29, %v8650_v58  ;;  %v3508_v58 = vadd.f32 %v9047_v46, %v9016_v43 }
 0x491   : > { %5675 = vtanh.f32 %v4244_v60  ;;  %v4243_v0 = vmul.f32 0.5, %v4211_v5  ;;  %v9204_v41 = vadd.f32 %v3044_v1, %v2912_v53  ;;  %v5206_v16 = vpop.f32.mrf.mxu0  ;;  %v2447_v25 = vadd.f32 %v10128_v42, %v2247_v10 }
 0x492   : > { %4684 = vst [vmem:[%s8818_s15 + $0x38] sm:$0xff] %v5206_v16  ;;  %v2584_v7 = vpop.permute.xlu1 %2583  ;;  %v4815_v45 = vmul.f32 %v5206_v16, %v5206_v16  ;;  %v2913_v62 = vadd.f32 %v2881_v49, %v2845_v48  ;;  %v4720_v48 = vadd.s32 72, %v10017_v15  ;;  %v10129_v16 = vld [vmem:[#allocation95_spill] sm:$0xff] }
 0x493   : > { %5677 = vtanh.f32 %v4243_v0  ;;  %v4548_v57 = vpop.f32.mrf.mxu0  ;;  %v2648_v17 = vadd.f32 %v2584_v7, %v2448_v3  ;;  %v3507_v0 = vadd.f32 %v9056_v6, %v8913_v37  ;;  %v3544_v23 = vmul.f32 %v7290_v18, %v10129_v16 }
 0x494   : > { %4683 = vst [vmem:[%s8818_s15 + $0x30] sm:$0xff] %v4548_v57  ;;  %v4814_v30 = vmul.f32 %v4548_v57, %v4548_v57  ;;  %v3704_v22 = vpop.permute.xlu0 %3703  ;;  %v4847_v31 = vsel %vm4783_vm8, %v4815_v45, 0.0  ;;  %v4753_v6 = vadd.s32 %v8773_v36, %v4720_v48  ;;  %v3509_v16 = vadd.f32 %v9183_v52, %v9098_v8 }
 0x495   : > { %v3576_v46 = vadd.f32 %v3544_v23, %v3508_v58  ;;  %v3546_v52 = vmul.f32 %v7290_v18, %v8720_v54 }
 0x496   : > { %v4846_v2 = vsel %vm4782_vm7, %v4814_v30, 0.0  ;;  %v3904_v19 = vpop.permute.xlu1 %3903  ;;  %v10130_v30 = vld [vmem:[#allocation75_spill] sm:$0xff]  ;;  %vm4785_vm10 = vcmp.lt.s32.totalorder %v4753_v6, 512 }
 0x497   : > { %v4877_v55 = vadd.f32 %v9149_v4, %v4846_v2  ;;  %v4719_v4 = vadd.s32 64, %v10017_v15  ;;  %v3543_v43 = vmul.f32 %v7290_v18, %v10130_v30 }
 0x498   : > { %v2582_v34 = vpop.permute.xlu0 %2581 }
 0x499   : > { %v2647_v51 = vadd.f32 %v2582_v34, %v2447_v25  ;;  %v4878_v44 = vadd.f32 %v4877_v55, %v4847_v31  ;;  %v4752_v45 = vadd.s32 %v8773_v36, %v4719_v4  ;;  %v3575_v42 = vadd.f32 %v3543_v43, %v3507_v0 }
 0x49a   : > { %v3046_v21 = vpop.permute.xlu1 %3045  ;;  %v3776_v25 = vadd.f32 %v3704_v22, %v3576_v46 }
 0x49b   : > { %v9213_v40 = vadd.f32 %v3046_v21, %v2913_v62  ;;  %vm4784_vm9 = vcmp.lt.s32.totalorder %v4752_v45, 512  ;;  %v3775_v31 = vadd.f32 %v9152_v47, %v3575_v42 }
 0x49c   : > { %v3902_v14 = vpop.permute.xlu0 %3901  ;;  %v3976_v34 = vadd.f32 %v3904_v19, %v3776_v25 }
 0x49e   : > { %v5676_v60 = vpop.eup %5675  ;;  %v3706_v5 = vpop.permute.xlu1 %3705 }
 0x49f   : > { %v4308_v53 = vmul.f32 0.5, %v5676_v60  ;;  %v3975_v60 = vadd.f32 %v3902_v14, %v3775_v31 }
 0x4a0   : > { %v5678_v27 = vpop.eup %5677  ;;  %v9215_v12 = vpop.permute.xlu0 %3243 }
 0x4a1   : > { %v4307_v1 = vmul.f32 0.5, %v5678_v27  ;;  %v4340_v3 = vadd.f32 0.5, %v4308_v53 }
 0x4a2   : > { %v2784_v61 = vpop.permute.xlu1 %2783 }
 0x4a3   : > { %v9225_v7 = vadd.f32 %v2784_v61, %v2648_v17  ;;  %v4339_v10 = vadd.f32 0.5, %v4307_v1 }
 0x4a4   : > { %v2782_v57 = vpop.permute.xlu0 %2781 }
 0x4a5   : > { %v9230_v2 = vadd.f32 %v2782_v57, %v2647_v51  ;;  %5225 = vmatprep.mubr.msk.f32.mxu0 %vm4355_vm0, %v4339_v10  ;;  %v3310_v57 = vadd.f32 %v9158_v33, %v9107_v24 }
 0x4a6   : > { %v5209_v37 = vpop.f32.mrf.mxu0  ;;  %5226 = vmatmul.mubr.msk.f32.gmra.mxu0 %vm4355_vm0, %v4340_v3  ;;  %v9235_v17 = vpop.permute.xlu1 %3443 }
 0x4a7   : > { %4686 = vst [vmem:[%s8818_s15 + $0x48] sm:$0xff] %v5209_v37  ;;  %v4817_v51 = vmul.f32 %v5209_v37, %v5209_v37  ;;  %v3510_v43 = vadd.f32 %v9178_v56, %v3310_v57 }
 0x4a8   : > { %v9238_v55 = vpop.permute.xlu0 %3441  ;;  %v4558_v49 = vpop.f32.mrf.mxu0 }
 0x4a9   : > { %4685 = vst [vmem:[%s8818_s15 + $0x40] sm:$0xff] %v4558_v49  ;;  %v4816_v62 = vmul.f32 %v4558_v49, %v4558_v49  ;;  %v4849_v1 = vsel %vm4785_vm10, %v4817_v51, 0.0  ;;  %v3578_v42 = vadd.f32 %v3546_v52, %v3510_v43 }
 0x4aa   : > { %v4104_v21 = vpop.permute.xlu1 %4103 }
 0x4ab   : > { %v4848_v53 = vsel %vm4784_vm9, %v4816_v62, 0.0  ;;  %v4176_v27 = vadd.f32 %v4104_v21, %v3976_v34  ;;  %v4721_v62 = vadd.s32 80, %v10017_v15 }
 0x4ac   : > { %v4879_v4 = vadd.f32 %v4878_v44, %v4848_v53  ;;  %v4102_v58 = vpop.permute.xlu0 %4101  ;;  %v3545_v44 = vmul.f32 %v7290_v18, %v8675_v26  ;;  %v4722_v53 = vadd.s32 88, %v10017_v15 }
 0x4ad   : > { %v4214_v22 = vadd.f32 %v9085_v39, %v4176_v27  ;;  %v4175_v61 = vadd.f32 %v4102_v58, %v3975_v60 }
 0x4ae   : > { %v3906_v48 = vpop.permute.xlu1 %3905  ;;  %v4880_v3 = vadd.f32 %v4879_v4, %v4849_v1  ;;  %v3577_v45 = vadd.f32 %v3545_v44, %v3509_v16  ;;  %v3312_v44 = vadd.f32 %v9215_v12, %v9204_v41 }
 0x4af   : > { %v4246_v0 = vmul.f32 0.5, %v4214_v22  ;;  %v4213_v47 = vadd.f32 %v9085_v39, %v4175_v61  ;;  %v4754_v22 = vadd.s32 %v8773_v36, %v4721_v62 }
 0x4b0   : > { %v9244_v19 = vpop.permute.xlu0 %3047  ;;  %v3777_v46 = vadd.f32 %v3706_v5, %v3577_v45  ;;  %v3512_v43 = vadd.f32 %v9235_v17, %v3312_v44  ;;  %v3511_v17 = vadd.f32 %v9238_v55, %v9198_v28 }
 0x4b1   : > { %5679 = vtanh.f32 %v4246_v0  ;;  %v4245_v14 = vmul.f32 0.5, %v4213_v47  ;;  %v4755_v0 = vadd.s32 %v8773_v36, %v4722_v53  ;;  %vm4786_vm11 = vcmp.lt.s32.totalorder %v4754_v22, 512 }
 0x4b2   : > { %v3908_v23 = vpop.permute.xlu1 %3907  ;;  %v3977_v8 = vadd.f32 %v3906_v48, %v3777_v46 }
 0x4b3   : > { %5681 = vtanh.f32 %v4245_v14  ;;  %vm4787_vm12 = vcmp.lt.s32.totalorder %v4755_v0, 512 }
 0x4b4   : > { %v3708_v10 = vpop.permute.xlu0 %3707 }
 0x4b5   : > { %v3778_v49 = vadd.f32 %v3708_v10, %v3578_v42  ;;  %v3548_v42 = vmul.f32 %v7290_v18, %v8924_v9 }
 0x4b6   : > { %v9252_v30 = vpop.permute.xlu1 %3445 }
 0x4b7   : > { %v3978_v54 = vadd.f32 %v3908_v23, %v3778_v49  ;;  %v3580_v12 = vadd.f32 %v3548_v42, %v3512_v43 }
 0x4b8   : > { %v9255_v37 = vpop.permute.xlu0 %3245 }
 0x4b9   : > { %v3313_v28 = vadd.f32 %v9255_v37, %v9213_v40  ;;  %v2884_v40 = vmul.f32 %v6992_v29, %v8915_v32 }
 0x4ba   : > { %v4106_v6 = vpop.permute.xlu1 %4105 }
 0x4bb   : > { %v4177_v26 = vadd.f32 %v4106_v6, %v3977_v8  ;;  %v3513_v44 = vadd.f32 %v9252_v30, %v3313_v28  ;;  %v4723_v30 = vadd.s32 96, %v10017_v15 }
 0x4bc   : > { %v9259_v25 = vpop.permute.xlu0 %3247 }
 0x4bd   : > { %v4215_v24 = vadd.f32 %v9085_v39, %v4177_v26 }
 0x4be   : > { %v5680_v33 = vpop.eup %5679  ;;  %v9262_v31 = vpop.permute.xlu1 %3447 }
 0x4bf   : > { %v4310_v34 = vmul.f32 0.5, %v5680_v33  ;;  %v4247_v56 = vmul.f32 0.5, %v4215_v24 }
 0x4c0   : > { %v5682_v5 = vpop.eup %5681  ;;  %v9264_v51 = vpop.permute.xlu0 %3049 }
 0x4c1   : > { %v4309_v21 = vmul.f32 0.5, %v5682_v5  ;;  %5683 = vtanh.f32 %v4247_v56  ;;  %v4342_v27 = vadd.f32 0.5, %v4310_v34 }
 0x4c2   : > { %v4108_v60 = vpop.permute.xlu1 %4107 }
 0x4c3   : > { %v4178_v4 = vadd.f32 %v4108_v60, %v3978_v54  ;;  %v4341_v58 = vadd.f32 0.5, %v4309_v21  ;;  %v3547_v21 = vmul.f32 %v7290_v18, %v8775_v11 }
 0x4c4   : > { %v3710_v1 = vpop.permute.xlu0 %3709 }
 0x4c5   : > { %v4216_v61 = vadd.f32 %v9085_v39, %v4178_v4  ;;  %5228 = vmatprep.mubr.msk.f32.mxu0 %vm4355_vm0, %v4341_v58  ;;  %v3579_v58 = vadd.f32 %v3547_v21, %v3511_v17 }
 0x4c6   : > { %v5212_v48 = vpop.f32.mrf.mxu0  ;;  %5229 = vmatmul.mubr.msk.f32.gmra.mxu0 %vm4355_vm0, %v4342_v27  ;;  %v3910_v47 = vpop.permute.xlu1 %3909 }
 0x4c7   : > { %v4248_v16 = vmul.f32 0.5, %v4216_v61  ;;  %4688 = vst [vmem:[%s8818_s15 + $0x58] sm:$0xff] %v5212_v48  ;;  %v4819_v10 = vmul.f32 %v5212_v48, %v5212_v48  ;;  %v3779_v61 = vadd.f32 %v3710_v1, %v3579_v58 }
 0x4c8   : > { %v3052_v14 = vpop.permute.xlu0 %3051  ;;  %v4568_v23 = vpop.f32.mrf.mxu0 }
 0x4c9   : > { %5685 = vtanh.f32 %v4248_v16  ;;  %4687 = vst [vmem:[%s8818_s15 + $0x50] sm:$0xff] %v4568_v23  ;;  %v4818_v57 = vmul.f32 %v4568_v23, %v4568_v23  ;;  %v4851_v6 = vsel %vm4787_vm12, %v4819_v10, 0.0  ;;  %v3979_v16 = vadd.f32 %v3910_v47, %v3779_v61 }
 0x4ca   : > { %v3912_v45 = vpop.permute.xlu1 %3911  ;;  %v2916_v10 = vadd.f32 %v2884_v40, %v9225_v7  ;;  %v4724_v7 = vadd.s32 104, %v10017_v15 }
 0x4cb   : > { %v4850_v46 = vsel %vm4786_vm11, %v4818_v57, 0.0 }
 0x4cc   : > { %v4881_v8 = vadd.f32 %v4880_v3, %v4850_v46  ;;  %v3712_v52 = vpop.permute.xlu0 %3711  ;;  %v2882_v3 = vmul.f32 %v6992_v29, %v8762_v50  ;;  %v3116_v43 = vadd.f32 %v3052_v14, %v2916_v10  ;;  %v4757_v17 = vadd.s32 %v8773_v36, %v4724_v7 }
 0x4cd   : > { %v3780_v34 = vadd.f32 %v3712_v52, %v3580_v12 }
 0x4ce   : > { %v5684_v26 = vpop.eup %5683  ;;  %v3714_v49 = vpop.permute.xlu1 %3713  ;;  %v9280_v24 = vadd.f32 %v4881_v8, %v4851_v6  ;;  %v2914_v62 = vadd.f32 %v2882_v3, %v9169_v13  ;;  %vm4789_vm14 = vcmp.lt.s32.totalorder %v4757_v17, 512 }
 0x4cf   : > { %v4311_v41 = vmul.f32 0.5, %v5684_v26  ;;  %v3980_v54 = vadd.f32 %v3912_v45, %v3780_v34  ;;  %v4756_v34 = vadd.s32 %v8773_v36, %v4723_v30 }
 0x4d0   : > { %v9282_v33 = vpop.permute.xlu0 %3249  ;;  %v3114_v27 = vadd.f32 %v9244_v19, %v2914_v62 }
 0x4d1   : > { %v4343_v56 = vadd.f32 0.5, %v4311_v41  ;;  %vm4788_vm13 = vcmp.lt.s32.totalorder %v4756_v34, 512 }
 0x4d2   : > { %v3452_v5 = vpop.permute.xlu1 %3451  ;;  %v3314_v55 = vadd.f32 %v9259_v25, %v3114_v27  ;;  %v3550_v25 = vmul.f32 %v7290_v18, %v8948_v59  ;;  %v2883_v59 = vmul.f32 %v6992_v29, %v8872_v63 }
 0x4d3   : > { %5231 = vmatprep.mubr.msk.f32.mxu0 %vm4355_vm0, %v4343_v56 }
 0x4d4   : > { %v3252_v9 = vpop.permute.xlu0 %3251  ;;  %v3514_v11 = vadd.f32 %v9262_v31, %v3314_v55  ;;  %v3549_v31 = vmul.f32 %v7290_v18, %v8933_v20  ;;  %v2915_v41 = vadd.f32 %v2883_v59, %v9230_v2  ;;  %v3552_v2 = vmul.f32 %v7290_v18, %v9071_v35 }
 0x4d5   : > { %v3316_v20 = vadd.f32 %v3252_v9, %v3116_v43  ;;  %v3551_v35 = vmul.f32 %v7290_v18, %v9063_v38  ;;  %v4725_v59 = vadd.s32 112, %v10017_v15 }
 0x4d6   : > { %v5686_v60 = vpop.eup %5685  ;;  %v4112_v53 = vpop.permute.xlu1 %4111  ;;  %v3582_v57 = vadd.f32 %v3550_v25, %v3514_v11  ;;  %v3581_v46 = vadd.f32 %v3549_v31, %v3513_v44  ;;  %v3115_v29 = vadd.f32 %v9264_v51, %v2915_v41 }
 0x4d7   : > { %v4312_v4 = vmul.f32 0.5, %v5686_v60  ;;  %v4180_v22 = vadd.f32 %v4112_v53, %v3980_v54  ;;  %v3516_v63 = vadd.f32 %v3452_v5, %v3316_v20 }
 0x4d8   : > { %v3450_v50 = vpop.permute.xlu0 %3449  ;;  %v3781_v6 = vadd.f32 %v3714_v49, %v3581_v46  ;;  %v3315_v21 = vadd.f32 %v9282_v33, %v3115_v29 }
 0x4d9   : > { %v4218_v13 = vadd.f32 %v9085_v39, %v4180_v22  ;;  %v4344_v48 = vadd.f32 0.5, %v4312_v4  ;;  %v3584_v58 = vadd.f32 %v3552_v2, %v3516_v63 }
 0x4da   : > { %v3916_v0 = vpop.permute.xlu1 %3915  ;;  %v3515_v27 = vadd.f32 %v3450_v50, %v3315_v21 }
 0x4db   : > { %5232 = vmatmul.mubr.msk.f32.gmra.mxu0 %vm4355_vm0, %v4344_v48  ;;  %v4250_v19 = vmul.f32 0.5, %v4218_v13 }
 0x4dc   : > { %v4110_v23 = vpop.permute.xlu0 %4109  ;;  %v3583_v48 = vadd.f32 %v3551_v35, %v3515_v27 }
 0x4dd   : > { %v4179_v37 = vadd.f32 %v4110_v23, %v3979_v16  ;;  %5687 = vtanh.f32 %v4250_v19 }
 0x4de   : > { %v4114_v1 = vpop.permute.xlu1 %4113 }
 0x4df   : > { %v4217_v47 = vadd.f32 %v9085_v39, %v4179_v37 }
 0x4e0   : > { %v3716_v45 = vpop.permute.xlu0 %3715 }
 0x4e1   : > { %v4249_v32 = vmul.f32 0.5, %v4217_v47  ;;  %v3782_v8 = vadd.f32 %v3716_v45, %v3582_v57 }
 0x4e2   : > { %v4116_v52 = vpop.permute.xlu1 %4115 }
 0x4e3   : > { %5689 = vtanh.f32 %v4249_v32  ;;  %v3982_v42 = vadd.f32 %v3916_v0, %v3782_v8 }
 0x4e4   : > { %v3914_v26 = vpop.permute.xlu0 %3913 }
 0x4e5   : > { %v4182_v12 = vadd.f32 %v4116_v52, %v3982_v42  ;;  %v3981_v14 = vadd.f32 %v3914_v26, %v3781_v6  ;;  %v4726_v52 = vadd.s32 120, %v10017_v15 }
 0x4e6   : > { %v5215_v56 = vpop.f32.mrf.mxu0  ;;  %v3920_v51 = vpop.permute.xlu1 %3919 }
 0x4e7   : > { %v4220_v3 = vadd.f32 %v9085_v39, %v4182_v12  ;;  %v4181_v49 = vadd.f32 %v4114_v1, %v3981_v14  ;;  %4690 = vst [vmem:[%s8818_s15 + $0x68] sm:$0xff] %v5215_v56  ;;  %v4821_v53 = vmul.f32 %v5215_v56, %v5215_v56  ;;  %v4759_v20 = vadd.s32 %v8773_v36, %v4726_v52 }
 0x4e8   : > { %v3718_v9 = vpop.permute.xlu0 %3717  ;;  %v4578_v62 = vpop.f32.mrf.mxu0 }
 0x4e9   : > { %v4252_v54 = vmul.f32 0.5, %v4220_v3  ;;  %v4219_v60 = vadd.f32 %v9085_v39, %v4181_v49  ;;  %4689 = vst [vmem:[%s8818_s15 + $0x60] sm:$0xff] %v4578_v62  ;;  %v4820_v5 = vmul.f32 %v4578_v62, %v4578_v62  ;;  %v4853_v13 = vsel %vm4789_vm14, %v4821_v53, 0.0 }
 0x4ea   : > { %v5688_v55 = vpop.eup %5687  ;;  %v4120_v50 = vpop.permute.xlu1 %4119  ;;  %v3783_v40 = vadd.f32 %v3718_v9, %v3583_v48  ;;  %vm4791_vm1 = vcmp.lt.s32.totalorder %v4759_v20, 512  ;;  %v4727_v9 = vadd.s32 128, %v10017_v15  ;;  %v4728_v62 = vadd.s32 136, %v10017_v15 }
 0x4eb   : > { %5691 = vtanh.f32 %v4252_v54  ;;  %v4251_v4 = vmul.f32 0.5, %v4219_v60  ;;  %v4852_v22 = vsel %vm4788_vm13, %v4820_v5, 0.0  ;;  %v4314_v19 = vmul.f32 0.5, %v5688_v55 }
 0x4ec   : > { %v3720_v28 = vpop.permute.xlu0 %3719  ;;  %v4883_v33 = vadd.f32 %v9280_v24, %v4852_v22  ;;  %v4760_v2 = vadd.s32 %v8773_v36, %v4727_v9  ;;  %v4761_v54 = vadd.s32 %v8773_v36, %v4728_v62  ;;  %v4729_v22 = vadd.s32 144, %v10017_v15 }
 0x4ed   : > { %5693 = vtanh.f32 %v4251_v4  ;;  %v3784_v61 = vadd.f32 %v3720_v28, %v3584_v58  ;;  %v4346_v18 = vadd.f32 0.5, %v4314_v19  ;;  %v4730_v28 = vadd.s32 152, %v10017_v15 }
 0x4ee   : > { %v4884_v11 = vadd.f32 %v4883_v33, %v4853_v13  ;;  %vm4792_vm2 = vcmp.lt.s32.totalorder %v4760_v2, 512  ;;  %vm4793_vm3 = vcmp.lt.s32.totalorder %v4761_v54, 512  ;;  %v4762_v55 = vadd.s32 %v8773_v36, %v4729_v22 }
 0x4ef   : > { %v3984_v0 = vadd.f32 %v3920_v51, %v3784_v61  ;;  %v4763_v33 = vadd.s32 %v8773_v36, %v4730_v28  ;;  %v4739_v9 = vadd.s32 224, %v10017_v15 }
 0x4f0   : > { %v5690_v16 = vpop.eup %5689  ;;  %v3918_v23 = vpop.permute.xlu0 %3917 }
 0x4f1   : > { %v4313_v44 = vmul.f32 0.5, %v5690_v16  ;;  %v4184_v37 = vadd.f32 %v4120_v50, %v3984_v0  ;;  %v3983_v1 = vadd.f32 %v3918_v23, %v3783_v40  ;;  %vm4795_vm4 = vcmp.lt.s32.totalorder %v4763_v33, 512 }
 0x4f2   : > { %v4731_v50 = vadd.s32 160, %v10017_v15  ;;  %v4732_v23 = vadd.s32 168, %v10017_v15  ;;  %v4742_v33 = vadd.s32 248, %v10017_v15 }
 0x4f3   : > { %v4222_v25 = vadd.f32 %v9085_v39, %v4184_v37  ;;  %v4345_v10 = vadd.f32 0.5, %v4313_v44 }
 0x4f4   : > { %v4118_v31 = vpop.permute.xlu0 %4117  ;;  %v4764_v44 = vadd.s32 %v8773_v36, %v4731_v50  ;;  %v4765_v37 = vadd.s32 %v8773_v36, %v4732_v23  ;;  %v4775_v50 = vadd.s32 %v8773_v36, %v4742_v33 }
 0x4f5   : > { %v4254_v38 = vmul.f32 0.5, %v4222_v25  ;;  %v4183_v24 = vadd.f32 %v4118_v31, %v3983_v1  ;;  %5234 = vmatprep.mubr.msk.f32.mxu0 %vm4355_vm0, %v4345_v10 }
 0x4f6   : > { %5235 = vmatmul.mubr.msk.f32.gmra.mxu0 %vm4355_vm0, %v4346_v18  ;;  %vm4796_vm5 = vcmp.lt.s32.totalorder %v4764_v44, 512  ;;  %vm4797_vm6 = vcmp.lt.s32.totalorder %v4765_v37, 512 }
 0x4f7   : > { %v4221_v47 = vadd.f32 %v9085_v39, %v4183_v24  ;;  %5695 = vtanh.f32 %v4254_v38  ;;  %v4758_v39 = vadd.s32 %v8773_v36, %v4725_v59 }
 0x4f8   : > { %v5692_v57 = vpop.eup %5691 }
 0x4f9   : > { %v4253_v45 = vmul.f32 0.5, %v4221_v47  ;;  %v4316_v43 = vmul.f32 0.5, %v5692_v57  ;;  %vm4790_vm15 = vcmp.lt.s32.totalorder %v4758_v39, 512 }
 0x4fa   : > { %v5694_v30 = vpop.eup %5693 }
 0x4fb   : > { %5697 = vtanh.f32 %v4253_v45  ;;  %v4315_v46 = vmul.f32 0.5, %v5694_v30  ;;  %v4348_v8 = vadd.f32 0.5, %v4316_v43  ;;  %v4733_v43 = vadd.s32 176, %v10017_v15 }
 0x4fd   : > { %v4347_v32 = vadd.f32 0.5, %v4315_v46  ;;  %v4766_v46 = vadd.s32 %v8773_v36, %v4733_v43 }
 0x4ff   : > { %5237 = vmatprep.mubr.msk.f32.mxu0 %vm4355_vm0, %v4347_v32  ;;  %v4734_v32 = vadd.s32 184, %v10017_v15  ;;  %vm4798_vm7 = vcmp.lt.s32.totalorder %v4766_v46, 512 }
 0x500   : > { %5238 = vmatmul.mubr.msk.f32.gmra.mxu0 %vm4355_vm0, %v4348_v8  ;;  %v4735_v8 = vadd.s32 192, %v10017_v15 }
 0x501   : > { %v4767_v39 = vadd.s32 %v8773_v36, %v4734_v32 }
 0x503   : > { %vm4799_vm8 = vcmp.lt.s32.totalorder %v4767_v39, 512 }
 0x504   : > { %v5696_v7 = vpop.eup %5695 }
 0x505   : > { %v4318_v41 = vmul.f32 0.5, %v5696_v7  ;;  %v4768_v7 = vadd.s32 %v8773_v36, %v4735_v8 }
 0x506   : > { %v5218_v6 = vpop.f32.mrf.mxu0 }
 0x507   : > { %4692 = vst [vmem:[%s8818_s15 + $0x78] sm:$0xff] %v5218_v6  ;;  %v4823_v14 = vmul.f32 %v5218_v6, %v5218_v6  ;;  %v4350_v63 = vadd.f32 0.5, %v4318_v41  ;;  %vm4800_vm9 = vcmp.lt.s32.totalorder %v4768_v7, 512 }
 0x508   : > { %v5698_v42 = vpop.eup %5697  ;;  %v4588_v26 = vpop.f32.mrf.mxu0 }
 0x509   : > { %v4317_v12 = vmul.f32 0.5, %v5698_v42  ;;  %4691 = vst [vmem:[%s8818_s15 + $0x70] sm:$0xff] %v4588_v26  ;;  %v4822_v34 = vmul.f32 %v4588_v26, %v4588_v26  ;;  %v4855_v3 = vsel %vm4791_vm1, %v4823_v14, 0.0  ;;  %v4736_v42 = vadd.s32 200, %v10017_v15 }
 0x50a   : > { %v4737_v26 = vadd.s32 208, %v10017_v15  ;;  %vm4807_vm1 = vcmp.lt.s32.totalorder %v4775_v50, 512 }
 0x50b   : > { %v4854_v56 = vsel %vm4790_vm15, %v4822_v34, 0.0  ;;  %v4349_v17 = vadd.f32 0.5, %v4317_v12  ;;  %v4769_v34 = vadd.s32 %v8773_v36, %v4736_v42 }
 0x50c   : > { %v4885_v29 = vadd.f32 %v4884_v11, %v4854_v56  ;;  %v4770_v56 = vadd.s32 %v8773_v36, %v4737_v26 }
 0x50d   : > { %5240 = vmatprep.mubr.msk.f32.mxu0 %vm4355_vm0, %v4349_v17  ;;  %vm4801_vm10 = vcmp.lt.s32.totalorder %v4769_v34, 512 }
 0x50e   : > { %5241 = vmatmul.mubr.msk.f32.gmra.mxu0 %vm4355_vm0, %v4350_v63  ;;  %v4886_v49 = vadd.f32 %v4885_v29, %v4855_v3  ;;  %vm4794_vm0 = vcmp.lt.s32.totalorder %v4762_v55, 512  ;;  %v4738_v3 = vadd.s32 216, %v10017_v15  ;;  %vm4802_vm11 = vcmp.lt.s32.totalorder %v4770_v56, 512 }
 0x50f   : > { %v4741_v55 = vadd.s32 240, %v10017_v15 }
 0x526   : > { %v5221_v21 = vpop.f32.mrf.mxu0 }
 0x527   : > { %4694 = vst [vmem:[%s8818_s15 + $0x88] sm:$0xff] %v5221_v21  ;;  %v4825_v53 = vmul.f32 %v5221_v21, %v5221_v21 }
 0x528   : > { %v4598_v60 = vpop.f32.mrf.mxu0 }
 0x529   : > { %4693 = vst [vmem:[%s8818_s15 + $0x80] sm:$0xff] %v4598_v60  ;;  %v4824_v51 = vmul.f32 %v4598_v60, %v4598_v60  ;;  %v4857_v4 = vsel %vm4793_vm3, %v4825_v53, 0.0  ;;  %v4771_v60 = vadd.s32 %v8773_v36, %v4738_v3  ;;  %v4772_v53 = vadd.s32 %v8773_v36, %v4739_v9 }
 0x52b   : > { %v4856_v5 = vsel %vm4792_vm2, %v4824_v51, 0.0  ;;  %vm4803_vm12 = vcmp.lt.s32.totalorder %v4771_v60, 512  ;;  %vm4804_vm13 = vcmp.lt.s32.totalorder %v4772_v53, 512 }
 0x52c   : > { %v4887_v27 = vadd.f32 %v4886_v49, %v4856_v5 }
 0x52e   : > { %v4888_v58 = vadd.f32 %v4887_v27, %v4857_v4  ;;  %v4740_v4 = vadd.s32 232, %v10017_v15 }
 0x546   : > { %v5224_v35 = vpop.f32.mrf.mxu0 }
 0x547   : > { %4696 = vst [vmem:[%s8818_s15 + $0x98] sm:$0xff] %v5224_v35  ;;  %v4827_v13 = vmul.f32 %v5224_v35, %v5224_v35  ;;  %v4773_v35 = vadd.s32 %v8773_v36, %v4740_v4 }
 0x548   : > { %v4608_v61 = vpop.f32.mrf.mxu0 }
 0x549   : > { %4695 = vst [vmem:[%s8818_s15 + $0x90] sm:$0xff] %v4608_v61  ;;  %v4826_v48 = vmul.f32 %v4608_v61, %v4608_v61  ;;  %v4859_v16 = vsel %vm4795_vm4, %v4827_v13, 0.0  ;;  %vm4805_vm14 = vcmp.lt.s32.totalorder %v4773_v35, 512 }
 0x54b   : > { %v4858_v0 = vsel %vm4794_vm0, %v4826_v48, 0.0 }
 0x54c   : > { %v4889_v11 = vadd.f32 %v4888_v58, %v4858_v0  ;;  %v4774_v0 = vadd.s32 %v8773_v36, %v4741_v55 }
 0x54e   : > { %v4890_v19 = vadd.f32 %v4889_v11, %v4859_v16  ;;  %vm4806_vm15 = vcmp.lt.s32.totalorder %v4774_v0, 512 }
 0x566   : > { %v5227_v40 = vpop.f32.mrf.mxu0 }
 0x567   : > { %4698 = vst [vmem:[%s8818_s15 + $0xa8] sm:$0xff] %v5227_v40  ;;  %v4829_v1 = vmul.f32 %v5227_v40, %v5227_v40 }
 0x568   : > { %v4618_v25 = vpop.f32.mrf.mxu0 }
 0x569   : > { %4697 = vst [vmem:[%s8818_s15 + $0xa0] sm:$0xff] %v4618_v25  ;;  %v4828_v10 = vmul.f32 %v4618_v25, %v4618_v25  ;;  %v4861_v38 = vsel %vm4797_vm6, %v4829_v1, 0.0 }
 0x56b   : > { %v4860_v31 = vsel %vm4796_vm5, %v4828_v10, 0.0 }
 0x56c   : > { %v4891_v18 = vadd.f32 %v4890_v19, %v4860_v31 }
 0x56e   : > { %v4892_v24 = vadd.f32 %v4891_v18, %v4861_v38 }
 0x586   : > { %v5230_v47 = vpop.f32.mrf.mxu0 }
 0x587   : > { %4700 = vst [vmem:[%s8818_s15 + $0xb8] sm:$0xff] %v5230_v47  ;;  %v4831_v41 = vmul.f32 %v5230_v47, %v5230_v47 }
 0x588   : > { %v4628_v57 = vpop.f32.mrf.mxu0 }
 0x589   : > { %4699 = vst [vmem:[%s8818_s15 + $0xb0] sm:$0xff] %v4628_v57  ;;  %v4830_v59 = vmul.f32 %v4628_v57, %v4628_v57  ;;  %v4863_v17 = vsel %vm4799_vm8, %v4831_v41, 0.0 }
 0x58b   : > { %v4862_v20 = vsel %vm4798_vm7, %v4830_v59, 0.0 }
 0x58c   : > { %v4893_v14 = vadd.f32 %v4892_v24, %v4862_v20 }
 0x58e   : > { %v4894_v63 = vadd.f32 %v4893_v14, %v4863_v17 }
 0x59b   : > { %v5233_v45 = vpop.f32.mrf.mxu0 }
 0x59c   : > { %4702 = vst [vmem:[%s8818_s15 + $0xc8] sm:$0xff] %v5233_v45  ;;  %v4833_v62 = vmul.f32 %v5233_v45, %v5233_v45 }
 0x59d   : > { %v4638_v30 = vpop.f32.mrf.mxu0 }
 0x59e   : > { %4701 = vst [vmem:[%s8818_s15 + $0xc0] sm:$0xff] %v4638_v30  ;;  %v4832_v12 = vmul.f32 %v4638_v30, %v4638_v30  ;;  %v4865_v51 = vsel %vm4801_vm10, %v4833_v62, 0.0 }
 0x5a0   : > { %v4864_v29 = vsel %vm4800_vm9, %v4832_v12, 0.0 }
 0x5a1   : > { %v4895_v21 = vadd.f32 %v4894_v63, %v4864_v29 }
 0x5a3   : > { %v4896_v27 = vadd.f32 %v4895_v21, %v4865_v51 }
 0x5b6   : > { %v5236_v52 = vpop.f32.mrf.mxu0 }
 0x5b7   : > { %4704 = vst [vmem:[%s8818_s15 + $0xd8] sm:$0xff] %v5236_v52  ;;  %v4835_v58 = vmul.f32 %v5236_v52, %v5236_v52 }
 0x5b8   : > { %v4648_v6 = vpop.f32.mrf.mxu0 }
 0x5b9   : > { %4703 = vst [vmem:[%s8818_s15 + $0xd0] sm:$0xff] %v4648_v6  ;;  %v4834_v2 = vmul.f32 %v4648_v6, %v4648_v6  ;;  %v4867_v61 = vsel %vm4803_vm12, %v4835_v58, 0.0 }
 0x5bb   : > { %v4866_v5 = vsel %vm4802_vm11, %v4834_v2, 0.0 }
 0x5bc   : > { %v4897_v28 = vadd.f32 %v4896_v27, %v4866_v5 }
 0x5be   : > { %v4898_v48 = vadd.f32 %v4897_v28, %v4867_v61 }
 0x5c0   : > { %v5239_v49 = vpop.f32.mrf.mxu0 }
 0x5c1   : > { %4706 = vst [vmem:[%s8818_s15 + $0xe8] sm:$0xff] %v5239_v49  ;;  %v4837_v11 = vmul.f32 %v5239_v49, %v5239_v49 }
 0x5c2   : > { %v4658_v54 = vpop.f32.mrf.mxu0 }
 0x5c3   : > { %4705 = vst [vmem:[%s8818_s15 + $0xe0] sm:$0xff] %v4658_v54  ;;  %v4836_v22 = vmul.f32 %v4658_v54, %v4658_v54  ;;  %v4869_v44 = vsel %vm4805_vm14, %v4837_v11, 0.0 }
 0x5c5   : > { %v4868_v13 = vsel %vm4804_vm13, %v4836_v22, 0.0 }
 0x5c6   : > { %v4899_v16 = vadd.f32 %v4898_v48, %v4868_v13 }
 0x5c8   : > { %v4900_v37 = vadd.f32 %v4899_v16, %v4869_v44 }
 0x5ce   : > { %v5242_v19 = vpop.f32.mrf.mxu0 }
 0x5cf   : > { %4708 = vst [vmem:[%s8818_s15 + $0xf8] sm:$0xff] %v5242_v19  ;;  %v4839_v40 = vmul.f32 %v5242_v19, %v5242_v19 }
 0x5d0   : > { %v4668_v23 = vpop.f32.mrf.mxu0 }
 0x5d1   : > { %4707 = vst [vmem:[%s8818_s15 + $0xf0] sm:$0xff] %v4668_v23  ;;  %v4838_v15 = vmul.f32 %v4668_v23, %v4668_v23  ;;  %v4871_v10 = vsel %vm4807_vm1, %v4839_v40, 0.0 }
 0x5d3   : > { %v4870_v25 = vsel %vm4806_vm15, %v4838_v15, 0.0 }
 0x5d4   : > { %v4901_v1 = vadd.f32 %v4900_v37, %v4870_v25 }
 0x5d6   : > { %v4902_v31 = vadd.f32 %v4901_v1, %v4871_v10 }
 0x5d8   : > { %4903 = vadd.xlane.f32.xlu0 %v4902_v31 }
 0x5d9   : > { %5849 = shalt.err (!%p5846_p5)
}
 0x5da   : > { %s5850_s13 = scalar_lea.hbm %s9392_s30, 4096  ;;  %s5854_s14 = scalar_lea.hbm %s9468_s6, 8192 }
 0x5db   : > { %p5851_p0 = scmp.ne.s32.totalorder %s9392_s30, %s5850_s13  ;;  %p5855_p10 = scmp.lt.s32.totalorder %s9392_s30, %s9468_s6 }
 0x5dc   : > { %p5856_p1 = scmp.lt.s32.totalorder %s5854_s14, %s5850_s13 }
 0x5dd   : > { %p5852_p7 = pnand %p5851_p0, %p10131_p8 }
 0x5de   : > { %p5857_p2 = por %p5856_p1, %p5855_p10 }
 0x5df   : > { %p5853_p11 = pneg %p5852_p7 }
 0x5e1   : > { %p5858_p4 = pnand %p5857_p2, %p5853_p11 }
 0x5e3   : > { %5861 = shalt.err (!%p5858_p4)
}
 0x5e4   : > { %s5954_s12 = smov 128   ;;  %s5955_s20 = smov 8  }
 0x5e5   : > { %5295 = dma.vmem_to_hbm [thread:$0]  (%p10131_p8), %s9395_s9, 4096, %s9392_s30, %s4916_s18, %s5954_s12, %s5954_s12, %s5955_s20  }
 0x5e6   : > { %s5107_s29 = sshll.u32 %s6149_s22, 3  ;;  %s5146_s13 = sshll.u32 %s6018_s28, 7 }
 0x5e7   : > { %s363_s17 = scalar_lea.vmem [#allocation12], %s5107_s29  ;;  %s4948_s15 = scalar_lea.hbm %s9469_s7, %s5146_s13 }
 0x5e8   : > { %s4950_s19 = sshll.u32 %s363_s17, 4  ;;  %s4921_s21 = scalar_lea.sflag [#allocation13], %s6149_s22  ;;  %s9422_s19 = int_to_ptr.vmem [resolvable:$true] %s4950_s19 }
 0x5e9   : > { %s5862_s14 = scalar_lea.vmem %s9422_s19, 128  ;;  %s5956_s1 = smov [#allocation12]  }
 0x5ea   : > { %p5863_p12 = scmp.ne.s32.totalorder %s9422_s19, %s5862_s14  ;;  %s5866_s28 = sshll.u32 %s5956_s1, 4  ;;  %s5867_s28 = int_to_ptr.vmem [resolvable:$false] %s5866_s28 }
 0x5eb   : > { %s5868_s16 = scalar_lea.vmem %s5867_s28, 256  ;;  %p5869_p9 = scmp.lt.s32.totalorder %s9422_s19, %s5867_s28 }
 0x5ec   : > { %p5864_p6 = pnand %p5863_p12, %p10131_p8  ;;  %p5870_p13 = scmp.lt.s32.totalorder %s5868_s16, %s5862_s14 }
 0x5ee   : > { %p5865_p3 = pneg %p5864_p6  ;;  %p5871_p5 = por %p5870_p13, %p5869_p9 }
 0x5f0   : > { %p5872_p0 = pnand %p5871_p5, %p5865_p3 }
 0x661   : > { %v4904_v36 = vpop.xlane.xlu0 %4903 }
 0x662   : > { %v4905_v18 = vrot.slane %v4904_v36, 4 }
 0x664   : > { %v4906_v38 = vadd.f32 %v4905_v18, %v4904_v36 }
 0x666   : > { %v4907_v24 = vrot.slane %v4906_v38, 2 }
 0x668   : > { %v4908_v47 = vadd.f32 %v4907_v24, %v4906_v38 }
 0x66a   : > { %v4909_v57 = vrot.slane %v4908_v47, 1 }
 0x66c   : > { %v4910_v45 = vadd.f32 %v4909_v57, %v4908_v47 }
 0x66e   : > { %5275 = vpush %v4910_v45 }
 0x69f   : > { %s5276_s30 = spop %5275 }
 0x6a0   : > { %v4912_v30 = vstv %s5276_s30 }
 0x6a1   : > { %4914 = vst [vmem:[%s363_s17] sm:$0xff] %v4912_v30 }
 0x6a2   : > { %5875 = shalt.err (!%p5872_p0)
}
 0x6a3   : > { %s5876_s12 = scalar_lea.hbm %s4948_s15, 128  ;;  %s5880_s29 = scalar_lea.hbm %s9469_s7, 256 }
 0x6a4   : > { %p5877_p7 = scmp.ne.s32.totalorder %s4948_s15, %s5876_s12  ;;  %p5881_p1 = scmp.lt.s32.totalorder %s4948_s15, %s9469_s7 }
 0x6a5   : > { %p5882_p2 = scmp.lt.s32.totalorder %s5880_s29, %s5876_s12 }
 0x6a6   : > { %p5878_p11 = pnand %p5877_p7, %p10131_p8 }
 0x6a7   : > { %p5883_p4 = por %p5882_p2, %p5881_p1 }
 0x6a8   : > { %p5879_p10 = pneg %p5878_p11 }
 0x6aa   : > { %p5884_p12 = pnand %p5883_p4, %p5879_p10 }
 0x6ac   : > { %5887 = shalt.err (!%p5884_p12)
}
 0x6ad   : > { %5296 = dma.vmem_to_hbm [thread:$0]  (%p10131_p8), %s9422_s19, 128, %s4948_s15, %s4921_s21  }
 0x6ae PF: > { %s4962_s30 = sand.u32 1, %s5926_s24   ;;  %p10132_p6 = scmp.ne.s32.totalorder %s9601_s8, 0 }
 0x6af   : > { %p10133_p3 = scmp.ge.s32.totalorder %s5938_s27, 2  ;;  %s4963_s9 = scalar_lea.sflag [#allocation4], %s4962_s30 }
 0x6b1   : > { %p5317_p9 = pnand %p10133_p3, %p10132_p6 }
 0x6b3   : > { %p5318_p13 = pneg %p5317_p9 }
 0x6b5   : > { %5917 = dma.done.wait (%p5318_p13), %s4963_s9, 4096  }
 0x6b6   : > { %5919 = vsyncadd (%p5318_p13), %s4963_s9, 4294963200  ;;  %s4972_s18 = scalar_lea.sflag [#allocation13], %s4962_s30 }
 0x6b7   : > { %5921 = dma.done.wait (%p5318_p13), %s4972_s18, 128  }
 0x6b8   : > { %5923 = vsyncadd (%p5318_p13), %s4972_s18, 4294967168  ;;  %p26_p8 = scmp.ge.s32.totalorder %s6091_s23, 4   ;;  %s10134_s24 = smov %s5930_s25 }
 0x6b9   : > { %s10135_s25 = smov %s5934_s26  ;;  %s10136_s26 = smov %s6100_s10 }
 0x6ba   : > { %s10137_s27 = smov %s6091_s23  ;;  %28 = sbr.rel (!%p26_p8) target bundleno = 11 (0xb), region = 122 }
 0x6bf   :  { %4977 = vsyncpa [#allocation3], 1 }
 0x6c0   :  { %4979 = vsyncpa [#allocation3 + $0x1], 1 }
 0x6c1   :  { %4980 = vsyncpa [#allocation6], 1 }
 0x6c2   :  { %4981 = vsyncpa [#allocation9], 1 }
 0x6c3   :  { %4982 = vsyncpa [#allocation4], 1 }
 0x6c4   :  { %4984 = vsyncpa [#allocation4 + $0x1], 1 }
 0x6c5   :  { %4985 = vsyncpa [#allocation13], 1 }
 0x6c6   :  { %4987 = vsyncpa [#allocation13 + $0x1], 1 }

</bundles_post_ra>
